<compile_context>
chip_gen: v5e
topology: v5e:2x2
jax: 0.10.0
libtpu: 0.0.40
codegen_flags: <defaults>
</compile_context>

<pallas_src>
import math

import jax
import jax.numpy as jnp
from jax.experimental import pallas as pl
from jax.experimental.pallas import tpu as pltpu

_HIGHEST = jax.lax.Precision.HIGHEST


def _round_up(n, m):
    return ((n + m - 1) // m) * m


# ------------------------------- fused kernel -------------------------------

def _make_fused_kernel(S, BP, num_layers, enc_hidden, dec_hidden):
    """Builds the fused autoencoder kernel body (closure over static sizes).

    BP = batch rows padded to a multiple of 8 (one sublane group); padded rows carry
    zeros and evolve independently through the row-wise LSTM math, then get sliced
    away by the wrapper.
    """
    L = num_layers
    SD = L * S                      # decoder sequence length (torch: repeat(S,1,1) on (L,B,H))
    He, Hd = enc_hidden, dec_hidden
    f32 = jnp.float32

    def cell(gates, c, H):
        # Two full-vreg EUP passes over all four gate groups, then lane-slice
        # i/f/g/o out (XLU work, off the single EUP slot).  PyTorch gate order: i,f,g,o.
        sg = jax.nn.sigmoid(gates)
        tg = jnp.tanh(gates)
        i = sg[:, 0 * H:1 * H]
        f = sg[:, 1 * H:2 * H]
        g = tg[:, 2 * H:3 * H]
        o = sg[:, 3 * H:4 * H]
        c = f * c + i * g
        h = o * jnp.tanh(c)
        return h, c

    def kernel(x_ref, *refs):
        # in refs: 3 weight refs per layer (wih, whh, b) — encoder layers, then decoder.
        w = [(refs[3 * k][...], refs[3 * k + 1][...], refs[3 * k + 2][...])
             for k in range(2 * L)]
        y_ref = refs[6 * L]

        zero_e = jnp.zeros((BP, He), f32)
        zero_d = jnp.zeros((BP, Hd), f32)

        # ------------------------------ encoder ------------------------------
        # Layer-0 input projection hoisted over ALL timesteps: one MXU matmul + bias,
        # kept as an SSA value and sliced per step (aligned 8-row groups).
        wih0, _, b0 = w[0]
        proj0 = jnp.dot(x_ref[...], wih0, precision=_HIGHEST,
                        preferred_element_type=f32) + b0

        h_e = [zero_e] * L
        c_e = [zero_e] * L

        # Wavefront structure: layer l @ step t depends only on (layer l-1 @ step t,
        # layer l @ step t-1), so independent recurrent chains overlap in the unrolled DAG.
        for t in range(S):
            below = None
            for l in range(L):
                wih, whh, b = w[l]
                if l == 0:
                    xproj = proj0[t * BP:(t + 1) * BP, :]
                else:
                    xproj = jnp.dot(below, wih, precision=_HIGHEST,
                                    preferred_element_type=f32) + b
                gates = xproj + jnp.dot(h_e[l], whh, precision=_HIGHEST,
                                        preferred_element_type=f32)
                h_e[l], c_e[l] = cell(gates, c_e[l], He)
                below = h_e[l]

        # ------------------------------ decoder ------------------------------
        # torch: encoded = last_hidden.repeat(S,1,1)  =>  encoded[t] = h_enc_last[t % L].
        # Only L distinct input rows -> stack them (tile-aligned concat) and do ONE
        # hoisted matmul + bias for the decoder layer-0 projection.
        wih_d0, _, b_d0 = w[L]
        last_h = jnp.concatenate(h_e, axis=0)                      # (L*BP, He)
        proj_d0 = jnp.dot(last_h, wih_d0, precision=_HIGHEST,
                          preferred_element_type=f32) + b_d0       # (L*BP, 4*Hd)

        h_d = [zero_d] * L
        c_d = [zero_d] * L
        for t in range(SD):
            below = None
            for l in range(L):
                wih, whh, b = w[L + l]
                if l == 0:
                    j = t % L
                    xproj = proj_d0[j * BP:(j + 1) * BP, :]
                else:
                    xproj = jnp.dot(below, wih, precision=_HIGHEST,
                                    preferred_element_type=f32) + b
                gates = xproj + jnp.dot(h_d[l], whh, precision=_HIGHEST,
                                        preferred_element_type=f32)
                h_d[l], c_d[l] = cell(gates, c_d[l], Hd)
                below = h_d[l]
            # Each step owns its own (8, Hd) sublane group -> aligned store to a
            # distinct tile, a pure leaf of the DAG (no read-modify-write chain).
            y_ref[t * BP:(t + 1) * BP, :] = h_d[L - 1].astype(y_ref.dtype)

    return kernel


# ---------------------------- weight prep (once) ----------------------------

def _prep_layer(w_ih, w_hh, b_ih, b_hh):
    """PyTorch layout -> kernel layout: (in, 4H), (H, 4H), combined bias (1, 4H)."""
    H = w_hh.shape[1]
    return (jnp.asarray(w_ih).T,
            jnp.asarray(w_hh).T,
            (jnp.asarray(b_ih) + jnp.asarray(b_hh)).reshape(1, 4 * H))


def prepare_params(enc_params, dec_params):
    """One-time transpose + bias fuse, outside the per-forward path."""
    return (tuple(_prep_layer(*p) for p in enc_params),
            tuple(_prep_layer(*p) for p in dec_params))


# --------------------------------- forward ----------------------------------

@jax.jit
def lstm_autoencoder_forward(x, enc_prepped, dec_prepped):
    """Mirrors LSTM.forward: encoder -> repeat last hidden -> decoder -> squeeze."""
    S, B, Din = x.shape
    L = len(enc_prepped)
    He = enc_prepped[0][1].shape[0]          # whh is (H, 4H)
    Hd = dec_prepped[0][1].shape[0]
    SD = L * S
    BP = _round_up(B, 8)                     # pad batch rows to a full sublane group

    # layout: row t*BP + b == x[t, b]; pad rows are zeros (row-wise independent math).
    x_pad = jnp.zeros((S, BP, Din), jnp.float32).at[:, :B, :].set(x.astype(jnp.float32))
    x2d = x_pad.reshape(S * BP, Din)

    flat_w = [a for layer in (list(enc_prepped) + list(dec_prepped)) for a in layer]
    kernel = _make_fused_kernel(S, BP, L, He, Hd)
    in_specs = [pl.BlockSpec(a.shape, lambda i: (0, 0)) for a in [x2d] + flat_w]

    # Single-shot launch: total footprint (weights + activations) is <<1 MiB, so full-array
    # BlockSpecs with grid=(1,) are correct; no multi-buffering/tiling needed on any
    # generation.  (On v7x one of the two TCs is idle; with B this small there is nothing
    # to shard — add a "parallel" batch grid axis only if batch grows beyond a vreg.)
    y2d = pl.pallas_call(
        kernel,
        out_shape=jax.ShapeDtypeStruct((SD * BP, Hd), jnp.float32),
        grid_spec=pltpu.PrefetchScalarGridSpec(
            num_scalar_prefetch=0,
            grid=(1,),
            in_specs=in_specs,
            out_specs=pl.BlockSpec((SD * BP, Hd), lambda i: (0, 0)),
        ),
        compiler_params=pltpu.CompilerParams(dimension_semantics=("arbitrary",)),
    )(x2d, *flat_w)

    y = y2d.reshape(SD, BP, Hd)[:, :B, :]
    # Mirrors torch.squeeze(): drops ALL unit dims (shape-fragile for batch=1 by design).
    return jnp.squeeze(y)


# ------------------------- parameter init (PyTorch-style) -------------------------

def init_lstm_params(key, input_size, hidden_size, num_layers):
    params = []
    bound = 1.0 / math.sqrt(hidden_size)
    for layer in range(num_layers):
        in_sz = input_size if layer == 0 else hidden_size
        key, k1, k2, k3, k4 = jax.random.split(key, 5)
        w_ih = jax.random.uniform(k1, (4 * hidden_size, in_sz), jnp.float32, -bound, bound)
        w_hh = jax.random.uniform(k2, (4 * hidden_size, hidden_size), jnp.float32, -bound, bound)
        b_ih = jax.random.uniform(k3, (4 * hidden_size,), jnp.float32, -bound, bound)
        b_hh = jax.random.uniform(k4, (4 * hidden_size,), jnp.float32, -bound, bound)
        params.append((w_ih, w_hh, b_ih, b_hh))
    return key, params


# ------------------------- pure-JAX reference for validation -------------------------

def _ref_layer(x, w_ih, w_hh, b_ih, b_hh):
    H = w_hh.shape[1]
    B = x.shape[1]

    def step(carry, xt):
        h, c = carry
        gates = (jnp.dot(xt, w_ih.T, precision=_HIGHEST) + b_ih
                 + jnp.dot(h, w_hh.T, precision=_HIGHEST) + b_hh)
        i, f, g, o = jnp.split(gates, 4, axis=-1)
        i = jax.nn.sigmoid(i)
        f = jax.nn.sigmoid(f)
        g = jnp.tanh(g)
        o = jax.nn.sigmoid(o)
        c = f * c + i * g
        h = o * jnp.tanh(c)
        return (h, c), h

    init = (jnp.zeros((B, H), jnp.float32), jnp.zeros((B, H), jnp.float32))
    (_, _), ys = jax.lax.scan(step, init, x)
    return ys


def _ref_forward(x, enc_params, dec_params):
    h = x
    lasts = []
    for p in enc_params:
        h = _ref_layer(h, *p)
        lasts.append(h[-1])
    last_hidden = jnp.stack(lasts, axis=0)
    encoded = jnp.tile(last_hidden, (x.shape[0], 1, 1))
    y = encoded
    for p in dec_params:
        y = _ref_layer(y, *p)
    return jnp.squeeze(y)


if __name__ == "__main__":
    seq_len, batch, input_dim, latent_dim, num_layers = 8, 2, 16, 32, 2

    key = jax.random.PRNGKey(0)
    key, x_key = jax.random.split(key)
    # layout: (seq_len, batch, input_dim), matching PyTorch nn.LSTM default
    x = jax.random.normal(x_key, (seq_len, batch, input_dim), jnp.float32)

    key, enc_params = init_lstm_params(key, input_dim, latent_dim, num_layers)
    key, dec_params = init_lstm_params(key, latent_dim, input_dim, num_layers)

    enc_prepped, dec_prepped = prepare_params(enc_params, dec_params)

    out = jax.block_until_ready(lstm_autoencoder_forward(x, enc_prepped, dec_prepped))
    ref = _ref_forward(x, enc_params, dec_params)

    assert out.shape == (num_layers * seq_len, batch, input_dim), out.shape
    assert jnp.allclose(out, ref, atol=1e-4, rtol=1e-4), "mismatch vs reference"
    print("KERNEL_OK")
</pallas_src>

<mosaic_0001>
module attributes {stable_mosaic.version = 11 : i64} {
  func.func @kernel(%arg0: i32, %arg1: memref<64x16xf32, #tpu.memory_space<vmem>>, %arg2: memref<16x128xf32, #tpu.memory_space<vmem>>, %arg3: memref<32x128xf32, #tpu.memory_space<vmem>>, %arg4: memref<1x128xf32, #tpu.memory_space<vmem>>, %arg5: memref<32x128xf32, #tpu.memory_space<vmem>>, %arg6: memref<32x128xf32, #tpu.memory_space<vmem>>, %arg7: memref<1x128xf32, #tpu.memory_space<vmem>>, %arg8: memref<32x64xf32, #tpu.memory_space<vmem>>, %arg9: memref<16x64xf32, #tpu.memory_space<vmem>>, %arg10: memref<1x64xf32, #tpu.memory_space<vmem>>, %arg11: memref<16x64xf32, #tpu.memory_space<vmem>>, %arg12: memref<16x64xf32, #tpu.memory_space<vmem>>, %arg13: memref<1x64xf32, #tpu.memory_space<vmem>>, %arg14: memref<128x16xf32, #tpu.memory_space<vmem>>) attributes {dimension_semantics = [#tpu.dimension_semantics<arbitrary>], iteration_bounds = array<i64: 1>, scalar_prefetch = 0 : i64, scratch_operands = 0 : i64, tpu.core_type = #tpu.core_type<tc>, window_params = [{pipeline_mode = #tpu.pipeline_mode<synchronous>, transform_indices = @transform_0, window_bounds = array<i64: 64, 16>}, {pipeline_mode = #tpu.pipeline_mode<synchronous>, transform_indices = @transform_1, window_bounds = array<i64: 16, 128>}, {pipeline_mode = #tpu.pipeline_mode<synchronous>, transform_indices = @transform_2, window_bounds = array<i64: 32, 128>}, {pipeline_mode = #tpu.pipeline_mode<synchronous>, transform_indices = @transform_3, window_bounds = array<i64: 1, 128>}, {pipeline_mode = #tpu.pipeline_mode<synchronous>, transform_indices = @transform_4, window_bounds = array<i64: 32, 128>}, {pipeline_mode = #tpu.pipeline_mode<synchronous>, transform_indices = @transform_5, window_bounds = array<i64: 32, 128>}, {pipeline_mode = #tpu.pipeline_mode<synchronous>, transform_indices = @transform_6, window_bounds = array<i64: 1, 128>}, {pipeline_mode = #tpu.pipeline_mode<synchronous>, transform_indices = @transform_7, window_bounds = array<i64: 32, 64>}, {pipeline_mode = #tpu.pipeline_mode<synchronous>, transform_indices = @transform_8, window_bounds = array<i64: 16, 64>}, {pipeline_mode = #tpu.pipeline_mode<synchronous>, transform_indices = @transform_9, window_bounds = array<i64: 1, 64>}, {pipeline_mode = #tpu.pipeline_mode<synchronous>, transform_indices = @transform_10, window_bounds = array<i64: 16, 64>}, {pipeline_mode = #tpu.pipeline_mode<synchronous>, transform_indices = @transform_11, window_bounds = array<i64: 16, 64>}, {pipeline_mode = #tpu.pipeline_mode<synchronous>, transform_indices = @transform_12, window_bounds = array<i64: 1, 64>}, {pipeline_mode = #tpu.pipeline_mode<synchronous>, transform_indices = @transform_13, window_bounds = array<i64: 128, 16>}]} {
    %c0 = arith.constant 0 : index
    %c0_0 = arith.constant 0 : index
    %0 = vector.load %arg2[%c0, %c0_0] : memref<16x128xf32, #tpu.memory_space<vmem>>, vector<16x128xf32>
    %c0_1 = arith.constant 0 : index
    %c0_2 = arith.constant 0 : index
    %1 = vector.load %arg3[%c0_1, %c0_2] : memref<32x128xf32, #tpu.memory_space<vmem>>, vector<32x128xf32>
    %c0_3 = arith.constant 0 : index
    %c0_4 = arith.constant 0 : index
    %2 = vector.load %arg4[%c0_3, %c0_4] : memref<1x128xf32, #tpu.memory_space<vmem>>, vector<1x128xf32>
    %c0_5 = arith.constant 0 : index
    %c0_6 = arith.constant 0 : index
    %3 = vector.load %arg5[%c0_5, %c0_6] : memref<32x128xf32, #tpu.memory_space<vmem>>, vector<32x128xf32>
    %c0_7 = arith.constant 0 : index
    %c0_8 = arith.constant 0 : index
    %4 = vector.load %arg6[%c0_7, %c0_8] : memref<32x128xf32, #tpu.memory_space<vmem>>, vector<32x128xf32>
    %c0_9 = arith.constant 0 : index
    %c0_10 = arith.constant 0 : index
    %5 = vector.load %arg7[%c0_9, %c0_10] : memref<1x128xf32, #tpu.memory_space<vmem>>, vector<1x128xf32>
    %c0_11 = arith.constant 0 : index
    %c0_12 = arith.constant 0 : index
    %6 = vector.load %arg8[%c0_11, %c0_12] : memref<32x64xf32, #tpu.memory_space<vmem>>, vector<32x64xf32>
    %c0_13 = arith.constant 0 : index
    %c0_14 = arith.constant 0 : index
    %7 = vector.load %arg9[%c0_13, %c0_14] : memref<16x64xf32, #tpu.memory_space<vmem>>, vector<16x64xf32>
    %c0_15 = arith.constant 0 : index
    %c0_16 = arith.constant 0 : index
    %8 = vector.load %arg10[%c0_15, %c0_16] : memref<1x64xf32, #tpu.memory_space<vmem>>, vector<1x64xf32>
    %c0_17 = arith.constant 0 : index
    %c0_18 = arith.constant 0 : index
    %9 = vector.load %arg11[%c0_17, %c0_18] : memref<16x64xf32, #tpu.memory_space<vmem>>, vector<16x64xf32>
    %c0_19 = arith.constant 0 : index
    %c0_20 = arith.constant 0 : index
    %10 = vector.load %arg12[%c0_19, %c0_20] : memref<16x64xf32, #tpu.memory_space<vmem>>, vector<16x64xf32>
    %c0_21 = arith.constant 0 : index
    %c0_22 = arith.constant 0 : index
    %11 = vector.load %arg13[%c0_21, %c0_22] : memref<1x64xf32, #tpu.memory_space<vmem>>, vector<1x64xf32>
    %cst = arith.constant 0.000000e+00 : f32
    %12 = vector.broadcast %cst : f32 to vector<8x32xf32>
    %cst_23 = arith.constant 0.000000e+00 : f32
    %13 = vector.broadcast %cst_23 : f32 to vector<8x16xf32>
    %c0_24 = arith.constant 0 : index
    %c0_25 = arith.constant 0 : index
    %14 = vector.load %arg1[%c0_24, %c0_25] : memref<64x16xf32, #tpu.memory_space<vmem>>, vector<64x16xf32>
    %cst_26 = arith.constant dense<0.000000e+00> : vector<64x128xf32>
    %15 = tpu.matmul %14, %0, %cst_26 {dimension_numbers = #tpu.dot_dimension_numbers<[1], [0], [0], [1], [0, 0, 1, 1], [], []>, precision = #tpu.contract_precision<fp32>} : vector<64x16xf32>, vector<16x128xf32>, vector<64x128xf32> -> vector<64x128xf32>
    %16 = vector.broadcast %2 : vector<1x128xf32> to vector<64x128xf32>
    %17 = arith.addf %15, %16 : vector<64x128xf32>
    %18 = vector.extract_strided_slice %17 {offsets = [0, 0], sizes = [8, 128], strides = [1, 1]} : vector<64x128xf32> to vector<8x128xf32>
    %cst_27 = arith.constant dense<0.000000e+00> : vector<8x128xf32>
    %19 = tpu.matmul %12, %1, %cst_27 {dimension_numbers = #tpu.dot_dimension_numbers<[1], [0], [0], [1], [0, 0, 1, 1], [], []>, precision = #tpu.contract_precision<fp32>} : vector<8x32xf32>, vector<32x128xf32>, vector<8x128xf32> -> vector<8x128xf32>
    %20 = arith.addf %18, %19 : vector<8x128xf32>
    %21 = arith.negf %20 : vector<8x128xf32>
    %22 = math.exp %21 : vector<8x128xf32>
    %cst_28 = arith.constant 1.000000e+00 : f32
    %23 = vector.broadcast %cst_28 : f32 to vector<8x128xf32>
    %24 = arith.addf %23, %22 : vector<8x128xf32>
    %25 = arith.divf %23, %24 : vector<8x128xf32>
    %26 = math.tanh %20 : vector<8x128xf32>
    %27 = vector.extract_strided_slice %25 {offsets = [0, 0], sizes = [8, 32], strides = [1, 1]} : vector<8x128xf32> to vector<8x32xf32>
    %28 = vector.extract_strided_slice %25 {offsets = [0, 32], sizes = [8, 32], strides = [1, 1]} : vector<8x128xf32> to vector<8x32xf32>
    %29 = vector.extract_strided_slice %26 {offsets = [0, 64], sizes = [8, 32], strides = [1, 1]} : vector<8x128xf32> to vector<8x32xf32>
    %30 = vector.extract_strided_slice %25 {offsets = [0, 96], sizes = [8, 32], strides = [1, 1]} : vector<8x128xf32> to vector<8x32xf32>
    %31 = arith.mulf %28, %12 : vector<8x32xf32>
    %32 = arith.mulf %27, %29 : vector<8x32xf32>
    %33 = arith.addf %31, %32 : vector<8x32xf32>
    %34 = math.tanh %33 : vector<8x32xf32>
    %35 = arith.mulf %30, %34 : vector<8x32xf32>
    %cst_29 = arith.constant dense<0.000000e+00> : vector<8x128xf32>
    %36 = tpu.matmul %35, %3, %cst_29 {dimension_numbers = #tpu.dot_dimension_numbers<[1], [0], [0], [1], [0, 0, 1, 1], [], []>, precision = #tpu.contract_precision<fp32>} : vector<8x32xf32>, vector<32x128xf32>, vector<8x128xf32> -> vector<8x128xf32>
    %37 = vector.broadcast %5 : vector<1x128xf32> to vector<8x128xf32>
    %38 = arith.addf %36, %37 : vector<8x128xf32>
    %cst_30 = arith.constant dense<0.000000e+00> : vector<8x128xf32>
    %39 = tpu.matmul %12, %4, %cst_30 {dimension_numbers = #tpu.dot_dimension_numbers<[1], [0], [0], [1], [0, 0, 1, 1], [], []>, precision = #tpu.contract_precision<fp32>} : vector<8x32xf32>, vector<32x128xf32>, vector<8x128xf32> -> vector<8x128xf32>
    %40 = arith.addf %38, %39 : vector<8x128xf32>
    %41 = arith.negf %40 : vector<8x128xf32>
    %42 = math.exp %41 : vector<8x128xf32>
    %cst_31 = arith.constant 1.000000e+00 : f32
    %43 = vector.broadcast %cst_31 : f32 to vector<8x128xf32>
    %44 = arith.addf %43, %42 : vector<8x128xf32>
    %45 = arith.divf %43, %44 : vector<8x128xf32>
    %46 = math.tanh %40 : vector<8x128xf32>
    %47 = vector.extract_strided_slice %45 {offsets = [0, 0], sizes = [8, 32], strides = [1, 1]} : vector<8x128xf32> to vector<8x32xf32>
    %48 = vector.extract_strided_slice %45 {offsets = [0, 32], sizes = [8, 32], strides = [1, 1]} : vector<8x128xf32> to vector<8x32xf32>
    %49 = vector.extract_strided_slice %46 {offsets = [0, 64], sizes = [8, 32], strides = [1, 1]} : vector<8x128xf32> to vector<8x32xf32>
    %50 = vector.extract_strided_slice %45 {offsets = [0, 96], sizes = [8, 32], strides = [1, 1]} : vector<8x128xf32> to vector<8x32xf32>
    %51 = arith.mulf %48, %12 : vector<8x32xf32>
    %52 = arith.mulf %47, %49 : vector<8x32xf32>
    %53 = arith.addf %51, %52 : vector<8x32xf32>
    %54 = math.tanh %53 : vector<8x32xf32>
    %55 = arith.mulf %50, %54 : vector<8x32xf32>
    %56 = vector.extract_strided_slice %17 {offsets = [8, 0], sizes = [8, 128], strides = [1, 1]} : vector<64x128xf32> to vector<8x128xf32>
    %cst_32 = arith.constant dense<0.000000e+00> : vector<8x128xf32>
    %57 = tpu.matmul %35, %1, %cst_32 {dimension_numbers = #tpu.dot_dimension_numbers<[1], [0], [0], [1], [0, 0, 1, 1], [], []>, precision = #tpu.contract_precision<fp32>} : vector<8x32xf32>, vector<32x128xf32>, vector<8x128xf32> -> vector<8x128xf32>
    %58 = arith.addf %56, %57 : vector<8x128xf32>
    %59 = arith.negf %58 : vector<8x128xf32>
    %60 = math.exp %59 : vector<8x128xf32>
    %cst_33 = arith.constant 1.000000e+00 : f32
    %61 = vector.broadcast %cst_33 : f32 to vector<8x128xf32>
    %62 = arith.addf %61, %60 : vector<8x128xf32>
    %63 = arith.divf %61, %62 : vector<8x128xf32>
    %64 = math.tanh %58 : vector<8x128xf32>
    %65 = vector.extract_strided_slice %63 {offsets = [0, 0], sizes = [8, 32], strides = [1, 1]} : vector<8x128xf32> to vector<8x32xf32>
    %66 = vector.extract_strided_slice %63 {offsets = [0, 32], sizes = [8, 32], strides = [1, 1]} : vector<8x128xf32> to vector<8x32xf32>
    %67 = vector.extract_strided_slice %64 {offsets = [0, 64], sizes = [8, 32], strides = [1, 1]} : vector<8x128xf32> to vector<8x32xf32>
    %68 = vector.extract_strided_slice %63 {offsets = [0, 96], sizes = [8, 32], strides = [1, 1]} : vector<8x128xf32> to vector<8x32xf32>
    %69 = arith.mulf %66, %33 : vector<8x32xf32>
    %70 = arith.mulf %65, %67 : vector<8x32xf32>
    %71 = arith.addf %69, %70 : vector<8x32xf32>
    %72 = math.tanh %71 : vector<8x32xf32>
    %73 = arith.mulf %68, %72 : vector<8x32xf32>
    %cst_34 = arith.constant dense<0.000000e+00> : vector<8x128xf32>
    %74 = tpu.matmul %73, %3, %cst_34 {dimension_numbers = #tpu.dot_dimension_numbers<[1], [0], [0], [1], [0, 0, 1, 1], [], []>, precision = #tpu.contract_precision<fp32>} : vector<8x32xf32>, vector<32x128xf32>, vector<8x128xf32> -> vector<8x128xf32>
    %75 = vector.broadcast %5 : vector<1x128xf32> to vector<8x128xf32>
    %76 = arith.addf %74, %75 : vector<8x128xf32>
    %cst_35 = arith.constant dense<0.000000e+00> : vector<8x128xf32>
    %77 = tpu.matmul %55, %4, %cst_35 {dimension_numbers = #tpu.dot_dimension_numbers<[1], [0], [0], [1], [0, 0, 1, 1], [], []>, precision = #tpu.contract_precision<fp32>} : vector<8x32xf32>, vector<32x128xf32>, vector<8x128xf32> -> vector<8x128xf32>
    %78 = arith.addf %76, %77 : vector<8x128xf32>
    %79 = arith.negf %78 : vector<8x128xf32>
    %80 = math.exp %79 : vector<8x128xf32>
    %cst_36 = arith.constant 1.000000e+00 : f32
    %81 = vector.broadcast %cst_36 : f32 to vector<8x128xf32>
    %82 = arith.addf %81, %80 : vector<8x128xf32>
    %83 = arith.divf %81, %82 : vector<8x128xf32>
    %84 = math.tanh %78 : vector<8x128xf32>
    %85 = vector.extract_strided_slice %83 {offsets = [0, 0], sizes = [8, 32], strides = [1, 1]} : vector<8x128xf32> to vector<8x32xf32>
    %86 = vector.extract_strided_slice %83 {offsets = [0, 32], sizes = [8, 32], strides = [1, 1]} : vector<8x128xf32> to vector<8x32xf32>
    %87 = vector.extract_strided_slice %84 {offsets = [0, 64], sizes = [8, 32], strides = [1, 1]} : vector<8x128xf32> to vector<8x32xf32>
    %88 = vector.extract_strided_slice %83 {offsets = [0, 96], sizes = [8, 32], strides = [1, 1]} : vector<8x128xf32> to vector<8x32xf32>
    %89 = arith.mulf %86, %53 : vector<8x32xf32>
    %90 = arith.mulf %85, %87 : vector<8x32xf32>
    %91 = arith.addf %89, %90 : vector<8x32xf32>
    %92 = math.tanh %91 : vector<8x32xf32>
    %93 = arith.mulf %88, %92 : vector<8x32xf32>
    %94 = vector.extract_strided_slice %17 {offsets = [16, 0], sizes = [8, 128], strides = [1, 1]} : vector<64x128xf32> to vector<8x128xf32>
    %cst_37 = arith.constant dense<0.000000e+00> : vector<8x128xf32>
    %95 = tpu.matmul %73, %1, %cst_37 {dimension_numbers = #tpu.dot_dimension_numbers<[1], [0], [0], [1], [0, 0, 1, 1], [], []>, precision = #tpu.contract_precision<fp32>} : vector<8x32xf32>, vector<32x128xf32>, vector<8x128xf32> -> vector<8x128xf32>
    %96 = arith.addf %94, %95 : vector<8x128xf32>
    %97 = arith.negf %96 : vector<8x128xf32>
    %98 = math.exp %97 : vector<8x128xf32>
    %cst_38 = arith.constant 1.000000e+00 : f32
    %99 = vector.broadcast %cst_38 : f32 to vector<8x128xf32>
    %100 = arith.addf %99, %98 : vector<8x128xf32>
    %101 = arith.divf %99, %100 : vector<8x128xf32>
    %102 = math.tanh %96 : vector<8x128xf32>
    %103 = vector.extract_strided_slice %101 {offsets = [0, 0], sizes = [8, 32], strides = [1, 1]} : vector<8x128xf32> to vector<8x32xf32>
    %104 = vector.extract_strided_slice %101 {offsets = [0, 32], sizes = [8, 32], strides = [1, 1]} : vector<8x128xf32> to vector<8x32xf32>
    %105 = vector.extract_strided_slice %102 {offsets = [0, 64], sizes = [8, 32], strides = [1, 1]} : vector<8x128xf32> to vector<8x32xf32>
    %106 = vector.extract_strided_slice %101 {offsets = [0, 96], sizes = [8, 32], strides = [1, 1]} : vector<8x128xf32> to vector<8x32xf32>
    %107 = arith.mulf %104, %71 : vector<8x32xf32>
    %108 = arith.mulf %103, %105 : vector<8x32xf32>
    %109 = arith.addf %107, %108 : vector<8x32xf32>
    %110 = math.tanh %109 : vector<8x32xf32>
    %111 = arith.mulf %106, %110 : vector<8x32xf32>
    %cst_39 = arith.constant dense<0.000000e+00> : vector<8x128xf32>
    %112 = tpu.matmul %111, %3, %cst_39 {dimension_numbers = #tpu.dot_dimension_numbers<[1], [0], [0], [1], [0, 0, 1, 1], [], []>, precision = #tpu.contract_precision<fp32>} : vector<8x32xf32>, vector<32x128xf32>, vector<8x128xf32> -> vector<8x128xf32>
    %113 = vector.broadcast %5 : vector<1x128xf32> to vector<8x128xf32>
    %114 = arith.addf %112, %113 : vector<8x128xf32>
    %cst_40 = arith.constant dense<0.000000e+00> : vector<8x128xf32>
    %115 = tpu.matmul %93, %4, %cst_40 {dimension_numbers = #tpu.dot_dimension_numbers<[1], [0], [0], [1], [0, 0, 1, 1], [], []>, precision = #tpu.contract_precision<fp32>} : vector<8x32xf32>, vector<32x128xf32>, vector<8x128xf32> -> vector<8x128xf32>
    %116 = arith.addf %114, %115 : vector<8x128xf32>
    %117 = arith.negf %116 : vector<8x128xf32>
    %118 = math.exp %117 : vector<8x128xf32>
    %cst_41 = arith.constant 1.000000e+00 : f32
    %119 = vector.broadcast %cst_41 : f32 to vector<8x128xf32>
    %120 = arith.addf %119, %118 : vector<8x128xf32>
    %121 = arith.divf %119, %120 : vector<8x128xf32>
    %122 = math.tanh %116 : vector<8x128xf32>
    %123 = vector.extract_strided_slice %121 {offsets = [0, 0], sizes = [8, 32], strides = [1, 1]} : vector<8x128xf32> to vector<8x32xf32>
    %124 = vector.extract_strided_slice %121 {offsets = [0, 32], sizes = [8, 32], strides = [1, 1]} : vector<8x128xf32> to vector<8x32xf32>
    %125 = vector.extract_strided_slice %122 {offsets = [0, 64], sizes = [8, 32], strides = [1, 1]} : vector<8x128xf32> to vector<8x32xf32>
    %126 = vector.extract_strided_slice %121 {offsets = [0, 96], sizes = [8, 32], strides = [1, 1]} : vector<8x128xf32> to vector<8x32xf32>
    %127 = arith.mulf %124, %91 : vector<8x32xf32>
    %128 = arith.mulf %123, %125 : vector<8x32xf32>
    %129 = arith.addf %127, %128 : vector<8x32xf32>
    %130 = math.tanh %129 : vector<8x32xf32>
    %131 = arith.mulf %126, %130 : vector<8x32xf32>
    %132 = vector.extract_strided_slice %17 {offsets = [24, 0], sizes = [8, 128], strides = [1, 1]} : vector<64x128xf32> to vector<8x128xf32>
    %cst_42 = arith.constant dense<0.000000e+00> : vector<8x128xf32>
    %133 = tpu.matmul %111, %1, %cst_42 {dimension_numbers = #tpu.dot_dimension_numbers<[1], [0], [0], [1], [0, 0, 1, 1], [], []>, precision = #tpu.contract_precision<fp32>} : vector<8x32xf32>, vector<32x128xf32>, vector<8x128xf32> -> vector<8x128xf32>
    %134 = arith.addf %132, %133 : vector<8x128xf32>
    %135 = arith.negf %134 : vector<8x128xf32>
    %136 = math.exp %135 : vector<8x128xf32>
    %cst_43 = arith.constant 1.000000e+00 : f32
    %137 = vector.broadcast %cst_43 : f32 to vector<8x128xf32>
    %138 = arith.addf %137, %136 : vector<8x128xf32>
    %139 = arith.divf %137, %138 : vector<8x128xf32>
    %140 = math.tanh %134 : vector<8x128xf32>
    %141 = vector.extract_strided_slice %139 {offsets = [0, 0], sizes = [8, 32], strides = [1, 1]} : vector<8x128xf32> to vector<8x32xf32>
    %142 = vector.extract_strided_slice %139 {offsets = [0, 32], sizes = [8, 32], strides = [1, 1]} : vector<8x128xf32> to vector<8x32xf32>
    %143 = vector.extract_strided_slice %140 {offsets = [0, 64], sizes = [8, 32], strides = [1, 1]} : vector<8x128xf32> to vector<8x32xf32>
    %144 = vector.extract_strided_slice %139 {offsets = [0, 96], sizes = [8, 32], strides = [1, 1]} : vector<8x128xf32> to vector<8x32xf32>
    %145 = arith.mulf %142, %109 : vector<8x32xf32>
    %146 = arith.mulf %141, %143 : vector<8x32xf32>
    %147 = arith.addf %145, %146 : vector<8x32xf32>
    %148 = math.tanh %147 : vector<8x32xf32>
    %149 = arith.mulf %144, %148 : vector<8x32xf32>
    %cst_44 = arith.constant dense<0.000000e+00> : vector<8x128xf32>
    %150 = tpu.matmul %149, %3, %cst_44 {dimension_numbers = #tpu.dot_dimension_numbers<[1], [0], [0], [1], [0, 0, 1, 1], [], []>, precision = #tpu.contract_precision<fp32>} : vector<8x32xf32>, vector<32x128xf32>, vector<8x128xf32> -> vector<8x128xf32>
    %151 = vector.broadcast %5 : vector<1x128xf32> to vector<8x128xf32>
    %152 = arith.addf %150, %151 : vector<8x128xf32>
    %cst_45 = arith.constant dense<0.000000e+00> : vector<8x128xf32>
    %153 = tpu.matmul %131, %4, %cst_45 {dimension_numbers = #tpu.dot_dimension_numbers<[1], [0], [0], [1], [0, 0, 1, 1], [], []>, precision = #tpu.contract_precision<fp32>} : vector<8x32xf32>, vector<32x128xf32>, vector<8x128xf32> -> vector<8x128xf32>
    %154 = arith.addf %152, %153 : vector<8x128xf32>
    %155 = arith.negf %154 : vector<8x128xf32>
    %156 = math.exp %155 : vector<8x128xf32>
    %cst_46 = arith.constant 1.000000e+00 : f32
    %157 = vector.broadcast %cst_46 : f32 to vector<8x128xf32>
    %158 = arith.addf %157, %156 : vector<8x128xf32>
    %159 = arith.divf %157, %158 : vector<8x128xf32>
    %160 = math.tanh %154 : vector<8x128xf32>
    %161 = vector.extract_strided_slice %159 {offsets = [0, 0], sizes = [8, 32], strides = [1, 1]} : vector<8x128xf32> to vector<8x32xf32>
    %162 = vector.extract_strided_slice %159 {offsets = [0, 32], sizes = [8, 32], strides = [1, 1]} : vector<8x128xf32> to vector<8x32xf32>
    %163 = vector.extract_strided_slice %160 {offsets = [0, 64], sizes = [8, 32], strides = [1, 1]} : vector<8x128xf32> to vector<8x32xf32>
    %164 = vector.extract_strided_slice %159 {offsets = [0, 96], sizes = [8, 32], strides = [1, 1]} : vector<8x128xf32> to vector<8x32xf32>
    %165 = arith.mulf %162, %129 : vector<8x32xf32>
    %166 = arith.mulf %161, %163 : vector<8x32xf32>
    %167 = arith.addf %165, %166 : vector<8x32xf32>
    %168 = math.tanh %167 : vector<8x32xf32>
    %169 = arith.mulf %164, %168 : vector<8x32xf32>
    %170 = vector.extract_strided_slice %17 {offsets = [32, 0], sizes = [8, 128], strides = [1, 1]} : vector<64x128xf32> to vector<8x128xf32>
    %cst_47 = arith.constant dense<0.000000e+00> : vector<8x128xf32>
    %171 = tpu.matmul %149, %1, %cst_47 {dimension_numbers = #tpu.dot_dimension_numbers<[1], [0], [0], [1], [0, 0, 1, 1], [], []>, precision = #tpu.contract_precision<fp32>} : vector<8x32xf32>, vector<32x128xf32>, vector<8x128xf32> -> vector<8x128xf32>
    %172 = arith.addf %170, %171 : vector<8x128xf32>
    %173 = arith.negf %172 : vector<8x128xf32>
    %174 = math.exp %173 : vector<8x128xf32>
    %cst_48 = arith.constant 1.000000e+00 : f32
    %175 = vector.broadcast %cst_48 : f32 to vector<8x128xf32>
    %176 = arith.addf %175, %174 : vector<8x128xf32>
    %177 = arith.divf %175, %176 : vector<8x128xf32>
    %178 = math.tanh %172 : vector<8x128xf32>
    %179 = vector.extract_strided_slice %177 {offsets = [0, 0], sizes = [8, 32], strides = [1, 1]} : vector<8x128xf32> to vector<8x32xf32>
    %180 = vector.extract_strided_slice %177 {offsets = [0, 32], sizes = [8, 32], strides = [1, 1]} : vector<8x128xf32> to vector<8x32xf32>
    %181 = vector.extract_strided_slice %178 {offsets = [0, 64], sizes = [8, 32], strides = [1, 1]} : vector<8x128xf32> to vector<8x32xf32>
    %182 = vector.extract_strided_slice %177 {offsets = [0, 96], sizes = [8, 32], strides = [1, 1]} : vector<8x128xf32> to vector<8x32xf32>
    %183 = arith.mulf %180, %147 : vector<8x32xf32>
    %184 = arith.mulf %179, %181 : vector<8x32xf32>
    %185 = arith.addf %183, %184 : vector<8x32xf32>
    %186 = math.tanh %185 : vector<8x32xf32>
    %187 = arith.mulf %182, %186 : vector<8x32xf32>
    %cst_49 = arith.constant dense<0.000000e+00> : vector<8x128xf32>
    %188 = tpu.matmul %187, %3, %cst_49 {dimension_numbers = #tpu.dot_dimension_numbers<[1], [0], [0], [1], [0, 0, 1, 1], [], []>, precision = #tpu.contract_precision<fp32>} : vector<8x32xf32>, vector<32x128xf32>, vector<8x128xf32> -> vector<8x128xf32>
    %189 = vector.broadcast %5 : vector<1x128xf32> to vector<8x128xf32>
    %190 = arith.addf %188, %189 : vector<8x128xf32>
    %cst_50 = arith.constant dense<0.000000e+00> : vector<8x128xf32>
    %191 = tpu.matmul %169, %4, %cst_50 {dimension_numbers = #tpu.dot_dimension_numbers<[1], [0], [0], [1], [0, 0, 1, 1], [], []>, precision = #tpu.contract_precision<fp32>} : vector<8x32xf32>, vector<32x128xf32>, vector<8x128xf32> -> vector<8x128xf32>
    %192 = arith.addf %190, %191 : vector<8x128xf32>
    %193 = arith.negf %192 : vector<8x128xf32>
    %194 = math.exp %193 : vector<8x128xf32>
    %cst_51 = arith.constant 1.000000e+00 : f32
    %195 = vector.broadcast %cst_51 : f32 to vector<8x128xf32>
    %196 = arith.addf %195, %194 : vector<8x128xf32>
    %197 = arith.divf %195, %196 : vector<8x128xf32>
    %198 = math.tanh %192 : vector<8x128xf32>
    %199 = vector.extract_strided_slice %197 {offsets = [0, 0], sizes = [8, 32], strides = [1, 1]} : vector<8x128xf32> to vector<8x32xf32>
    %200 = vector.extract_strided_slice %197 {offsets = [0, 32], sizes = [8, 32], strides = [1, 1]} : vector<8x128xf32> to vector<8x32xf32>
    %201 = vector.extract_strided_slice %198 {offsets = [0, 64], sizes = [8, 32], strides = [1, 1]} : vector<8x128xf32> to vector<8x32xf32>
    %202 = vector.extract_strided_slice %197 {offsets = [0, 96], sizes = [8, 32], strides = [1, 1]} : vector<8x128xf32> to vector<8x32xf32>
    %203 = arith.mulf %200, %167 : vector<8x32xf32>
    %204 = arith.mulf %199, %201 : vector<8x32xf32>
    %205 = arith.addf %203, %204 : vector<8x32xf32>
    %206 = math.tanh %205 : vector<8x32xf32>
    %207 = arith.mulf %202, %206 : vector<8x32xf32>
    %208 = vector.extract_strided_slice %17 {offsets = [40, 0], sizes = [8, 128], strides = [1, 1]} : vector<64x128xf32> to vector<8x128xf32>
    %cst_52 = arith.constant dense<0.000000e+00> : vector<8x128xf32>
    %209 = tpu.matmul %187, %1, %cst_52 {dimension_numbers = #tpu.dot_dimension_numbers<[1], [0], [0], [1], [0, 0, 1, 1], [], []>, precision = #tpu.contract_precision<fp32>} : vector<8x32xf32>, vector<32x128xf32>, vector<8x128xf32> -> vector<8x128xf32>
    %210 = arith.addf %208, %209 : vector<8x128xf32>
    %211 = arith.negf %210 : vector<8x128xf32>
    %212 = math.exp %211 : vector<8x128xf32>
    %cst_53 = arith.constant 1.000000e+00 : f32
    %213 = vector.broadcast %cst_53 : f32 to vector<8x128xf32>
    %214 = arith.addf %213, %212 : vector<8x128xf32>
    %215 = arith.divf %213, %214 : vector<8x128xf32>
    %216 = math.tanh %210 : vector<8x128xf32>
    %217 = vector.extract_strided_slice %215 {offsets = [0, 0], sizes = [8, 32], strides = [1, 1]} : vector<8x128xf32> to vector<8x32xf32>
    %218 = vector.extract_strided_slice %215 {offsets = [0, 32], sizes = [8, 32], strides = [1, 1]} : vector<8x128xf32> to vector<8x32xf32>
    %219 = vector.extract_strided_slice %216 {offsets = [0, 64], sizes = [8, 32], strides = [1, 1]} : vector<8x128xf32> to vector<8x32xf32>
    %220 = vector.extract_strided_slice %215 {offsets = [0, 96], sizes = [8, 32], strides = [1, 1]} : vector<8x128xf32> to vector<8x32xf32>
    %221 = arith.mulf %218, %185 : vector<8x32xf32>
    %222 = arith.mulf %217, %219 : vector<8x32xf32>
    %223 = arith.addf %221, %222 : vector<8x32xf32>
    %224 = math.tanh %223 : vector<8x32xf32>
    %225 = arith.mulf %220, %224 : vector<8x32xf32>
    %cst_54 = arith.constant dense<0.000000e+00> : vector<8x128xf32>
    %226 = tpu.matmul %225, %3, %cst_54 {dimension_numbers = #tpu.dot_dimension_numbers<[1], [0], [0], [1], [0, 0, 1, 1], [], []>, precision = #tpu.contract_precision<fp32>} : vector<8x32xf32>, vector<32x128xf32>, vector<8x128xf32> -> vector<8x128xf32>
    %227 = vector.broadcast %5 : vector<1x128xf32> to vector<8x128xf32>
    %228 = arith.addf %226, %227 : vector<8x128xf32>
    %cst_55 = arith.constant dense<0.000000e+00> : vector<8x128xf32>
    %229 = tpu.matmul %207, %4, %cst_55 {dimension_numbers = #tpu.dot_dimension_numbers<[1], [0], [0], [1], [0, 0, 1, 1], [], []>, precision = #tpu.contract_precision<fp32>} : vector<8x32xf32>, vector<32x128xf32>, vector<8x128xf32> -> vector<8x128xf32>
    %230 = arith.addf %228, %229 : vector<8x128xf32>
    %231 = arith.negf %230 : vector<8x128xf32>
    %232 = math.exp %231 : vector<8x128xf32>
    %cst_56 = arith.constant 1.000000e+00 : f32
    %233 = vector.broadcast %cst_56 : f32 to vector<8x128xf32>
    %234 = arith.addf %233, %232 : vector<8x128xf32>
    %235 = arith.divf %233, %234 : vector<8x128xf32>
    %236 = math.tanh %230 : vector<8x128xf32>
    %237 = vector.extract_strided_slice %235 {offsets = [0, 0], sizes = [8, 32], strides = [1, 1]} : vector<8x128xf32> to vector<8x32xf32>
    %238 = vector.extract_strided_slice %235 {offsets = [0, 32], sizes = [8, 32], strides = [1, 1]} : vector<8x128xf32> to vector<8x32xf32>
    %239 = vector.extract_strided_slice %236 {offsets = [0, 64], sizes = [8, 32], strides = [1, 1]} : vector<8x128xf32> to vector<8x32xf32>
    %240 = vector.extract_strided_slice %235 {offsets = [0, 96], sizes = [8, 32], strides = [1, 1]} : vector<8x128xf32> to vector<8x32xf32>
    %241 = arith.mulf %238, %205 : vector<8x32xf32>
    %242 = arith.mulf %237, %239 : vector<8x32xf32>
    %243 = arith.addf %241, %242 : vector<8x32xf32>
    %244 = math.tanh %243 : vector<8x32xf32>
    %245 = arith.mulf %240, %244 : vector<8x32xf32>
    %246 = vector.extract_strided_slice %17 {offsets = [48, 0], sizes = [8, 128], strides = [1, 1]} : vector<64x128xf32> to vector<8x128xf32>
    %cst_57 = arith.constant dense<0.000000e+00> : vector<8x128xf32>
    %247 = tpu.matmul %225, %1, %cst_57 {dimension_numbers = #tpu.dot_dimension_numbers<[1], [0], [0], [1], [0, 0, 1, 1], [], []>, precision = #tpu.contract_precision<fp32>} : vector<8x32xf32>, vector<32x128xf32>, vector<8x128xf32> -> vector<8x128xf32>
    %248 = arith.addf %246, %247 : vector<8x128xf32>
    %249 = arith.negf %248 : vector<8x128xf32>
    %250 = math.exp %249 : vector<8x128xf32>
    %cst_58 = arith.constant 1.000000e+00 : f32
    %251 = vector.broadcast %cst_58 : f32 to vector<8x128xf32>
    %252 = arith.addf %251, %250 : vector<8x128xf32>
    %253 = arith.divf %251, %252 : vector<8x128xf32>
    %254 = math.tanh %248 : vector<8x128xf32>
    %255 = vector.extract_strided_slice %253 {offsets = [0, 0], sizes = [8, 32], strides = [1, 1]} : vector<8x128xf32> to vector<8x32xf32>
    %256 = vector.extract_strided_slice %253 {offsets = [0, 32], sizes = [8, 32], strides = [1, 1]} : vector<8x128xf32> to vector<8x32xf32>
    %257 = vector.extract_strided_slice %254 {offsets = [0, 64], sizes = [8, 32], strides = [1, 1]} : vector<8x128xf32> to vector<8x32xf32>
    %258 = vector.extract_strided_slice %253 {offsets = [0, 96], sizes = [8, 32], strides = [1, 1]} : vector<8x128xf32> to vector<8x32xf32>
    %259 = arith.mulf %256, %223 : vector<8x32xf32>
    %260 = arith.mulf %255, %257 : vector<8x32xf32>
    %261 = arith.addf %259, %260 : vector<8x32xf32>
    %262 = math.tanh %261 : vector<8x32xf32>
    %263 = arith.mulf %258, %262 : vector<8x32xf32>
    %cst_59 = arith.constant dense<0.000000e+00> : vector<8x128xf32>
    %264 = tpu.matmul %263, %3, %cst_59 {dimension_numbers = #tpu.dot_dimension_numbers<[1], [0], [0], [1], [0, 0, 1, 1], [], []>, precision = #tpu.contract_precision<fp32>} : vector<8x32xf32>, vector<32x128xf32>, vector<8x128xf32> -> vector<8x128xf32>
    %265 = vector.broadcast %5 : vector<1x128xf32> to vector<8x128xf32>
    %266 = arith.addf %264, %265 : vector<8x128xf32>
    %cst_60 = arith.constant dense<0.000000e+00> : vector<8x128xf32>
    %267 = tpu.matmul %245, %4, %cst_60 {dimension_numbers = #tpu.dot_dimension_numbers<[1], [0], [0], [1], [0, 0, 1, 1], [], []>, precision = #tpu.contract_precision<fp32>} : vector<8x32xf32>, vector<32x128xf32>, vector<8x128xf32> -> vector<8x128xf32>
    %268 = arith.addf %266, %267 : vector<8x128xf32>
    %269 = arith.negf %268 : vector<8x128xf32>
    %270 = math.exp %269 : vector<8x128xf32>
    %cst_61 = arith.constant 1.000000e+00 : f32
    %271 = vector.broadcast %cst_61 : f32 to vector<8x128xf32>
    %272 = arith.addf %271, %270 : vector<8x128xf32>
    %273 = arith.divf %271, %272 : vector<8x128xf32>
    %274 = math.tanh %268 : vector<8x128xf32>
    %275 = vector.extract_strided_slice %273 {offsets = [0, 0], sizes = [8, 32], strides = [1, 1]} : vector<8x128xf32> to vector<8x32xf32>
    %276 = vector.extract_strided_slice %273 {offsets = [0, 32], sizes = [8, 32], strides = [1, 1]} : vector<8x128xf32> to vector<8x32xf32>
    %277 = vector.extract_strided_slice %274 {offsets = [0, 64], sizes = [8, 32], strides = [1, 1]} : vector<8x128xf32> to vector<8x32xf32>
    %278 = vector.extract_strided_slice %273 {offsets = [0, 96], sizes = [8, 32], strides = [1, 1]} : vector<8x128xf32> to vector<8x32xf32>
    %279 = arith.mulf %276, %243 : vector<8x32xf32>
    %280 = arith.mulf %275, %277 : vector<8x32xf32>
    %281 = arith.addf %279, %280 : vector<8x32xf32>
    %282 = math.tanh %281 : vector<8x32xf32>
    %283 = arith.mulf %278, %282 : vector<8x32xf32>
    %284 = vector.extract_strided_slice %17 {offsets = [56, 0], sizes = [8, 128], strides = [1, 1]} : vector<64x128xf32> to vector<8x128xf32>
    %cst_62 = arith.constant dense<0.000000e+00> : vector<8x128xf32>
    %285 = tpu.matmul %263, %1, %cst_62 {dimension_numbers = #tpu.dot_dimension_numbers<[1], [0], [0], [1], [0, 0, 1, 1], [], []>, precision = #tpu.contract_precision<fp32>} : vector<8x32xf32>, vector<32x128xf32>, vector<8x128xf32> -> vector<8x128xf32>
    %286 = arith.addf %284, %285 : vector<8x128xf32>
    %287 = arith.negf %286 : vector<8x128xf32>
    %288 = math.exp %287 : vector<8x128xf32>
    %cst_63 = arith.constant 1.000000e+00 : f32
    %289 = vector.broadcast %cst_63 : f32 to vector<8x128xf32>
    %290 = arith.addf %289, %288 : vector<8x128xf32>
    %291 = arith.divf %289, %290 : vector<8x128xf32>
    %292 = math.tanh %286 : vector<8x128xf32>
    %293 = vector.extract_strided_slice %291 {offsets = [0, 0], sizes = [8, 32], strides = [1, 1]} : vector<8x128xf32> to vector<8x32xf32>
    %294 = vector.extract_strided_slice %291 {offsets = [0, 32], sizes = [8, 32], strides = [1, 1]} : vector<8x128xf32> to vector<8x32xf32>
    %295 = vector.extract_strided_slice %292 {offsets = [0, 64], sizes = [8, 32], strides = [1, 1]} : vector<8x128xf32> to vector<8x32xf32>
    %296 = vector.extract_strided_slice %291 {offsets = [0, 96], sizes = [8, 32], strides = [1, 1]} : vector<8x128xf32> to vector<8x32xf32>
    %297 = arith.mulf %294, %261 : vector<8x32xf32>
    %298 = arith.mulf %293, %295 : vector<8x32xf32>
    %299 = arith.addf %297, %298 : vector<8x32xf32>
    %300 = math.tanh %299 : vector<8x32xf32>
    %301 = arith.mulf %296, %300 : vector<8x32xf32>
    %cst_64 = arith.constant dense<0.000000e+00> : vector<8x128xf32>
    %302 = tpu.matmul %301, %3, %cst_64 {dimension_numbers = #tpu.dot_dimension_numbers<[1], [0], [0], [1], [0, 0, 1, 1], [], []>, precision = #tpu.contract_precision<fp32>} : vector<8x32xf32>, vector<32x128xf32>, vector<8x128xf32> -> vector<8x128xf32>
    %303 = vector.broadcast %5 : vector<1x128xf32> to vector<8x128xf32>
    %304 = arith.addf %302, %303 : vector<8x128xf32>
    %cst_65 = arith.constant dense<0.000000e+00> : vector<8x128xf32>
    %305 = tpu.matmul %283, %4, %cst_65 {dimension_numbers = #tpu.dot_dimension_numbers<[1], [0], [0], [1], [0, 0, 1, 1], [], []>, precision = #tpu.contract_precision<fp32>} : vector<8x32xf32>, vector<32x128xf32>, vector<8x128xf32> -> vector<8x128xf32>
    %306 = arith.addf %304, %305 : vector<8x128xf32>
    %307 = arith.negf %306 : vector<8x128xf32>
    %308 = math.exp %307 : vector<8x128xf32>
    %cst_66 = arith.constant 1.000000e+00 : f32
    %309 = vector.broadcast %cst_66 : f32 to vector<8x128xf32>
    %310 = arith.addf %309, %308 : vector<8x128xf32>
    %311 = arith.divf %309, %310 : vector<8x128xf32>
    %312 = math.tanh %306 : vector<8x128xf32>
    %313 = vector.extract_strided_slice %311 {offsets = [0, 0], sizes = [8, 32], strides = [1, 1]} : vector<8x128xf32> to vector<8x32xf32>
    %314 = vector.extract_strided_slice %311 {offsets = [0, 32], sizes = [8, 32], strides = [1, 1]} : vector<8x128xf32> to vector<8x32xf32>
    %315 = vector.extract_strided_slice %312 {offsets = [0, 64], sizes = [8, 32], strides = [1, 1]} : vector<8x128xf32> to vector<8x32xf32>
    %316 = vector.extract_strided_slice %311 {offsets = [0, 96], sizes = [8, 32], strides = [1, 1]} : vector<8x128xf32> to vector<8x32xf32>
    %317 = arith.mulf %314, %281 : vector<8x32xf32>
    %318 = arith.mulf %313, %315 : vector<8x32xf32>
    %319 = arith.addf %317, %318 : vector<8x32xf32>
    %320 = math.tanh %319 : vector<8x32xf32>
    %321 = arith.mulf %316, %320 : vector<8x32xf32>
    %322 = tpu.concatenate %301, %321 in 0 : vector<8x32xf32>, vector<8x32xf32> -> vector<16x32xf32>
    %cst_67 = arith.constant dense<0.000000e+00> : vector<16x64xf32>
    %323 = tpu.matmul %322, %6, %cst_67 {dimension_numbers = #tpu.dot_dimension_numbers<[1], [0], [0], [1], [0, 0, 1, 1], [], []>, precision = #tpu.contract_precision<fp32>} : vector<16x32xf32>, vector<32x64xf32>, vector<16x64xf32> -> vector<16x64xf32>
    %324 = vector.broadcast %8 : vector<1x64xf32> to vector<16x64xf32>
    %325 = arith.addf %323, %324 : vector<16x64xf32>
    %326 = vector.extract_strided_slice %325 {offsets = [0, 0], sizes = [8, 64], strides = [1, 1]} : vector<16x64xf32> to vector<8x64xf32>
    %cst_68 = arith.constant dense<0.000000e+00> : vector<8x64xf32>
    %327 = tpu.matmul %13, %7, %cst_68 {dimension_numbers = #tpu.dot_dimension_numbers<[1], [0], [0], [1], [0, 0, 1, 1], [], []>, precision = #tpu.contract_precision<fp32>} : vector<8x16xf32>, vector<16x64xf32>, vector<8x64xf32> -> vector<8x64xf32>
    %328 = arith.addf %326, %327 : vector<8x64xf32>
    %329 = arith.negf %328 : vector<8x64xf32>
    %330 = math.exp %329 : vector<8x64xf32>
    %cst_69 = arith.constant 1.000000e+00 : f32
    %331 = vector.broadcast %cst_69 : f32 to vector<8x64xf32>
    %332 = arith.addf %331, %330 : vector<8x64xf32>
    %333 = arith.divf %331, %332 : vector<8x64xf32>
    %334 = math.tanh %328 : vector<8x64xf32>
    %335 = vector.extract_strided_slice %333 {offsets = [0, 0], sizes = [8, 16], strides = [1, 1]} : vector<8x64xf32> to vector<8x16xf32>
    %336 = vector.extract_strided_slice %333 {offsets = [0, 16], sizes = [8, 16], strides = [1, 1]} : vector<8x64xf32> to vector<8x16xf32>
    %337 = vector.extract_strided_slice %334 {offsets = [0, 32], sizes = [8, 16], strides = [1, 1]} : vector<8x64xf32> to vector<8x16xf32>
    %338 = vector.extract_strided_slice %333 {offsets = [0, 48], sizes = [8, 16], strides = [1, 1]} : vector<8x64xf32> to vector<8x16xf32>
    %339 = arith.mulf %336, %13 : vector<8x16xf32>
    %340 = arith.mulf %335, %337 : vector<8x16xf32>
    %341 = arith.addf %339, %340 : vector<8x16xf32>
    %342 = math.tanh %341 : vector<8x16xf32>
    %343 = arith.mulf %338, %342 : vector<8x16xf32>
    %cst_70 = arith.constant dense<0.000000e+00> : vector<8x64xf32>
    %344 = tpu.matmul %343, %9, %cst_70 {dimension_numbers = #tpu.dot_dimension_numbers<[1], [0], [0], [1], [0, 0, 1, 1], [], []>, precision = #tpu.contract_precision<fp32>} : vector<8x16xf32>, vector<16x64xf32>, vector<8x64xf32> -> vector<8x64xf32>
    %345 = vector.broadcast %11 : vector<1x64xf32> to vector<8x64xf32>
    %346 = arith.addf %344, %345 : vector<8x64xf32>
    %cst_71 = arith.constant dense<0.000000e+00> : vector<8x64xf32>
    %347 = tpu.matmul %13, %10, %cst_71 {dimension_numbers = #tpu.dot_dimension_numbers<[1], [0], [0], [1], [0, 0, 1, 1], [], []>, precision = #tpu.contract_precision<fp32>} : vector<8x16xf32>, vector<16x64xf32>, vector<8x64xf32> -> vector<8x64xf32>
    %348 = arith.addf %346, %347 : vector<8x64xf32>
    %349 = arith.negf %348 : vector<8x64xf32>
    %350 = math.exp %349 : vector<8x64xf32>
    %cst_72 = arith.constant 1.000000e+00 : f32
    %351 = vector.broadcast %cst_72 : f32 to vector<8x64xf32>
    %352 = arith.addf %351, %350 : vector<8x64xf32>
    %353 = arith.divf %351, %352 : vector<8x64xf32>
    %354 = math.tanh %348 : vector<8x64xf32>
    %355 = vector.extract_strided_slice %353 {offsets = [0, 0], sizes = [8, 16], strides = [1, 1]} : vector<8x64xf32> to vector<8x16xf32>
    %356 = vector.extract_strided_slice %353 {offsets = [0, 16], sizes = [8, 16], strides = [1, 1]} : vector<8x64xf32> to vector<8x16xf32>
    %357 = vector.extract_strided_slice %354 {offsets = [0, 32], sizes = [8, 16], strides = [1, 1]} : vector<8x64xf32> to vector<8x16xf32>
    %358 = vector.extract_strided_slice %353 {offsets = [0, 48], sizes = [8, 16], strides = [1, 1]} : vector<8x64xf32> to vector<8x16xf32>
    %359 = arith.mulf %356, %13 : vector<8x16xf32>
    %360 = arith.mulf %355, %357 : vector<8x16xf32>
    %361 = arith.addf %359, %360 : vector<8x16xf32>
    %362 = math.tanh %361 : vector<8x16xf32>
    %363 = arith.mulf %358, %362 : vector<8x16xf32>
    %c0_73 = arith.constant 0 : index
    %c0_74 = arith.constant 0 : index
    %364 = vector.load %arg14[%c0_73, %c0_74] : memref<128x16xf32, #tpu.memory_space<vmem>>, vector<8x16xf32>
    tpu.vector_store %arg14[%c0_73, %c0_74], %363 {strides = array<i32>} : memref<128x16xf32, #tpu.memory_space<vmem>>, vector<8x16xf32>,
    %365 = vector.extract_strided_slice %325 {offsets = [8, 0], sizes = [8, 64], strides = [1, 1]} : vector<16x64xf32> to vector<8x64xf32>
    %cst_75 = arith.constant dense<0.000000e+00> : vector<8x64xf32>
    %366 = tpu.matmul %343, %7, %cst_75 {dimension_numbers = #tpu.dot_dimension_numbers<[1], [0], [0], [1], [0, 0, 1, 1], [], []>, precision = #tpu.contract_precision<fp32>} : vector<8x16xf32>, vector<16x64xf32>, vector<8x64xf32> -> vector<8x64xf32>
    %367 = arith.addf %365, %366 : vector<8x64xf32>
    %368 = arith.negf %367 : vector<8x64xf32>
    %369 = math.exp %368 : vector<8x64xf32>
    %cst_76 = arith.constant 1.000000e+00 : f32
    %370 = vector.broadcast %cst_76 : f32 to vector<8x64xf32>
    %371 = arith.addf %370, %369 : vector<8x64xf32>
    %372 = arith.divf %370, %371 : vector<8x64xf32>
    %373 = math.tanh %367 : vector<8x64xf32>
    %374 = vector.extract_strided_slice %372 {offsets = [0, 0], sizes = [8, 16], strides = [1, 1]} : vector<8x64xf32> to vector<8x16xf32>
    %375 = vector.extract_strided_slice %372 {offsets = [0, 16], sizes = [8, 16], strides = [1, 1]} : vector<8x64xf32> to vector<8x16xf32>
    %376 = vector.extract_strided_slice %373 {offsets = [0, 32], sizes = [8, 16], strides = [1, 1]} : vector<8x64xf32> to vector<8x16xf32>
    %377 = vector.extract_strided_slice %372 {offsets = [0, 48], sizes = [8, 16], strides = [1, 1]} : vector<8x64xf32> to vector<8x16xf32>
    %378 = arith.mulf %375, %341 : vector<8x16xf32>
    %379 = arith.mulf %374, %376 : vector<8x16xf32>
    %380 = arith.addf %378, %379 : vector<8x16xf32>
    %381 = math.tanh %380 : vector<8x16xf32>
    %382 = arith.mulf %377, %381 : vector<8x16xf32>
    %cst_77 = arith.constant dense<0.000000e+00> : vector<8x64xf32>
    %383 = tpu.matmul %382, %9, %cst_77 {dimension_numbers = #tpu.dot_dimension_numbers<[1], [0], [0], [1], [0, 0, 1, 1], [], []>, precision = #tpu.contract_precision<fp32>} : vector<8x16xf32>, vector<16x64xf32>, vector<8x64xf32> -> vector<8x64xf32>
    %384 = vector.broadcast %11 : vector<1x64xf32> to vector<8x64xf32>
    %385 = arith.addf %383, %384 : vector<8x64xf32>
    %cst_78 = arith.constant dense<0.000000e+00> : vector<8x64xf32>
    %386 = tpu.matmul %363, %10, %cst_78 {dimension_numbers = #tpu.dot_dimension_numbers<[1], [0], [0], [1], [0, 0, 1, 1], [], []>, precision = #tpu.contract_precision<fp32>} : vector<8x16xf32>, vector<16x64xf32>, vector<8x64xf32> -> vector<8x64xf32>
    %387 = arith.addf %385, %386 : vector<8x64xf32>
    %388 = arith.negf %387 : vector<8x64xf32>
    %389 = math.exp %388 : vector<8x64xf32>
    %cst_79 = arith.constant 1.000000e+00 : f32
    %390 = vector.broadcast %cst_79 : f32 to vector<8x64xf32>
    %391 = arith.addf %390, %389 : vector<8x64xf32>
    %392 = arith.divf %390, %391 : vector<8x64xf32>
    %393 = math.tanh %387 : vector<8x64xf32>
    %394 = vector.extract_strided_slice %392 {offsets = [0, 0], sizes = [8, 16], strides = [1, 1]} : vector<8x64xf32> to vector<8x16xf32>
    %395 = vector.extract_strided_slice %392 {offsets = [0, 16], sizes = [8, 16], strides = [1, 1]} : vector<8x64xf32> to vector<8x16xf32>
    %396 = vector.extract_strided_slice %393 {offsets = [0, 32], sizes = [8, 16], strides = [1, 1]} : vector<8x64xf32> to vector<8x16xf32>
    %397 = vector.extract_strided_slice %392 {offsets = [0, 48], sizes = [8, 16], strides = [1, 1]} : vector<8x64xf32> to vector<8x16xf32>
    %398 = arith.mulf %395, %361 : vector<8x16xf32>
    %399 = arith.mulf %394, %396 : vector<8x16xf32>
    %400 = arith.addf %398, %399 : vector<8x16xf32>
    %401 = math.tanh %400 : vector<8x16xf32>
    %402 = arith.mulf %397, %401 : vector<8x16xf32>
    %c8 = arith.constant 8 : index
    %c0_80 = arith.constant 0 : index
    %403 = vector.load %arg14[%c8, %c0_80] : memref<128x16xf32, #tpu.memory_space<vmem>>, vector<8x16xf32>
    tpu.vector_store %arg14[%c8, %c0_80], %402 {strides = array<i32>} : memref<128x16xf32, #tpu.memory_space<vmem>>, vector<8x16xf32>,
    %404 = vector.extract_strided_slice %325 {offsets = [0, 0], sizes = [8, 64], strides = [1, 1]} : vector<16x64xf32> to vector<8x64xf32>
    %cst_81 = arith.constant dense<0.000000e+00> : vector<8x64xf32>
    %405 = tpu.matmul %382, %7, %cst_81 {dimension_numbers = #tpu.dot_dimension_numbers<[1], [0], [0], [1], [0, 0, 1, 1], [], []>, precision = #tpu.contract_precision<fp32>} : vector<8x16xf32>, vector<16x64xf32>, vector<8x64xf32> -> vector<8x64xf32>
    %406 = arith.addf %404, %405 : vector<8x64xf32>
    %407 = arith.negf %406 : vector<8x64xf32>
    %408 = math.exp %407 : vector<8x64xf32>
    %cst_82 = arith.constant 1.000000e+00 : f32
    %409 = vector.broadcast %cst_82 : f32 to vector<8x64xf32>
    %410 = arith.addf %409, %408 : vector<8x64xf32>
    %411 = arith.divf %409, %410 : vector<8x64xf32>
    %412 = math.tanh %406 : vector<8x64xf32>
    %413 = vector.extract_strided_slice %411 {offsets = [0, 0], sizes = [8, 16], strides = [1, 1]} : vector<8x64xf32> to vector<8x16xf32>
    %414 = vector.extract_strided_slice %411 {offsets = [0, 16], sizes = [8, 16], strides = [1, 1]} : vector<8x64xf32> to vector<8x16xf32>
    %415 = vector.extract_strided_slice %412 {offsets = [0, 32], sizes = [8, 16], strides = [1, 1]} : vector<8x64xf32> to vector<8x16xf32>
    %416 = vector.extract_strided_slice %411 {offsets = [0, 48], sizes = [8, 16], strides = [1, 1]} : vector<8x64xf32> to vector<8x16xf32>
    %417 = arith.mulf %414, %380 : vector<8x16xf32>
    %418 = arith.mulf %413, %415 : vector<8x16xf32>
    %419 = arith.addf %417, %418 : vector<8x16xf32>
    %420 = math.tanh %419 : vector<8x16xf32>
    %421 = arith.mulf %416, %420 : vector<8x16xf32>
    %cst_83 = arith.constant dense<0.000000e+00> : vector<8x64xf32>
    %422 = tpu.matmul %421, %9, %cst_83 {dimension_numbers = #tpu.dot_dimension_numbers<[1], [0], [0], [1], [0, 0, 1, 1], [], []>, precision = #tpu.contract_precision<fp32>} : vector<8x16xf32>, vector<16x64xf32>, vector<8x64xf32> -> vector<8x64xf32>
    %423 = vector.broadcast %11 : vector<1x64xf32> to vector<8x64xf32>
    %424 = arith.addf %422, %423 : vector<8x64xf32>
    %cst_84 = arith.constant dense<0.000000e+00> : vector<8x64xf32>
    %425 = tpu.matmul %402, %10, %cst_84 {dimension_numbers = #tpu.dot_dimension_numbers<[1], [0], [0], [1], [0, 0, 1, 1], [], []>, precision = #tpu.contract_precision<fp32>} : vector<8x16xf32>, vector<16x64xf32>, vector<8x64xf32> -> vector<8x64xf32>
    %426 = arith.addf %424, %425 : vector<8x64xf32>
    %427 = arith.negf %426 : vector<8x64xf32>
    %428 = math.exp %427 : vector<8x64xf32>
    %cst_85 = arith.constant 1.000000e+00 : f32
    %429 = vector.broadcast %cst_85 : f32 to vector<8x64xf32>
    %430 = arith.addf %429, %428 : vector<8x64xf32>
    %431 = arith.divf %429, %430 : vector<8x64xf32>
    %432 = math.tanh %426 : vector<8x64xf32>
    %433 = vector.extract_strided_slice %431 {offsets = [0, 0], sizes = [8, 16], strides = [1, 1]} : vector<8x64xf32> to vector<8x16xf32>
    %434 = vector.extract_strided_slice %431 {offsets = [0, 16], sizes = [8, 16], strides = [1, 1]} : vector<8x64xf32> to vector<8x16xf32>
    %435 = vector.extract_strided_slice %432 {offsets = [0, 32], sizes = [8, 16], strides = [1, 1]} : vector<8x64xf32> to vector<8x16xf32>
    %436 = vector.extract_strided_slice %431 {offsets = [0, 48], sizes = [8, 16], strides = [1, 1]} : vector<8x64xf32> to vector<8x16xf32>
    %437 = arith.mulf %434, %400 : vector<8x16xf32>
    %438 = arith.mulf %433, %435 : vector<8x16xf32>
    %439 = arith.addf %437, %438 : vector<8x16xf32>
    %440 = math.tanh %439 : vector<8x16xf32>
    %441 = arith.mulf %436, %440 : vector<8x16xf32>
    %c16 = arith.constant 16 : index
    %c0_86 = arith.constant 0 : index
    %442 = vector.load %arg14[%c16, %c0_86] : memref<128x16xf32, #tpu.memory_space<vmem>>, vector<8x16xf32>
    tpu.vector_store %arg14[%c16, %c0_86], %441 {strides = array<i32>} : memref<128x16xf32, #tpu.memory_space<vmem>>, vector<8x16xf32>,
    %443 = vector.extract_strided_slice %325 {offsets = [8, 0], sizes = [8, 64], strides = [1, 1]} : vector<16x64xf32> to vector<8x64xf32>
    %cst_87 = arith.constant dense<0.000000e+00> : vector<8x64xf32>
    %444 = tpu.matmul %421, %7, %cst_87 {dimension_numbers = #tpu.dot_dimension_numbers<[1], [0], [0], [1], [0, 0, 1, 1], [], []>, precision = #tpu.contract_precision<fp32>} : vector<8x16xf32>, vector<16x64xf32>, vector<8x64xf32> -> vector<8x64xf32>
    %445 = arith.addf %443, %444 : vector<8x64xf32>
    %446 = arith.negf %445 : vector<8x64xf32>
    %447 = math.exp %446 : vector<8x64xf32>
    %cst_88 = arith.constant 1.000000e+00 : f32
    %448 = vector.broadcast %cst_88 : f32 to vector<8x64xf32>
    %449 = arith.addf %448, %447 : vector<8x64xf32>
    %450 = arith.divf %448, %449 : vector<8x64xf32>
    %451 = math.tanh %445 : vector<8x64xf32>
    %452 = vector.extract_strided_slice %450 {offsets = [0, 0], sizes = [8, 16], strides = [1, 1]} : vector<8x64xf32> to vector<8x16xf32>
    %453 = vector.extract_strided_slice %450 {offsets = [0, 16], sizes = [8, 16], strides = [1, 1]} : vector<8x64xf32> to vector<8x16xf32>
    %454 = vector.extract_strided_slice %451 {offsets = [0, 32], sizes = [8, 16], strides = [1, 1]} : vector<8x64xf32> to vector<8x16xf32>
    %455 = vector.extract_strided_slice %450 {offsets = [0, 48], sizes = [8, 16], strides = [1, 1]} : vector<8x64xf32> to vector<8x16xf32>
    %456 = arith.mulf %453, %419 : vector<8x16xf32>
    %457 = arith.mulf %452, %454 : vector<8x16xf32>
    %458 = arith.addf %456, %457 : vector<8x16xf32>
    %459 = math.tanh %458 : vector<8x16xf32>
    %460 = arith.mulf %455, %459 : vector<8x16xf32>
    %cst_89 = arith.constant dense<0.000000e+00> : vector<8x64xf32>
    %461 = tpu.matmul %460, %9, %cst_89 {dimension_numbers = #tpu.dot_dimension_numbers<[1], [0], [0], [1], [0, 0, 1, 1], [], []>, precision = #tpu.contract_precision<fp32>} : vector<8x16xf32>, vector<16x64xf32>, vector<8x64xf32> -> vector<8x64xf32>
    %462 = vector.broadcast %11 : vector<1x64xf32> to vector<8x64xf32>
    %463 = arith.addf %461, %462 : vector<8x64xf32>
    %cst_90 = arith.constant dense<0.000000e+00> : vector<8x64xf32>
    %464 = tpu.matmul %441, %10, %cst_90 {dimension_numbers = #tpu.dot_dimension_numbers<[1], [0], [0], [1], [0, 0, 1, 1], [], []>, precision = #tpu.contract_precision<fp32>} : vector<8x16xf32>, vector<16x64xf32>, vector<8x64xf32> -> vector<8x64xf32>
    %465 = arith.addf %463, %464 : vector<8x64xf32>
    %466 = arith.negf %465 : vector<8x64xf32>
    %467 = math.exp %466 : vector<8x64xf32>
    %cst_91 = arith.constant 1.000000e+00 : f32
    %468 = vector.broadcast %cst_91 : f32 to vector<8x64xf32>
    %469 = arith.addf %468, %467 : vector<8x64xf32>
    %470 = arith.divf %468, %469 : vector<8x64xf32>
    %471 = math.tanh %465 : vector<8x64xf32>
    %472 = vector.extract_strided_slice %470 {offsets = [0, 0], sizes = [8, 16], strides = [1, 1]} : vector<8x64xf32> to vector<8x16xf32>
    %473 = vector.extract_strided_slice %470 {offsets = [0, 16], sizes = [8, 16], strides = [1, 1]} : vector<8x64xf32> to vector<8x16xf32>
    %474 = vector.extract_strided_slice %471 {offsets = [0, 32], sizes = [8, 16], strides = [1, 1]} : vector<8x64xf32> to vector<8x16xf32>
    %475 = vector.extract_strided_slice %470 {offsets = [0, 48], sizes = [8, 16], strides = [1, 1]} : vector<8x64xf32> to vector<8x16xf32>
    %476 = arith.mulf %473, %439 : vector<8x16xf32>
    %477 = arith.mulf %472, %474 : vector<8x16xf32>
    %478 = arith.addf %476, %477 : vector<8x16xf32>
    %479 = math.tanh %478 : vector<8x16xf32>
    %480 = arith.mulf %475, %479 : vector<8x16xf32>
    %c24 = arith.constant 24 : index
    %c0_92 = arith.constant 0 : index
    %481 = vector.load %arg14[%c24, %c0_92] : memref<128x16xf32, #tpu.memory_space<vmem>>, vector<8x16xf32>
    tpu.vector_store %arg14[%c24, %c0_92], %480 {strides = array<i32>} : memref<128x16xf32, #tpu.memory_space<vmem>>, vector<8x16xf32>,
    %482 = vector.extract_strided_slice %325 {offsets = [0, 0], sizes = [8, 64], strides = [1, 1]} : vector<16x64xf32> to vector<8x64xf32>
    %cst_93 = arith.constant dense<0.000000e+00> : vector<8x64xf32>
    %483 = tpu.matmul %460, %7, %cst_93 {dimension_numbers = #tpu.dot_dimension_numbers<[1], [0], [0], [1], [0, 0, 1, 1], [], []>, precision = #tpu.contract_precision<fp32>} : vector<8x16xf32>, vector<16x64xf32>, vector<8x64xf32> -> vector<8x64xf32>
    %484 = arith.addf %482, %483 : vector<8x64xf32>
    %485 = arith.negf %484 : vector<8x64xf32>
    %486 = math.exp %485 : vector<8x64xf32>
    %cst_94 = arith.constant 1.000000e+00 : f32
    %487 = vector.broadcast %cst_94 : f32 to vector<8x64xf32>
    %488 = arith.addf %487, %486 : vector<8x64xf32>
    %489 = arith.divf %487, %488 : vector<8x64xf32>
    %490 = math.tanh %484 : vector<8x64xf32>
    %491 = vector.extract_strided_slice %489 {offsets = [0, 0], sizes = [8, 16], strides = [1, 1]} : vector<8x64xf32> to vector<8x16xf32>
    %492 = vector.extract_strided_slice %489 {offsets = [0, 16], sizes = [8, 16], strides = [1, 1]} : vector<8x64xf32> to vector<8x16xf32>
    %493 = vector.extract_strided_slice %490 {offsets = [0, 32], sizes = [8, 16], strides = [1, 1]} : vector<8x64xf32> to vector<8x16xf32>
    %494 = vector.extract_strided_slice %489 {offsets = [0, 48], sizes = [8, 16], strides = [1, 1]} : vector<8x64xf32> to vector<8x16xf32>
    %495 = arith.mulf %492, %458 : vector<8x16xf32>
    %496 = arith.mulf %491, %493 : vector<8x16xf32>
    %497 = arith.addf %495, %496 : vector<8x16xf32>
    %498 = math.tanh %497 : vector<8x16xf32>
    %499 = arith.mulf %494, %498 : vector<8x16xf32>
    %cst_95 = arith.constant dense<0.000000e+00> : vector<8x64xf32>
    %500 = tpu.matmul %499, %9, %cst_95 {dimension_numbers = #tpu.dot_dimension_numbers<[1], [0], [0], [1], [0, 0, 1, 1], [], []>, precision = #tpu.contract_precision<fp32>} : vector<8x16xf32>, vector<16x64xf32>, vector<8x64xf32> -> vector<8x64xf32>
    %501 = vector.broadcast %11 : vector<1x64xf32> to vector<8x64xf32>
    %502 = arith.addf %500, %501 : vector<8x64xf32>
    %cst_96 = arith.constant dense<0.000000e+00> : vector<8x64xf32>
    %503 = tpu.matmul %480, %10, %cst_96 {dimension_numbers = #tpu.dot_dimension_numbers<[1], [0], [0], [1], [0, 0, 1, 1], [], []>, precision = #tpu.contract_precision<fp32>} : vector<8x16xf32>, vector<16x64xf32>, vector<8x64xf32> -> vector<8x64xf32>
    %504 = arith.addf %502, %503 : vector<8x64xf32>
    %505 = arith.negf %504 : vector<8x64xf32>
    %506 = math.exp %505 : vector<8x64xf32>
    %cst_97 = arith.constant 1.000000e+00 : f32
    %507 = vector.broadcast %cst_97 : f32 to vector<8x64xf32>
    %508 = arith.addf %507, %506 : vector<8x64xf32>
    %509 = arith.divf %507, %508 : vector<8x64xf32>
    %510 = math.tanh %504 : vector<8x64xf32>
    %511 = vector.extract_strided_slice %509 {offsets = [0, 0], sizes = [8, 16], strides = [1, 1]} : vector<8x64xf32> to vector<8x16xf32>
    %512 = vector.extract_strided_slice %509 {offsets = [0, 16], sizes = [8, 16], strides = [1, 1]} : vector<8x64xf32> to vector<8x16xf32>
    %513 = vector.extract_strided_slice %510 {offsets = [0, 32], sizes = [8, 16], strides = [1, 1]} : vector<8x64xf32> to vector<8x16xf32>
    %514 = vector.extract_strided_slice %509 {offsets = [0, 48], sizes = [8, 16], strides = [1, 1]} : vector<8x64xf32> to vector<8x16xf32>
    %515 = arith.mulf %512, %478 : vector<8x16xf32>
    %516 = arith.mulf %511, %513 : vector<8x16xf32>
    %517 = arith.addf %515, %516 : vector<8x16xf32>
    %518 = math.tanh %517 : vector<8x16xf32>
    %519 = arith.mulf %514, %518 : vector<8x16xf32>
    %c32 = arith.constant 32 : index
    %c0_98 = arith.constant 0 : index
    %520 = vector.load %arg14[%c32, %c0_98] : memref<128x16xf32, #tpu.memory_space<vmem>>, vector<8x16xf32>
    tpu.vector_store %arg14[%c32, %c0_98], %519 {strides = array<i32>} : memref<128x16xf32, #tpu.memory_space<vmem>>, vector<8x16xf32>,
    %521 = vector.extract_strided_slice %325 {offsets = [8, 0], sizes = [8, 64], strides = [1, 1]} : vector<16x64xf32> to vector<8x64xf32>
    %cst_99 = arith.constant dense<0.000000e+00> : vector<8x64xf32>
    %522 = tpu.matmul %499, %7, %cst_99 {dimension_numbers = #tpu.dot_dimension_numbers<[1], [0], [0], [1], [0, 0, 1, 1], [], []>, precision = #tpu.contract_precision<fp32>} : vector<8x16xf32>, vector<16x64xf32>, vector<8x64xf32> -> vector<8x64xf32>
    %523 = arith.addf %521, %522 : vector<8x64xf32>
    %524 = arith.negf %523 : vector<8x64xf32>
    %525 = math.exp %524 : vector<8x64xf32>
    %cst_100 = arith.constant 1.000000e+00 : f32
    %526 = vector.broadcast %cst_100 : f32 to vector<8x64xf32>
    %527 = arith.addf %526, %525 : vector<8x64xf32>
    %528 = arith.divf %526, %527 : vector<8x64xf32>
    %529 = math.tanh %523 : vector<8x64xf32>
    %530 = vector.extract_strided_slice %528 {offsets = [0, 0], sizes = [8, 16], strides = [1, 1]} : vector<8x64xf32> to vector<8x16xf32>
    %531 = vector.extract_strided_slice %528 {offsets = [0, 16], sizes = [8, 16], strides = [1, 1]} : vector<8x64xf32> to vector<8x16xf32>
    %532 = vector.extract_strided_slice %529 {offsets = [0, 32], sizes = [8, 16], strides = [1, 1]} : vector<8x64xf32> to vector<8x16xf32>
    %533 = vector.extract_strided_slice %528 {offsets = [0, 48], sizes = [8, 16], strides = [1, 1]} : vector<8x64xf32> to vector<8x16xf32>
    %534 = arith.mulf %531, %497 : vector<8x16xf32>
    %535 = arith.mulf %530, %532 : vector<8x16xf32>
    %536 = arith.addf %534, %535 : vector<8x16xf32>
    %537 = math.tanh %536 : vector<8x16xf32>
    %538 = arith.mulf %533, %537 : vector<8x16xf32>
    %cst_101 = arith.constant dense<0.000000e+00> : vector<8x64xf32>
    %539 = tpu.matmul %538, %9, %cst_101 {dimension_numbers = #tpu.dot_dimension_numbers<[1], [0], [0], [1], [0, 0, 1, 1], [], []>, precision = #tpu.contract_precision<fp32>} : vector<8x16xf32>, vector<16x64xf32>, vector<8x64xf32> -> vector<8x64xf32>
    %540 = vector.broadcast %11 : vector<1x64xf32> to vector<8x64xf32>
    %541 = arith.addf %539, %540 : vector<8x64xf32>
    %cst_102 = arith.constant dense<0.000000e+00> : vector<8x64xf32>
    %542 = tpu.matmul %519, %10, %cst_102 {dimension_numbers = #tpu.dot_dimension_numbers<[1], [0], [0], [1], [0, 0, 1, 1], [], []>, precision = #tpu.contract_precision<fp32>} : vector<8x16xf32>, vector<16x64xf32>, vector<8x64xf32> -> vector<8x64xf32>
    %543 = arith.addf %541, %542 : vector<8x64xf32>
    %544 = arith.negf %543 : vector<8x64xf32>
    %545 = math.exp %544 : vector<8x64xf32>
    %cst_103 = arith.constant 1.000000e+00 : f32
    %546 = vector.broadcast %cst_103 : f32 to vector<8x64xf32>
    %547 = arith.addf %546, %545 : vector<8x64xf32>
    %548 = arith.divf %546, %547 : vector<8x64xf32>
    %549 = math.tanh %543 : vector<8x64xf32>
    %550 = vector.extract_strided_slice %548 {offsets = [0, 0], sizes = [8, 16], strides = [1, 1]} : vector<8x64xf32> to vector<8x16xf32>
    %551 = vector.extract_strided_slice %548 {offsets = [0, 16], sizes = [8, 16], strides = [1, 1]} : vector<8x64xf32> to vector<8x16xf32>
    %552 = vector.extract_strided_slice %549 {offsets = [0, 32], sizes = [8, 16], strides = [1, 1]} : vector<8x64xf32> to vector<8x16xf32>
    %553 = vector.extract_strided_slice %548 {offsets = [0, 48], sizes = [8, 16], strides = [1, 1]} : vector<8x64xf32> to vector<8x16xf32>
    %554 = arith.mulf %551, %517 : vector<8x16xf32>
    %555 = arith.mulf %550, %552 : vector<8x16xf32>
    %556 = arith.addf %554, %555 : vector<8x16xf32>
    %557 = math.tanh %556 : vector<8x16xf32>
    %558 = arith.mulf %553, %557 : vector<8x16xf32>
    %c40 = arith.constant 40 : index
    %c0_104 = arith.constant 0 : index
    %559 = vector.load %arg14[%c40, %c0_104] : memref<128x16xf32, #tpu.memory_space<vmem>>, vector<8x16xf32>
    tpu.vector_store %arg14[%c40, %c0_104], %558 {strides = array<i32>} : memref<128x16xf32, #tpu.memory_space<vmem>>, vector<8x16xf32>,
    %560 = vector.extract_strided_slice %325 {offsets = [0, 0], sizes = [8, 64], strides = [1, 1]} : vector<16x64xf32> to vector<8x64xf32>
    %cst_105 = arith.constant dense<0.000000e+00> : vector<8x64xf32>
    %561 = tpu.matmul %538, %7, %cst_105 {dimension_numbers = #tpu.dot_dimension_numbers<[1], [0], [0], [1], [0, 0, 1, 1], [], []>, precision = #tpu.contract_precision<fp32>} : vector<8x16xf32>, vector<16x64xf32>, vector<8x64xf32> -> vector<8x64xf32>
    %562 = arith.addf %560, %561 : vector<8x64xf32>
    %563 = arith.negf %562 : vector<8x64xf32>
    %564 = math.exp %563 : vector<8x64xf32>
    %cst_106 = arith.constant 1.000000e+00 : f32
    %565 = vector.broadcast %cst_106 : f32 to vector<8x64xf32>
    %566 = arith.addf %565, %564 : vector<8x64xf32>
    %567 = arith.divf %565, %566 : vector<8x64xf32>
    %568 = math.tanh %562 : vector<8x64xf32>
    %569 = vector.extract_strided_slice %567 {offsets = [0, 0], sizes = [8, 16], strides = [1, 1]} : vector<8x64xf32> to vector<8x16xf32>
    %570 = vector.extract_strided_slice %567 {offsets = [0, 16], sizes = [8, 16], strides = [1, 1]} : vector<8x64xf32> to vector<8x16xf32>
    %571 = vector.extract_strided_slice %568 {offsets = [0, 32], sizes = [8, 16], strides = [1, 1]} : vector<8x64xf32> to vector<8x16xf32>
    %572 = vector.extract_strided_slice %567 {offsets = [0, 48], sizes = [8, 16], strides = [1, 1]} : vector<8x64xf32> to vector<8x16xf32>
    %573 = arith.mulf %570, %536 : vector<8x16xf32>
    %574 = arith.mulf %569, %571 : vector<8x16xf32>
    %575 = arith.addf %573, %574 : vector<8x16xf32>
    %576 = math.tanh %575 : vector<8x16xf32>
    %577 = arith.mulf %572, %576 : vector<8x16xf32>
    %cst_107 = arith.constant dense<0.000000e+00> : vector<8x64xf32>
    %578 = tpu.matmul %577, %9, %cst_107 {dimension_numbers = #tpu.dot_dimension_numbers<[1], [0], [0], [1], [0, 0, 1, 1], [], []>, precision = #tpu.contract_precision<fp32>} : vector<8x16xf32>, vector<16x64xf32>, vector<8x64xf32> -> vector<8x64xf32>
    %579 = vector.broadcast %11 : vector<1x64xf32> to vector<8x64xf32>
    %580 = arith.addf %578, %579 : vector<8x64xf32>
    %cst_108 = arith.constant dense<0.000000e+00> : vector<8x64xf32>
    %581 = tpu.matmul %558, %10, %cst_108 {dimension_numbers = #tpu.dot_dimension_numbers<[1], [0], [0], [1], [0, 0, 1, 1], [], []>, precision = #tpu.contract_precision<fp32>} : vector<8x16xf32>, vector<16x64xf32>, vector<8x64xf32> -> vector<8x64xf32>
    %582 = arith.addf %580, %581 : vector<8x64xf32>
    %583 = arith.negf %582 : vector<8x64xf32>
    %584 = math.exp %583 : vector<8x64xf32>
    %cst_109 = arith.constant 1.000000e+00 : f32
    %585 = vector.broadcast %cst_109 : f32 to vector<8x64xf32>
    %586 = arith.addf %585, %584 : vector<8x64xf32>
    %587 = arith.divf %585, %586 : vector<8x64xf32>
    %588 = math.tanh %582 : vector<8x64xf32>
    %589 = vector.extract_strided_slice %587 {offsets = [0, 0], sizes = [8, 16], strides = [1, 1]} : vector<8x64xf32> to vector<8x16xf32>
    %590 = vector.extract_strided_slice %587 {offsets = [0, 16], sizes = [8, 16], strides = [1, 1]} : vector<8x64xf32> to vector<8x16xf32>
    %591 = vector.extract_strided_slice %588 {offsets = [0, 32], sizes = [8, 16], strides = [1, 1]} : vector<8x64xf32> to vector<8x16xf32>
    %592 = vector.extract_strided_slice %587 {offsets = [0, 48], sizes = [8, 16], strides = [1, 1]} : vector<8x64xf32> to vector<8x16xf32>
    %593 = arith.mulf %590, %556 : vector<8x16xf32>
    %594 = arith.mulf %589, %591 : vector<8x16xf32>
    %595 = arith.addf %593, %594 : vector<8x16xf32>
    %596 = math.tanh %595 : vector<8x16xf32>
    %597 = arith.mulf %592, %596 : vector<8x16xf32>
    %c48 = arith.constant 48 : index
    %c0_110 = arith.constant 0 : index
    %598 = vector.load %arg14[%c48, %c0_110] : memref<128x16xf32, #tpu.memory_space<vmem>>, vector<8x16xf32>
    tpu.vector_store %arg14[%c48, %c0_110], %597 {strides = array<i32>} : memref<128x16xf32, #tpu.memory_space<vmem>>, vector<8x16xf32>,
    %599 = vector.extract_strided_slice %325 {offsets = [8, 0], sizes = [8, 64], strides = [1, 1]} : vector<16x64xf32> to vector<8x64xf32>
    %cst_111 = arith.constant dense<0.000000e+00> : vector<8x64xf32>
    %600 = tpu.matmul %577, %7, %cst_111 {dimension_numbers = #tpu.dot_dimension_numbers<[1], [0], [0], [1], [0, 0, 1, 1], [], []>, precision = #tpu.contract_precision<fp32>} : vector<8x16xf32>, vector<16x64xf32>, vector<8x64xf32> -> vector<8x64xf32>
    %601 = arith.addf %599, %600 : vector<8x64xf32>
    %602 = arith.negf %601 : vector<8x64xf32>
    %603 = math.exp %602 : vector<8x64xf32>
    %cst_112 = arith.constant 1.000000e+00 : f32
    %604 = vector.broadcast %cst_112 : f32 to vector<8x64xf32>
    %605 = arith.addf %604, %603 : vector<8x64xf32>
    %606 = arith.divf %604, %605 : vector<8x64xf32>
    %607 = math.tanh %601 : vector<8x64xf32>
    %608 = vector.extract_strided_slice %606 {offsets = [0, 0], sizes = [8, 16], strides = [1, 1]} : vector<8x64xf32> to vector<8x16xf32>
    %609 = vector.extract_strided_slice %606 {offsets = [0, 16], sizes = [8, 16], strides = [1, 1]} : vector<8x64xf32> to vector<8x16xf32>
    %610 = vector.extract_strided_slice %607 {offsets = [0, 32], sizes = [8, 16], strides = [1, 1]} : vector<8x64xf32> to vector<8x16xf32>
    %611 = vector.extract_strided_slice %606 {offsets = [0, 48], sizes = [8, 16], strides = [1, 1]} : vector<8x64xf32> to vector<8x16xf32>
    %612 = arith.mulf %609, %575 : vector<8x16xf32>
    %613 = arith.mulf %608, %610 : vector<8x16xf32>
    %614 = arith.addf %612, %613 : vector<8x16xf32>
    %615 = math.tanh %614 : vector<8x16xf32>
    %616 = arith.mulf %611, %615 : vector<8x16xf32>
    %cst_113 = arith.constant dense<0.000000e+00> : vector<8x64xf32>
    %617 = tpu.matmul %616, %9, %cst_113 {dimension_numbers = #tpu.dot_dimension_numbers<[1], [0], [0], [1], [0, 0, 1, 1], [], []>, precision = #tpu.contract_precision<fp32>} : vector<8x16xf32>, vector<16x64xf32>, vector<8x64xf32> -> vector<8x64xf32>
    %618 = vector.broadcast %11 : vector<1x64xf32> to vector<8x64xf32>
    %619 = arith.addf %617, %618 : vector<8x64xf32>
    %cst_114 = arith.constant dense<0.000000e+00> : vector<8x64xf32>
    %620 = tpu.matmul %597, %10, %cst_114 {dimension_numbers = #tpu.dot_dimension_numbers<[1], [0], [0], [1], [0, 0, 1, 1], [], []>, precision = #tpu.contract_precision<fp32>} : vector<8x16xf32>, vector<16x64xf32>, vector<8x64xf32> -> vector<8x64xf32>
    %621 = arith.addf %619, %620 : vector<8x64xf32>
    %622 = arith.negf %621 : vector<8x64xf32>
    %623 = math.exp %622 : vector<8x64xf32>
    %cst_115 = arith.constant 1.000000e+00 : f32
    %624 = vector.broadcast %cst_115 : f32 to vector<8x64xf32>
    %625 = arith.addf %624, %623 : vector<8x64xf32>
    %626 = arith.divf %624, %625 : vector<8x64xf32>
    %627 = math.tanh %621 : vector<8x64xf32>
    %628 = vector.extract_strided_slice %626 {offsets = [0, 0], sizes = [8, 16], strides = [1, 1]} : vector<8x64xf32> to vector<8x16xf32>
    %629 = vector.extract_strided_slice %626 {offsets = [0, 16], sizes = [8, 16], strides = [1, 1]} : vector<8x64xf32> to vector<8x16xf32>
    %630 = vector.extract_strided_slice %627 {offsets = [0, 32], sizes = [8, 16], strides = [1, 1]} : vector<8x64xf32> to vector<8x16xf32>
    %631 = vector.extract_strided_slice %626 {offsets = [0, 48], sizes = [8, 16], strides = [1, 1]} : vector<8x64xf32> to vector<8x16xf32>
    %632 = arith.mulf %629, %595 : vector<8x16xf32>
    %633 = arith.mulf %628, %630 : vector<8x16xf32>
    %634 = arith.addf %632, %633 : vector<8x16xf32>
    %635 = math.tanh %634 : vector<8x16xf32>
    %636 = arith.mulf %631, %635 : vector<8x16xf32>
    %c56 = arith.constant 56 : index
    %c0_116 = arith.constant 0 : index
    %637 = vector.load %arg14[%c56, %c0_116] : memref<128x16xf32, #tpu.memory_space<vmem>>, vector<8x16xf32>
    tpu.vector_store %arg14[%c56, %c0_116], %636 {strides = array<i32>} : memref<128x16xf32, #tpu.memory_space<vmem>>, vector<8x16xf32>,
    %638 = vector.extract_strided_slice %325 {offsets = [0, 0], sizes = [8, 64], strides = [1, 1]} : vector<16x64xf32> to vector<8x64xf32>
    %cst_117 = arith.constant dense<0.000000e+00> : vector<8x64xf32>
    %639 = tpu.matmul %616, %7, %cst_117 {dimension_numbers = #tpu.dot_dimension_numbers<[1], [0], [0], [1], [0, 0, 1, 1], [], []>, precision = #tpu.contract_precision<fp32>} : vector<8x16xf32>, vector<16x64xf32>, vector<8x64xf32> -> vector<8x64xf32>
    %640 = arith.addf %638, %639 : vector<8x64xf32>
    %641 = arith.negf %640 : vector<8x64xf32>
    %642 = math.exp %641 : vector<8x64xf32>
    %cst_118 = arith.constant 1.000000e+00 : f32
    %643 = vector.broadcast %cst_118 : f32 to vector<8x64xf32>
    %644 = arith.addf %643, %642 : vector<8x64xf32>
    %645 = arith.divf %643, %644 : vector<8x64xf32>
    %646 = math.tanh %640 : vector<8x64xf32>
    %647 = vector.extract_strided_slice %645 {offsets = [0, 0], sizes = [8, 16], strides = [1, 1]} : vector<8x64xf32> to vector<8x16xf32>
    %648 = vector.extract_strided_slice %645 {offsets = [0, 16], sizes = [8, 16], strides = [1, 1]} : vector<8x64xf32> to vector<8x16xf32>
    %649 = vector.extract_strided_slice %646 {offsets = [0, 32], sizes = [8, 16], strides = [1, 1]} : vector<8x64xf32> to vector<8x16xf32>
    %650 = vector.extract_strided_slice %645 {offsets = [0, 48], sizes = [8, 16], strides = [1, 1]} : vector<8x64xf32> to vector<8x16xf32>
    %651 = arith.mulf %648, %614 : vector<8x16xf32>
    %652 = arith.mulf %647, %649 : vector<8x16xf32>
    %653 = arith.addf %651, %652 : vector<8x16xf32>
    %654 = math.tanh %653 : vector<8x16xf32>
    %655 = arith.mulf %650, %654 : vector<8x16xf32>
    %cst_119 = arith.constant dense<0.000000e+00> : vector<8x64xf32>
    %656 = tpu.matmul %655, %9, %cst_119 {dimension_numbers = #tpu.dot_dimension_numbers<[1], [0], [0], [1], [0, 0, 1, 1], [], []>, precision = #tpu.contract_precision<fp32>} : vector<8x16xf32>, vector<16x64xf32>, vector<8x64xf32> -> vector<8x64xf32>
    %657 = vector.broadcast %11 : vector<1x64xf32> to vector<8x64xf32>
    %658 = arith.addf %656, %657 : vector<8x64xf32>
    %cst_120 = arith.constant dense<0.000000e+00> : vector<8x64xf32>
    %659 = tpu.matmul %636, %10, %cst_120 {dimension_numbers = #tpu.dot_dimension_numbers<[1], [0], [0], [1], [0, 0, 1, 1], [], []>, precision = #tpu.contract_precision<fp32>} : vector<8x16xf32>, vector<16x64xf32>, vector<8x64xf32> -> vector<8x64xf32>
    %660 = arith.addf %658, %659 : vector<8x64xf32>
    %661 = arith.negf %660 : vector<8x64xf32>
    %662 = math.exp %661 : vector<8x64xf32>
    %cst_121 = arith.constant 1.000000e+00 : f32
    %663 = vector.broadcast %cst_121 : f32 to vector<8x64xf32>
    %664 = arith.addf %663, %662 : vector<8x64xf32>
    %665 = arith.divf %663, %664 : vector<8x64xf32>
    %666 = math.tanh %660 : vector<8x64xf32>
    %667 = vector.extract_strided_slice %665 {offsets = [0, 0], sizes = [8, 16], strides = [1, 1]} : vector<8x64xf32> to vector<8x16xf32>
    %668 = vector.extract_strided_slice %665 {offsets = [0, 16], sizes = [8, 16], strides = [1, 1]} : vector<8x64xf32> to vector<8x16xf32>
    %669 = vector.extract_strided_slice %666 {offsets = [0, 32], sizes = [8, 16], strides = [1, 1]} : vector<8x64xf32> to vector<8x16xf32>
    %670 = vector.extract_strided_slice %665 {offsets = [0, 48], sizes = [8, 16], strides = [1, 1]} : vector<8x64xf32> to vector<8x16xf32>
    %671 = arith.mulf %668, %634 : vector<8x16xf32>
    %672 = arith.mulf %667, %669 : vector<8x16xf32>
    %673 = arith.addf %671, %672 : vector<8x16xf32>
    %674 = math.tanh %673 : vector<8x16xf32>
    %675 = arith.mulf %670, %674 : vector<8x16xf32>
    %c64 = arith.constant 64 : index
    %c0_122 = arith.constant 0 : index
    %676 = vector.load %arg14[%c64, %c0_122] : memref<128x16xf32, #tpu.memory_space<vmem>>, vector<8x16xf32>
    tpu.vector_store %arg14[%c64, %c0_122], %675 {strides = array<i32>} : memref<128x16xf32, #tpu.memory_space<vmem>>, vector<8x16xf32>,
    %677 = vector.extract_strided_slice %325 {offsets = [8, 0], sizes = [8, 64], strides = [1, 1]} : vector<16x64xf32> to vector<8x64xf32>
    %cst_123 = arith.constant dense<0.000000e+00> : vector<8x64xf32>
    %678 = tpu.matmul %655, %7, %cst_123 {dimension_numbers = #tpu.dot_dimension_numbers<[1], [0], [0], [1], [0, 0, 1, 1], [], []>, precision = #tpu.contract_precision<fp32>} : vector<8x16xf32>, vector<16x64xf32>, vector<8x64xf32> -> vector<8x64xf32>
    %679 = arith.addf %677, %678 : vector<8x64xf32>
    %680 = arith.negf %679 : vector<8x64xf32>
    %681 = math.exp %680 : vector<8x64xf32>
    %cst_124 = arith.constant 1.000000e+00 : f32
    %682 = vector.broadcast %cst_124 : f32 to vector<8x64xf32>
    %683 = arith.addf %682, %681 : vector<8x64xf32>
    %684 = arith.divf %682, %683 : vector<8x64xf32>
    %685 = math.tanh %679 : vector<8x64xf32>
    %686 = vector.extract_strided_slice %684 {offsets = [0, 0], sizes = [8, 16], strides = [1, 1]} : vector<8x64xf32> to vector<8x16xf32>
    %687 = vector.extract_strided_slice %684 {offsets = [0, 16], sizes = [8, 16], strides = [1, 1]} : vector<8x64xf32> to vector<8x16xf32>
    %688 = vector.extract_strided_slice %685 {offsets = [0, 32], sizes = [8, 16], strides = [1, 1]} : vector<8x64xf32> to vector<8x16xf32>
    %689 = vector.extract_strided_slice %684 {offsets = [0, 48], sizes = [8, 16], strides = [1, 1]} : vector<8x64xf32> to vector<8x16xf32>
    %690 = arith.mulf %687, %653 : vector<8x16xf32>
    %691 = arith.mulf %686, %688 : vector<8x16xf32>
    %692 = arith.addf %690, %691 : vector<8x16xf32>
    %693 = math.tanh %692 : vector<8x16xf32>
    %694 = arith.mulf %689, %693 : vector<8x16xf32>
    %cst_125 = arith.constant dense<0.000000e+00> : vector<8x64xf32>
    %695 = tpu.matmul %694, %9, %cst_125 {dimension_numbers = #tpu.dot_dimension_numbers<[1], [0], [0], [1], [0, 0, 1, 1], [], []>, precision = #tpu.contract_precision<fp32>} : vector<8x16xf32>, vector<16x64xf32>, vector<8x64xf32> -> vector<8x64xf32>
    %696 = vector.broadcast %11 : vector<1x64xf32> to vector<8x64xf32>
    %697 = arith.addf %695, %696 : vector<8x64xf32>
    %cst_126 = arith.constant dense<0.000000e+00> : vector<8x64xf32>
    %698 = tpu.matmul %675, %10, %cst_126 {dimension_numbers = #tpu.dot_dimension_numbers<[1], [0], [0], [1], [0, 0, 1, 1], [], []>, precision = #tpu.contract_precision<fp32>} : vector<8x16xf32>, vector<16x64xf32>, vector<8x64xf32> -> vector<8x64xf32>
    %699 = arith.addf %697, %698 : vector<8x64xf32>
    %700 = arith.negf %699 : vector<8x64xf32>
    %701 = math.exp %700 : vector<8x64xf32>
    %cst_127 = arith.constant 1.000000e+00 : f32
    %702 = vector.broadcast %cst_127 : f32 to vector<8x64xf32>
    %703 = arith.addf %702, %701 : vector<8x64xf32>
    %704 = arith.divf %702, %703 : vector<8x64xf32>
    %705 = math.tanh %699 : vector<8x64xf32>
    %706 = vector.extract_strided_slice %704 {offsets = [0, 0], sizes = [8, 16], strides = [1, 1]} : vector<8x64xf32> to vector<8x16xf32>
    %707 = vector.extract_strided_slice %704 {offsets = [0, 16], sizes = [8, 16], strides = [1, 1]} : vector<8x64xf32> to vector<8x16xf32>
    %708 = vector.extract_strided_slice %705 {offsets = [0, 32], sizes = [8, 16], strides = [1, 1]} : vector<8x64xf32> to vector<8x16xf32>
    %709 = vector.extract_strided_slice %704 {offsets = [0, 48], sizes = [8, 16], strides = [1, 1]} : vector<8x64xf32> to vector<8x16xf32>
    %710 = arith.mulf %707, %673 : vector<8x16xf32>
    %711 = arith.mulf %706, %708 : vector<8x16xf32>
    %712 = arith.addf %710, %711 : vector<8x16xf32>
    %713 = math.tanh %712 : vector<8x16xf32>
    %714 = arith.mulf %709, %713 : vector<8x16xf32>
    %c72 = arith.constant 72 : index
    %c0_128 = arith.constant 0 : index
    %715 = vector.load %arg14[%c72, %c0_128] : memref<128x16xf32, #tpu.memory_space<vmem>>, vector<8x16xf32>
    tpu.vector_store %arg14[%c72, %c0_128], %714 {strides = array<i32>} : memref<128x16xf32, #tpu.memory_space<vmem>>, vector<8x16xf32>,
    %716 = vector.extract_strided_slice %325 {offsets = [0, 0], sizes = [8, 64], strides = [1, 1]} : vector<16x64xf32> to vector<8x64xf32>
    %cst_129 = arith.constant dense<0.000000e+00> : vector<8x64xf32>
    %717 = tpu.matmul %694, %7, %cst_129 {dimension_numbers = #tpu.dot_dimension_numbers<[1], [0], [0], [1], [0, 0, 1, 1], [], []>, precision = #tpu.contract_precision<fp32>} : vector<8x16xf32>, vector<16x64xf32>, vector<8x64xf32> -> vector<8x64xf32>
    %718 = arith.addf %716, %717 : vector<8x64xf32>
    %719 = arith.negf %718 : vector<8x64xf32>
    %720 = math.exp %719 : vector<8x64xf32>
    %cst_130 = arith.constant 1.000000e+00 : f32
    %721 = vector.broadcast %cst_130 : f32 to vector<8x64xf32>
    %722 = arith.addf %721, %720 : vector<8x64xf32>
    %723 = arith.divf %721, %722 : vector<8x64xf32>
    %724 = math.tanh %718 : vector<8x64xf32>
    %725 = vector.extract_strided_slice %723 {offsets = [0, 0], sizes = [8, 16], strides = [1, 1]} : vector<8x64xf32> to vector<8x16xf32>
    %726 = vector.extract_strided_slice %723 {offsets = [0, 16], sizes = [8, 16], strides = [1, 1]} : vector<8x64xf32> to vector<8x16xf32>
    %727 = vector.extract_strided_slice %724 {offsets = [0, 32], sizes = [8, 16], strides = [1, 1]} : vector<8x64xf32> to vector<8x16xf32>
    %728 = vector.extract_strided_slice %723 {offsets = [0, 48], sizes = [8, 16], strides = [1, 1]} : vector<8x64xf32> to vector<8x16xf32>
    %729 = arith.mulf %726, %692 : vector<8x16xf32>
    %730 = arith.mulf %725, %727 : vector<8x16xf32>
    %731 = arith.addf %729, %730 : vector<8x16xf32>
    %732 = math.tanh %731 : vector<8x16xf32>
    %733 = arith.mulf %728, %732 : vector<8x16xf32>
    %cst_131 = arith.constant dense<0.000000e+00> : vector<8x64xf32>
    %734 = tpu.matmul %733, %9, %cst_131 {dimension_numbers = #tpu.dot_dimension_numbers<[1], [0], [0], [1], [0, 0, 1, 1], [], []>, precision = #tpu.contract_precision<fp32>} : vector<8x16xf32>, vector<16x64xf32>, vector<8x64xf32> -> vector<8x64xf32>
    %735 = vector.broadcast %11 : vector<1x64xf32> to vector<8x64xf32>
    %736 = arith.addf %734, %735 : vector<8x64xf32>
    %cst_132 = arith.constant dense<0.000000e+00> : vector<8x64xf32>
    %737 = tpu.matmul %714, %10, %cst_132 {dimension_numbers = #tpu.dot_dimension_numbers<[1], [0], [0], [1], [0, 0, 1, 1], [], []>, precision = #tpu.contract_precision<fp32>} : vector<8x16xf32>, vector<16x64xf32>, vector<8x64xf32> -> vector<8x64xf32>
    %738 = arith.addf %736, %737 : vector<8x64xf32>
    %739 = arith.negf %738 : vector<8x64xf32>
    %740 = math.exp %739 : vector<8x64xf32>
    %cst_133 = arith.constant 1.000000e+00 : f32
    %741 = vector.broadcast %cst_133 : f32 to vector<8x64xf32>
    %742 = arith.addf %741, %740 : vector<8x64xf32>
    %743 = arith.divf %741, %742 : vector<8x64xf32>
    %744 = math.tanh %738 : vector<8x64xf32>
    %745 = vector.extract_strided_slice %743 {offsets = [0, 0], sizes = [8, 16], strides = [1, 1]} : vector<8x64xf32> to vector<8x16xf32>
    %746 = vector.extract_strided_slice %743 {offsets = [0, 16], sizes = [8, 16], strides = [1, 1]} : vector<8x64xf32> to vector<8x16xf32>
    %747 = vector.extract_strided_slice %744 {offsets = [0, 32], sizes = [8, 16], strides = [1, 1]} : vector<8x64xf32> to vector<8x16xf32>
    %748 = vector.extract_strided_slice %743 {offsets = [0, 48], sizes = [8, 16], strides = [1, 1]} : vector<8x64xf32> to vector<8x16xf32>
    %749 = arith.mulf %746, %712 : vector<8x16xf32>
    %750 = arith.mulf %745, %747 : vector<8x16xf32>
    %751 = arith.addf %749, %750 : vector<8x16xf32>
    %752 = math.tanh %751 : vector<8x16xf32>
    %753 = arith.mulf %748, %752 : vector<8x16xf32>
    %c80 = arith.constant 80 : index
    %c0_134 = arith.constant 0 : index
    %754 = vector.load %arg14[%c80, %c0_134] : memref<128x16xf32, #tpu.memory_space<vmem>>, vector<8x16xf32>
    tpu.vector_store %arg14[%c80, %c0_134], %753 {strides = array<i32>} : memref<128x16xf32, #tpu.memory_space<vmem>>, vector<8x16xf32>,
    %755 = vector.extract_strided_slice %325 {offsets = [8, 0], sizes = [8, 64], strides = [1, 1]} : vector<16x64xf32> to vector<8x64xf32>
    %cst_135 = arith.constant dense<0.000000e+00> : vector<8x64xf32>
    %756 = tpu.matmul %733, %7, %cst_135 {dimension_numbers = #tpu.dot_dimension_numbers<[1], [0], [0], [1], [0, 0, 1, 1], [], []>, precision = #tpu.contract_precision<fp32>} : vector<8x16xf32>, vector<16x64xf32>, vector<8x64xf32> -> vector<8x64xf32>
    %757 = arith.addf %755, %756 : vector<8x64xf32>
    %758 = arith.negf %757 : vector<8x64xf32>
    %759 = math.exp %758 : vector<8x64xf32>
    %cst_136 = arith.constant 1.000000e+00 : f32
    %760 = vector.broadcast %cst_136 : f32 to vector<8x64xf32>
    %761 = arith.addf %760, %759 : vector<8x64xf32>
    %762 = arith.divf %760, %761 : vector<8x64xf32>
    %763 = math.tanh %757 : vector<8x64xf32>
    %764 = vector.extract_strided_slice %762 {offsets = [0, 0], sizes = [8, 16], strides = [1, 1]} : vector<8x64xf32> to vector<8x16xf32>
    %765 = vector.extract_strided_slice %762 {offsets = [0, 16], sizes = [8, 16], strides = [1, 1]} : vector<8x64xf32> to vector<8x16xf32>
    %766 = vector.extract_strided_slice %763 {offsets = [0, 32], sizes = [8, 16], strides = [1, 1]} : vector<8x64xf32> to vector<8x16xf32>
    %767 = vector.extract_strided_slice %762 {offsets = [0, 48], sizes = [8, 16], strides = [1, 1]} : vector<8x64xf32> to vector<8x16xf32>
    %768 = arith.mulf %765, %731 : vector<8x16xf32>
    %769 = arith.mulf %764, %766 : vector<8x16xf32>
    %770 = arith.addf %768, %769 : vector<8x16xf32>
    %771 = math.tanh %770 : vector<8x16xf32>
    %772 = arith.mulf %767, %771 : vector<8x16xf32>
    %cst_137 = arith.constant dense<0.000000e+00> : vector<8x64xf32>
    %773 = tpu.matmul %772, %9, %cst_137 {dimension_numbers = #tpu.dot_dimension_numbers<[1], [0], [0], [1], [0, 0, 1, 1], [], []>, precision = #tpu.contract_precision<fp32>} : vector<8x16xf32>, vector<16x64xf32>, vector<8x64xf32> -> vector<8x64xf32>
    %774 = vector.broadcast %11 : vector<1x64xf32> to vector<8x64xf32>
    %775 = arith.addf %773, %774 : vector<8x64xf32>
    %cst_138 = arith.constant dense<0.000000e+00> : vector<8x64xf32>
    %776 = tpu.matmul %753, %10, %cst_138 {dimension_numbers = #tpu.dot_dimension_numbers<[1], [0], [0], [1], [0, 0, 1, 1], [], []>, precision = #tpu.contract_precision<fp32>} : vector<8x16xf32>, vector<16x64xf32>, vector<8x64xf32> -> vector<8x64xf32>
    %777 = arith.addf %775, %776 : vector<8x64xf32>
    %778 = arith.negf %777 : vector<8x64xf32>
    %779 = math.exp %778 : vector<8x64xf32>
    %cst_139 = arith.constant 1.000000e+00 : f32
    %780 = vector.broadcast %cst_139 : f32 to vector<8x64xf32>
    %781 = arith.addf %780, %779 : vector<8x64xf32>
    %782 = arith.divf %780, %781 : vector<8x64xf32>
    %783 = math.tanh %777 : vector<8x64xf32>
    %784 = vector.extract_strided_slice %782 {offsets = [0, 0], sizes = [8, 16], strides = [1, 1]} : vector<8x64xf32> to vector<8x16xf32>
    %785 = vector.extract_strided_slice %782 {offsets = [0, 16], sizes = [8, 16], strides = [1, 1]} : vector<8x64xf32> to vector<8x16xf32>
    %786 = vector.extract_strided_slice %783 {offsets = [0, 32], sizes = [8, 16], strides = [1, 1]} : vector<8x64xf32> to vector<8x16xf32>
    %787 = vector.extract_strided_slice %782 {offsets = [0, 48], sizes = [8, 16], strides = [1, 1]} : vector<8x64xf32> to vector<8x16xf32>
    %788 = arith.mulf %785, %751 : vector<8x16xf32>
    %789 = arith.mulf %784, %786 : vector<8x16xf32>
    %790 = arith.addf %788, %789 : vector<8x16xf32>
    %791 = math.tanh %790 : vector<8x16xf32>
    %792 = arith.mulf %787, %791 : vector<8x16xf32>
    %c88 = arith.constant 88 : index
    %c0_140 = arith.constant 0 : index
    %793 = vector.load %arg14[%c88, %c0_140] : memref<128x16xf32, #tpu.memory_space<vmem>>, vector<8x16xf32>
    tpu.vector_store %arg14[%c88, %c0_140], %792 {strides = array<i32>} : memref<128x16xf32, #tpu.memory_space<vmem>>, vector<8x16xf32>,
    %794 = vector.extract_strided_slice %325 {offsets = [0, 0], sizes = [8, 64], strides = [1, 1]} : vector<16x64xf32> to vector<8x64xf32>
    %cst_141 = arith.constant dense<0.000000e+00> : vector<8x64xf32>
    %795 = tpu.matmul %772, %7, %cst_141 {dimension_numbers = #tpu.dot_dimension_numbers<[1], [0], [0], [1], [0, 0, 1, 1], [], []>, precision = #tpu.contract_precision<fp32>} : vector<8x16xf32>, vector<16x64xf32>, vector<8x64xf32> -> vector<8x64xf32>
    %796 = arith.addf %794, %795 : vector<8x64xf32>
    %797 = arith.negf %796 : vector<8x64xf32>
    %798 = math.exp %797 : vector<8x64xf32>
    %cst_142 = arith.constant 1.000000e+00 : f32
    %799 = vector.broadcast %cst_142 : f32 to vector<8x64xf32>
    %800 = arith.addf %799, %798 : vector<8x64xf32>
    %801 = arith.divf %799, %800 : vector<8x64xf32>
    %802 = math.tanh %796 : vector<8x64xf32>
    %803 = vector.extract_strided_slice %801 {offsets = [0, 0], sizes = [8, 16], strides = [1, 1]} : vector<8x64xf32> to vector<8x16xf32>
    %804 = vector.extract_strided_slice %801 {offsets = [0, 16], sizes = [8, 16], strides = [1, 1]} : vector<8x64xf32> to vector<8x16xf32>
    %805 = vector.extract_strided_slice %802 {offsets = [0, 32], sizes = [8, 16], strides = [1, 1]} : vector<8x64xf32> to vector<8x16xf32>
    %806 = vector.extract_strided_slice %801 {offsets = [0, 48], sizes = [8, 16], strides = [1, 1]} : vector<8x64xf32> to vector<8x16xf32>
    %807 = arith.mulf %804, %770 : vector<8x16xf32>
    %808 = arith.mulf %803, %805 : vector<8x16xf32>
    %809 = arith.addf %807, %808 : vector<8x16xf32>
    %810 = math.tanh %809 : vector<8x16xf32>
    %811 = arith.mulf %806, %810 : vector<8x16xf32>
    %cst_143 = arith.constant dense<0.000000e+00> : vector<8x64xf32>
    %812 = tpu.matmul %811, %9, %cst_143 {dimension_numbers = #tpu.dot_dimension_numbers<[1], [0], [0], [1], [0, 0, 1, 1], [], []>, precision = #tpu.contract_precision<fp32>} : vector<8x16xf32>, vector<16x64xf32>, vector<8x64xf32> -> vector<8x64xf32>
    %813 = vector.broadcast %11 : vector<1x64xf32> to vector<8x64xf32>
    %814 = arith.addf %812, %813 : vector<8x64xf32>
    %cst_144 = arith.constant dense<0.000000e+00> : vector<8x64xf32>
    %815 = tpu.matmul %792, %10, %cst_144 {dimension_numbers = #tpu.dot_dimension_numbers<[1], [0], [0], [1], [0, 0, 1, 1], [], []>, precision = #tpu.contract_precision<fp32>} : vector<8x16xf32>, vector<16x64xf32>, vector<8x64xf32> -> vector<8x64xf32>
    %816 = arith.addf %814, %815 : vector<8x64xf32>
    %817 = arith.negf %816 : vector<8x64xf32>
    %818 = math.exp %817 : vector<8x64xf32>
    %cst_145 = arith.constant 1.000000e+00 : f32
    %819 = vector.broadcast %cst_145 : f32 to vector<8x64xf32>
    %820 = arith.addf %819, %818 : vector<8x64xf32>
    %821 = arith.divf %819, %820 : vector<8x64xf32>
    %822 = math.tanh %816 : vector<8x64xf32>
    %823 = vector.extract_strided_slice %821 {offsets = [0, 0], sizes = [8, 16], strides = [1, 1]} : vector<8x64xf32> to vector<8x16xf32>
    %824 = vector.extract_strided_slice %821 {offsets = [0, 16], sizes = [8, 16], strides = [1, 1]} : vector<8x64xf32> to vector<8x16xf32>
    %825 = vector.extract_strided_slice %822 {offsets = [0, 32], sizes = [8, 16], strides = [1, 1]} : vector<8x64xf32> to vector<8x16xf32>
    %826 = vector.extract_strided_slice %821 {offsets = [0, 48], sizes = [8, 16], strides = [1, 1]} : vector<8x64xf32> to vector<8x16xf32>
    %827 = arith.mulf %824, %790 : vector<8x16xf32>
    %828 = arith.mulf %823, %825 : vector<8x16xf32>
    %829 = arith.addf %827, %828 : vector<8x16xf32>
    %830 = math.tanh %829 : vector<8x16xf32>
    %831 = arith.mulf %826, %830 : vector<8x16xf32>
    %c96 = arith.constant 96 : index
    %c0_146 = arith.constant 0 : index
    %832 = vector.load %arg14[%c96, %c0_146] : memref<128x16xf32, #tpu.memory_space<vmem>>, vector<8x16xf32>
    tpu.vector_store %arg14[%c96, %c0_146], %831 {strides = array<i32>} : memref<128x16xf32, #tpu.memory_space<vmem>>, vector<8x16xf32>,
    %833 = vector.extract_strided_slice %325 {offsets = [8, 0], sizes = [8, 64], strides = [1, 1]} : vector<16x64xf32> to vector<8x64xf32>
    %cst_147 = arith.constant dense<0.000000e+00> : vector<8x64xf32>
    %834 = tpu.matmul %811, %7, %cst_147 {dimension_numbers = #tpu.dot_dimension_numbers<[1], [0], [0], [1], [0, 0, 1, 1], [], []>, precision = #tpu.contract_precision<fp32>} : vector<8x16xf32>, vector<16x64xf32>, vector<8x64xf32> -> vector<8x64xf32>
    %835 = arith.addf %833, %834 : vector<8x64xf32>
    %836 = arith.negf %835 : vector<8x64xf32>
    %837 = math.exp %836 : vector<8x64xf32>
    %cst_148 = arith.constant 1.000000e+00 : f32
    %838 = vector.broadcast %cst_148 : f32 to vector<8x64xf32>
    %839 = arith.addf %838, %837 : vector<8x64xf32>
    %840 = arith.divf %838, %839 : vector<8x64xf32>
    %841 = math.tanh %835 : vector<8x64xf32>
    %842 = vector.extract_strided_slice %840 {offsets = [0, 0], sizes = [8, 16], strides = [1, 1]} : vector<8x64xf32> to vector<8x16xf32>
    %843 = vector.extract_strided_slice %840 {offsets = [0, 16], sizes = [8, 16], strides = [1, 1]} : vector<8x64xf32> to vector<8x16xf32>
    %844 = vector.extract_strided_slice %841 {offsets = [0, 32], sizes = [8, 16], strides = [1, 1]} : vector<8x64xf32> to vector<8x16xf32>
    %845 = vector.extract_strided_slice %840 {offsets = [0, 48], sizes = [8, 16], strides = [1, 1]} : vector<8x64xf32> to vector<8x16xf32>
    %846 = arith.mulf %843, %809 : vector<8x16xf32>
    %847 = arith.mulf %842, %844 : vector<8x16xf32>
    %848 = arith.addf %846, %847 : vector<8x16xf32>
    %849 = math.tanh %848 : vector<8x16xf32>
    %850 = arith.mulf %845, %849 : vector<8x16xf32>
    %cst_149 = arith.constant dense<0.000000e+00> : vector<8x64xf32>
    %851 = tpu.matmul %850, %9, %cst_149 {dimension_numbers = #tpu.dot_dimension_numbers<[1], [0], [0], [1], [0, 0, 1, 1], [], []>, precision = #tpu.contract_precision<fp32>} : vector<8x16xf32>, vector<16x64xf32>, vector<8x64xf32> -> vector<8x64xf32>
    %852 = vector.broadcast %11 : vector<1x64xf32> to vector<8x64xf32>
    %853 = arith.addf %851, %852 : vector<8x64xf32>
    %cst_150 = arith.constant dense<0.000000e+00> : vector<8x64xf32>
    %854 = tpu.matmul %831, %10, %cst_150 {dimension_numbers = #tpu.dot_dimension_numbers<[1], [0], [0], [1], [0, 0, 1, 1], [], []>, precision = #tpu.contract_precision<fp32>} : vector<8x16xf32>, vector<16x64xf32>, vector<8x64xf32> -> vector<8x64xf32>
    %855 = arith.addf %853, %854 : vector<8x64xf32>
    %856 = arith.negf %855 : vector<8x64xf32>
    %857 = math.exp %856 : vector<8x64xf32>
    %cst_151 = arith.constant 1.000000e+00 : f32
    %858 = vector.broadcast %cst_151 : f32 to vector<8x64xf32>
    %859 = arith.addf %858, %857 : vector<8x64xf32>
    %860 = arith.divf %858, %859 : vector<8x64xf32>
    %861 = math.tanh %855 : vector<8x64xf32>
    %862 = vector.extract_strided_slice %860 {offsets = [0, 0], sizes = [8, 16], strides = [1, 1]} : vector<8x64xf32> to vector<8x16xf32>
    %863 = vector.extract_strided_slice %860 {offsets = [0, 16], sizes = [8, 16], strides = [1, 1]} : vector<8x64xf32> to vector<8x16xf32>
    %864 = vector.extract_strided_slice %861 {offsets = [0, 32], sizes = [8, 16], strides = [1, 1]} : vector<8x64xf32> to vector<8x16xf32>
    %865 = vector.extract_strided_slice %860 {offsets = [0, 48], sizes = [8, 16], strides = [1, 1]} : vector<8x64xf32> to vector<8x16xf32>
    %866 = arith.mulf %863, %829 : vector<8x16xf32>
    %867 = arith.mulf %862, %864 : vector<8x16xf32>
    %868 = arith.addf %866, %867 : vector<8x16xf32>
    %869 = math.tanh %868 : vector<8x16xf32>
    %870 = arith.mulf %865, %869 : vector<8x16xf32>
    %c104 = arith.constant 104 : index
    %c0_152 = arith.constant 0 : index
    %871 = vector.load %arg14[%c104, %c0_152] : memref<128x16xf32, #tpu.memory_space<vmem>>, vector<8x16xf32>
    tpu.vector_store %arg14[%c104, %c0_152], %870 {strides = array<i32>} : memref<128x16xf32, #tpu.memory_space<vmem>>, vector<8x16xf32>,
    %872 = vector.extract_strided_slice %325 {offsets = [0, 0], sizes = [8, 64], strides = [1, 1]} : vector<16x64xf32> to vector<8x64xf32>
    %cst_153 = arith.constant dense<0.000000e+00> : vector<8x64xf32>
    %873 = tpu.matmul %850, %7, %cst_153 {dimension_numbers = #tpu.dot_dimension_numbers<[1], [0], [0], [1], [0, 0, 1, 1], [], []>, precision = #tpu.contract_precision<fp32>} : vector<8x16xf32>, vector<16x64xf32>, vector<8x64xf32> -> vector<8x64xf32>
    %874 = arith.addf %872, %873 : vector<8x64xf32>
    %875 = arith.negf %874 : vector<8x64xf32>
    %876 = math.exp %875 : vector<8x64xf32>
    %cst_154 = arith.constant 1.000000e+00 : f32
    %877 = vector.broadcast %cst_154 : f32 to vector<8x64xf32>
    %878 = arith.addf %877, %876 : vector<8x64xf32>
    %879 = arith.divf %877, %878 : vector<8x64xf32>
    %880 = math.tanh %874 : vector<8x64xf32>
    %881 = vector.extract_strided_slice %879 {offsets = [0, 0], sizes = [8, 16], strides = [1, 1]} : vector<8x64xf32> to vector<8x16xf32>
    %882 = vector.extract_strided_slice %879 {offsets = [0, 16], sizes = [8, 16], strides = [1, 1]} : vector<8x64xf32> to vector<8x16xf32>
    %883 = vector.extract_strided_slice %880 {offsets = [0, 32], sizes = [8, 16], strides = [1, 1]} : vector<8x64xf32> to vector<8x16xf32>
    %884 = vector.extract_strided_slice %879 {offsets = [0, 48], sizes = [8, 16], strides = [1, 1]} : vector<8x64xf32> to vector<8x16xf32>
    %885 = arith.mulf %882, %848 : vector<8x16xf32>
    %886 = arith.mulf %881, %883 : vector<8x16xf32>
    %887 = arith.addf %885, %886 : vector<8x16xf32>
    %888 = math.tanh %887 : vector<8x16xf32>
    %889 = arith.mulf %884, %888 : vector<8x16xf32>
    %cst_155 = arith.constant dense<0.000000e+00> : vector<8x64xf32>
    %890 = tpu.matmul %889, %9, %cst_155 {dimension_numbers = #tpu.dot_dimension_numbers<[1], [0], [0], [1], [0, 0, 1, 1], [], []>, precision = #tpu.contract_precision<fp32>} : vector<8x16xf32>, vector<16x64xf32>, vector<8x64xf32> -> vector<8x64xf32>
    %891 = vector.broadcast %11 : vector<1x64xf32> to vector<8x64xf32>
    %892 = arith.addf %890, %891 : vector<8x64xf32>
    %cst_156 = arith.constant dense<0.000000e+00> : vector<8x64xf32>
    %893 = tpu.matmul %870, %10, %cst_156 {dimension_numbers = #tpu.dot_dimension_numbers<[1], [0], [0], [1], [0, 0, 1, 1], [], []>, precision = #tpu.contract_precision<fp32>} : vector<8x16xf32>, vector<16x64xf32>, vector<8x64xf32> -> vector<8x64xf32>
    %894 = arith.addf %892, %893 : vector<8x64xf32>
    %895 = arith.negf %894 : vector<8x64xf32>
    %896 = math.exp %895 : vector<8x64xf32>
    %cst_157 = arith.constant 1.000000e+00 : f32
    %897 = vector.broadcast %cst_157 : f32 to vector<8x64xf32>
    %898 = arith.addf %897, %896 : vector<8x64xf32>
    %899 = arith.divf %897, %898 : vector<8x64xf32>
    %900 = math.tanh %894 : vector<8x64xf32>
    %901 = vector.extract_strided_slice %899 {offsets = [0, 0], sizes = [8, 16], strides = [1, 1]} : vector<8x64xf32> to vector<8x16xf32>
    %902 = vector.extract_strided_slice %899 {offsets = [0, 16], sizes = [8, 16], strides = [1, 1]} : vector<8x64xf32> to vector<8x16xf32>
    %903 = vector.extract_strided_slice %900 {offsets = [0, 32], sizes = [8, 16], strides = [1, 1]} : vector<8x64xf32> to vector<8x16xf32>
    %904 = vector.extract_strided_slice %899 {offsets = [0, 48], sizes = [8, 16], strides = [1, 1]} : vector<8x64xf32> to vector<8x16xf32>
    %905 = arith.mulf %902, %868 : vector<8x16xf32>
    %906 = arith.mulf %901, %903 : vector<8x16xf32>
    %907 = arith.addf %905, %906 : vector<8x16xf32>
    %908 = math.tanh %907 : vector<8x16xf32>
    %909 = arith.mulf %904, %908 : vector<8x16xf32>
    %c112 = arith.constant 112 : index
    %c0_158 = arith.constant 0 : index
    %910 = vector.load %arg14[%c112, %c0_158] : memref<128x16xf32, #tpu.memory_space<vmem>>, vector<8x16xf32>
    tpu.vector_store %arg14[%c112, %c0_158], %909 {strides = array<i32>} : memref<128x16xf32, #tpu.memory_space<vmem>>, vector<8x16xf32>,
    %911 = vector.extract_strided_slice %325 {offsets = [8, 0], sizes = [8, 64], strides = [1, 1]} : vector<16x64xf32> to vector<8x64xf32>
    %cst_159 = arith.constant dense<0.000000e+00> : vector<8x64xf32>
    %912 = tpu.matmul %889, %7, %cst_159 {dimension_numbers = #tpu.dot_dimension_numbers<[1], [0], [0], [1], [0, 0, 1, 1], [], []>, precision = #tpu.contract_precision<fp32>} : vector<8x16xf32>, vector<16x64xf32>, vector<8x64xf32> -> vector<8x64xf32>
    %913 = arith.addf %911, %912 : vector<8x64xf32>
    %914 = arith.negf %913 : vector<8x64xf32>
    %915 = math.exp %914 : vector<8x64xf32>
    %cst_160 = arith.constant 1.000000e+00 : f32
    %916 = vector.broadcast %cst_160 : f32 to vector<8x64xf32>
    %917 = arith.addf %916, %915 : vector<8x64xf32>
    %918 = arith.divf %916, %917 : vector<8x64xf32>
    %919 = math.tanh %913 : vector<8x64xf32>
    %920 = vector.extract_strided_slice %918 {offsets = [0, 0], sizes = [8, 16], strides = [1, 1]} : vector<8x64xf32> to vector<8x16xf32>
    %921 = vector.extract_strided_slice %918 {offsets = [0, 16], sizes = [8, 16], strides = [1, 1]} : vector<8x64xf32> to vector<8x16xf32>
    %922 = vector.extract_strided_slice %919 {offsets = [0, 32], sizes = [8, 16], strides = [1, 1]} : vector<8x64xf32> to vector<8x16xf32>
    %923 = vector.extract_strided_slice %918 {offsets = [0, 48], sizes = [8, 16], strides = [1, 1]} : vector<8x64xf32> to vector<8x16xf32>
    %924 = arith.mulf %921, %887 : vector<8x16xf32>
    %925 = arith.mulf %920, %922 : vector<8x16xf32>
    %926 = arith.addf %924, %925 : vector<8x16xf32>
    %927 = math.tanh %926 : vector<8x16xf32>
    %928 = arith.mulf %923, %927 : vector<8x16xf32>
    %cst_161 = arith.constant dense<0.000000e+00> : vector<8x64xf32>
    %929 = tpu.matmul %928, %9, %cst_161 {dimension_numbers = #tpu.dot_dimension_numbers<[1], [0], [0], [1], [0, 0, 1, 1], [], []>, precision = #tpu.contract_precision<fp32>} : vector<8x16xf32>, vector<16x64xf32>, vector<8x64xf32> -> vector<8x64xf32>
    %930 = vector.broadcast %11 : vector<1x64xf32> to vector<8x64xf32>
    %931 = arith.addf %929, %930 : vector<8x64xf32>
    %cst_162 = arith.constant dense<0.000000e+00> : vector<8x64xf32>
    %932 = tpu.matmul %909, %10, %cst_162 {dimension_numbers = #tpu.dot_dimension_numbers<[1], [0], [0], [1], [0, 0, 1, 1], [], []>, precision = #tpu.contract_precision<fp32>} : vector<8x16xf32>, vector<16x64xf32>, vector<8x64xf32> -> vector<8x64xf32>
    %933 = arith.addf %931, %932 : vector<8x64xf32>
    %934 = arith.negf %933 : vector<8x64xf32>
    %935 = math.exp %934 : vector<8x64xf32>
    %cst_163 = arith.constant 1.000000e+00 : f32
    %936 = vector.broadcast %cst_163 : f32 to vector<8x64xf32>
    %937 = arith.addf %936, %935 : vector<8x64xf32>
    %938 = arith.divf %936, %937 : vector<8x64xf32>
    %939 = math.tanh %933 : vector<8x64xf32>
    %940 = vector.extract_strided_slice %938 {offsets = [0, 0], sizes = [8, 16], strides = [1, 1]} : vector<8x64xf32> to vector<8x16xf32>
    %941 = vector.extract_strided_slice %938 {offsets = [0, 16], sizes = [8, 16], strides = [1, 1]} : vector<8x64xf32> to vector<8x16xf32>
    %942 = vector.extract_strided_slice %939 {offsets = [0, 32], sizes = [8, 16], strides = [1, 1]} : vector<8x64xf32> to vector<8x16xf32>
    %943 = vector.extract_strided_slice %938 {offsets = [0, 48], sizes = [8, 16], strides = [1, 1]} : vector<8x64xf32> to vector<8x16xf32>
    %944 = arith.mulf %941, %907 : vector<8x16xf32>
    %945 = arith.mulf %940, %942 : vector<8x16xf32>
    %946 = arith.addf %944, %945 : vector<8x16xf32>
    %947 = math.tanh %946 : vector<8x16xf32>
    %948 = arith.mulf %943, %947 : vector<8x16xf32>
    %c120 = arith.constant 120 : index
    %c0_164 = arith.constant 0 : index
    %949 = vector.load %arg14[%c120, %c0_164] : memref<128x16xf32, #tpu.memory_space<vmem>>, vector<8x16xf32>
    tpu.vector_store %arg14[%c120, %c0_164], %948 {strides = array<i32>} : memref<128x16xf32, #tpu.memory_space<vmem>>, vector<8x16xf32>,
    return
  }
  func.func @transform_0(%arg0: i32) -> (i32, i32) {
    %c0_i32 = arith.constant 0 : i32
    %c0_i32_0 = arith.constant 0 : i32
    %c0_i32_1 = arith.constant 0 : i32
    return %c0_i32, %c0_i32_0 : i32, i32
  }
  func.func @transform_1(%arg0: i32) -> (i32, i32) {
    %c0_i32 = arith.constant 0 : i32
    %c0_i32_0 = arith.constant 0 : i32
    %c0_i32_1 = arith.constant 0 : i32
    return %c0_i32, %c0_i32_0 : i32, i32
  }
  func.func @transform_2(%arg0: i32) -> (i32, i32) {
    %c0_i32 = arith.constant 0 : i32
    %c0_i32_0 = arith.constant 0 : i32
    %c0_i32_1 = arith.constant 0 : i32
    return %c0_i32, %c0_i32_0 : i32, i32
  }
  func.func @transform_3(%arg0: i32) -> (i32, i32) {
    %c0_i32 = arith.constant 0 : i32
    %c0_i32_0 = arith.constant 0 : i32
    %c0_i32_1 = arith.constant 0 : i32
    return %c0_i32, %c0_i32_0 : i32, i32
  }
  func.func @transform_4(%arg0: i32) -> (i32, i32) {
    %c0_i32 = arith.constant 0 : i32
    %c0_i32_0 = arith.constant 0 : i32
    %c0_i32_1 = arith.constant 0 : i32
    return %c0_i32, %c0_i32_0 : i32, i32
  }
  func.func @transform_5(%arg0: i32) -> (i32, i32) {
    %c0_i32 = arith.constant 0 : i32
    %c0_i32_0 = arith.constant 0 : i32
    %c0_i32_1 = arith.constant 0 : i32
    return %c0_i32, %c0_i32_0 : i32, i32
  }
  func.func @transform_6(%arg0: i32) -> (i32, i32) {
    %c0_i32 = arith.constant 0 : i32
    %c0_i32_0 = arith.constant 0 : i32
    %c0_i32_1 = arith.constant 0 : i32
    return %c0_i32, %c0_i32_0 : i32, i32
  }
  func.func @transform_7(%arg0: i32) -> (i32, i32) {
    %c0_i32 = arith.constant 0 : i32
    %c0_i32_0 = arith.constant 0 : i32
    %c0_i32_1 = arith.constant 0 : i32
    return %c0_i32, %c0_i32_0 : i32, i32
  }
  func.func @transform_8(%arg0: i32) -> (i32, i32) {
    %c0_i32 = arith.constant 0 : i32
    %c0_i32_0 = arith.constant 0 : i32
    %c0_i32_1 = arith.constant 0 : i32
    return %c0_i32, %c0_i32_0 : i32, i32
  }
  func.func @transform_9(%arg0: i32) -> (i32, i32) {
    %c0_i32 = arith.constant 0 : i32
    %c0_i32_0 = arith.constant 0 : i32
    %c0_i32_1 = arith.constant 0 : i32
    return %c0_i32, %c0_i32_0 : i32, i32
  }
  func.func @transform_10(%arg0: i32) -> (i32, i32) {
    %c0_i32 = arith.constant 0 : i32
    %c0_i32_0 = arith.constant 0 : i32
    %c0_i32_1 = arith.constant 0 : i32
    return %c0_i32, %c0_i32_0 : i32, i32
  }
  func.func @transform_11(%arg0: i32) -> (i32, i32) {
    %c0_i32 = arith.constant 0 : i32
    %c0_i32_0 = arith.constant 0 : i32
    %c0_i32_1 = arith.constant 0 : i32
    return %c0_i32, %c0_i32_0 : i32, i32
  }
  func.func @transform_12(%arg0: i32) -> (i32, i32) {
    %c0_i32 = arith.constant 0 : i32
    %c0_i32_0 = arith.constant 0 : i32
    %c0_i32_1 = arith.constant 0 : i32
    return %c0_i32, %c0_i32_0 : i32, i32
  }
  func.func @transform_13(%arg0: i32) -> (i32, i32) {
    %c0_i32 = arith.constant 0 : i32
    %c0_i32_0 = arith.constant 0 : i32
    %c0_i32_1 = arith.constant 0 : i32
    return %c0_i32, %c0_i32_0 : i32, i32
  }
}

</mosaic_0001>

<bundles_post_ra>
// kernel: lstm_autoencoder_forward.1
= control target key start
LH: loop header
LB: loop body
LE: loop exit
PB: predicated region body
PF: predicated region fallthrough
CT: control target
= control target key end

     0   :  { %18 = vsyncpa [#allocation3], 0  ;;  %s18083_s0 = inlined_call_operand.vmem [shape: f32[64,16], index: 0, kind: input, shape index: {}]   ;;  %s18084_s1 = inlined_call_operand.vmem [shape: f32[16,128], index: 1, kind: input, shape index: {}]   ;;  %s18085_s2 = inlined_call_operand.vmem [shape: f32[32,128], index: 2, kind: input, shape index: {}]   ;;  %s18086_s3 = inlined_call_operand.vmem [shape: f32[1,128], index: 3, kind: input, shape index: {}]   ;;  %s18087_s4 = inlined_call_operand.vmem [shape: f32[32,128], index: 4, kind: input, shape index: {}]   ;;  %s18088_s5 = inlined_call_operand.hbm [shape: f32[32,128], index: 5, kind: input, shape index: {}]   ;;  %s18089_s6 = inlined_call_operand.vmem [shape: f32[1,128], index: 6, kind: input, shape index: {}]   ;;  %s18090_s7 = inlined_call_operand.hbm [shape: f32[32,64], index: 7, kind: input, shape index: {}]   ;;  %s18091_s8 = inlined_call_operand.hbm [shape: f32[16,64], index: 8, kind: input, shape index: {}]   ;;  %s18092_s9 = inlined_call_operand.vmem [shape: f32[1,64], index: 9, kind: input, shape index: {}]   ;;  %s18093_s10 = inlined_call_operand.hbm [shape: f32[16,64], index: 10, kind: input, shape index: {}]   ;;  %s18094_s11 = inlined_call_operand.hbm [shape: f32[16,64], index: 11, kind: input, shape index: {}]   ;;  %s18095_s12 = inlined_call_operand.vmem [shape: f32[1,64], index: 12, kind: input, shape index: {}]   ;;  %s18096_s13 = inlined_call_operand.vmem [shape: f32[128,16], index: 13, kind: output, shape index: {}]  }
   0x1   :  { %19 = vsyncpa [#allocation5], 0 }
   0x2   :  { %20 = vsyncpa [#allocation8], 0  ;;  %s50_s27 = sshll.u32 %s18090_s7, 4  ;;  %s15549_s28 = smov [#allocation4]   ;;  %s51_s27 = int_to_ptr.hbm [resolvable:$true] %s50_s27 }
   0x3   :  { %s52_s29 = sshll.u32 %s15549_s28, 4  ;;  %s78_s15 = sshll.u32 %s18093_s10, 4  ;;  %s53_s29 = int_to_ptr.vmem [resolvable:$true] %s52_s29  ;;  %s79_s15 = int_to_ptr.hbm [resolvable:$true] %s78_s15 }
   0x4   :  { %s15550_s16 = smov 128   ;;  %s15551_s17 = smov 8  }
   0x5   :  { %58 = dma.hbm_to_vmem [thread:$0]  %s51_s27, 512, %s53_s29, [#allocation5], %s15550_s16, %s15550_s16, %s15551_s17  }
   0x6   :  { %s15552_s18 = smov [#allocation7]   ;;  %s35_s22 = sshll.u32 %s18088_s5, 4  ;;  %s36_s22 = int_to_ptr.hbm [resolvable:$true] %s35_s22 }
   0x7   :  { %s80_s19 = sshll.u32 %s15552_s18, 4  ;;  %s63_s24 = sshll.u32 %s18091_s8, 4  ;;  %s81_s19 = int_to_ptr.vmem [resolvable:$true] %s80_s19  ;;  %s64_s24 = int_to_ptr.hbm [resolvable:$true] %s63_s24 }
   0x8   :  { %86 = dma.hbm_to_vmem [thread:$0]  %s79_s15, 256, %s81_s19, [#allocation8], %s15550_s16, %s15550_s16, %s15551_s17  }
   0x9   :  { %s15553_s25 = smov [#allocation2]   ;;  %s15554_s10 = smov [#allocation6]  }
   0xa   :  { %s37_s26 = sshll.u32 %s15553_s25, 4  ;;  %s65_s27 = sshll.u32 %s15554_s10, 4  ;;  %s38_s26 = int_to_ptr.vmem [resolvable:$true] %s37_s26  ;;  %s66_s27 = int_to_ptr.vmem [resolvable:$true] %s65_s27 }
   0xb   :  { %43 = dma.hbm_to_vmem [thread:$0]  %s36_s22, 512, %s38_s26, [#allocation3], %s15550_s16, %s15550_s16, %s15551_s17  }
   0xc   :  { %s91_s30 = sshll.u32 %s18094_s11, 4  ;;  %s15555_s5 = smov [#allocation9]   ;;  %s92_s30 = int_to_ptr.hbm [resolvable:$true] %s91_s30 }
   0xd   :  { %71 = dma.hbm_to_vmem [thread:$0]  %s64_s24, 256, %s66_s27, [#allocation5], %s15550_s16, %s15550_s16, %s15551_s17  }
   0xe   :  { %s93_s14 = sshll.u32 %s15555_s5, 4  ;;  %s94_s14 = int_to_ptr.vmem [resolvable:$true] %s93_s14 }
   0xf   :  { %99 = dma.hbm_to_vmem [thread:$0]  %s92_s30, 256, %s94_s14, [#allocation8], %s15550_s16, %s15550_s16, %s15551_s17  }
  0x10   :  { %15543 = dma.done.wait [#allocation3], 512  }
  0x11   :  { %15544 = vsyncadd [#allocation3], 4294966784 }
  0x12   :  { %15545 = dma.done.wait [#allocation5], 768  }
  0x13   :  { %15546 = vsyncadd [#allocation5], 4294966528 }
  0x14   :  { %15547 = dma.done.wait [#allocation8], 512  }
  0x15   :  { %15548 = vsyncadd [#allocation8], 4294966784  ;;  %vm161_vm0 = vcmask 130048   ;;  %v123_v0 = vld [vmem:[%s18084_s1 + $0x8] sm:$0xff]  ;;  %v122_v1 = vld [vmem:[%s18084_s1] sm:$0xff]  ;;  %s15557_s20 = smov 64  }
  0x16   :  { %v150_v2 = vld [vmem:[%s18083_s0] sm:$0xff]  ;;  %v200_v3 = vand.u32 4294901760, %v123_v0  ;;  %v15656_v4 = vand.u32 4294901760, %v122_v1  ;;  %v127_v6 = vld [vmem:[%s18085_s2 + $0x18] sm:$0xff]  ;;  %v151_v7 = vld [vmem:[%s18083_s0 + $0x8] sm:$0xff]  ;;  %s15558_s16 = smov 32  }
  0x17   :  { %v163_v5 = vsel %vm161_vm0, %v150_v2, 0  ;;  %v152_v8 = vld [vmem:[%s18083_s0 + $0x10] sm:$0xff]  ;;  %v15670_v10 = vand.u32 4294901760, %v127_v6  ;;  %v166_v11 = vsel %vm161_vm0, %v151_v7, 0  ;;  %v125_v33 = vld [vmem:[%s18085_s2 + $0x8] sm:$0xff]  ;;  %v153_v39 = vld [vmem:[%s18083_s0 + $0x18] sm:$0xff] }
  0x18   :  { %v15668_v9 = vand.u32 4294901760, %v163_v5  ;;  %v126_v12 = vld [vmem:[%s18085_s2 + $0x10] sm:$0xff]  ;;  %v284_v13 = vsub.f32 %v123_v0, %v200_v3  ;;  %404 = vmatpush.msra.mxu3 %v200_v3  ;;  %v290_v14 = vsub.f32 %v122_v1, %v15656_v4  ;;  %201 = vmatpush.msra.mxu0 %v200_v3  ;;  %v15677_v15 = vand.u32 4294901760, %v166_v11  ;;  %v154_v51 = vld [vmem:[%s18083_s0 + $0x20] sm:$0xff]  ;;  %v155_v61 = vld [vmem:[%s18083_s0 + $0x28] sm:$0xff]  ;;  %s15561_s15 = smov 80  }
  0x19   :  { %v15681_v17 = vsub.f32 %v127_v6, %v15670_v10  ;;  %v169_v18 = vsel %vm161_vm0, %v152_v8, 0  ;;  %v15684_v19 = vand.u32 4294901760, %v126_v12  ;;  %v15714_v40 = vand.u32 4294901760, %v125_v33  ;;  %v124_v59 = vld [vmem:[%s18085_s2] sm:$0xff]  ;;  %v156_v8 = vld [vmem:[%s18083_s0 + $0x30] sm:$0xff]  ;;  %s15560_s2 = smov 16  }
  0x1a   :  { %v205_v16 = vsub.f32 %v163_v5, %v15668_v9  ;;  %344 = vmatpush.msra.mxu2 %v284_v13  ;;  %406 = vmatpush.msra.mxu3 %v15656_v4  ;;  %v285_v20 = vand.u32 4294901760, %v284_v13  ;;  %v291_v21 = vand.u32 4294901760, %v290_v14  ;;  %v213_v22 = vsub.f32 %v166_v11, %v15677_v15 }
  0x1b   :  { %203 = vmatpush.msra.mxu0 %v15656_v4  ;;  %v15690_v24 = vand.u32 4294901760, %v15681_v17  ;;  %v15693_v25 = vsub.f32 %v126_v12, %v15684_v19  ;;  %v15695_v28 = vand.u32 4294901760, %v169_v18  ;;  %v172_v44 = vsel %vm161_vm0, %v153_v39, 0 }
  0x1c   :  { %v206_v23 = vand.u32 4294901760, %v205_v16  ;;  %347 = vmatpush.msra.mxu2 %v290_v14  ;;  %v286_v26 = vsub.f32 %v284_v13, %v285_v20  ;;  %v292_v27 = vsub.f32 %v290_v14, %v291_v21  ;;  %v214_v31 = vand.u32 4294901760, %v213_v22 }
  0x1d   :  { %18161 = vst [vmem:[#allocation13_spill] sm:$0xff] %v15690_v24  ;;  %473 = vmatpush.msrb.mxu0 %v285_v20  ;;  %350 = vmatmul.f32.vlgmr.msra.gmra.mxu2 %v205_v16  ;;  %v610_v29 = vsub.f32 %v15681_v17, %v15690_v24  ;;  %v15700_v32 = vand.u32 4294901760, %v15693_v25  ;;  %v221_v42 = vsub.f32 %v169_v18, %v15695_v28  ;;  %v15730_v49 = vand.u32 4294901760, %v172_v44  ;;  %v157_v20 = vld [vmem:[%s18083_s0 + $0x38] sm:$0xff] }
  0x1e   :  { %410 = vmatmul.f32.vlgmr.msra.gmra.mxu3 %v206_v23  ;;  %v207_v30 = vsub.f32 %v205_v16, %v206_v23  ;;  %579 = vmatpush.msrb.mxu2 %v15670_v10  ;;  %v287_v34 = vand.u32 4294901760, %v286_v26  ;;  %v293_v35 = vand.u32 4294901760, %v292_v27  ;;  %v215_v41 = vsub.f32 %v213_v22, %v214_v31 }
  0x1f   :  { %18162 = vst [vmem:[#allocation14_spill] sm:$0xff] %v15700_v32  ;;  %477 = vmatpush.msrb.mxu0 %v291_v21  ;;  %v15706_v36 = vand.u32 4294901760, %v610_v29  ;;  %v616_v38 = vsub.f32 %v15693_v25, %v15700_v32  ;;  %v15723_v45 = vsub.f32 %v125_v33, %v15714_v40  ;;  %v222_v48 = vand.u32 4294901760, %v221_v42 }
  0x20   :  { %v208_v37 = vand.u32 4294901760, %v207_v30  ;;  %288 = vmatpush.msra.mxu1 %v287_v34  ;;  %581 = vmatpush.msrb.mxu2 %v15684_v19  ;;  %v216_v47 = vand.u32 4294901760, %v215_v41  ;;  %v229_v54 = vsub.f32 %v172_v44, %v15730_v49  ;;  %v175_v55 = vsel %vm161_vm0, %v154_v51, 0 }
  0x21   :  { %612 = vmatpush.msrb.mxu3 %v15706_v36  ;;  %v15718_v43 = vand.u32 4294901760, %v616_v38  ;;  %v15728_v46 = vand.u32 4294901760, %v15723_v45  ;;  %v223_v53 = vsub.f32 %v221_v42, %v222_v48  ;;  %v15744_v58 = vand.u32 4294901760, %v175_v55 }
  0x22   :  { %209 = vmatmul.f32.vlgmr.msra.gmra.mxu0 %v208_v37  ;;  %294 = vmatpush.msra.mxu1 %v293_v35  ;;  %v230_v57 = vand.u32 4294901760, %v229_v54  ;;  %v15749_v60 = vand.u32 4294901760, %v124_v59  ;;  %v178_v1 = vsel %vm161_vm0, %v155_v61, 0  ;;  %v181_v13 = vsel %vm161_vm0, %v156_v8, 0 }
  0x23   :  { %583 = vmatpush.msrb.mxu2 %v15714_v40  ;;  %296 = vmatmul.f32.vlgmr.msra.gmra.mxu1 %v15668_v9  ;;  %18163 = vst [vmem:[#allocation15_spill] sm:$0xff] %v15728_v46  ;;  %v622_v50 = vsub.f32 %v15723_v45, %v15728_v46  ;;  %v224_v56 = vand.u32 4294901760, %v223_v53  ;;  %v237_v0 = vsub.f32 %v175_v55, %v15744_v58  ;;  %v15768_v6 = vand.u32 4294901760, %v178_v1 }
  0x24   :  { %618 = vmatpush.msrb.mxu3 %v15718_v43  ;;  %526 = vmatpush.msrb.mxu1 %v200_v3  ;;  %v15756_v62 = vsub.f32 %v124_v59, %v15749_v60  ;;  %v231_v63 = vsub.f32 %v229_v54, %v230_v57  ;;  %v252_v18 = vand.u32 4294901760, %v181_v13  ;;  %v184_v23 = vsel %vm161_vm0, %v157_v20, 0 }
  0x25   :  { %355 = vmatmul.f32.gmra.mxu2 %v213_v22  ;;  %v15738_v52 = vand.u32 4294901760, %v622_v50  ;;  %v238_v5 = vand.u32 4294901760, %v237_v0  ;;  %v245_v12 = vsub.f32 %v178_v1, %v15768_v6  ;;  %v260_v29 = vand.u32 4294901760, %v184_v23 }
  0x26   :  { %416 = vmatmul.f32.gmra.mxu3 %v214_v31  ;;  %528 = vmatpush.msrb.mxu1 %v15656_v4  ;;  %v15762_v2 = vand.u32 4294901760, %v15756_v62  ;;  %v232_v4 = vand.u32 4294901760, %v231_v63  ;;  %v253_v22 = vsub.f32 %v181_v13, %v252_v18  ;;  %v18097_v38 = vmov 0.0   ;;  %v15872_v13 = vld [vmem:[%s18086_s3] ss:$0 sm:$0xff] }
  0x27   :  { %624 = vmatpush.msrb.mxu3 %v15738_v52  ;;  %585 = vmatpush.msrb.mxu2 %v15749_v60  ;;  %v239_v11 = vsub.f32 %v237_v0, %v238_v5  ;;  %v246_v16 = vand.u32 4294901760, %v245_v12  ;;  %v261_v31 = vsub.f32 %v184_v23, %v260_v29  ;;  %18187 = vst [vmem:[#allocation39_spill] sm:$0xff] %v15872_v13  ;;  %vm562_vm5 = vcmask 261120  }
  0x28   :  { %18164 = vst [vmem:[#allocation16_spill] sm:$0xff] %v15762_v2  ;;  %v628_v3 = vsub.f32 %v15756_v62, %v15762_v2  ;;  %v254_v27 = vand.u32 4294901760, %v253_v22 }
  0x29   :  { %650 = vmatpush.msra.mxu2 %v15681_v17  ;;  %v240_v14 = vand.u32 4294901760, %v239_v11  ;;  %v247_v21 = vsub.f32 %v245_v12, %v246_v16  ;;  %v262_v34 = vand.u32 4294901760, %v261_v31 }
  0x2a   :  { %217 = vmatmul.f32.gmra.mxu0 %v216_v47  ;;  %v15770_v7 = vand.u32 4294901760, %v628_v3  ;;  %v255_v30 = vsub.f32 %v253_v22, %v254_v27 }
  0x2b   :  { %300 = vmatmul.f32.gmra.mxu1 %v15677_v15  ;;  %653 = vmatpush.msra.mxu2 %v15693_v25  ;;  %v248_v26 = vand.u32 4294901760, %v247_v21  ;;  %v263_v35 = vsub.f32 %v261_v31, %v262_v34 }
  0x2c   :  { %630 = vmatpush.msrb.mxu3 %v15770_v7  ;;  %v256_v33 = vand.u32 4294901760, %v255_v30 }
  0x2d   :  { %360 = vmatmul.f32.gmra.mxu2 %v221_v42  ;;  %v264_v37 = vand.u32 4294901760, %v263_v35 }
  0x2e   :  { %422 = vmatmul.f32.gmra.mxu3 %v222_v48  ;;  %656 = vmatpush.msra.mxu2 %v15723_v45 }
  0x2f   :  { %679 = vmatpush.msra.mxu3 %v15670_v10 }
  0x30   :  { %659 = vmatpush.msra.mxu2 %v15756_v62 }
  0x31   :  { %681 = vmatpush.msra.mxu3 %v15684_v19 }
  0x32   :  { %225 = vmatmul.f32.gmra.mxu0 %v224_v56 }
  0x33   :  { %304 = vmatmul.f32.gmra.mxu1 %v15695_v28  ;;  %683 = vmatpush.msra.mxu3 %v15714_v40 }
  0x35   :  { %365 = vmatmul.f32.gmra.mxu2 %v229_v54  ;;  %685 = vmatpush.msra.mxu3 %v15749_v60 }
  0x36   :  { %428 = vmatmul.f32.gmra.mxu3 %v230_v57 }
  0x3a   :  { %233 = vmatmul.f32.gmra.mxu0 %v232_v4 }
  0x3b   :  { %308 = vmatmul.f32.gmra.mxu1 %v15730_v49 }
  0x3d   :  { %370 = vmatmul.f32.gmra.mxu2 %v237_v0 }
  0x3e   :  { %434 = vmatmul.f32.gmra.mxu3 %v238_v5 }
  0x42   :  { %241 = vmatmul.f32.gmra.mxu0 %v240_v14 }
  0x43   :  { %312 = vmatmul.f32.gmra.mxu1 %v15744_v58 }
  0x45   :  { %375 = vmatmul.f32.gmra.mxu2 %v245_v12 }
  0x46   :  { %440 = vmatmul.f32.gmra.mxu3 %v246_v16 }
  0x4a   :  { %249 = vmatmul.f32.gmra.mxu0 %v248_v26 }
  0x4b   :  { %316 = vmatmul.f32.gmra.mxu1 %v15768_v6 }
  0x4d   :  { %380 = vmatmul.f32.gmra.mxu2 %v253_v22 }
  0x4e   :  { %446 = vmatmul.f32.gmra.mxu3 %v254_v27 }
  0x52   :  { %257 = vmatmul.f32.gmra.mxu0 %v256_v33 }
  0x53   :  { %320 = vmatmul.f32.gmra.mxu1 %v252_v18 }
  0x55   :  { %385 = vmatmul.f32.gmra.mxu2 %v261_v31 }
  0x56   :  { %452 = vmatmul.f32.gmra.mxu3 %v262_v34 }
  0x5a   :  { %265 = vmatmul.f32.gmra.mxu0 %v264_v37 }
  0x5b   :  { %324 = vmatmul.f32.gmra.mxu1 %v260_v29 }
  0x5d   :  { %591 = vmatmul.f32.vlgmr.msrb.gmra.mxu2 %v18097_v38 }
  0x5e   :  { %632 = vmatmul.f32.vlgmr.msrb.gmra.mxu3 %v18097_v38  ;;  %708 = vmatpush.msrb.mxu2 %v15690_v24 }
  0x5f   :  { %739 = vmatpush.msrb.mxu3 %v15670_v10 }
  0x60   :  { %712 = vmatpush.msrb.mxu2 %v15700_v32 }
  0x61   :  { %741 = vmatpush.msrb.mxu3 %v15684_v19 }
  0x62   :  { %479 = vmatmul.f32.vlgmr.msrb.gmra.mxu0 %v15668_v9  ;;  %716 = vmatpush.msrb.mxu2 %v15728_v46 }
  0x63   :  { %743 = vmatpush.msrb.mxu3 %v15714_v40  ;;  %530 = vmatmul.f32.vlgmr.msrb.gmra.mxu1 %v15668_v9 }
  0x64   :  { %720 = vmatpush.msrb.mxu2 %v15762_v2 }
  0x65   :  { %745 = vmatpush.msrb.mxu3 %v15749_v60  ;;  %662 = vmatmul.f32.vlgmr.msra.gmra.mxu2 %v18097_v38 }
  0x66   :  { %689 = vmatmul.f32.vlgmr.msra.gmra.mxu3 %v18097_v38 }
  0x6a   :  { %483 = vmatmul.f32.gmra.mxu0 %v15677_v15 }
  0x6b   :  { %534 = vmatmul.f32.gmra.mxu1 %v15677_v15 }
  0x6d   :  { %722 = vmatmul.f32.vlgmr.msrb.gmra.mxu2 %v18097_v38 }
  0x6e   :  { %747 = vmatmul.f32.vlgmr.msrb.gmra.mxu3 %v18097_v38 }
  0x72   :  { %487 = vmatmul.f32.gmra.mxu0 %v15695_v28 }
  0x73   :  { %538 = vmatmul.f32.gmra.mxu1 %v15695_v28 }
  0x7a   :  { %491 = vmatmul.f32.gmra.mxu0 %v15730_v49 }
  0x7b   :  { %542 = vmatmul.f32.gmra.mxu1 %v15730_v49 }
  0x82   :  { %495 = vmatmul.f32.gmra.mxu0 %v15744_v58 }
  0x83   :  { %546 = vmatmul.f32.gmra.mxu1 %v15744_v58 }
  0x8a   :  { %499 = vmatmul.f32.gmra.mxu0 %v15768_v6 }
  0x8b   :  { %550 = vmatmul.f32.gmra.mxu1 %v15768_v6 }
  0x92   :  { %503 = vmatmul.f32.gmra.mxu0 %v252_v18 }
  0x93   :  { %554 = vmatmul.f32.gmra.mxu1 %v252_v18 }
  0x9a   :  { %507 = vmatmul.f32.gmra.mxu0 %v260_v29 }
  0x9b   :  { %558 = vmatmul.f32.gmra.mxu1 %v260_v29 }
  0x9f   :  { %v210_v9 = vpop.f32.mrf.mxu0 }
  0xa0   :  { %v297_v15 = vpop.f32.mrf.mxu1  ;;  %v351_v39 = vpop.f32.mrf.mxu2  ;;  %v211_v16 = vadd.f32 %v15872_v13, %v210_v9 }
  0xa1   :  { %v411_v28 = vpop.f32.mrf.mxu3 }
  0xa2   :  { %v298_v21 = vadd.f32 %v297_v15, %v211_v16 }
  0xa4   :  { %v352_v26 = vadd.f32 %v351_v39, %v298_v21 }
  0xa6   :  { %v412_v33 = vadd.f32 %v411_v28, %v352_v26 }
  0xa7   :  { %v15817_v41 = vpop.f32.mrf.mxu0 }
  0xa8   :  { %v15819_v42 = vpop.f32.mrf.mxu2  ;;  %v15823_v47 = vpop.f32.mrf.mxu1 }
  0xa9   :  { %v15821_v44 = vpop.f32.mrf.mxu3 }
  0xaf   :  { %v15825_v48 = vpop.f32.mrf.mxu0 }
  0xb0   :  { %18165 = vst [vmem:[#allocation17_spill] sm:$0xff] %v15825_v48  ;;  %v15827_v49 = vpop.f32.mrf.mxu2  ;;  %v15831_v51 = vpop.f32.mrf.mxu1 }
  0xb1   :  { %18166 = vst [vmem:[#allocation18_spill] sm:$0xff] %v15827_v49  ;;  %v15829_v50 = vpop.f32.mrf.mxu3 }
  0xb2   :  { %18167 = vst [vmem:[#allocation19_spill] sm:$0xff] %v15829_v50 }
  0xb3   :  { %18168 = vst [vmem:[#allocation20_spill] sm:$0xff] %v15831_v51 }
  0xb7   :  { %v15837_v55 = vpop.f32.mrf.mxu0 }
  0xb8   :  { %v15833_v53 = vpop.f32.mrf.mxu2  ;;  %18171 = vst [vmem:[#allocation23_spill] sm:$0xff] %v15837_v55  ;;  %v15839_v56 = vpop.f32.mrf.mxu1 }
  0xb9   :  { %18169 = vst [vmem:[#allocation21_spill] sm:$0xff] %v15833_v53  ;;  %v15835_v54 = vpop.f32.mrf.mxu3 }
  0xba   :  { %18170 = vst [vmem:[#allocation22_spill] sm:$0xff] %v15835_v54 }
  0xbb   :  { %18172 = vst [vmem:[#allocation24_spill] sm:$0xff] %v15839_v56 }
  0xbf   :  { %v15845_v59 = vpop.f32.mrf.mxu0 }
  0xc0   :  { %v15841_v57 = vpop.f32.mrf.mxu2  ;;  %18175 = vst [vmem:[#allocation27_spill] sm:$0xff] %v15845_v59  ;;  %v15847_v61 = vpop.f32.mrf.mxu1 }
  0xc1   :  { %18173 = vst [vmem:[#allocation25_spill] sm:$0xff] %v15841_v57  ;;  %v15843_v58 = vpop.f32.mrf.mxu3 }
  0xc2   :  { %18174 = vst [vmem:[#allocation26_spill] sm:$0xff] %v15843_v58 }
  0xc3   :  { %18176 = vst [vmem:[#allocation28_spill] sm:$0xff] %v15847_v61 }
  0xc7   :  { %v15853_v1 = vpop.f32.mrf.mxu0 }
  0xc8   :  { %v15849_v63 = vpop.f32.mrf.mxu2  ;;  %18179 = vst [vmem:[#allocation31_spill] sm:$0xff] %v15853_v1  ;;  %v15859_v5 = vpop.f32.mrf.mxu1 }
  0xc9   :  { %18177 = vst [vmem:[#allocation29_spill] sm:$0xff] %v15849_v63  ;;  %v15851_v0 = vpop.f32.mrf.mxu3 }
  0xca   :  { %18178 = vst [vmem:[#allocation30_spill] sm:$0xff] %v15851_v0  ;;  %v129_v0 = vld [vmem:[%s18087_s4] sm:$0xff] }
  0xcb   :  { %18182 = vst [vmem:[#allocation34_spill] sm:$0xff] %v15859_v5  ;;  %v15990_v5 = vand.u32 4294901760, %v129_v0 }
  0xcd   :  { %18200 = vst [vmem:[#allocation51_spill] sm:$0xff] %v15990_v5 }
  0xcf   :  { %v15861_v6 = vpop.f32.mrf.mxu0 }
  0xd0   :  { %v15855_v3 = vpop.f32.mrf.mxu2  ;;  %18183 = vst [vmem:[#allocation35_spill] sm:$0xff] %v15861_v6  ;;  %v15867_v12 = vpop.f32.mrf.mxu1 }
  0xd1   :  { %18180 = vst [vmem:[#allocation32_spill] sm:$0xff] %v15855_v3  ;;  %v15857_v4 = vpop.f32.mrf.mxu3 }
  0xd2   :  { %18181 = vst [vmem:[#allocation33_spill] sm:$0xff] %v15857_v4 }
  0xd3   :  { %18186 = vst [vmem:[#allocation38_spill] sm:$0xff] %v15867_v12  ;;  %v130_v12 = vld [vmem:[%s18087_s4 + $0x8] sm:$0xff] }
  0xd4   :  { %v15982_v6 = vand.u32 4294901760, %v130_v12 }
  0xd6   :  { %18198 = vst [vmem:[#allocation49_spill] sm:$0xff] %v15982_v6  ;;  %v15988_v63 = vsub.f32 %v130_v12, %v15982_v6 }
  0xd7   :  { %v15875_v20 = vpop.f32.mrf.mxu0 }
  0xd8   :  { %v15863_v8 = vpop.f32.mrf.mxu2  ;;  %18188 = vst [vmem:[#allocation40_spill] sm:$0xff] %v15875_v20  ;;  %v15877_v22 = vpop.f32.mrf.mxu1  ;;  %v18197_v20 = vmov 0.0  }
  0xd9   :  { %18184 = vst [vmem:[#allocation36_spill] sm:$0xff] %v15863_v8  ;;  %v15865_v11 = vpop.f32.mrf.mxu3 }
  0xda   :  { %18185 = vst [vmem:[#allocation37_spill] sm:$0xff] %v15865_v11 }
  0xdb   :  { %18189 = vst [vmem:[#allocation41_spill] sm:$0xff] %v15877_v22 }
  0xdc   :  { %18199 = vst [vmem:[#allocation50_spill] sm:$0xff] %v15988_v63 }
  0xdf   :  { %v480_v31 = vpop.f32.mrf.mxu0 }
  0xe0   :  { %v592_v14 = vpop.f32.mrf.mxu2  ;;  %v481_v34 = vadd.f32 %v480_v31, %v412_v33  ;;  %v531_v37 = vpop.f32.mrf.mxu1 }
  0xe1   :  { %v633_v18 = vpop.f32.mrf.mxu3 }
  0xe2   :  { %v634_v27 = vadd.f32 %v633_v18, %v592_v14  ;;  %v532_v9 = vadd.f32 %v531_v37, %v481_v34  ;;  %v135_v37 = vld [vmem:[#allocation2 + $0x10] sm:$0xff] }
  0xe8   :  { %v663_v23 = vpop.f32.mrf.mxu2 }
  0xe9   :  { %v690_v29 = vpop.f32.mrf.mxu3  ;;  %v664_v30 = vadd.f32 %v663_v23, %v634_v27 }
  0xeb   :  { %v691_v35 = vadd.f32 %v690_v29, %v664_v30 }
  0xf0   :  { %v723_v38 = vpop.f32.mrf.mxu2 }
  0xf1   :  { %v724_v11 = vadd.f32 %v723_v38, %v691_v35  ;;  %v748_v8 = vpop.f32.mrf.mxu3  ;;  %v136_v35 = vld [vmem:[#allocation2 + $0x18] sm:$0xff] }
  0xf3   :  { %v749_v4 = vadd.f32 %v748_v8, %v724_v11 }
  0xf5   :  { %v751_v3 = vadd.f32 %v749_v4, %v532_v9  ;;  %v134_v9 = vld [vmem:[#allocation2 + $0x8] sm:$0xff] }
  0xf7   :  { %15031 = vtanh.f32 %v751_v3  ;;  %v14966_v39 = vmul.f32 -1.442695, %v751_v3 }
  0xf9   :  { %15033 = vpow2.f32 %v14966_v39  ;;  %v15891_v39 = vand.u32 4294901760, %v135_v37 }
  0xfd   :  { %v15032_v15 = vpop.eup %15031 }
  0xfe   :  { %774 = vrot.lane.b32.xlu0 %v15032_v15, %s15557_s20  ;;  %v15889_v15 = vand.u32 4294901760, %v136_v35 }
  0xff   :  { %v15034_v14 = vpop.eup %15033 }
 0x100   :  { %v755_v16 = vadd.f32 1.0, %v15034_v14  ;;  %v15893_v14 = vand.u32 4294901760, %v134_v9  ;;  %1155 = vmatpush.msra.mxu1 %v15889_v15 }
 0x102   :  { %15035 = vrcp.f32 %v755_v16  ;;  %v767_v38 = vand.u32 2147483648, %v755_v16  ;;  %vm761_vm2 = vweird.f32 %v755_v16  ;;  %v765_v8 = vand.u32 2147483647, %v755_v16  ;;  %1157 = vmatpush.msra.mxu1 %v15891_v39 }
 0x104   :  { %v768_v11 = vor.u32 1.1754944e-38, %v767_v38  ;;  %vm766_vm4 = vcmp.eq.f32.partialorder %v765_v8, 8.507059e+37  ;;  %v15908_v38 = vsub.f32 %v136_v35, %v15889_v15  ;;  %v15911_v8 = vsub.f32 %v135_v37, %v15891_v39  ;;  %1159 = vmatpush.msra.mxu1 %v15893_v14 }
 0x108   :  { %v15036_v28 = vpop.eup %15035 }
 0x109   :  { %v757_v18 = vmul.f32 %v15036_v28, %v755_v16  ;;  %vm762_vm1 = vweird.f32 %v15036_v28  ;;  %v132_v16 = vld [vmem:[%s18087_s4 + $0x18] sm:$0xff] }
 0x10a   :  { %vm763_vm3 = vmor %vm761_vm2, %vm762_vm1 }
 0x10b   :  { %v758_v21 = vsub.f32 1.0, %v757_v18  ;;  %v131_v18 = vld [vmem:[%s18087_s4 + $0x10] sm:$0xff] }
 0x10d   :  { %v759_v23 = vmul.f32 %v15036_v28, %v758_v21  ;;  %v15901_v21 = vand.u32 4294901760, %v132_v16 }
 0x10f   :  { %v760_v26 = vadd.f32 %v15036_v28, %v759_v23  ;;  %18190 = vst [vmem:[#allocation42_spill] sm:$0xff] %v15901_v21  ;;  %810 = vmatpush.msra.mxu2 %v15901_v21 }
 0x111   :  { %v764_v4 = vsel %vm763_vm3, %v15036_v28, %v760_v26  ;;  %v133_v28 = vld [vmem:[#allocation2] sm:$0xff]  ;;  %v15905_v26 = vand.u32 4294901760, %v131_v18 }
 0x112   :  { %v15880_v29 = vsel %vm766_vm4, %v768_v11, %v764_v4  ;;  %v15903_v23 = vand.u32 4294901760, %v133_v28  ;;  %v15915_v4 = vsub.f32 %v134_v9, %v15893_v14  ;;  %v15918_v11 = vsub.f32 %v132_v16, %v15901_v21 }
 0x113   :  { %v772_v30 = vmul.f32 0.0, %v15880_v29  ;;  %18191 = vst [vmem:[#allocation43_spill] sm:$0xff] %v15905_v26  ;;  %812 = vmatpush.msra.mxu2 %v15905_v26 }
 0x114   :  { %18192 = vst [vmem:[#allocation44_spill] sm:$0xff] %v15918_v11  ;;  %v15943_v37 = vand.u32 4294901760, %v15915_v4  ;;  %1161 = vmatpush.msra.mxu1 %v15903_v23 }
 0x115   :  { %1163 = vmatmul.f32.vlgmr.msra.gmra.mxu1 %v18197_v20  ;;  %814 = vmatpush.msra.mxu2 %v15982_v6 }
 0x116   :  { %1318 = vmatpush.msrb.mxu1 %v15670_v10  ;;  %v1038_v56 = vsub.f32 %v15915_v4, %v15943_v37 }
 0x117   :  { %816 = vmatpush.msra.mxu2 %v15990_v5 }
 0x118   :  { %1320 = vmatpush.msrb.mxu1 %v15684_v19 }
 0x119   :  { %881 = vmatpush.msrb.mxu2 %v15918_v11 }
 0x11a   :  { %1322 = vmatpush.msrb.mxu1 %v15714_v40 }
 0x11c   :  { %1324 = vmatpush.msrb.mxu1 %v15749_v60 }
 0x170   :  { %v775_v27 = vpop.permute.xlu0 %774 }
 0x171   :  { %v777_v3 = vmul.f32 %v775_v27, %v15880_v29  ;;  %v15921_v27 = vsub.f32 %v131_v18, %v15905_v26 }
 0x173   :  { %779 = vrot.lane.b32.xlu0 %v777_v3, %s15558_s16  ;;  %18193 = vst [vmem:[#allocation45_spill] sm:$0xff] %v15921_v27  ;;  %v15925_v3 = vand.u32 4294901760, %v15908_v38  ;;  %v15938_v35 = vand.u32 4294901760, %v15921_v27  ;;  %884 = vmatpush.msrb.mxu2 %v15921_v27 }
 0x175   :  { %18195 = vst [vmem:[#allocation47_spill] sm:$0xff] %v15938_v35  ;;  %1124 = vmatpush.msra.mxu0 %v15925_v3  ;;  %v847_v16 = vsub.f32 %v15921_v27, %v15938_v35  ;;  %887 = vmatpush.msrb.mxu2 %v15988_v63  ;;  %v1026_v59 = vsub.f32 %v15908_v38, %v15925_v3 }
 0x177   :  { %v15957_v22 = vand.u32 4294901760, %v847_v16 }
 0x179   :  { %18196 = vst [vmem:[#allocation48_spill] sm:$0xff] %v15957_v22 }
 0x1e5   :  { %v780_v31 = vpop.permute.xlu0 %779 }
 0x1e6   :  { %v15885_v33 = vadd.f32 %v780_v31, %v772_v30  ;;  %v15928_v30 = vand.u32 4294901760, %v15911_v8  ;;  %v15932_v31 = vsub.f32 %v133_v28, %v15903_v23 }
 0x1e8   :  { %15037 = vtanh.f32 %v15885_v33  ;;  %1128 = vmatpush.msra.mxu0 %v15928_v30  ;;  %v15952_v28 = vand.u32 4294901760, %v15932_v31  ;;  %v1032_v53 = vsub.f32 %v15911_v8, %v15928_v30 }
 0x1ea   :  { %1132 = vmatpush.msra.mxu0 %v15943_v37  ;;  %v16045_v50 = vand.u32 4294901760, %v1032_v53  ;;  %v1044_v49 = vsub.f32 %v15932_v31, %v15952_v28 }
 0x1ec   :  { %1136 = vmatpush.msra.mxu0 %v15952_v28  ;;  %18207 = vst [vmem:[#allocation58_spill] sm:$0xff] %v16045_v50  ;;  %v16058_v53 = vand.u32 4294901760, %v1044_v49  ;;  %v484_v49 = vpop.f32.mrf.mxu0 }
 0x1ed   :  { %1138 = vmatmul.f32.vlgmr.msra.gmra.mxu0 %v18197_v20 }
 0x1ee   :  { %v15038_v34 = vpop.eup %15037  ;;  %1289 = vmatpush.msrb.mxu0 %v15681_v17  ;;  %18209 = vst [vmem:[#allocation60_spill] sm:$0xff] %v16058_v53 }
 0x1ef   :  { %785 = vrot.lane.b32.xlu1 %v15038_v34, %s15557_s20  ;;  %v15935_v34 = vand.u32 4294901760, %v15918_v11 }
 0x1f0   :  { %1292 = vmatpush.msrb.mxu0 %v15693_v25 }
 0x1f1   :  { %18194 = vst [vmem:[#allocation46_spill] sm:$0xff] %v15935_v34  ;;  %v841_v9 = vsub.f32 %v15918_v11, %v15935_v34 }
 0x1f2   :  { %1295 = vmatpush.msrb.mxu0 %v15723_v45 }
 0x1f3   :  { %v15955_v18 = vand.u32 4294901760, %v841_v9 }
 0x1f4   :  { %1298 = vmatpush.msrb.mxu0 %v15756_v62 }
 0x1f5   :  { %843 = vmatpush.msra.mxu3 %v15955_v18  ;;  %1479 = vmatpush.msra.mxu1 %v15955_v18 }
 0x1f6   :  { %1446 = vmatpush.msra.mxu0 %v15901_v21 }
 0x1f7   :  { %849 = vmatpush.msra.mxu3 %v15957_v22  ;;  %1485 = vmatpush.msra.mxu1 %v15957_v22 }
 0x1f8   :  { %1448 = vmatpush.msra.mxu0 %v15905_v26 }
 0x1fa   :  { %1450 = vmatpush.msra.mxu0 %v15982_v6 }
 0x1fc   :  { %1452 = vmatpush.msra.mxu0 %v15990_v5 }
 0x261   :  { %v786_v9 = vpop.permute.xlu1 %785 }
 0x262   :  { %v788_v16 = vmul.f32 %v786_v9, %v15880_v29  ;;  %v15995_v29 = vand.u32 4294901760, %v15988_v63  ;;  %v15998_v9 = vsub.f32 %v129_v0, %v15990_v5 }
 0x264   :  { %793 = vrot.lane.b32.xlu1 %v788_v16, %s15558_s16  ;;  %18201 = vst [vmem:[#allocation52_spill] sm:$0xff] %v15995_v29  ;;  %v853_v12 = vsub.f32 %v15988_v63, %v15995_v29  ;;  %v16006_v16 = vand.u32 4294901760, %v15998_v9  ;;  %890 = vmatpush.msrb.mxu2 %v15998_v9 }
 0x265   :  { %18202 = vst [vmem:[#allocation53_spill] sm:$0xff] %v15998_v9 }
 0x266   :  { %18203 = vst [vmem:[#allocation54_spill] sm:$0xff] %v16006_v16  ;;  %v16009_v1 = vand.u32 4294901760, %v853_v12  ;;  %v859_v0 = vsub.f32 %v15998_v9, %v16006_v16 }
 0x268   :  { %18204 = vst [vmem:[#allocation55_spill] sm:$0xff] %v16009_v1  ;;  %855 = vmatpush.msra.mxu3 %v16009_v1  ;;  %v16015_v58 = vand.u32 4294901760, %v859_v0  ;;  %1491 = vmatpush.msra.mxu1 %v16009_v1 }
 0x26a   :  { %18205 = vst [vmem:[#allocation56_spill] sm:$0xff] %v16015_v58  ;;  %861 = vmatpush.msra.mxu3 %v16015_v58  ;;  %1497 = vmatpush.msra.mxu1 %v16015_v58 }
 0x26c   :  { %910 = vmatpush.msrb.mxu3 %v15901_v21 }
 0x26e   :  { %912 = vmatpush.msrb.mxu3 %v15905_v26 }
 0x270   :  { %914 = vmatpush.msrb.mxu3 %v15982_v6 }
 0x272   :  { %916 = vmatpush.msrb.mxu3 %v15990_v5 }
 0x2d6   :  { %v794_v12 = vpop.permute.xlu1 %793 }
 0x2d7   :  { %v795_v0 = vsel %vm562_vm5, %v794_v12, 0 }
 0x2d8   :  { %v16026_v57 = vand.u32 4294901760, %v795_v0 }
 0x2da   :  { %v818_v61 = vsub.f32 %v795_v0, %v16026_v57  ;;  %863 = vmatmul.f32.vlgmr.msra.gmra.mxu3 %v16026_v57  ;;  %v16038_v0 = vand.u32 4294901760, %v1026_v59  ;;  %v16052_v59 = vand.u32 4294901760, %v1038_v56 }
 0x2db   :  { %970 = vmatpush.msra.mxu3 %v15901_v21 }
 0x2dc   :  { %1301 = vmatmul.f32.vlgmr.msrb.gmra.mxu0 %v818_v61  ;;  %v819_v54 = vand.u32 4294901760, %v818_v61  ;;  %18206 = vst [vmem:[#allocation57_spill] sm:$0xff] %v16038_v0 }
 0x2dd   :  { %972 = vmatpush.msra.mxu3 %v15905_v26  ;;  %1575 = vmatpush.msrb.mxu0 %v15935_v34  ;;  %18208 = vst [vmem:[#allocation59_spill] sm:$0xff] %v16052_v59 }
 0x2de   :  { %1328 = vmatmul.f32.vlgmr.msrb.gmra.mxu1 %v819_v54  ;;  %v820_v12 = vsub.f32 %v818_v61, %v819_v54 }
 0x2df   :  { %974 = vmatpush.msra.mxu3 %v15982_v6  ;;  %1606 = vmatpush.msrb.mxu1 %v15901_v21 }
 0x2e0   :  { %v821_v55 = vand.u32 4294901760, %v820_v12  ;;  %1579 = vmatpush.msrb.mxu0 %v15938_v35 }
 0x2e1   :  { %976 = vmatpush.msra.mxu3 %v15990_v5  ;;  %1608 = vmatpush.msrb.mxu1 %v15905_v26 }
 0x2e2   :  { %822 = vmatmul.f32.vlgmr.msra.gmra.mxu2 %v821_v55  ;;  %920 = vmatmul.f32.vlgmr.msrb.gmra.mxu3 %v819_v54  ;;  %v535_v54 = vpop.f32.mrf.mxu1 }
 0x2e3   :  { %939 = vmatpush.msra.mxu2 %v15935_v34  ;;  %1028 = vmatpush.msrb.mxu3 %v16038_v0 }
 0x2e4   :  { %1610 = vmatpush.msrb.mxu1 %v15982_v6  ;;  %1583 = vmatpush.msrb.mxu0 %v15995_v29 }
 0x2e5   :  { %943 = vmatpush.msra.mxu2 %v15938_v35  ;;  %1034 = vmatpush.msrb.mxu3 %v16045_v50 }
 0x2e6   :  { %1612 = vmatpush.msrb.mxu1 %v15990_v5  ;;  %1587 = vmatpush.msrb.mxu0 %v16006_v16 }
 0x2e7   :  { %947 = vmatpush.msra.mxu2 %v15995_v29  ;;  %1040 = vmatpush.msrb.mxu3 %v16052_v59 }
 0x2e9   :  { %951 = vmatpush.msra.mxu2 %v16006_v16  ;;  %1046 = vmatpush.msrb.mxu3 %v16058_v53 }
 0x2ea   :  { %893 = vmatmul.f32.vlgmr.msrb.gmra.mxu2 %v818_v61  ;;  %978 = vmatmul.f32.vlgmr.msra.gmra.mxu3 %v16026_v57  ;;  %v16121_v56 = vpop.f32.mrf.mxu1 }
 0x2eb   :  { %995 = vmatpush.msrb.mxu2 %v15889_v15  ;;  %1095 = vmatpush.msra.mxu3 %v15889_v15  ;;  %18211 = vst [vmem:[#allocation62_spill] sm:$0xff] %v16121_v56 }
 0x2ed   :  { %997 = vmatpush.msrb.mxu2 %v15891_v39  ;;  %1097 = vmatpush.msra.mxu3 %v15891_v39 }
 0x2ef   :  { %999 = vmatpush.msrb.mxu2 %v15893_v14  ;;  %1099 = vmatpush.msra.mxu3 %v15893_v14 }
 0x2f1   :  { %1001 = vmatpush.msrb.mxu2 %v15903_v23  ;;  %1101 = vmatpush.msra.mxu3 %v15903_v23 }
 0x2f2   :  { %953 = vmatmul.f32.vlgmr.msra.gmra.mxu2 %v16026_v57  ;;  %1048 = vmatmul.f32.vlgmr.msrb.gmra.mxu3 %v18197_v20  ;;  %v16125_v12 = vpop.f32.mrf.mxu1 }
 0x2f3   :  { %1066 = vmatpush.msra.mxu2 %v15908_v38  ;;  %1251 = vmatpush.msrb.mxu3 %v15706_v36  ;;  %18213 = vst [vmem:[#allocation64_spill] sm:$0xff] %v16125_v12 }
 0x2f5   :  { %1069 = vmatpush.msra.mxu2 %v15911_v8  ;;  %1257 = vmatpush.msrb.mxu3 %v15718_v43 }
 0x2f7   :  { %1072 = vmatpush.msra.mxu2 %v15915_v4  ;;  %1263 = vmatpush.msrb.mxu3 %v15738_v52 }
 0x2f9   :  { %1075 = vmatpush.msra.mxu2 %v15932_v31  ;;  %1269 = vmatpush.msrb.mxu3 %v15770_v7 }
 0x2fa   :  { %1007 = vmatmul.f32.vlgmr.msrb.gmra.mxu2 %v18197_v20  ;;  %1105 = vmatmul.f32.vlgmr.msra.gmra.mxu3 %v18197_v20  ;;  %v16129_v51 = vpop.f32.mrf.mxu1 }
 0x2fb   :  { %1218 = vmatpush.msrb.mxu2 %v15670_v10  ;;  %1378 = vmatpush.msra.mxu3 %v15670_v10  ;;  %18215 = vst [vmem:[#allocation66_spill] sm:$0xff] %v16129_v51 }
 0x2fd   :  { %1220 = vmatpush.msrb.mxu2 %v15684_v19  ;;  %1380 = vmatpush.msra.mxu3 %v15684_v19 }
 0x2ff   :  { %1222 = vmatpush.msrb.mxu2 %v15714_v40  ;;  %1382 = vmatpush.msra.mxu3 %v15714_v40 }
 0x301   :  { %1224 = vmatpush.msrb.mxu2 %v15749_v60  ;;  %1384 = vmatpush.msra.mxu3 %v15749_v60 }
 0x302   :  { %1078 = vmatmul.f32.vlgmr.msra.gmra.mxu2 %v18197_v20  ;;  %1271 = vmatmul.f32.vlgmr.msrb.gmra.mxu3 %v16026_v57 }
 0x303   :  { %1347 = vmatpush.msra.mxu2 %v15690_v24  ;;  %1546 = vmatpush.msrb.mxu3 %v15901_v21 }
 0x305   :  { %1351 = vmatpush.msra.mxu2 %v15700_v32  ;;  %1548 = vmatpush.msrb.mxu3 %v15905_v26 }
 0x307   :  { %1355 = vmatpush.msra.mxu2 %v15728_v46  ;;  %1550 = vmatpush.msrb.mxu3 %v15982_v6 }
 0x309   :  { %1359 = vmatpush.msra.mxu2 %v15762_v2  ;;  %1552 = vmatpush.msrb.mxu3 %v15990_v5 }
 0x30a   :  { %1230 = vmatmul.f32.vlgmr.msrb.gmra.mxu2 %v821_v55  ;;  %1386 = vmatmul.f32.vlgmr.msra.gmra.mxu3 %v16026_v57  ;;  %v16119_v55 = vpop.f32.mrf.mxu0 }
 0x30b   :  { %1517 = vmatpush.msrb.mxu2 %v15918_v11  ;;  %1669 = vmatpush.msra.mxu3 %v16038_v0  ;;  %18210 = vst [vmem:[#allocation61_spill] sm:$0xff] %v16119_v55 }
 0x30d   :  { %1520 = vmatpush.msrb.mxu2 %v15921_v27  ;;  %1675 = vmatpush.msra.mxu3 %v16045_v50 }
 0x30f   :  { %1523 = vmatpush.msrb.mxu2 %v15988_v63  ;;  %1681 = vmatpush.msra.mxu3 %v16052_v59 }
 0x311   :  { %1526 = vmatpush.msrb.mxu2 %v15998_v9  ;;  %1687 = vmatpush.msra.mxu3 %v16058_v53  ;;  %v16133_v53 = vpop.f32.mrf.mxu1 }
 0x312   :  { %1361 = vmatmul.f32.vlgmr.msra.gmra.mxu2 %v16026_v57  ;;  %v16123_v61 = vpop.f32.mrf.mxu0  ;;  %18217 = vst [vmem:[#allocation68_spill] sm:$0xff] %v16133_v53 }
 0x313   :  { %1636 = vmatpush.msra.mxu2 %v15889_v15  ;;  %18212 = vst [vmem:[#allocation63_spill] sm:$0xff] %v16123_v61 }
 0x315   :  { %1638 = vmatpush.msra.mxu2 %v15891_v39 }
 0x317   :  { %1640 = vmatpush.msra.mxu2 %v15893_v14 }
 0x319   :  { %1642 = vmatpush.msra.mxu2 %v15903_v23  ;;  %v16137_v34 = vpop.f32.mrf.mxu1 }
 0x31a   :  { %v16127_v57 = vpop.f32.mrf.mxu0  ;;  %18219 = vst [vmem:[#allocation70_spill] sm:$0xff] %v16137_v34 }
 0x31b   :  { %18214 = vst [vmem:[#allocation65_spill] sm:$0xff] %v16127_v57 }
 0x321   :  { %v16141_v57 = vpop.f32.mrf.mxu1 }
 0x322   :  { %v16131_v29 = vpop.f32.mrf.mxu0  ;;  %18221 = vst [vmem:[#allocation72_spill] sm:$0xff] %v16141_v57 }
 0x323   :  { %18216 = vst [vmem:[#allocation67_spill] sm:$0xff] %v16131_v29  ;;  %v219_v29 = vadd.f32 %v15872_v13, %v15817_v41 }
 0x325   :  { %v302_v5 = vadd.f32 %v15823_v47, %v219_v29 }
 0x329   :  { %v1164_v53 = vpop.f32.mrf.mxu1 }
 0x32a   :  { %v16135_v55 = vpop.f32.mrf.mxu0 }
 0x32b   :  { %18218 = vst [vmem:[#allocation69_spill] sm:$0xff] %v16135_v55  ;;  %v16149_v55 = vld [vmem:[%s18089_s6] ss:$0 sm:$0xff] }
 0x32c   :  { %18222 = vst [vmem:[#allocation73_spill] sm:$0xff] %v16149_v55 }
 0x332   :  { %v16139_v12 = vpop.f32.mrf.mxu0 }
 0x333   :  { %18220 = vst [vmem:[#allocation71_spill] sm:$0xff] %v16139_v12  ;;  %v357_v12 = vadd.f32 %v15819_v42, %v302_v5 }
 0x335   :  { %v418_v41 = vadd.f32 %v15821_v44, %v357_v12 }
 0x337   :  { %v485_v29 = vadd.f32 %v484_v49, %v418_v41 }
 0x339   :  { %v536_v24 = vadd.f32 %v535_v54, %v485_v29 }
 0x33a   :  { %v1139_v9 = vpop.f32.mrf.mxu0 }
 0x359   :  { %v1302_v26 = vpop.f32.mrf.mxu0 }
 0x35b   :  { %v1329_v47 = vpop.f32.mrf.mxu1 }
 0x35d   :  { %v864_v20 = vpop.f32.mrf.mxu3 }
 0x365   :  { %v823_v48 = vpop.f32.mrf.mxu2  ;;  %v921_v16 = vpop.f32.mrf.mxu3 }
 0x366   :  { %v824_v57 = vadd.f32 %v16149_v55, %v823_v48 }
 0x368   :  { %v865_v13 = vadd.f32 %v864_v20, %v824_v57 }
 0x36d   :  { %v894_v35 = vpop.f32.mrf.mxu2  ;;  %v979_v59 = vpop.f32.mrf.mxu3 }
 0x36e   :  { %v895_v58 = vadd.f32 %v894_v35, %v865_v13 }
 0x370   :  { %v922_v42 = vadd.f32 %v921_v16, %v895_v58 }
 0x375   :  { %v954_v56 = vpop.f32.mrf.mxu2  ;;  %v1049_v61 = vpop.f32.mrf.mxu3 }
 0x37d   :  { %v1008_v50 = vpop.f32.mrf.mxu2  ;;  %v1106_v51 = vpop.f32.mrf.mxu3 }
 0x37e   :  { %v1050_v6 = vadd.f32 %v1049_v61, %v1008_v50  ;;  %v955_v50 = vadd.f32 %v954_v56, %v922_v42 }
 0x385   :  { %v1079_v0 = vpop.f32.mrf.mxu2  ;;  %v1272_v34 = vpop.f32.mrf.mxu3 }
 0x386   :  { %v1080_v11 = vadd.f32 %v1079_v0, %v1050_v6  ;;  %v980_v6 = vadd.f32 %v979_v59, %v955_v50 }
 0x388   :  { %v1107_v46 = vadd.f32 %v1106_v51, %v1080_v11 }
 0x38a   :  { %v1140_v5 = vadd.f32 %v1139_v9, %v1107_v46 }
 0x38d   :  { %v1231_v63 = vpop.f32.mrf.mxu2  ;;  %v1387_v22 = vpop.f32.mrf.mxu3 }
 0x38e   :  { %v1273_v27 = vadd.f32 %v1272_v34, %v1231_v63  ;;  %v1165_v34 = vadd.f32 %v1164_v53, %v1140_v5 }
 0x390   :  { %v1303_v2 = vadd.f32 %v1302_v26, %v1273_v27  ;;  %v1167_v26 = vadd.f32 %v1165_v34, %v980_v6 }
 0x392   :  { %v1330_v21 = vadd.f32 %v1329_v47, %v1303_v2  ;;  %v14967_v51 = vmul.f32 -1.442695, %v1167_v26 }
 0x395   :  { %v1362_v1 = vpop.f32.mrf.mxu2 }
 0x396   :  { %v1363_v32 = vadd.f32 %v1362_v1, %v1330_v21 }
 0x398   :  { %v1388_v48 = vadd.f32 %v1387_v22, %v1363_v32 }
 0x39a   :  { %v1390_v63 = vadd.f32 %v1388_v48, %v536_v24 }
 0x39c   :  { %15039 = vtanh.f32 %v1390_v63  ;;  %v14968_v2 = vmul.f32 -1.442695, %v1390_v63 }
 0x39d   :  { %15041 = vtanh.f32 %v1167_v26 }
 0x39e   :  { %15043 = vpow2.f32 %v14968_v2 }
 0x39f   :  { %15045 = vpow2.f32 %v14967_v51 }
 0x3a2   :  { %v15040_v44 = vpop.eup %15039 }
 0x3a3   :  { %1413 = vrot.lane.b32.xlu2 %v15040_v44, %s15557_s20  ;;  %v15042_v13 = vpop.eup %15041 }
 0x3a4   :  { %v15044_v1 = vpop.eup %15043 }
 0x3a5   :  { %v1394_v46 = vadd.f32 1.0, %v15044_v1  ;;  %v15046_v32 = vpop.eup %15045 }
 0x3a6   :  { %v1171_v24 = vadd.f32 1.0, %v15046_v32 }
 0x3a7   :  { %15047 = vrcp.f32 %v1394_v46  ;;  %v1406_v16 = vand.u32 2147483648, %v1394_v46  ;;  %vm1400_vm7 = vweird.f32 %v1394_v46  ;;  %v1404_v0 = vand.u32 2147483647, %v1394_v46 }
 0x3a8   :  { %15049 = vrcp.f32 %v1171_v24  ;;  %v1183_v57 = vand.u32 2147483648, %v1171_v24  ;;  %vm1177_vm11 = vweird.f32 %v1171_v24  ;;  %v1181_v41 = vand.u32 2147483647, %v1171_v24 }
 0x3a9   :  { %v1407_v49 = vor.u32 1.1754944e-38, %v1406_v16  ;;  %vm1405_vm9 = vcmp.eq.f32.partialorder %v1404_v0, 8.507059e+37 }
 0x3aa   :  { %v1184_v29 = vor.u32 1.1754944e-38, %v1183_v57  ;;  %vm1182_vm13 = vcmp.eq.f32.partialorder %v1181_v41, 8.507059e+37  ;;  %v18228_v57 = vld [vmem:[#allocation15_spill] sm:$0xff]  ;;  %v18229_v41 = vld [vmem:[#allocation56_spill] sm:$0xff] }
 0x3ab   :  { %1190 = vrot.lane.b32.xlu2 %v15042_v13, %s15557_s20 }
 0x3ad   :  { %v15048_v58 = vpop.eup %15047 }
 0x3ae   :  { %v1396_v20 = vmul.f32 %v15048_v58, %v1394_v46  ;;  %v15050_v21 = vpop.eup %15049  ;;  %vm1401_vm6 = vweird.f32 %v15048_v58 }
 0x3af   :  { %v1173_v27 = vmul.f32 %v15050_v21, %v1171_v24  ;;  %vm1402_vm8 = vmor %vm1400_vm7, %vm1401_vm6  ;;  %vm1178_vm10 = vweird.f32 %v15050_v21 }
 0x3b0   :  { %v1397_v22 = vsub.f32 1.0, %v1396_v20  ;;  %vm1179_vm12 = vmor %vm1177_vm11, %vm1178_vm10 }
 0x3b1   :  { %v1174_v9 = vsub.f32 1.0, %v1173_v27 }
 0x3b2   :  { %v1398_v11 = vmul.f32 %v15048_v58, %v1397_v22 }
 0x3b3   :  { %v1175_v53 = vmul.f32 %v15050_v21, %v1174_v9 }
 0x3b4   :  { %v1399_v35 = vadd.f32 %v15048_v58, %v1398_v11 }
 0x3b5   :  { %v1176_v12 = vadd.f32 %v15050_v21, %v1175_v53 }
 0x3b6   :  { %v1403_v59 = vsel %vm1402_vm8, %v15048_v58, %v1399_v35 }
 0x3b7   :  { %v1408_v56 = vsel %vm1405_vm9, %v1407_v49, %v1403_v59  ;;  %v1180_v47 = vsel %vm1179_vm12, %v15050_v21, %v1176_v12  ;;  %v18223_v49 = vld [vmem:[#allocation13_spill] sm:$0xff]  ;;  %v18227_v12 = vld [vmem:[#allocation42_spill] sm:$0xff] }
 0x3b8   :  { %v1185_v5 = vsel %vm1182_vm13, %v1184_v29, %v1180_v47  ;;  %v1411_v50 = vmul.f32 %v1408_v56, %v15885_v33  ;;  %v18230_v47 = vld [vmem:[#allocation16_spill] sm:$0xff] }
 0x3b9   :  { %v1188_v6 = vmul.f32 0.0, %v1185_v5  ;;  %v18231_v29 = vld [vmem:[#allocation44_spill] sm:$0xff] }
 0x3fd   :  { %v1414_v54 = vpop.permute.xlu2 %1413 }
 0x3fe   :  { %v1416_v61 = vmul.f32 %v1414_v54, %v1408_v56  ;;  %v18224_v54 = vld [vmem:[#allocation48_spill] sm:$0xff] }
 0x400   :  { %1418 = vrot.lane.b32.xlu0 %v1416_v61, %s15558_s16  ;;  %v18226_v61 = vld [vmem:[#allocation55_spill] sm:$0xff] }
 0x405   :  { %v1191_v42 = vpop.permute.xlu2 %1190 }
 0x406   :  { %v1193_v48 = vmul.f32 %v1191_v42, %v1185_v5  ;;  %v18232_v42 = vld [vmem:[#allocation43_spill] sm:$0xff] }
 0x408   :  { %1195 = vrot.lane.b32.xlu1 %v1193_v48, %s15558_s16  ;;  %v18234_v48 = vld [vmem:[#allocation49_spill] sm:$0xff] }
 0x472   :  { %v1419_v63 = vpop.permute.xlu0 %1418 }
 0x473   :  { %v16159_v34 = vadd.f32 %v1419_v63, %v1411_v50  ;;  %v18235_v50 = vld [vmem:[#allocation50_spill] sm:$0xff]  ;;  %v18236_v63 = vld [vmem:[#allocation51_spill] sm:$0xff] }
 0x475   :  { %15051 = vtanh.f32 %v16159_v34 }
 0x47a   :  { %v1196_v26 = vpop.permute.xlu1 %1195 }
 0x47b   :  { %v15052_v44 = vpop.eup %15051  ;;  %v16162_v13 = vadd.f32 %v1196_v26, %v1188_v6  ;;  %v18237_v6 = vld [vmem:[#allocation57_spill] sm:$0xff] }
 0x47c   :  { %1424 = vrot.lane.b32.xlu2 %v15052_v44, %s15557_s20  ;;  %v18238_v26 = vld [vmem:[#allocation53_spill] sm:$0xff]  ;;  %v18239_v44 = vld [vmem:[#allocation58_spill] sm:$0xff] }
 0x47d   :  { %15053 = vtanh.f32 %v16162_v13 }
 0x483   :  { %v15054_v2 = vpop.eup %15053 }
 0x484   :  { %1201 = vrot.lane.b32.xlu0 %v15054_v2, %s15557_s20  ;;  %v18240_v2 = vld [vmem:[#allocation46_spill] sm:$0xff] }
 0x4d6   :  { %v1425_v51 = vpop.permute.xlu2 %1424 }
 0x4d7   :  { %v1427_v1 = vmul.f32 %v1425_v51, %v1408_v56  ;;  %v18225_v56 = vld [vmem:[#allocation14_spill] sm:$0xff]  ;;  %v18241_v51 = vld [vmem:[#allocation59_spill] sm:$0xff] }
 0x4d9   :  { %1429 = vrot.lane.b32.xlu1 %v1427_v1, %s15558_s16  ;;  %v18242_v1 = vld [vmem:[#allocation47_spill] sm:$0xff] }
 0x4f6   :  { %v1202_v33 = vpop.permute.xlu0 %1201 }
 0x4f7   :  { %v1204_v46 = vmul.f32 %v1202_v33, %v1185_v5  ;;  %v18233_v5 = vld [vmem:[#allocation45_spill] sm:$0xff]  ;;  %v18243_v33 = vld [vmem:[#allocation60_spill] sm:$0xff] }
 0x4f9   :  { %1619 = vrot.lane.b32.xlu2 %v1204_v46, %s15558_s16  ;;  %v18244_v46 = vld [vmem:[#allocation52_spill] sm:$0xff] }
 0x54b   :  { %v1430_v32 = vpop.permute.xlu1 %1429 }
 0x54c   :  { %v1431_v24 = vsel %vm562_vm5, %v1430_v32, 0  ;;  %v18245_v32 = vld [vmem:[#allocation54_spill] sm:$0xff] }
 0x54d   :  { %v16170_v58 = vand.u32 4294901760, %v1431_v24 }
 0x54f   :  { %v16173_v20 = vsub.f32 %v1431_v24, %v16170_v58  ;;  %1499 = vmatmul.f32.vlgmr.msra.gmra.mxu1 %v16170_v58 }
 0x550   :  { %1736 = vmatpush.msra.mxu1 %v15889_v15 }
 0x551   :  { %1529 = vmatmul.f32.vlgmr.msrb.gmra.mxu2 %v16173_v20  ;;  %v1455_v22 = vand.u32 4294901760, %v16173_v20 }
 0x552   :  { %1738 = vmatpush.msra.mxu1 %v15891_v39  ;;  %1765 = vmatpush.msrb.mxu2 %v15925_v3 }
 0x553   :  { %1556 = vmatmul.f32.vlgmr.msrb.gmra.mxu3 %v1455_v22  ;;  %v1620_v21 = vpop.permute.xlu2 %1619  ;;  %v1456_v11 = vsub.f32 %v16173_v20, %v1455_v22 }
 0x554   :  { %v1621_v27 = vsel %vm562_vm5, %v1620_v21, 0  ;;  %1740 = vmatpush.msra.mxu1 %v15893_v14  ;;  %1796 = vmatpush.msrb.mxu3 %v15889_v15 }
 0x555   :  { %v1643_v35 = vand.u32 4294901760, %v1621_v27  ;;  %v1457_v9 = vand.u32 4294901760, %v1456_v11  ;;  %1769 = vmatpush.msrb.mxu2 %v15928_v30 }
 0x556   :  { %1742 = vmatpush.msra.mxu1 %v15903_v23  ;;  %1798 = vmatpush.msrb.mxu3 %v15891_v39 }
 0x557   :  { %v1644_v16 = vsub.f32 %v1621_v27, %v1643_v35  ;;  %1458 = vmatmul.f32.vlgmr.msra.gmra.mxu0 %v1457_v9  ;;  %1614 = vmatmul.f32.vlgmr.msrb.gmra.mxu1 %v16170_v58 }
 0x558   :  { %1707 = vmatpush.msra.mxu0 %v15908_v38  ;;  %1800 = vmatpush.msrb.mxu3 %v15893_v14 }
 0x559   :  { %v1645_v0 = vand.u32 4294901760, %v1644_v16  ;;  %1892 = vmatpush.msrb.mxu1 %v15706_v36  ;;  %1773 = vmatpush.msrb.mxu2 %v15943_v37 }
 0x55a   :  { %1710 = vmatpush.msra.mxu0 %v15911_v8  ;;  %1802 = vmatpush.msrb.mxu3 %v15903_v23 }
 0x55b   :  { %v1646_v59 = vsub.f32 %v1644_v16, %v1645_v0  ;;  %1689 = vmatmul.f32.vlgmr.msra.gmra.mxu3 %v1643_v35  ;;  %1898 = vmatpush.msrb.mxu1 %v15718_v43 }
 0x55c   :  { %1713 = vmatpush.msra.mxu0 %v15915_v4  ;;  %1959 = vmatpush.msra.mxu3 %v15670_v10 }
 0x55d   :  { %v1647_v53 = vand.u32 4294901760, %v1646_v59  ;;  %1904 = vmatpush.msrb.mxu1 %v15738_v52  ;;  %1777 = vmatpush.msrb.mxu2 %v15952_v28 }
 0x55e   :  { %1716 = vmatpush.msra.mxu0 %v15932_v31  ;;  %1961 = vmatpush.msra.mxu3 %v15684_v19 }
 0x55f   :  { %1589 = vmatmul.f32.vlgmr.msrb.gmra.mxu0 %v16170_v58  ;;  %1648 = vmatmul.f32.vlgmr.msra.gmra.mxu2 %v1647_v53 }
 0x560   :  { %1746 = vmatmul.f32.vlgmr.msra.gmra.mxu1 %v1645_v0  ;;  %1859 = vmatpush.msrb.mxu0 %v15670_v10 }
 0x561   :  { %1910 = vmatpush.msrb.mxu1 %v15770_v7  ;;  %1930 = vmatpush.msra.mxu2 %v15681_v17 }
 0x562   :  { %1963 = vmatpush.msra.mxu3 %v15714_v40  ;;  %1861 = vmatpush.msrb.mxu0 %v15684_v19 }
 0x563   :  { %2019 = vmatpush.msra.mxu1 %v15670_v10  ;;  %1804 = vmatmul.f32.vlgmr.msrb.gmra.mxu3 %v1643_v35 }
 0x564   :  { %1933 = vmatpush.msra.mxu2 %v15693_v25  ;;  %1965 = vmatpush.msra.mxu3 %v15749_v60 }
 0x565   :  { %2021 = vmatpush.msra.mxu1 %v15684_v19  ;;  %1863 = vmatpush.msrb.mxu0 %v15714_v40 }
 0x566   :  { %1936 = vmatpush.msra.mxu2 %v15723_v45  ;;  %2120 = vmatpush.msrb.mxu3 %v15955_v18 }
 0x567   :  { %1719 = vmatmul.f32.vlgmr.msra.gmra.mxu0 %v1644_v16  ;;  %1779 = vmatmul.f32.vlgmr.msrb.gmra.mxu2 %v1643_v35 }
 0x568   :  { %1912 = vmatmul.f32.vlgmr.msrb.gmra.mxu1 %v16170_v58  ;;  %1865 = vmatpush.msrb.mxu0 %v15749_v60 }
 0x569   :  { %2023 = vmatpush.msra.mxu1 %v15714_v40  ;;  %1939 = vmatpush.msra.mxu2 %v15756_v62 }
 0x56a   :  { %1988 = vmatpush.msra.mxu0 %v18223_v49  ;;  %2126 = vmatpush.msrb.mxu3 %v18224_v54 }
 0x56b   :  { %1969 = vmatmul.f32.vlgmr.msra.gmra.mxu3 %v1455_v22  ;;  %2025 = vmatpush.msra.mxu1 %v15749_v60 }
 0x56c   :  { %1992 = vmatpush.msra.mxu0 %v18225_v56  ;;  %2132 = vmatpush.msrb.mxu3 %v18226_v61 }
 0x56d   :  { %2187 = vmatpush.msrb.mxu1 %v18227_v12  ;;  %2087 = vmatpush.msrb.mxu2 %v18227_v12 }
 0x56e   :  { %1996 = vmatpush.msra.mxu0 %v18228_v57  ;;  %2138 = vmatpush.msrb.mxu3 %v18229_v41 }
 0x56f   :  { %1871 = vmatmul.f32.vlgmr.msrb.gmra.mxu0 %v1457_v9  ;;  %1942 = vmatmul.f32.vlgmr.msra.gmra.mxu2 %v16173_v20 }
 0x570   :  { %2027 = vmatmul.f32.vlgmr.msra.gmra.mxu1 %v16170_v58  ;;  %2000 = vmatpush.msra.mxu0 %v18230_v47 }
 0x571   :  { %2189 = vmatpush.msrb.mxu1 %v18232_v42  ;;  %2247 = vmatpush.msra.mxu3 %v18227_v12 }
 0x572   :  { %2158 = vmatpush.msrb.mxu0 %v18231_v29  ;;  %2089 = vmatpush.msrb.mxu2 %v18232_v42 }
 0x573   :  { %2191 = vmatpush.msrb.mxu1 %v18234_v48  ;;  %2249 = vmatpush.msra.mxu3 %v18232_v42 }
 0x574   :  { %2161 = vmatpush.msrb.mxu0 %v18233_v5  ;;  %2091 = vmatpush.msrb.mxu2 %v18234_v48 }
 0x575   :  { %2193 = vmatpush.msrb.mxu1 %v18236_v63  ;;  %2251 = vmatpush.msra.mxu3 %v18234_v48 }
 0x576   :  { %2164 = vmatpush.msrb.mxu0 %v18235_v50  ;;  %2093 = vmatpush.msrb.mxu2 %v18236_v63 }
 0x577   :  { %2310 = vmatpush.msra.mxu1 %v18237_v6  ;;  %2002 = vmatmul.f32.vlgmr.msra.gmra.mxu0 %v16170_v58 }
 0x578   :  { %2167 = vmatpush.msrb.mxu0 %v18238_v26  ;;  %2253 = vmatpush.msra.mxu3 %v18236_v63  ;;  %v18246_v26 = vld [vmem:[#allocation17_spill] sm:$0xff] }
 0x579   :  { %2316 = vmatpush.msra.mxu1 %v18239_v44  ;;  %2216 = vmatpush.msra.mxu2 %v18240_v2 }
 0x57a   :  { %2277 = vmatpush.msra.mxu0 %v15889_v15 }
 0x57b   :  { %2322 = vmatpush.msra.mxu1 %v18241_v51  ;;  %2220 = vmatpush.msra.mxu2 %v18242_v1  ;;  %v18247_v1 = vld [vmem:[#allocation39_spill] sm:$0xff] }
 0x57c   :  { %2279 = vmatpush.msra.mxu0 %v15891_v39 }
 0x57d   :  { %2328 = vmatpush.msra.mxu1 %v18243_v33  ;;  %2224 = vmatpush.msra.mxu2 %v18244_v46 }
 0x57e   :  { %2281 = vmatpush.msra.mxu0 %v15893_v14 }
 0x57f   :  { %2228 = vmatpush.msra.mxu2 %v18245_v32  ;;  %v227_v32 = vadd.f32 %v18247_v1, %v18246_v26 }
 0x580   :  { %2283 = vmatpush.msra.mxu0 %v15903_v23 }
 0x5cc   :  { %v1500_v24 = vpop.f32.mrf.mxu1 }
 0x5d4   :  { %v1459_v58 = vpop.f32.mrf.mxu0  ;;  %v1530_v21 = vpop.f32.mrf.mxu2 }
 0x5d5   :  { %v1460_v22 = vadd.f32 %v16149_v55, %v1459_v58  ;;  %v1615_v11 = vpop.f32.mrf.mxu1  ;;  %v18248_v58 = vld [vmem:[#allocation20_spill] sm:$0xff] }
 0x5d6   :  { %v1557_v20 = vpop.f32.mrf.mxu3  ;;  %v306_v55 = vadd.f32 %v18248_v58, %v227_v32 }
 0x5d7   :  { %v1501_v35 = vadd.f32 %v1500_v24, %v1460_v22 }
 0x5d9   :  { %v1531_v16 = vadd.f32 %v1530_v21, %v1501_v35  ;;  %v18249_v35 = vld [vmem:[#allocation18_spill] sm:$0xff] }
 0x5db   :  { %v1558_v46 = vadd.f32 %v1557_v20, %v1531_v16  ;;  %v18250_v16 = vld [vmem:[#allocation19_spill] sm:$0xff] }
 0x5dc   :  { %v1590_v27 = vpop.f32.mrf.mxu0 }
 0x5dd   :  { %v1747_v53 = vpop.f32.mrf.mxu1  ;;  %v1591_v44 = vadd.f32 %v1590_v27, %v1558_v46 }
 0x5de   :  { %v1690_v9 = vpop.f32.mrf.mxu3 }
 0x5df   :  { %v1616_v24 = vadd.f32 %v1615_v11, %v1591_v44 }
 0x5e2   :  { %v1649_v0 = vpop.f32.mrf.mxu2 }
 0x5e3   :  { %v1691_v59 = vadd.f32 %v1690_v9, %v1649_v0  ;;  %v362_v9 = vadd.f32 %v18249_v35, %v306_v55 }
 0x5e4   :  { %v1720_v33 = vpop.f32.mrf.mxu0 }
 0x5e5   :  { %v1721_v51 = vadd.f32 %v1720_v33, %v1691_v59  ;;  %v1913_v21 = vpop.f32.mrf.mxu1  ;;  %v424_v59 = vadd.f32 %v18250_v16, %v362_v9 }
 0x5e6   :  { %v1805_v2 = vpop.f32.mrf.mxu3 }
 0x5e7   :  { %v1748_v50 = vadd.f32 %v1747_v53, %v1721_v51  ;;  %v18251_v51 = vld [vmem:[#allocation61_spill] sm:$0xff] }
 0x5e8   :  { %v489_v46 = vadd.f32 %v18251_v51, %v424_v59 }
 0x5ea   :  { %v1780_v6 = vpop.f32.mrf.mxu2 }
 0x5eb   :  { %v1781_v5 = vadd.f32 %v1780_v6, %v1748_v50 }
 0x5ec   :  { %v1872_v63 = vpop.f32.mrf.mxu0 }
 0x5ed   :  { %v1806_v22 = vadd.f32 %v1805_v2, %v1781_v5  ;;  %v1914_v20 = vadd.f32 %v1913_v21, %v1872_v63  ;;  %v2028_v6 = vpop.f32.mrf.mxu1  ;;  %v18252_v5 = vld [vmem:[#allocation62_spill] sm:$0xff] }
 0x5ee   :  { %v1970_v1 = vpop.f32.mrf.mxu3  ;;  %v540_v44 = vadd.f32 %v18252_v5, %v489_v46 }
 0x5ef   :  { %v1808_v0 = vadd.f32 %v1806_v22, %v1616_v24 }
 0x5f1   :  { %15055 = vtanh.f32 %v1808_v0  ;;  %v14969_v11 = vmul.f32 -1.442695, %v1808_v0 }
 0x5f2   :  { %v1943_v33 = vpop.f32.mrf.mxu2 }
 0x5f3   :  { %v1944_v26 = vadd.f32 %v1943_v33, %v1914_v20 }
 0x5f4   :  { %v2003_v53 = vpop.f32.mrf.mxu0 }
 0x5f5   :  { %v1971_v27 = vadd.f32 %v1970_v1, %v1944_v26 }
 0x5f7   :  { %v15056_v32 = vpop.eup %15055  ;;  %v2004_v50 = vadd.f32 %v2003_v53, %v1971_v27 }
 0x5f8   :  { %1831 = vrot.lane.b32.xlu1 %v15056_v32, %s15557_s20 }
 0x5f9   :  { %v2029_v55 = vadd.f32 %v2028_v6, %v2004_v50 }
 0x5fb   :  { %v2031_v2 = vadd.f32 %v2029_v55, %v540_v44 }
 0x5fd   :  { %15057 = vtanh.f32 %v2031_v2  ;;  %v14970_v24 = vmul.f32 -1.442695, %v2031_v2 }
 0x5fe   :  { %15059 = vpow2.f32 %v14969_v11 }
 0x5ff   :  { %15061 = vpow2.f32 %v14970_v24 }
 0x603   :  { %v15058_v63 = vpop.eup %15057 }
 0x604   :  { %2054 = vrot.lane.b32.xlu0 %v15058_v63, %s15557_s20  ;;  %v15060_v58 = vpop.eup %15059 }
 0x605   :  { %v1812_v22 = vadd.f32 1.0, %v15060_v58  ;;  %v15062_v21 = vpop.eup %15061 }
 0x606   :  { %v2035_v9 = vadd.f32 1.0, %v15062_v21 }
 0x607   :  { %15063 = vrcp.f32 %v1812_v22  ;;  %v1824_v51 = vand.u32 2147483648, %v1812_v22  ;;  %vm1818_vm15 = vweird.f32 %v1812_v22  ;;  %v1822_v0 = vand.u32 2147483647, %v1812_v22 }
 0x608   :  { %15065 = vrcp.f32 %v2035_v9  ;;  %v2047_v55 = vand.u32 2147483648, %v2035_v9  ;;  %vm2041_vm4 = vweird.f32 %v2035_v9  ;;  %v2045_v2 = vand.u32 2147483647, %v2035_v9 }
 0x609   :  { %v1825_v53 = vor.u32 1.1754944e-38, %v1824_v51  ;;  %vm1823_vm2 = vcmp.eq.f32.partialorder %v1822_v0, 8.507059e+37 }
 0x60a   :  { %v2048_v11 = vor.u32 1.1754944e-38, %v2047_v55  ;;  %vm2046_vm7 = vcmp.eq.f32.partialorder %v2045_v2, 8.507059e+37 }
 0x60d   :  { %v15064_v35 = vpop.eup %15063 }
 0x60e   :  { %v1814_v20 = vmul.f32 %v15064_v35, %v1812_v22  ;;  %v15066_v59 = vpop.eup %15065  ;;  %vm1819_vm14 = vweird.f32 %v15064_v35 }
 0x60f   :  { %v2037_v1 = vmul.f32 %v15066_v59, %v2035_v9  ;;  %vm1820_vm1 = vmor %vm1818_vm15, %vm1819_vm14  ;;  %vm2042_vm3 = vweird.f32 %v15066_v59 }
 0x610   :  { %v1815_v33 = vsub.f32 1.0, %v1814_v20  ;;  %vm2043_vm6 = vmor %vm2041_vm4, %vm2042_vm3 }
 0x611   :  { %v2038_v27 = vsub.f32 1.0, %v2037_v1 }
 0x612   :  { %v1816_v16 = vmul.f32 %v15064_v35, %v1815_v33 }
 0x613   :  { %v2039_v5 = vmul.f32 %v15066_v59, %v2038_v27 }
 0x614   :  { %v1817_v26 = vadd.f32 %v15064_v35, %v1816_v16 }
 0x615   :  { %v2040_v44 = vadd.f32 %v15066_v59, %v2039_v5 }
 0x616   :  { %v1821_v46 = vsel %vm1820_vm1, %v15064_v35, %v1817_v26 }
 0x617   :  { %v1826_v50 = vsel %vm1823_vm2, %v1825_v53, %v1821_v46  ;;  %v2044_v63 = vsel %vm2043_vm6, %v15066_v59, %v2040_v44 }
 0x618   :  { %v2049_v24 = vsel %vm2046_vm7, %v2048_v11, %v2044_v63  ;;  %v1829_v9 = vmul.f32 %v1826_v50, %v16162_v13 }
 0x619   :  { %v2052_v21 = vmul.f32 %v2049_v24, %v16159_v34 }
 0x66a   :  { %v1832_v32 = vpop.permute.xlu1 %1831 }
 0x66b   :  { %v1834_v6 = vmul.f32 %v1832_v32, %v1826_v50 }
 0x66d   :  { %1836 = vrot.lane.b32.xlu0 %v1834_v6, %s15558_s16 }
 0x676   :  { %v2055_v58 = vpop.permute.xlu0 %2054 }
 0x677   :  { %v2057_v22 = vmul.f32 %v2055_v58, %v2049_v24 }
 0x679   :  { %2059 = vrot.lane.b32.xlu2 %v2057_v22, %s15558_s16  ;;  %v18254_v22 = vld [vmem:[#allocation45_spill] sm:$0xff] }
 0x6d3   :  { %v2060_v35 = vpop.permute.xlu2 %2059 }
 0x6d4   :  { %v16271_v20 = vadd.f32 %v2060_v35, %v2052_v21  ;;  %v18255_v21 = vld [vmem:[#allocation57_spill] sm:$0xff]  ;;  %v18256_v35 = vld [vmem:[#allocation46_spill] sm:$0xff] }
 0x6d6   :  { %15067 = vtanh.f32 %v16271_v20 }
 0x6dc   :  { %v15068_v33 = vpop.eup %15067 }
 0x6dd   :  { %2065 = vrot.lane.b32.xlu1 %v15068_v33, %s15557_s20  ;;  %v18257_v33 = vld [vmem:[#allocation50_spill] sm:$0xff] }
 0x6df   :  { %v1837_v16 = vpop.permute.xlu0 %1836 }
 0x6e0   :  { %v16276_v59 = vadd.f32 %v1837_v16, %v1829_v9  ;;  %v18258_v9 = vld [vmem:[#allocation58_spill] sm:$0xff]  ;;  %v18259_v16 = vld [vmem:[#allocation47_spill] sm:$0xff] }
 0x6e2   :  { %15069 = vtanh.f32 %v16276_v59 }
 0x6e8   :  { %v15070_v26 = vpop.eup %15069 }
 0x6e9   :  { %1842 = vrot.lane.b32.xlu2 %v15070_v26, %s15557_s20  ;;  %v18260_v26 = vld [vmem:[#allocation53_spill] sm:$0xff] }
 0x743   :  { %v1843_v1 = vpop.permute.xlu2 %1842 }
 0x744   :  { %v1845_v34 = vmul.f32 %v1843_v1, %v1826_v50  ;;  %v18261_v1 = vld [vmem:[#allocation59_spill] sm:$0xff] }
 0x746   :  { %2260 = vrot.lane.b32.xlu1 %v1845_v34, %s15558_s16  ;;  %v18262_v34 = vld [vmem:[#allocation52_spill] sm:$0xff] }
 0x74f   :  { %v2066_v51 = vpop.permute.xlu1 %2065 }
 0x750   :  { %v2068_v0 = vmul.f32 %v2066_v51, %v2049_v24  ;;  %v18253_v24 = vld [vmem:[#allocation51_spill] sm:$0xff]  ;;  %v18263_v51 = vld [vmem:[#allocation60_spill] sm:$0xff] }
 0x752   :  { %2070 = vrot.lane.b32.xlu0 %v2068_v0, %s15558_s16  ;;  %v18264_v0 = vld [vmem:[#allocation54_spill] sm:$0xff] }
 0x7b8   :  { %v2261_v46 = vpop.permute.xlu1 %2260 }
 0x7b9   :  { %v2262_v27 = vsel %vm562_vm5, %v2261_v46, 0 }
 0x7ba   :  { %v2284_v13 = vand.u32 4294901760, %v2262_v27 }
 0x7bc   :  { %v2285_v53 = vsub.f32 %v2262_v27, %v2284_v13 }
 0x7be   :  { %v2286_v44 = vand.u32 4294901760, %v2285_v53 }
 0x7c0   :  { %v2287_v2 = vsub.f32 %v2285_v53, %v2286_v44 }
 0x7c2   :  { %v2288_v58 = vand.u32 4294901760, %v2287_v2 }
 0x7c4   :  { %v2071_v32 = vpop.permute.xlu0 %2070 }
 0x7c5   :  { %v2072_v6 = vsel %vm562_vm5, %v2071_v32, 0  ;;  %v18265_v32 = vld [vmem:[#allocation73_spill] sm:$0xff] }
 0x7c6   :  { %v16284_v5 = vand.u32 4294901760, %v2072_v6 }
 0x7c8   :  { %v2095_v55 = vsub.f32 %v2072_v6, %v16284_v5  ;;  %2140 = vmatmul.f32.vlgmr.msrb.gmra.mxu3 %v16284_v5 }
 0x7c9   :  { %2377 = vmatpush.msrb.mxu3 %v15889_v15 }
 0x7ca   :  { %2170 = vmatmul.f32.vlgmr.msrb.gmra.mxu0 %v2095_v55  ;;  %v2096_v50 = vand.u32 4294901760, %v2095_v55 }
 0x7cb   :  { %2379 = vmatpush.msrb.mxu3 %v15891_v39  ;;  %2406 = vmatpush.msrb.mxu0 %v15925_v3 }
 0x7cc   :  { %2197 = vmatmul.f32.vlgmr.msrb.gmra.mxu1 %v2096_v50  ;;  %v2097_v63 = vsub.f32 %v2095_v55, %v2096_v50 }
 0x7cd   :  { %2381 = vmatpush.msrb.mxu3 %v15893_v14  ;;  %2410 = vmatpush.msrb.mxu0 %v15928_v30 }
 0x7ce   :  { %v2098_v11 = vand.u32 4294901760, %v2097_v63  ;;  %2437 = vmatpush.msrb.mxu1 %v15889_v15 }
 0x7cf   :  { %2383 = vmatpush.msrb.mxu3 %v15903_v23  ;;  %2414 = vmatpush.msrb.mxu0 %v15943_v37 }
 0x7d0   :  { %2099 = vmatmul.f32.vlgmr.msrb.gmra.mxu2 %v2098_v11  ;;  %2255 = vmatmul.f32.vlgmr.msra.gmra.mxu3 %v16284_v5 }
 0x7d1   :  { %2439 = vmatpush.msrb.mxu1 %v15891_v39  ;;  %2348 = vmatpush.msrb.mxu2 %v15908_v38 }
 0x7d2   :  { %2289 = vmatmul.f32.vlgmr.msra.gmra.mxu0 %v2288_v58  ;;  %2533 = vmatpush.msra.mxu3 %v15706_v36 }
 0x7d3   :  { %2418 = vmatpush.msrb.mxu0 %v15952_v28  ;;  %2441 = vmatpush.msrb.mxu1 %v15893_v14 }
 0x7d4   :  { %2330 = vmatmul.f32.vlgmr.msra.gmra.mxu1 %v2284_v13  ;;  %2351 = vmatpush.msrb.mxu2 %v15911_v8 }
 0x7d5   :  { %2443 = vmatpush.msrb.mxu1 %v15903_v23  ;;  %2539 = vmatpush.msra.mxu3 %v15718_v43 }
 0x7d6   :  { %2571 = vmatpush.msra.mxu0 %v15681_v17  ;;  %2354 = vmatpush.msrb.mxu2 %v15915_v4 }
 0x7d7   :  { %2545 = vmatpush.msra.mxu3 %v15738_v52  ;;  %2600 = vmatpush.msra.mxu1 %v15670_v10 }
 0x7d8   :  { %2230 = vmatmul.f32.vlgmr.msra.gmra.mxu2 %v16284_v5  ;;  %2387 = vmatmul.f32.vlgmr.msrb.gmra.mxu3 %v2286_v44 }
 0x7d9   :  { %2574 = vmatpush.msra.mxu0 %v15693_v25  ;;  %2357 = vmatpush.msrb.mxu2 %v15932_v31 }
 0x7da   :  { %2420 = vmatmul.f32.vlgmr.msrb.gmra.mxu0 %v2284_v13  ;;  %2551 = vmatpush.msra.mxu3 %v15770_v7 }
 0x7db   :  { %2577 = vmatpush.msra.mxu0 %v15723_v45  ;;  %2602 = vmatpush.msra.mxu1 %v15684_v19 }
 0x7dc   :  { %2445 = vmatmul.f32.vlgmr.msrb.gmra.mxu1 %v2284_v13  ;;  %2500 = vmatpush.msra.mxu2 %v15670_v10 }
 0x7dd   :  { %2580 = vmatpush.msra.mxu0 %v15756_v62  ;;  %2604 = vmatpush.msra.mxu1 %v15714_v40 }
 0x7de   :  { %2660 = vmatpush.msrb.mxu3 %v15670_v10  ;;  %2502 = vmatpush.msra.mxu2 %v15684_v19 }
 0x7df   :  { %2606 = vmatpush.msra.mxu1 %v15749_v60  ;;  %2728 = vmatpush.msrb.mxu0 %v18227_v12 }
 0x7e0   :  { %2360 = vmatmul.f32.vlgmr.msrb.gmra.mxu2 %v2285_v53  ;;  %2553 = vmatmul.f32.vlgmr.msra.gmra.mxu3 %v16284_v5 }
 0x7e1   :  { %2662 = vmatpush.msrb.mxu3 %v15684_v19  ;;  %2504 = vmatpush.msra.mxu2 %v15714_v40 }
 0x7e2   :  { %2583 = vmatmul.f32.vlgmr.msra.gmra.mxu0 %v2095_v55  ;;  %2761 = vmatpush.msrb.mxu1 %v15955_v18 }
 0x7e3   :  { %2664 = vmatpush.msrb.mxu3 %v15714_v40  ;;  %2506 = vmatpush.msra.mxu2 %v15749_v60 }
 0x7e4   :  { %2610 = vmatmul.f32.vlgmr.msra.gmra.mxu1 %v2096_v50  ;;  %2730 = vmatpush.msrb.mxu0 %v18232_v42 }
 0x7e5   :  { %2629 = vmatpush.msrb.mxu2 %v18223_v49  ;;  %2666 = vmatpush.msrb.mxu3 %v15749_v60 }
 0x7e6   :  { %2767 = vmatpush.msrb.mxu1 %v18224_v54  ;;  %2732 = vmatpush.msrb.mxu0 %v18234_v48 }
 0x7e7   :  { %2633 = vmatpush.msrb.mxu2 %v18225_v56  ;;  %2828 = vmatpush.msra.mxu3 %v18227_v12 }
 0x7e8   :  { %2773 = vmatpush.msrb.mxu1 %v18226_v61  ;;  %2512 = vmatmul.f32.vlgmr.msra.gmra.mxu2 %v2098_v11 }
 0x7e9   :  { %2668 = vmatmul.f32.vlgmr.msrb.gmra.mxu3 %v16284_v5  ;;  %2637 = vmatpush.msrb.mxu2 %v18228_v57 }
 0x7ea   :  { %2779 = vmatpush.msrb.mxu1 %v18229_v41  ;;  %2830 = vmatpush.msra.mxu3 %v18232_v42 }
 0x7eb   :  { %2641 = vmatpush.msrb.mxu2 %v18230_v47  ;;  %2734 = vmatpush.msrb.mxu0 %v18253_v24 }
 0x7ec   :  { %2888 = vmatpush.msra.mxu1 %v18227_v12  ;;  %2832 = vmatpush.msra.mxu3 %v18234_v48 }
 0x7ed   :  { %2799 = vmatpush.msra.mxu2 %v18231_v29  ;;  %2857 = vmatpush.msra.mxu0 %v18256_v35 }
 0x7ee   :  { %2890 = vmatpush.msra.mxu1 %v18232_v42  ;;  %2834 = vmatpush.msra.mxu3 %v18253_v24  ;;  %v18269_v42 = vld [vmem:[#allocation22_spill] sm:$0xff] }
 0x7ef   :  { %2802 = vmatpush.msra.mxu2 %v18254_v22  ;;  %2861 = vmatpush.msra.mxu0 %v18259_v16  ;;  %v16369_v16 = vld [vmem:[%s18086_s3] ss:$0 sm:$0xff] }
 0x7f0   :  { %2892 = vmatpush.msra.mxu1 %v18234_v48  ;;  %2951 = vmatpush.msrb.mxu3 %v18255_v21 }
 0x7f1   :  { %2643 = vmatmul.f32.vlgmr.msrb.gmra.mxu2 %v16284_v5  ;;  %2865 = vmatpush.msra.mxu0 %v18262_v34 }
 0x7f2   :  { %2805 = vmatpush.msra.mxu2 %v18257_v33  ;;  %2894 = vmatpush.msra.mxu1 %v18253_v24 }
 0x7f3   :  { %2957 = vmatpush.msrb.mxu3 %v18258_v9  ;;  %2869 = vmatpush.msra.mxu0 %v18264_v0 }
 0x7f4   :  { %2808 = vmatpush.msra.mxu2 %v18260_v26 }
 0x7f5   :  { %2963 = vmatpush.msrb.mxu3 %v18261_v1  ;;  %v18266_v1 = vld [vmem:[#allocation23_spill] sm:$0xff] }
 0x7f6   :  { %2918 = vmatpush.msrb.mxu2 %v15889_v15  ;;  %v235_v35 = vadd.f32 %v16369_v16, %v18266_v1 }
 0x7f7   :  { %2969 = vmatpush.msrb.mxu3 %v18263_v51 }
 0x7f8   :  { %2920 = vmatpush.msrb.mxu2 %v15891_v39 }
 0x7fa   :  { %2922 = vmatpush.msrb.mxu2 %v15893_v14 }
 0x7fc   :  { %2924 = vmatpush.msrb.mxu2 %v15903_v23 }
 0x847   :  { %v2171_v27 = vpop.f32.mrf.mxu0 }
 0x849   :  { %v2198_v13 = vpop.f32.mrf.mxu1 }
 0x84b   :  { %v2141_v46 = vpop.f32.mrf.mxu3 }
 0x84f   :  { %v2290_v44 = vpop.f32.mrf.mxu0 }
 0x851   :  { %v2331_v2 = vpop.f32.mrf.mxu1 }
 0x852   :  { %v2332_v58 = vadd.f32 %v2331_v2, %v2290_v44 }
 0x853   :  { %v2100_v53 = vpop.f32.mrf.mxu2  ;;  %v2256_v5 = vpop.f32.mrf.mxu3 }
 0x854   :  { %v2101_v6 = vadd.f32 %v18265_v32, %v2100_v53 }
 0x856   :  { %v2142_v55 = vadd.f32 %v2141_v46, %v2101_v6  ;;  %v18267_v6 = vld [vmem:[#allocation24_spill] sm:$0xff] }
 0x857   :  { %v2421_v34 = vpop.f32.mrf.mxu0  ;;  %v310_v26 = vadd.f32 %v18267_v6, %v235_v35 }
 0x858   :  { %v2172_v63 = vadd.f32 %v2171_v27, %v2142_v55 }
 0x859   :  { %v2446_v46 = vpop.f32.mrf.mxu1 }
 0x85a   :  { %v2199_v0 = vadd.f32 %v2198_v13, %v2172_v63  ;;  %v18268_v63 = vld [vmem:[#allocation21_spill] sm:$0xff] }
 0x85b   :  { %v2231_v50 = vpop.f32.mrf.mxu2  ;;  %v2388_v11 = vpop.f32.mrf.mxu3  ;;  %v367_v21 = vadd.f32 %v18268_v63, %v310_v26 }
 0x85c   :  { %v2232_v32 = vadd.f32 %v2231_v50, %v2199_v0  ;;  %v18270_v0 = vld [vmem:[#allocation63_spill] sm:$0xff] }
 0x85d   :  { %v430_v1 = vadd.f32 %v18269_v42, %v367_v21 }
 0x85e   :  { %v2257_v55 = vadd.f32 %v2256_v5, %v2232_v32  ;;  %v18271_v5 = vld [vmem:[#allocation64_spill] sm:$0xff] }
 0x85f   :  { %v2584_v48 = vpop.f32.mrf.mxu0  ;;  %v493_v50 = vadd.f32 %v18270_v0, %v430_v1 }
 0x863   :  { %v2361_v51 = vpop.f32.mrf.mxu2  ;;  %v2554_v13 = vpop.f32.mrf.mxu3 }
 0x864   :  { %v2362_v53 = vadd.f32 %v2361_v51, %v2332_v58  ;;  %v2611_v51 = vpop.f32.mrf.mxu1 }
 0x866   :  { %v2389_v9 = vadd.f32 %v2388_v11, %v2362_v53  ;;  %v544_v53 = vadd.f32 %v18271_v5, %v493_v50 }
 0x868   :  { %v2422_v27 = vadd.f32 %v2421_v34, %v2389_v9 }
 0x86a   :  { %v2447_v44 = vadd.f32 %v2446_v46, %v2422_v27 }
 0x86b   :  { %v2513_v2 = vpop.f32.mrf.mxu2 }
 0x86c   :  { %v2449_v24 = vadd.f32 %v2447_v44, %v2257_v55  ;;  %v2555_v33 = vadd.f32 %v2554_v13, %v2513_v2  ;;  %v2669_v34 = vpop.f32.mrf.mxu3 }
 0x86e   :  { %15071 = vtanh.f32 %v2449_v24  ;;  %v2585_v22 = vadd.f32 %v2584_v48, %v2555_v33  ;;  %v14971_v21 = vmul.f32 -1.442695, %v2449_v24 }
 0x870   :  { %v2612_v11 = vadd.f32 %v2611_v51, %v2585_v22 }
 0x874   :  { %v2644_v58 = vpop.f32.mrf.mxu2  ;;  %v15072_v35 = vpop.eup %15071 }
 0x875   :  { %v2645_v9 = vadd.f32 %v2644_v58, %v2612_v11  ;;  %2472 = vrot.lane.b32.xlu0 %v15072_v35, %s15557_s20 }
 0x877   :  { %v2670_v26 = vadd.f32 %v2669_v34, %v2645_v9 }
 0x879   :  { %v2672_v32 = vadd.f32 %v2670_v26, %v544_v53 }
 0x87b   :  { %15073 = vtanh.f32 %v2672_v32  ;;  %v14972_v48 = vmul.f32 -1.442695, %v2672_v32 }
 0x87d   :  { %15075 = vpow2.f32 %v14972_v48 }
 0x87e   :  { %15077 = vpow2.f32 %v14971_v21 }
 0x881   :  { %v15074_v46 = vpop.eup %15073 }
 0x882   :  { %2695 = vrot.lane.b32.xlu2 %v15074_v46, %s15557_s20 }
 0x883   :  { %v15076_v42 = vpop.eup %15075 }
 0x884   :  { %v2676_v33 = vadd.f32 1.0, %v15076_v42  ;;  %v15078_v22 = vpop.eup %15077 }
 0x885   :  { %v2453_v27 = vadd.f32 1.0, %v15078_v22 }
 0x886   :  { %15079 = vrcp.f32 %v2676_v33  ;;  %v2688_v51 = vand.u32 2147483648, %v2676_v33  ;;  %vm2682_vm9 = vweird.f32 %v2676_v33  ;;  %v2686_v0 = vand.u32 2147483647, %v2676_v33 }
 0x887   :  { %15081 = vrcp.f32 %v2453_v27  ;;  %v2465_v53 = vand.u32 2147483648, %v2453_v27  ;;  %vm2459_vm13 = vweird.f32 %v2453_v27  ;;  %v2463_v26 = vand.u32 2147483647, %v2453_v27 }
 0x888   :  { %v2689_v11 = vor.u32 1.1754944e-38, %v2688_v51  ;;  %vm2687_vm11 = vcmp.eq.f32.partialorder %v2686_v0, 8.507059e+37 }
 0x889   :  { %v2466_v46 = vor.u32 1.1754944e-38, %v2465_v53  ;;  %vm2464_vm15 = vcmp.eq.f32.partialorder %v2463_v26, 8.507059e+37 }
 0x88c   :  { %v15080_v6 = vpop.eup %15079 }
 0x88d   :  { %v2678_v55 = vmul.f32 %v15080_v6, %v2676_v33  ;;  %v15082_v2 = vpop.eup %15081  ;;  %vm2683_vm8 = vweird.f32 %v15080_v6 }
 0x88e   :  { %v2455_v1 = vmul.f32 %v15082_v2, %v2453_v27  ;;  %vm2684_vm10 = vmor %vm2682_vm9, %vm2683_vm8  ;;  %vm2460_vm12 = vweird.f32 %v15082_v2 }
 0x88f   :  { %v2679_v44 = vsub.f32 1.0, %v2678_v55  ;;  %vm2461_vm14 = vmor %vm2459_vm13, %vm2460_vm12 }
 0x890   :  { %v2456_v24 = vsub.f32 1.0, %v2455_v1 }
 0x891   :  { %v2680_v13 = vmul.f32 %v15080_v6, %v2679_v44 }
 0x892   :  { %v2457_v34 = vmul.f32 %v15082_v2, %v2456_v24 }
 0x893   :  { %v2681_v63 = vadd.f32 %v15080_v6, %v2680_v13 }
 0x894   :  { %v2458_v5 = vadd.f32 %v15082_v2, %v2457_v34 }
 0x895   :  { %v2685_v50 = vsel %vm2684_vm10, %v15080_v6, %v2681_v63 }
 0x896   :  { %v2690_v35 = vsel %vm2687_vm11, %v2689_v11, %v2685_v50  ;;  %v2462_v32 = vsel %vm2461_vm14, %v15082_v2, %v2458_v5 }
 0x897   :  { %v2467_v42 = vsel %vm2464_vm15, %v2466_v46, %v2462_v32  ;;  %v2693_v27 = vmul.f32 %v2690_v35, %v16271_v20 }
 0x898   :  { %v2470_v33 = vmul.f32 %v2467_v42, %v16276_v59 }
 0x8dc   :  { %v2696_v58 = vpop.permute.xlu2 %2695 }
 0x8dd   :  { %v2698_v9 = vmul.f32 %v2696_v58, %v2690_v35 }
 0x8df   :  { %2700 = vrot.lane.b32.xlu1 %v2698_v9, %s15558_s16 }
 0x8e7   :  { %v2473_v48 = vpop.permute.xlu0 %2472 }
 0x8e8   :  { %v2475_v21 = vmul.f32 %v2473_v48, %v2467_v42  ;;  %v18272_v48 = vld [vmem:[#allocation43_spill] sm:$0xff] }
 0x8ea   :  { %2477 = vrot.lane.b32.xlu2 %v2475_v21, %s15558_s16  ;;  %v18274_v21 = vld [vmem:[#allocation49_spill] sm:$0xff] }
 0x944   :  { %v2478_v22 = vpop.permute.xlu2 %2477 }
 0x945   :  { %v16383_v6 = vadd.f32 %v2478_v22, %v2470_v33  ;;  %v18275_v33 = vld [vmem:[#allocation50_spill] sm:$0xff]  ;;  %v18276_v22 = vld [vmem:[#allocation51_spill] sm:$0xff] }
 0x947   :  { %15083 = vtanh.f32 %v16383_v6 }
 0x94d   :  { %v15084_v55 = vpop.eup %15083 }
 0x94e   :  { %2483 = vrot.lane.b32.xlu1 %v15084_v55, %s15557_s20  ;;  %v18277_v55 = vld [vmem:[#allocation57_spill] sm:$0xff] }
 0x951   :  { %v2701_v44 = vpop.permute.xlu1 %2700 }
 0x952   :  { %v16388_v13 = vadd.f32 %v2701_v44, %v2693_v27  ;;  %v18278_v27 = vld [vmem:[#allocation53_spill] sm:$0xff]  ;;  %v18279_v44 = vld [vmem:[#allocation58_spill] sm:$0xff] }
 0x954   :  { %15085 = vtanh.f32 %v16388_v13 }
 0x95a   :  { %v15086_v2 = vpop.eup %15085 }
 0x95b   :  { %2706 = vrot.lane.b32.xlu0 %v15086_v2, %s15557_s20  ;;  %v18280_v2 = vld [vmem:[#allocation46_spill] sm:$0xff] }
 0x9c0   :  { %v2484_v63 = vpop.permute.xlu1 %2483 }
 0x9c1   :  { %v2486_v59 = vmul.f32 %v2484_v63, %v2467_v42  ;;  %v18273_v42 = vld [vmem:[#allocation45_spill] sm:$0xff]  ;;  %v18281_v63 = vld [vmem:[#allocation59_spill] sm:$0xff] }
 0x9c3   :  { %2901 = vrot.lane.b32.xlu0 %v2486_v59, %s15558_s16  ;;  %v18282_v59 = vld [vmem:[#allocation47_spill] sm:$0xff] }
 0x9cd   :  { %v2707_v1 = vpop.permute.xlu0 %2706 }
 0x9ce   :  { %v2709_v51 = vmul.f32 %v2707_v1, %v2690_v35  ;;  %v18283_v1 = vld [vmem:[#allocation60_spill] sm:$0xff] }
 0x9d0   :  { %2711 = vrot.lane.b32.xlu2 %v2709_v51, %s15558_s16  ;;  %v18284_v51 = vld [vmem:[#allocation52_spill] sm:$0xff] }
 0xa2a   :  { %v2712_v0 = vpop.permute.xlu2 %2711 }
 0xa2b   :  { %v2713_v50 = vsel %vm562_vm5, %v2712_v0, 0  ;;  %v18285_v0 = vld [vmem:[#allocation54_spill] sm:$0xff] }
 0xa2c   :  { %v16395_v20 = vand.u32 4294901760, %v2713_v50 }
 0xa2e   :  { %v16398_v24 = vsub.f32 %v2713_v50, %v16395_v20  ;;  %2781 = vmatmul.f32.vlgmr.msrb.gmra.mxu1 %v16395_v20 }
 0xa2f   :  { %3018 = vmatpush.msrb.mxu1 %v15889_v15 }
 0xa30   :  { %v2737_v11 = vand.u32 4294901760, %v16398_v24  ;;  %2811 = vmatmul.f32.vlgmr.msra.gmra.mxu2 %v16398_v24 }
 0xa31   :  { %3020 = vmatpush.msrb.mxu1 %v15891_v39  ;;  %3047 = vmatpush.msra.mxu2 %v15925_v3 }
 0xa32   :  { %v2738_v58 = vsub.f32 %v16398_v24, %v2737_v11  ;;  %2838 = vmatmul.f32.vlgmr.msra.gmra.mxu3 %v2737_v11 }
 0xa33   :  { %3022 = vmatpush.msrb.mxu1 %v15893_v14  ;;  %3078 = vmatpush.msra.mxu3 %v15889_v15 }
 0xa34   :  { %v2739_v35 = vand.u32 4294901760, %v2738_v58  ;;  %3051 = vmatpush.msra.mxu2 %v15928_v30  ;;  %v16486_v58 = vld [vmem:[%s18089_s6] ss:$0 sm:$0xff] }
 0xa35   :  { %3024 = vmatpush.msrb.mxu1 %v15903_v23  ;;  %3080 = vmatpush.msra.mxu3 %v15891_v39  ;;  %v2902_v9 = vpop.permute.xlu0 %2901  ;;  %18286 = vst [vmem:[#allocation13_spill] sm:$0xff] %v16486_v58 }
 0xa36   :  { %2740 = vmatmul.f32.vlgmr.msrb.gmra.mxu0 %v2739_v35  ;;  %2896 = vmatmul.f32.vlgmr.msra.gmra.mxu1 %v16395_v20  ;;  %v2903_v34 = vsel %vm562_vm5, %v2902_v9, 0 }
 0xa37   :  { %2989 = vmatpush.msrb.mxu0 %v15908_v38  ;;  %3082 = vmatpush.msra.mxu3 %v15893_v14  ;;  %v2925_v5 = vand.u32 4294901760, %v2903_v34 }
 0xa38   :  { %3174 = vmatpush.msra.mxu1 %v15706_v36  ;;  %3055 = vmatpush.msra.mxu2 %v15943_v37 }
 0xa39   :  { %2992 = vmatpush.msrb.mxu0 %v15911_v8  ;;  %3084 = vmatpush.msra.mxu3 %v15903_v23  ;;  %v2926_v53 = vsub.f32 %v2903_v34, %v2925_v5 }
 0xa3a   :  { %2971 = vmatmul.f32.vlgmr.msrb.gmra.mxu3 %v2925_v5  ;;  %3180 = vmatpush.msra.mxu1 %v15718_v43 }
 0xa3b   :  { %2995 = vmatpush.msrb.mxu0 %v15915_v4  ;;  %3241 = vmatpush.msrb.mxu3 %v15670_v10  ;;  %v2927_v26 = vand.u32 4294901760, %v2926_v53 }
 0xa3c   :  { %3186 = vmatpush.msra.mxu1 %v15738_v52  ;;  %3059 = vmatpush.msra.mxu2 %v15952_v28 }
 0xa3d   :  { %2998 = vmatpush.msrb.mxu0 %v15932_v31  ;;  %3243 = vmatpush.msrb.mxu3 %v15684_v19  ;;  %v2928_v32 = vsub.f32 %v2926_v53, %v2927_v26 }
 0xa3e   :  { %2871 = vmatmul.f32.vlgmr.msra.gmra.mxu0 %v16395_v20  ;;  %3028 = vmatmul.f32.vlgmr.msrb.gmra.mxu1 %v2927_v26 }
 0xa3f   :  { %3192 = vmatpush.msra.mxu1 %v15770_v7  ;;  %3141 = vmatpush.msra.mxu0 %v15670_v10  ;;  %v2929_v46 = vand.u32 4294901760, %v2928_v32 }
 0xa40   :  { %3245 = vmatpush.msrb.mxu3 %v15714_v40 }
 0xa41   :  { %3301 = vmatpush.msrb.mxu1 %v15670_v10  ;;  %3143 = vmatpush.msra.mxu0 %v15684_v19 }
 0xa42   :  { %2930 = vmatmul.f32.vlgmr.msrb.gmra.mxu2 %v2929_v46  ;;  %3086 = vmatmul.f32.vlgmr.msra.gmra.mxu3 %v2925_v5 }
 0xa43   :  { %3247 = vmatpush.msrb.mxu3 %v15749_v60  ;;  %3303 = vmatpush.msrb.mxu1 %v15684_v19 }
 0xa44   :  { %3145 = vmatpush.msra.mxu0 %v15714_v40  ;;  %3212 = vmatpush.msrb.mxu2 %v15681_v17 }
 0xa45   :  { %3305 = vmatpush.msrb.mxu1 %v15714_v40  ;;  %3402 = vmatpush.msra.mxu3 %v15955_v18 }
 0xa46   :  { %3001 = vmatmul.f32.vlgmr.msrb.gmra.mxu0 %v2926_v53  ;;  %3194 = vmatmul.f32.vlgmr.msra.gmra.mxu1 %v16395_v20 }
 0xa47   :  { %3147 = vmatpush.msra.mxu0 %v15749_v60  ;;  %3215 = vmatpush.msrb.mxu2 %v15693_v25 }
 0xa48   :  { %3307 = vmatpush.msrb.mxu1 %v15749_v60  ;;  %3408 = vmatpush.msra.mxu3 %v18224_v54 }
 0xa49   :  { %3270 = vmatpush.msrb.mxu0 %v18223_v49  ;;  %3218 = vmatpush.msrb.mxu2 %v15723_v45 }
 0xa4a   :  { %3061 = vmatmul.f32.vlgmr.msra.gmra.mxu2 %v2925_v5  ;;  %3251 = vmatmul.f32.vlgmr.msrb.gmra.mxu3 %v2737_v11 }
 0xa4b   :  { %3221 = vmatpush.msrb.mxu2 %v15756_v62  ;;  %3274 = vmatpush.msrb.mxu0 %v18225_v56 }
 0xa4c   :  { %3414 = vmatpush.msra.mxu3 %v18226_v61  ;;  %3469 = vmatpush.msra.mxu1 %v18227_v12 }
 0xa4d   :  { %3278 = vmatpush.msrb.mxu0 %v18228_v57  ;;  %3369 = vmatpush.msra.mxu2 %v18227_v12 }
 0xa4e   :  { %3153 = vmatmul.f32.vlgmr.msra.gmra.mxu0 %v2739_v35  ;;  %3309 = vmatmul.f32.vlgmr.msrb.gmra.mxu1 %v16395_v20 }
 0xa4f   :  { %3282 = vmatpush.msrb.mxu0 %v18230_v47  ;;  %3420 = vmatpush.msra.mxu3 %v18229_v41 }
 0xa50   :  { %3471 = vmatpush.msra.mxu1 %v18272_v48  ;;  %3371 = vmatpush.msra.mxu2 %v18272_v48 }
 0xa51   :  { %3440 = vmatpush.msra.mxu0 %v18231_v29  ;;  %3529 = vmatpush.msrb.mxu3 %v18227_v12 }
 0xa52   :  { %3224 = vmatmul.f32.vlgmr.msrb.gmra.mxu2 %v16398_v24  ;;  %3473 = vmatpush.msra.mxu1 %v18274_v21 }
 0xa53   :  { %3443 = vmatpush.msra.mxu0 %v18273_v42  ;;  %3531 = vmatpush.msrb.mxu3 %v18272_v48  ;;  %v18288_v42 = vld [vmem:[#allocation28_spill] sm:$0xff] }
 0xa54   :  { %3373 = vmatpush.msra.mxu2 %v18274_v21  ;;  %3475 = vmatpush.msra.mxu1 %v18276_v22 }
 0xa55   :  { %3446 = vmatpush.msra.mxu0 %v18275_v33  ;;  %3533 = vmatpush.msrb.mxu3 %v18274_v21 }
 0xa56   :  { %3284 = vmatmul.f32.vlgmr.msrb.gmra.mxu0 %v16395_v20  ;;  %3592 = vmatpush.msrb.mxu1 %v18277_v55 }
 0xa57   :  { %3449 = vmatpush.msra.mxu0 %v18278_v27  ;;  %3375 = vmatpush.msra.mxu2 %v18276_v22  ;;  %v18287_v27 = vld [vmem:[#allocation27_spill] sm:$0xff] }
 0xa58   :  { %3535 = vmatpush.msrb.mxu3 %v18276_v22  ;;  %3598 = vmatpush.msrb.mxu1 %v18279_v44 }
 0xa59   :  { %3559 = vmatpush.msrb.mxu0 %v15889_v15  ;;  %3498 = vmatpush.msrb.mxu2 %v18280_v2 }
 0xa5a   :  { %3604 = vmatpush.msrb.mxu1 %v18281_v63 }
 0xa5b   :  { %3561 = vmatpush.msrb.mxu0 %v15891_v39  ;;  %3502 = vmatpush.msrb.mxu2 %v18282_v59  ;;  %v243_v59 = vadd.f32 %v16369_v16, %v18287_v27 }
 0xa5c   :  { %3610 = vmatpush.msrb.mxu1 %v18283_v1 }
 0xa5d   :  { %3563 = vmatpush.msrb.mxu0 %v15893_v14  ;;  %3506 = vmatpush.msrb.mxu2 %v18284_v51 }
 0xa5f   :  { %3565 = vmatpush.msrb.mxu0 %v15903_v23  ;;  %3510 = vmatpush.msrb.mxu2 %v18285_v0 }
 0xaab   :  { %v2782_v50 = vpop.f32.mrf.mxu1 }
 0xab3   :  { %v2741_v20 = vpop.f32.mrf.mxu0  ;;  %v2812_v9 = vpop.f32.mrf.mxu2 }
 0xab4   :  { %v2742_v35 = vadd.f32 %v16486_v58, %v2741_v20  ;;  %v2897_v34 = vpop.f32.mrf.mxu1  ;;  %v314_v20 = vadd.f32 %v18288_v42, %v243_v59 }
 0xab5   :  { %v2839_v24 = vpop.f32.mrf.mxu3 }
 0xab6   :  { %v2783_v5 = vadd.f32 %v2782_v50, %v2742_v35 }
 0xab8   :  { %v2813_v26 = vadd.f32 %v2812_v9, %v2783_v5  ;;  %v18289_v5 = vld [vmem:[#allocation25_spill] sm:$0xff] }
 0xab9   :  { %v372_v29 = vadd.f32 %v18289_v5, %v314_v20 }
 0xaba   :  { %v2840_v51 = vadd.f32 %v2839_v24, %v2813_v26  ;;  %v18290_v24 = vld [vmem:[#allocation26_spill] sm:$0xff] }
 0xabb   :  { %v2872_v11 = vpop.f32.mrf.mxu0  ;;  %v436_v26 = vadd.f32 %v18290_v24, %v372_v29 }
 0xabc   :  { %v3029_v0 = vpop.f32.mrf.mxu1  ;;  %v2873_v44 = vadd.f32 %v2872_v11, %v2840_v51 }
 0xabd   :  { %v2972_v53 = vpop.f32.mrf.mxu3 }
 0xabe   :  { %v2898_v50 = vadd.f32 %v2897_v34, %v2873_v44  ;;  %v18292_v44 = vld [vmem:[#allocation66_spill] sm:$0xff] }
 0xac3   :  { %v3002_v32 = vpop.f32.mrf.mxu0 }
 0xac4   :  { %v3195_v9 = vpop.f32.mrf.mxu1 }
 0xac5   :  { %v2931_v46 = vpop.f32.mrf.mxu2  ;;  %v3087_v2 = vpop.f32.mrf.mxu3 }
 0xac6   :  { %v2973_v1 = vadd.f32 %v2972_v53, %v2931_v46 }
 0xac8   :  { %v3003_v63 = vadd.f32 %v3002_v32, %v2973_v1 }
 0xaca   :  { %v3030_v33 = vadd.f32 %v3029_v0, %v3003_v63  ;;  %v18291_v63 = vld [vmem:[#allocation65_spill] sm:$0xff] }
 0xacb   :  { %v3154_v22 = vpop.f32.mrf.mxu0  ;;  %v497_v0 = vadd.f32 %v18291_v63, %v436_v26 }
 0xacc   :  { %v3196_v46 = vadd.f32 %v3195_v9, %v3154_v22 }
 0xacd   :  { %v3062_v55 = vpop.f32.mrf.mxu2  ;;  %v3252_v51 = vpop.f32.mrf.mxu3 }
 0xace   :  { %v3063_v58 = vadd.f32 %v3062_v55, %v3030_v33  ;;  %v3310_v55 = vpop.f32.mrf.mxu1 }
 0xad0   :  { %v3088_v35 = vadd.f32 %v3087_v2, %v3063_v58  ;;  %v548_v2 = vadd.f32 %v18292_v44, %v497_v0 }
 0xad2   :  { %v3090_v53 = vadd.f32 %v3088_v35, %v2898_v50 }
 0xad3   :  { %v3285_v32 = vpop.f32.mrf.mxu0 }
 0xad4   :  { %15087 = vtanh.f32 %v3090_v53  ;;  %v14973_v29 = vmul.f32 -1.442695, %v3090_v53 }
 0xad5   :  { %v3225_v1 = vpop.f32.mrf.mxu2 }
 0xad6   :  { %v3226_v27 = vadd.f32 %v3225_v1, %v3196_v46 }
 0xad8   :  { %v3253_v11 = vadd.f32 %v3252_v51, %v3226_v27 }
 0xada   :  { %v15088_v42 = vpop.eup %15087  ;;  %v3286_v33 = vadd.f32 %v3285_v32, %v3253_v11 }
 0xadb   :  { %3113 = vrot.lane.b32.xlu2 %v15088_v42, %s15557_s20 }
 0xadc   :  { %v3311_v59 = vadd.f32 %v3310_v55, %v3286_v33 }
 0xade   :  { %v3313_v58 = vadd.f32 %v3311_v59, %v548_v2 }
 0xae0   :  { %15089 = vtanh.f32 %v3313_v58  ;;  %v14974_v46 = vmul.f32 -1.442695, %v3313_v58 }
 0xae1   :  { %15091 = vpow2.f32 %v14973_v29 }
 0xae6   :  { %v15090_v22 = vpop.eup %15089 }
 0xae7   :  { %3336 = vrot.lane.b32.xlu1 %v15090_v22, %s15557_s20  ;;  %v15092_v34 = vpop.eup %15091 }
 0xae8   :  { %v3094_v20 = vadd.f32 1.0, %v15092_v34 }
 0xaea   :  { %15093 = vrcp.f32 %v3094_v20  ;;  %v3106_v24 = vand.u32 2147483648, %v3094_v20  ;;  %vm3100_vm2 = vweird.f32 %v3094_v20  ;;  %v3104_v26 = vand.u32 2147483647, %v3094_v20 }
 0xaeb   :  { %15095 = vpow2.f32 %v14974_v46 }
 0xaec   :  { %v3107_v51 = vor.u32 1.1754944e-38, %v3106_v24  ;;  %vm3105_vm4 = vcmp.eq.f32.partialorder %v3104_v26, 8.507059e+37 }
 0xaf0   :  { %v15094_v50 = vpop.eup %15093 }
 0xaf1   :  { %v3096_v35 = vmul.f32 %v15094_v50, %v3094_v20  ;;  %vm3101_vm1 = vweird.f32 %v15094_v50  ;;  %v15096_v0 = vpop.eup %15095 }
 0xaf2   :  { %vm3102_vm3 = vmor %vm3100_vm2, %vm3101_vm1  ;;  %v3317_v32 = vadd.f32 1.0, %v15096_v0 }
 0xaf3   :  { %v3097_v9 = vsub.f32 1.0, %v3096_v35 }
 0xaf4   :  { %15097 = vrcp.f32 %v3317_v32  ;;  %v3329_v59 = vand.u32 2147483648, %v3317_v32  ;;  %vm3323_vm7 = vweird.f32 %v3317_v32  ;;  %v3327_v58 = vand.u32 2147483647, %v3317_v32 }
 0xaf5   :  { %v3098_v5 = vmul.f32 %v15094_v50, %v3097_v9 }
 0xaf6   :  { %v3330_v29 = vor.u32 1.1754944e-38, %v3329_v59  ;;  %vm3328_vm9 = vcmp.eq.f32.partialorder %v3327_v58, 8.507059e+37 }
 0xaf7   :  { %v3099_v1 = vadd.f32 %v15094_v50, %v3098_v5 }
 0xaf9   :  { %v3103_v27 = vsel %vm3102_vm3, %v15094_v50, %v3099_v1 }
 0xafa   :  { %v3108_v63 = vsel %vm3105_vm4, %v3107_v51, %v3103_v27  ;;  %v15098_v42 = vpop.eup %15097 }
 0xafb   :  { %v3319_v33 = vmul.f32 %v15098_v42, %v3317_v32  ;;  %vm3324_vm6 = vweird.f32 %v15098_v42  ;;  %v3111_v35 = vmul.f32 %v3108_v63, %v16383_v6 }
 0xafc   :  { %vm3325_vm8 = vmor %vm3323_vm7, %vm3324_vm6 }
 0xafd   :  { %v3320_v55 = vsub.f32 1.0, %v3319_v33 }
 0xaff   :  { %v3321_v44 = vmul.f32 %v15098_v42, %v3320_v55 }
 0xb01   :  { %v3322_v2 = vadd.f32 %v15098_v42, %v3321_v44 }
 0xb03   :  { %v3326_v22 = vsel %vm3325_vm8, %v15098_v42, %v3322_v2 }
 0xb04   :  { %v3331_v20 = vsel %vm3328_vm9, %v3330_v29, %v3326_v22 }
 0xb05   :  { %v3334_v1 = vmul.f32 %v3331_v20, %v16388_v13 }
 0xb35   :  { %v3114_v53 = vpop.permute.xlu2 %3113 }
 0xb36   :  { %v3116_v11 = vmul.f32 %v3114_v53, %v3108_v63 }
 0xb38   :  { %3118 = vrot.lane.b32.xlu1 %v3116_v11, %s15558_s16 }
 0xb59   :  { %v3337_v34 = vpop.permute.xlu1 %3336 }
 0xb5a   :  { %v3339_v50 = vmul.f32 %v3337_v34, %v3331_v20 }
 0xb5c   :  { %3341 = vrot.lane.b32.xlu0 %v3339_v50, %s15558_s16  ;;  %v18294_v50 = vld [vmem:[#allocation51_spill] sm:$0xff] }
 0xbaa   :  { %v3119_v9 = vpop.permute.xlu1 %3118 }
 0xbab   :  { %v16501_v5 = vadd.f32 %v3119_v9, %v3111_v35  ;;  %v18295_v35 = vld [vmem:[#allocation45_spill] sm:$0xff] }
 0xbac   :  { %v18296_v9 = vld [vmem:[#allocation57_spill] sm:$0xff] }
 0xbad   :  { %15099 = vtanh.f32 %v16501_v5 }
 0xbb3   :  { %v15100_v46 = vpop.eup %15099 }
 0xbb4   :  { %3124 = vrot.lane.b32.xlu0 %v15100_v46, %s15557_s20  ;;  %v18297_v46 = vld [vmem:[#allocation46_spill] sm:$0xff] }
 0xbce   :  { %v3342_v24 = vpop.permute.xlu0 %3341 }
 0xbcf   :  { %v16506_v26 = vadd.f32 %v3342_v24, %v3334_v1  ;;  %v18298_v1 = vld [vmem:[#allocation50_spill] sm:$0xff] }
 0xbd0   :  { %v18299_v24 = vld [vmem:[#allocation58_spill] sm:$0xff] }
 0xbd1   :  { %15101 = vtanh.f32 %v16506_v26 }
 0xbd7   :  { %v15102_v27 = vpop.eup %15101 }
 0xbd8   :  { %3347 = vrot.lane.b32.xlu2 %v15102_v27, %s15557_s20  ;;  %v18300_v27 = vld [vmem:[#allocation47_spill] sm:$0xff] }
 0xc26   :  { %v3125_v51 = vpop.permute.xlu0 %3124 }
 0xc27   :  { %v3127_v6 = vmul.f32 %v3125_v51, %v3108_v63  ;;  %v18301_v51 = vld [vmem:[#allocation53_spill] sm:$0xff] }
 0xc29   :  { %3542 = vrot.lane.b32.xlu2 %v3127_v6, %s15558_s16  ;;  %v18302_v6 = vld [vmem:[#allocation59_spill] sm:$0xff] }
 0xc32   :  { %v3348_v53 = vpop.permute.xlu2 %3347 }
 0xc33   :  { %v3350_v0 = vmul.f32 %v3348_v53, %v3331_v20  ;;  %v18293_v20 = vld [vmem:[#allocation44_spill] sm:$0xff] }
 0xc34   :  { %v18303_v53 = vld [vmem:[#allocation52_spill] sm:$0xff] }
 0xc35   :  { %3352 = vrot.lane.b32.xlu1 %v3350_v0, %s15558_s16  ;;  %v18304_v0 = vld [vmem:[#allocation60_spill] sm:$0xff] }
 0xc83   :  { %v3543_v11 = vpop.permute.xlu2 %3542 }
 0xc84   :  { %v3544_v32 = vsel %vm562_vm5, %v3543_v11, 0  ;;  %v18305_v11 = vld [vmem:[#allocation54_spill] sm:$0xff] }
 0xc85   :  { %v3566_v13 = vand.u32 4294901760, %v3544_v32 }
 0xc87   :  { %v3567_v42 = vsub.f32 %v3544_v32, %v3566_v13 }
 0xc89   :  { %v3568_v2 = vand.u32 4294901760, %v3567_v42 }
 0xc8b   :  { %v3569_v58 = vsub.f32 %v3567_v42, %v3568_v2 }
 0xc8d   :  { %v3570_v34 = vand.u32 4294901760, %v3569_v58 }
 0xca7   :  { %v3353_v33 = vpop.permute.xlu1 %3352 }
 0xca8   :  { %v3354_v55 = vsel %vm562_vm5, %v3353_v33, 0 }
 0xca9   :  { %v16514_v44 = vand.u32 4294901760, %v3354_v55 }
 0xcab   :  { %v3377_v59 = vsub.f32 %v3354_v55, %v16514_v44  ;;  %3422 = vmatmul.f32.vlgmr.msra.gmra.mxu3 %v16514_v44  ;;  %v18306_v55 = vld [vmem:[#allocation13_spill] sm:$0xff] }
 0xcac   :  { %3659 = vmatpush.msra.mxu3 %v15889_v15 }
 0xcad   :  { %v3378_v63 = vand.u32 4294901760, %v3377_v59  ;;  %3452 = vmatmul.f32.vlgmr.msra.gmra.mxu0 %v3377_v59 }
 0xcae   :  { %3661 = vmatpush.msra.mxu3 %v15891_v39  ;;  %3688 = vmatpush.msra.mxu0 %v15925_v3 }
 0xcaf   :  { %v3379_v22 = vsub.f32 %v3377_v59, %v3378_v63  ;;  %3479 = vmatmul.f32.vlgmr.msra.gmra.mxu1 %v3378_v63 }
 0xcb0   :  { %3663 = vmatpush.msra.mxu3 %v15893_v14  ;;  %3692 = vmatpush.msra.mxu0 %v15928_v30 }
 0xcb1   :  { %v3380_v29 = vand.u32 4294901760, %v3379_v22  ;;  %3719 = vmatpush.msra.mxu1 %v15889_v15 }
 0xcb2   :  { %3665 = vmatpush.msra.mxu3 %v15903_v23  ;;  %3696 = vmatpush.msra.mxu0 %v15943_v37 }
 0xcb3   :  { %3381 = vmatmul.f32.vlgmr.msra.gmra.mxu2 %v3380_v29  ;;  %3537 = vmatmul.f32.vlgmr.msrb.gmra.mxu3 %v16514_v44 }
 0xcb4   :  { %3721 = vmatpush.msra.mxu1 %v15891_v39  ;;  %3630 = vmatpush.msra.mxu2 %v15908_v38 }
 0xcb5   :  { %3571 = vmatmul.f32.vlgmr.msrb.gmra.mxu0 %v3570_v34  ;;  %3815 = vmatpush.msrb.mxu3 %v15706_v36 }
 0xcb6   :  { %3700 = vmatpush.msra.mxu0 %v15952_v28  ;;  %3723 = vmatpush.msra.mxu1 %v15893_v14 }
 0xcb7   :  { %3612 = vmatmul.f32.vlgmr.msrb.gmra.mxu1 %v3566_v13  ;;  %3633 = vmatpush.msra.mxu2 %v15911_v8 }
 0xcb8   :  { %3725 = vmatpush.msra.mxu1 %v15903_v23  ;;  %3821 = vmatpush.msrb.mxu3 %v15718_v43 }
 0xcb9   :  { %3853 = vmatpush.msrb.mxu0 %v15681_v17  ;;  %3636 = vmatpush.msra.mxu2 %v15915_v4 }
 0xcba   :  { %3827 = vmatpush.msrb.mxu3 %v15738_v52  ;;  %3882 = vmatpush.msrb.mxu1 %v15670_v10 }
 0xcbb   :  { %3512 = vmatmul.f32.vlgmr.msrb.gmra.mxu2 %v16514_v44  ;;  %3669 = vmatmul.f32.vlgmr.msra.gmra.mxu3 %v3568_v2 }
 0xcbc   :  { %3856 = vmatpush.msrb.mxu0 %v15693_v25  ;;  %3639 = vmatpush.msra.mxu2 %v15932_v31 }
 0xcbd   :  { %3702 = vmatmul.f32.vlgmr.msra.gmra.mxu0 %v3566_v13  ;;  %3833 = vmatpush.msrb.mxu3 %v15770_v7 }
 0xcbe   :  { %3859 = vmatpush.msrb.mxu0 %v15723_v45  ;;  %3884 = vmatpush.msrb.mxu1 %v15684_v19 }
 0xcbf   :  { %3727 = vmatmul.f32.vlgmr.msra.gmra.mxu1 %v3566_v13  ;;  %3782 = vmatpush.msrb.mxu2 %v15670_v10 }
 0xcc0   :  { %3862 = vmatpush.msrb.mxu0 %v15756_v62  ;;  %3886 = vmatpush.msrb.mxu1 %v15714_v40 }
 0xcc1   :  { %3942 = vmatpush.msra.mxu3 %v15670_v10  ;;  %3784 = vmatpush.msrb.mxu2 %v15684_v19 }
 0xcc2   :  { %3888 = vmatpush.msrb.mxu1 %v15749_v60  ;;  %4010 = vmatpush.msra.mxu0 %v18227_v12 }
 0xcc3   :  { %3642 = vmatmul.f32.vlgmr.msra.gmra.mxu2 %v3567_v42  ;;  %3835 = vmatmul.f32.vlgmr.msrb.gmra.mxu3 %v16514_v44 }
 0xcc4   :  { %3944 = vmatpush.msra.mxu3 %v15684_v19  ;;  %3786 = vmatpush.msrb.mxu2 %v15714_v40 }
 0xcc5   :  { %3865 = vmatmul.f32.vlgmr.msrb.gmra.mxu0 %v3377_v59  ;;  %4043 = vmatpush.msra.mxu1 %v15955_v18 }
 0xcc6   :  { %3946 = vmatpush.msra.mxu3 %v15714_v40  ;;  %3788 = vmatpush.msrb.mxu2 %v15749_v60 }
 0xcc7   :  { %3892 = vmatmul.f32.vlgmr.msrb.gmra.mxu1 %v3378_v63  ;;  %4012 = vmatpush.msra.mxu0 %v18272_v48 }
 0xcc8   :  { %3911 = vmatpush.msra.mxu2 %v18223_v49  ;;  %3948 = vmatpush.msra.mxu3 %v15749_v60 }
 0xcc9   :  { %4049 = vmatpush.msra.mxu1 %v18224_v54  ;;  %4014 = vmatpush.msra.mxu0 %v18274_v21 }
 0xcca   :  { %3915 = vmatpush.msra.mxu2 %v18225_v56  ;;  %4110 = vmatpush.msrb.mxu3 %v18227_v12 }
 0xccb   :  { %4055 = vmatpush.msra.mxu1 %v18226_v61  ;;  %3794 = vmatmul.f32.vlgmr.msrb.gmra.mxu2 %v3380_v29 }
 0xccc   :  { %3950 = vmatmul.f32.vlgmr.msra.gmra.mxu3 %v16514_v44  ;;  %3919 = vmatpush.msra.mxu2 %v18228_v57 }
 0xccd   :  { %4061 = vmatpush.msra.mxu1 %v18229_v41  ;;  %4112 = vmatpush.msrb.mxu3 %v18272_v48 }
 0xcce   :  { %3923 = vmatpush.msra.mxu2 %v18230_v47  ;;  %4016 = vmatpush.msra.mxu0 %v18294_v50 }
 0xccf   :  { %4170 = vmatpush.msrb.mxu1 %v18227_v12  ;;  %4114 = vmatpush.msrb.mxu3 %v18274_v21 }
 0xcd0   :  { %4081 = vmatpush.msrb.mxu2 %v18293_v20  ;;  %4139 = vmatpush.msrb.mxu0 %v18297_v46 }
 0xcd1   :  { %4172 = vmatpush.msrb.mxu1 %v18272_v48  ;;  %4116 = vmatpush.msrb.mxu3 %v18294_v50 }
 0xcd2   :  { %4084 = vmatpush.msrb.mxu2 %v18295_v35  ;;  %4143 = vmatpush.msrb.mxu0 %v18300_v27  ;;  %v18308_v35 = vld [vmem:[#allocation34_spill] sm:$0xff] }
 0xcd3   :  { %4174 = vmatpush.msrb.mxu1 %v18274_v21  ;;  %4233 = vmatpush.msra.mxu3 %v18296_v9  ;;  %v18310_v21 = vld [vmem:[#allocation30_spill] sm:$0xff] }
 0xcd4   :  { %3925 = vmatmul.f32.vlgmr.msra.gmra.mxu2 %v16514_v44  ;;  %4147 = vmatpush.msrb.mxu0 %v18303_v53 }
 0xcd5   :  { %4087 = vmatpush.msrb.mxu2 %v18298_v1  ;;  %4176 = vmatpush.msrb.mxu1 %v18294_v50 }
 0xcd6   :  { %4239 = vmatpush.msra.mxu3 %v18299_v24  ;;  %4151 = vmatpush.msrb.mxu0 %v18305_v11 }
 0xcd7   :  { %4090 = vmatpush.msrb.mxu2 %v18301_v51  ;;  %v18307_v51 = vld [vmem:[#allocation31_spill] sm:$0xff] }
 0xcd8   :  { %4245 = vmatpush.msra.mxu3 %v18302_v6  ;;  %v251_v27 = vadd.f32 %v16369_v16, %v18307_v51 }
 0xcd9   :  { %4200 = vmatpush.msra.mxu2 %v15889_v15 }
 0xcda   :  { %4251 = vmatpush.msra.mxu3 %v18304_v0 }
 0xcdb   :  { %4202 = vmatpush.msra.mxu2 %v15891_v39 }
 0xcdd   :  { %4204 = vmatpush.msra.mxu2 %v15893_v14 }
 0xcdf   :  { %4206 = vmatpush.msra.mxu2 %v15903_v23 }
 0xd2a   :  { %v3453_v13 = vpop.f32.mrf.mxu0 }
 0xd2c   :  { %v3480_v42 = vpop.f32.mrf.mxu1 }
 0xd2e   :  { %v3423_v32 = vpop.f32.mrf.mxu3 }
 0xd32   :  { %v3572_v59 = vpop.f32.mrf.mxu0 }
 0xd34   :  { %v3613_v22 = vpop.f32.mrf.mxu1 }
 0xd35   :  { %v3614_v0 = vadd.f32 %v3613_v22, %v3572_v59 }
 0xd36   :  { %v3382_v33 = vpop.f32.mrf.mxu2  ;;  %v3538_v2 = vpop.f32.mrf.mxu3 }
 0xd37   :  { %v3383_v44 = vadd.f32 %v18306_v55, %v3382_v33  ;;  %v318_v33 = vadd.f32 %v18308_v35, %v251_v27 }
 0xd39   :  { %v3424_v63 = vadd.f32 %v3423_v32, %v3383_v44 }
 0xd3a   :  { %v3703_v11 = vpop.f32.mrf.mxu0 }
 0xd3b   :  { %v3454_v29 = vadd.f32 %v3453_v13, %v3424_v63  ;;  %v18309_v13 = vld [vmem:[#allocation29_spill] sm:$0xff] }
 0xd3c   :  { %v3728_v9 = vpop.f32.mrf.mxu1  ;;  %v377_v63 = vadd.f32 %v18309_v13, %v318_v33 }
 0xd3d   :  { %v3481_v53 = vadd.f32 %v3480_v42, %v3454_v29 }
 0xd3e   :  { %v3513_v58 = vpop.f32.mrf.mxu2  ;;  %v3670_v34 = vpop.f32.mrf.mxu3  ;;  %v442_v16 = vadd.f32 %v18310_v21, %v377_v63 }
 0xd3f   :  { %v3514_v1 = vadd.f32 %v3513_v58, %v3481_v53 }
 0xd41   :  { %v3539_v50 = vadd.f32 %v3538_v2, %v3514_v1 }
 0xd42   :  { %v3866_v22 = vpop.f32.mrf.mxu0 }
 0xd44   :  { %v3893_v51 = vpop.f32.mrf.mxu1 }
 0xd46   :  { %v3643_v6 = vpop.f32.mrf.mxu2  ;;  %v3836_v44 = vpop.f32.mrf.mxu3 }
 0xd47   :  { %v3644_v24 = vadd.f32 %v3643_v6, %v3614_v0  ;;  %v18311_v6 = vld [vmem:[#allocation67_spill] sm:$0xff] }
 0xd49   :  { %v3671_v46 = vadd.f32 %v3670_v34, %v3644_v24  ;;  %v501_v24 = vadd.f32 %v18311_v6, %v442_v16 }
 0xd4b   :  { %v3704_v55 = vadd.f32 %v3703_v11, %v3671_v46 }
 0xd4d   :  { %v3729_v32 = vadd.f32 %v3728_v9, %v3704_v55  ;;  %v18312_v9 = vld [vmem:[#allocation68_spill] sm:$0xff] }
 0xd4e   :  { %v3795_v20 = vpop.f32.mrf.mxu2  ;;  %v552_v27 = vadd.f32 %v18312_v9, %v501_v24 }
 0xd4f   :  { %v3731_v59 = vadd.f32 %v3729_v32, %v3539_v50  ;;  %v3837_v42 = vadd.f32 %v3836_v44, %v3795_v20  ;;  %v3951_v1 = vpop.f32.mrf.mxu3 }
 0xd51   :  { %15103 = vtanh.f32 %v3731_v59  ;;  %v3867_v29 = vadd.f32 %v3866_v22, %v3837_v42  ;;  %v14975_v55 = vmul.f32 -1.442695, %v3731_v59 }
 0xd53   :  { %v3894_v53 = vadd.f32 %v3893_v51, %v3867_v29 }
 0xd57   :  { %v3926_v0 = vpop.f32.mrf.mxu2  ;;  %v15104_v35 = vpop.eup %15103 }
 0xd58   :  { %v3927_v46 = vadd.f32 %v3926_v0, %v3894_v53  ;;  %3754 = vrot.lane.b32.xlu1 %v15104_v35, %s15557_s20 }
 0xd5a   :  { %v3952_v11 = vadd.f32 %v3951_v1, %v3927_v46 }
 0xd5c   :  { %v3954_v50 = vadd.f32 %v3952_v11, %v552_v27 }
 0xd5e   :  { %15105 = vtanh.f32 %v3954_v50  ;;  %v14976_v2 = vmul.f32 -1.442695, %v3954_v50 }
 0xd5f   :  { %15107 = vpow2.f32 %v14975_v55 }
 0xd60   :  { %15109 = vpow2.f32 %v14976_v2 }
 0xd64   :  { %v15106_v20 = vpop.eup %15105 }
 0xd65   :  { %3977 = vrot.lane.b32.xlu0 %v15106_v20, %s15557_s20  ;;  %v15108_v21 = vpop.eup %15107 }
 0xd66   :  { %v3735_v58 = vadd.f32 1.0, %v15108_v21  ;;  %v15110_v34 = vpop.eup %15109 }
 0xd67   :  { %v3958_v32 = vadd.f32 1.0, %v15110_v34 }
 0xd68   :  { %15111 = vrcp.f32 %v3735_v58  ;;  %v3747_v16 = vand.u32 2147483648, %v3735_v58  ;;  %vm3741_vm11 = vweird.f32 %v3735_v58  ;;  %v3745_v59 = vand.u32 2147483647, %v3735_v58 }
 0xd69   :  { %15113 = vrcp.f32 %v3958_v32  ;;  %v3970_v9 = vand.u32 2147483648, %v3958_v32  ;;  %vm3964_vm15 = vweird.f32 %v3958_v32  ;;  %v3968_v27 = vand.u32 2147483647, %v3958_v32 }
 0xd6a   :  { %v3748_v24 = vor.u32 1.1754944e-38, %v3747_v16  ;;  %vm3746_vm13 = vcmp.eq.f32.partialorder %v3745_v59, 8.507059e+37 }
 0xd6b   :  { %v3971_v50 = vor.u32 1.1754944e-38, %v3970_v9  ;;  %vm3969_vm2 = vcmp.eq.f32.partialorder %v3968_v27, 8.507059e+37 }
 0xd6e   :  { %v15112_v33 = vpop.eup %15111 }
 0xd6f   :  { %v3737_v44 = vmul.f32 %v15112_v33, %v3735_v58  ;;  %v15114_v42 = vpop.eup %15113  ;;  %vm3742_vm10 = vweird.f32 %v15112_v33 }
 0xd70   :  { %v3960_v29 = vmul.f32 %v15114_v42, %v3958_v32  ;;  %vm3743_vm12 = vmor %vm3741_vm11, %vm3742_vm10  ;;  %vm3965_vm14 = vweird.f32 %v15114_v42 }
 0xd71   :  { %v3738_v13 = vsub.f32 1.0, %v3737_v44  ;;  %vm3966_vm1 = vmor %vm3964_vm15, %vm3965_vm14 }
 0xd72   :  { %v3961_v6 = vsub.f32 1.0, %v3960_v29 }
 0xd73   :  { %v3739_v63 = vmul.f32 %v15112_v33, %v3738_v13 }
 0xd74   :  { %v3962_v46 = vmul.f32 %v15114_v42, %v3961_v6 }
 0xd75   :  { %v3740_v22 = vadd.f32 %v15112_v33, %v3739_v63 }
 0xd76   :  { %v3963_v1 = vadd.f32 %v15114_v42, %v3962_v46 }
 0xd77   :  { %v3744_v51 = vsel %vm3743_vm12, %v15112_v33, %v3740_v22 }
 0xd78   :  { %v3749_v0 = vsel %vm3746_vm13, %v3748_v24, %v3744_v51  ;;  %v3967_v11 = vsel %vm3966_vm1, %v15114_v42, %v3963_v1 }
 0xd79   :  { %v3972_v55 = vsel %vm3969_vm2, %v3971_v50, %v3967_v11  ;;  %v3752_v32 = vmul.f32 %v3749_v0, %v16501_v5  ;;  %v18313_v50 = vld [vmem:[#allocation49_spill] sm:$0xff] }
 0xd7a   :  { %v3975_v2 = vmul.f32 %v3972_v55, %v16506_v26 }
 0xdca   :  { %v3755_v53 = vpop.permute.xlu1 %3754 }
 0xdcb   :  { %v3757_v35 = vmul.f32 %v3755_v53, %v3749_v0 }
 0xdcd   :  { %3759 = vrot.lane.b32.xlu0 %v3757_v35, %s15558_s16 }
 0xdd7   :  { %v3978_v20 = vpop.permute.xlu0 %3977 }
 0xdd8   :  { %v3980_v21 = vmul.f32 %v3978_v20, %v3972_v55  ;;  %v18314_v20 = vld [vmem:[#allocation44_spill] sm:$0xff] }
 0xdda   :  { %3982 = vrot.lane.b32.xlu2 %v3980_v21, %s15558_s16  ;;  %v18316_v21 = vld [vmem:[#allocation45_spill] sm:$0xff] }
 0xe34   :  { %v3983_v58 = vpop.permute.xlu2 %3982 }
 0xe35   :  { %v16608_v34 = vadd.f32 %v3983_v58, %v3975_v2  ;;  %v18317_v2 = vld [vmem:[#allocation57_spill] sm:$0xff]  ;;  %v18318_v58 = vld [vmem:[#allocation46_spill] sm:$0xff] }
 0xe37   :  { %15115 = vtanh.f32 %v16608_v34 }
 0xe3d   :  { %v15116_v33 = vpop.eup %15115 }
 0xe3e   :  { %3988 = vrot.lane.b32.xlu1 %v15116_v33, %s15557_s20  ;;  %v18319_v33 = vld [vmem:[#allocation50_spill] sm:$0xff] }
 0xe3f   :  { %v3760_v44 = vpop.permute.xlu0 %3759 }
 0xe40   :  { %v16613_v13 = vadd.f32 %v3760_v44, %v3752_v32  ;;  %v18320_v32 = vld [vmem:[#allocation58_spill] sm:$0xff]  ;;  %v18321_v44 = vld [vmem:[#allocation47_spill] sm:$0xff] }
 0xe42   :  { %15117 = vtanh.f32 %v16613_v13 }
 0xe48   :  { %v15118_v63 = vpop.eup %15117 }
 0xe49   :  { %3765 = vrot.lane.b32.xlu2 %v15118_v63, %s15557_s20  ;;  %v18322_v63 = vld [vmem:[#allocation53_spill] sm:$0xff] }
 0xea3   :  { %v3766_v42 = vpop.permute.xlu2 %3765 }
 0xea4   :  { %v3768_v26 = vmul.f32 %v3766_v42, %v3749_v0  ;;  %v18323_v42 = vld [vmem:[#allocation59_spill] sm:$0xff] }
 0xea6   :  { %4183 = vrot.lane.b32.xlu1 %v3768_v26, %s15558_s16  ;;  %v18324_v26 = vld [vmem:[#allocation52_spill] sm:$0xff] }
 0xeb0   :  { %v3989_v22 = vpop.permute.xlu1 %3988 }
 0xeb1   :  { %v3991_v29 = vmul.f32 %v3989_v22, %v3972_v55  ;;  %v18315_v55 = vld [vmem:[#allocation51_spill] sm:$0xff]  ;;  %v18325_v22 = vld [vmem:[#allocation60_spill] sm:$0xff] }
 0xeb3   :  { %3993 = vrot.lane.b32.xlu0 %v3991_v29, %s15558_s16  ;;  %v18326_v29 = vld [vmem:[#allocation54_spill] sm:$0xff] }
 0xf18   :  { %v4184_v16 = vpop.permute.xlu1 %4183 }
 0xf19   :  { %v4185_v59 = vsel %vm562_vm5, %v4184_v16, 0 }
 0xf1a   :  { %v4207_v5 = vand.u32 4294901760, %v4185_v59 }
 0xf1c   :  { %v4208_v51 = vsub.f32 %v4185_v59, %v4207_v5 }
 0xf1e   :  { %v4209_v35 = vand.u32 4294901760, %v4208_v51 }
 0xf20   :  { %v4210_v1 = vsub.f32 %v4208_v51, %v4209_v35 }
 0xf22   :  { %v4211_v11 = vand.u32 4294901760, %v4210_v1 }
 0xf25   :  { %v3994_v6 = vpop.permute.xlu0 %3993 }
 0xf26   :  { %v3995_v24 = vsel %vm562_vm5, %v3994_v6, 0  ;;  %v18327_v6 = vld [vmem:[#allocation13_spill] sm:$0xff] }
 0xf27   :  { %v16621_v53 = vand.u32 4294901760, %v3995_v24 }
 0xf29   :  { %v4018_v46 = vsub.f32 %v3995_v24, %v16621_v53  ;;  %4063 = vmatmul.f32.vlgmr.msra.gmra.mxu1 %v16621_v53 }
 0xf2a   :  { %4300 = vmatpush.msra.mxu1 %v15889_v15 }
 0xf2b   :  { %v4019_v0 = vand.u32 4294901760, %v4018_v46  ;;  %4093 = vmatmul.f32.vlgmr.msrb.gmra.mxu2 %v4018_v46 }
 0xf2c   :  { %4302 = vmatpush.msra.mxu1 %v15891_v39  ;;  %4329 = vmatpush.msrb.mxu2 %v15925_v3 }
 0xf2d   :  { %v4020_v9 = vsub.f32 %v4018_v46, %v4019_v0  ;;  %4120 = vmatmul.f32.vlgmr.msrb.gmra.mxu3 %v4019_v0 }
 0xf2e   :  { %4304 = vmatpush.msra.mxu1 %v15893_v14  ;;  %4333 = vmatpush.msrb.mxu2 %v15928_v30 }
 0xf2f   :  { %v4021_v27 = vand.u32 4294901760, %v4020_v9  ;;  %4360 = vmatpush.msrb.mxu3 %v15889_v15 }
 0xf30   :  { %4306 = vmatpush.msra.mxu1 %v15903_v23  ;;  %4337 = vmatpush.msrb.mxu2 %v15943_v37 }
 0xf31   :  { %4022 = vmatmul.f32.vlgmr.msra.gmra.mxu0 %v4021_v27  ;;  %4178 = vmatmul.f32.vlgmr.msrb.gmra.mxu1 %v16621_v53 }
 0xf32   :  { %4362 = vmatpush.msrb.mxu3 %v15891_v39  ;;  %4271 = vmatpush.msra.mxu0 %v15908_v38 }
 0xf33   :  { %4212 = vmatmul.f32.vlgmr.msra.gmra.mxu2 %v4211_v11  ;;  %4456 = vmatpush.msrb.mxu1 %v15706_v36 }
 0xf34   :  { %4341 = vmatpush.msrb.mxu2 %v15952_v28  ;;  %4364 = vmatpush.msrb.mxu3 %v15893_v14 }
 0xf35   :  { %4253 = vmatmul.f32.vlgmr.msra.gmra.mxu3 %v4207_v5  ;;  %4274 = vmatpush.msra.mxu0 %v15911_v8 }
 0xf36   :  { %4366 = vmatpush.msrb.mxu3 %v15903_v23  ;;  %4462 = vmatpush.msrb.mxu1 %v15718_v43 }
 0xf37   :  { %4494 = vmatpush.msra.mxu2 %v15681_v17  ;;  %4277 = vmatpush.msra.mxu0 %v15915_v4 }
 0xf38   :  { %4468 = vmatpush.msrb.mxu1 %v15738_v52  ;;  %4523 = vmatpush.msra.mxu3 %v15670_v10 }
 0xf39   :  { %4153 = vmatmul.f32.vlgmr.msrb.gmra.mxu0 %v16621_v53  ;;  %4310 = vmatmul.f32.vlgmr.msra.gmra.mxu1 %v4209_v35 }
 0xf3a   :  { %4497 = vmatpush.msra.mxu2 %v15693_v25  ;;  %4280 = vmatpush.msra.mxu0 %v15932_v31 }
 0xf3b   :  { %4343 = vmatmul.f32.vlgmr.msrb.gmra.mxu2 %v4207_v5  ;;  %4474 = vmatpush.msrb.mxu1 %v15770_v7 }
 0xf3c   :  { %4500 = vmatpush.msra.mxu2 %v15723_v45  ;;  %4525 = vmatpush.msra.mxu3 %v15684_v19 }
 0xf3d   :  { %4368 = vmatmul.f32.vlgmr.msrb.gmra.mxu3 %v4207_v5  ;;  %4423 = vmatpush.msrb.mxu0 %v15670_v10 }
 0xf3e   :  { %4503 = vmatpush.msra.mxu2 %v15756_v62  ;;  %4527 = vmatpush.msra.mxu3 %v15714_v40 }
 0xf3f   :  { %4583 = vmatpush.msra.mxu1 %v15670_v10  ;;  %4425 = vmatpush.msrb.mxu0 %v15684_v19 }
 0xf40   :  { %4529 = vmatpush.msra.mxu3 %v15749_v60  ;;  %4651 = vmatpush.msrb.mxu2 %v18227_v12 }
 0xf41   :  { %4283 = vmatmul.f32.vlgmr.msra.gmra.mxu0 %v4208_v51  ;;  %4476 = vmatmul.f32.vlgmr.msrb.gmra.mxu1 %v16621_v53 }
 0xf42   :  { %4585 = vmatpush.msra.mxu1 %v15684_v19  ;;  %4427 = vmatpush.msrb.mxu0 %v15714_v40 }
 0xf43   :  { %4506 = vmatmul.f32.vlgmr.msra.gmra.mxu2 %v4018_v46  ;;  %4684 = vmatpush.msrb.mxu3 %v15955_v18 }
 0xf44   :  { %4587 = vmatpush.msra.mxu1 %v15714_v40  ;;  %4429 = vmatpush.msrb.mxu0 %v15749_v60 }
 0xf45   :  { %4533 = vmatmul.f32.vlgmr.msra.gmra.mxu3 %v4019_v0  ;;  %4653 = vmatpush.msrb.mxu2 %v18272_v48 }
 0xf46   :  { %4552 = vmatpush.msra.mxu0 %v18223_v49  ;;  %4589 = vmatpush.msra.mxu1 %v15749_v60 }
 0xf47   :  { %4690 = vmatpush.msrb.mxu3 %v18224_v54  ;;  %4655 = vmatpush.msrb.mxu2 %v18313_v50 }
 0xf48   :  { %4556 = vmatpush.msra.mxu0 %v18225_v56  ;;  %4751 = vmatpush.msrb.mxu1 %v18227_v12 }
 0xf49   :  { %4696 = vmatpush.msrb.mxu3 %v18226_v61  ;;  %4435 = vmatmul.f32.vlgmr.msrb.gmra.mxu0 %v4021_v27 }
 0xf4a   :  { %4591 = vmatmul.f32.vlgmr.msra.gmra.mxu1 %v16621_v53  ;;  %4560 = vmatpush.msra.mxu0 %v18228_v57 }
 0xf4b   :  { %4702 = vmatpush.msrb.mxu3 %v18229_v41  ;;  %4753 = vmatpush.msrb.mxu1 %v18272_v48 }
 0xf4c   :  { %4564 = vmatpush.msra.mxu0 %v18230_v47  ;;  %4657 = vmatpush.msrb.mxu2 %v18315_v55 }
 0xf4d   :  { %4811 = vmatpush.msra.mxu3 %v18227_v12  ;;  %4755 = vmatpush.msrb.mxu1 %v18313_v50 }
 0xf4e   :  { %4722 = vmatpush.msrb.mxu0 %v18314_v20  ;;  %4780 = vmatpush.msra.mxu2 %v18318_v58 }
 0xf4f   :  { %4813 = vmatpush.msra.mxu3 %v18272_v48  ;;  %4757 = vmatpush.msrb.mxu1 %v18315_v55  ;;  %v18331_v48 = vld [vmem:[#allocation33_spill] sm:$0xff] }
 0xf50   :  { %4725 = vmatpush.msrb.mxu0 %v18316_v21  ;;  %4784 = vmatpush.msra.mxu2 %v18321_v44  ;;  %v16706_v44 = vld [vmem:[%s18086_s3] ss:$0 sm:$0xff] }
 0xf51   :  { %4815 = vmatpush.msra.mxu3 %v18313_v50  ;;  %4874 = vmatpush.msra.mxu1 %v18317_v2 }
 0xf52   :  { %4566 = vmatmul.f32.vlgmr.msra.gmra.mxu0 %v16621_v53  ;;  %4788 = vmatpush.msra.mxu2 %v18324_v26 }
 0xf53   :  { %4728 = vmatpush.msrb.mxu0 %v18319_v33  ;;  %4817 = vmatpush.msra.mxu3 %v18315_v55 }
 0xf54   :  { %4880 = vmatpush.msra.mxu1 %v18320_v32  ;;  %4792 = vmatpush.msra.mxu2 %v18326_v29  ;;  %v18329_v32 = vld [vmem:[#allocation38_spill] sm:$0xff] }
 0xf55   :  { %4731 = vmatpush.msrb.mxu0 %v18322_v63 }
 0xf56   :  { %4886 = vmatpush.msra.mxu1 %v18323_v42  ;;  %v18328_v42 = vld [vmem:[#allocation35_spill] sm:$0xff] }
 0xf57   :  { %4841 = vmatpush.msra.mxu0 %v15889_v15  ;;  %v259_v58 = vadd.f32 %v16706_v44, %v18328_v42 }
 0xf58   :  { %4892 = vmatpush.msra.mxu1 %v18325_v22 }
 0xf59   :  { %4843 = vmatpush.msra.mxu0 %v15891_v39  ;;  %v322_v63 = vadd.f32 %v18329_v32, %v259_v58 }
 0xf5b   :  { %4845 = vmatpush.msra.mxu0 %v15893_v14 }
 0xf5d   :  { %4847 = vmatpush.msra.mxu0 %v15903_v23 }
 0xfa6   :  { %v4064_v16 = vpop.f32.mrf.mxu1 }
 0xfae   :  { %v4023_v59 = vpop.f32.mrf.mxu0  ;;  %v4094_v5 = vpop.f32.mrf.mxu2 }
 0xfaf   :  { %v4024_v24 = vadd.f32 %v18327_v6, %v4023_v59  ;;  %v4179_v53 = vpop.f32.mrf.mxu1 }
 0xfb0   :  { %v4121_v51 = vpop.f32.mrf.mxu3 }
 0xfb1   :  { %v4065_v35 = vadd.f32 %v4064_v16, %v4024_v24 }
 0xfb3   :  { %v4095_v9 = vadd.f32 %v4094_v5, %v4065_v35 }
 0xfb5   :  { %v4122_v11 = vadd.f32 %v4121_v51, %v4095_v9  ;;  %v18330_v9 = vld [vmem:[#allocation32_spill] sm:$0xff] }
 0xfb6   :  { %v4154_v46 = vpop.f32.mrf.mxu0  ;;  %v4213_v0 = vpop.f32.mrf.mxu2  ;;  %v382_v2 = vadd.f32 %v18330_v9, %v322_v63 }
 0xfb7   :  { %v4311_v27 = vpop.f32.mrf.mxu1  ;;  %v4155_v6 = vadd.f32 %v4154_v46, %v4122_v11 }
 0xfb8   :  { %v4254_v1 = vpop.f32.mrf.mxu3  ;;  %v448_v42 = vadd.f32 %v18331_v48, %v382_v2 }
 0xfb9   :  { %v4255_v29 = vadd.f32 %v4254_v1, %v4213_v0  ;;  %v4180_v35 = vadd.f32 %v4179_v53, %v4155_v6  ;;  %v18333_v53 = vld [vmem:[#allocation70_spill] sm:$0xff] }
 0xfbe   :  { %v4284_v26 = vpop.f32.mrf.mxu0  ;;  %v4344_v22 = vpop.f32.mrf.mxu2 }
 0xfbf   :  { %v4285_v59 = vadd.f32 %v4284_v26, %v4255_v29  ;;  %v4477_v0 = vpop.f32.mrf.mxu1  ;;  %v18332_v29 = vld [vmem:[#allocation69_spill] sm:$0xff] }
 0xfc0   :  { %v4369_v24 = vpop.f32.mrf.mxu3  ;;  %v505_v46 = vadd.f32 %v18332_v29, %v448_v42 }
 0xfc1   :  { %v4312_v16 = vadd.f32 %v4311_v27, %v4285_v59 }
 0xfc2   :  { %v556_v59 = vadd.f32 %v18333_v53, %v505_v46 }
 0xfc3   :  { %v4345_v5 = vadd.f32 %v4344_v22, %v4312_v16 }
 0xfc5   :  { %v4370_v51 = vadd.f32 %v4369_v24, %v4345_v5 }
 0xfc6   :  { %v4436_v1 = vpop.f32.mrf.mxu0  ;;  %v4507_v50 = vpop.f32.mrf.mxu2 }
 0xfc7   :  { %v4372_v55 = vadd.f32 %v4370_v51, %v4180_v35  ;;  %v4478_v33 = vadd.f32 %v4477_v0, %v4436_v1  ;;  %v4592_v22 = vpop.f32.mrf.mxu1 }
 0xfc8   :  { %v4534_v26 = vpop.f32.mrf.mxu3 }
 0xfc9   :  { %15119 = vtanh.f32 %v4372_v55  ;;  %v4508_v21 = vadd.f32 %v4507_v50, %v4478_v33  ;;  %v14977_v2 = vmul.f32 -1.442695, %v4372_v55 }
 0xfcb   :  { %v4535_v27 = vadd.f32 %v4534_v26, %v4508_v21 }
 0xfcf   :  { %v4567_v11 = vpop.f32.mrf.mxu0  ;;  %v15120_v58 = vpop.eup %15119 }
 0xfd0   :  { %v4568_v32 = vadd.f32 %v4567_v11, %v4535_v27  ;;  %4395 = vrot.lane.b32.xlu0 %v15120_v58, %s15557_s20 }
 0xfd2   :  { %v4593_v63 = vadd.f32 %v4592_v22, %v4568_v32 }
 0xfd4   :  { %v4595_v6 = vadd.f32 %v4593_v63, %v556_v59 }
 0xfd6   :  { %15121 = vtanh.f32 %v4595_v6  ;;  %v14978_v50 = vmul.f32 -1.442695, %v4595_v6 }
 0xfd8   :  { %15123 = vpow2.f32 %v14978_v50 }
 0xfd9   :  { %15125 = vpow2.f32 %v14977_v2 }
 0xfdc   :  { %v15122_v16 = vpop.eup %15121 }
 0xfdd   :  { %4618 = vrot.lane.b32.xlu2 %v15122_v16, %s15557_s20 }
 0xfde   :  { %v15124_v48 = vpop.eup %15123 }
 0xfdf   :  { %v4599_v33 = vadd.f32 1.0, %v15124_v48  ;;  %v15126_v21 = vpop.eup %15125 }
 0xfe0   :  { %v4376_v5 = vadd.f32 1.0, %v15126_v21 }
 0xfe1   :  { %15127 = vrcp.f32 %v4599_v33  ;;  %v4611_v26 = vand.u32 2147483648, %v4599_v33  ;;  %vm4605_vm4 = vweird.f32 %v4599_v33  ;;  %v4609_v29 = vand.u32 2147483647, %v4599_v33 }
 0xfe2   :  { %15129 = vrcp.f32 %v4376_v5  ;;  %v4388_v59 = vand.u32 2147483648, %v4376_v5  ;;  %vm4382_vm9 = vweird.f32 %v4376_v5  ;;  %v4386_v63 = vand.u32 2147483647, %v4376_v5 }
 0xfe3   :  { %v4612_v27 = vor.u32 1.1754944e-38, %v4611_v26  ;;  %vm4610_vm7 = vcmp.eq.f32.partialorder %v4609_v29, 8.507059e+37 }
 0xfe4   :  { %v4389_v16 = vor.u32 1.1754944e-38, %v4388_v59  ;;  %vm4387_vm11 = vcmp.eq.f32.partialorder %v4386_v63, 8.507059e+37 }
 0xfe7   :  { %v15128_v24 = vpop.eup %15127 }
 0xfe8   :  { %v4601_v35 = vmul.f32 %v15128_v24, %v4599_v33  ;;  %v15130_v1 = vpop.eup %15129  ;;  %vm4606_vm3 = vweird.f32 %v15128_v24 }
 0xfe9   :  { %v4378_v42 = vmul.f32 %v15130_v1, %v4376_v5  ;;  %vm4607_vm6 = vmor %vm4605_vm4, %vm4606_vm3  ;;  %vm4383_vm8 = vweird.f32 %v15130_v1 }
 0xfea   :  { %v4602_v51 = vsub.f32 1.0, %v4601_v35  ;;  %vm4384_vm10 = vmor %vm4382_vm9, %vm4383_vm8 }
 0xfeb   :  { %v4379_v55 = vsub.f32 1.0, %v4378_v42 }
 0xfec   :  { %v4603_v0 = vmul.f32 %v15128_v24, %v4602_v51 }
 0xfed   :  { %v4380_v22 = vmul.f32 %v15130_v1, %v4379_v55 }
 0xfee   :  { %v4604_v9 = vadd.f32 %v15128_v24, %v4603_v0 }
 0xfef   :  { %v4381_v53 = vadd.f32 %v15130_v1, %v4380_v22 }
 0xff0   :  { %v4608_v46 = vsel %vm4607_vm6, %v15128_v24, %v4604_v9 }
 0xff1   :  { %v4613_v58 = vsel %vm4610_vm7, %v4612_v27, %v4608_v46  ;;  %v4385_v6 = vsel %vm4384_vm10, %v15130_v1, %v4381_v53 }
 0xff2   :  { %v4390_v48 = vsel %vm4387_vm11, %v4389_v16, %v4385_v6  ;;  %v4616_v5 = vmul.f32 %v4613_v58, %v16608_v34 }
 0xff3   :  { %v4393_v33 = vmul.f32 %v4390_v48, %v16613_v13 }
0x1037   :  { %v4619_v11 = vpop.permute.xlu2 %4618 }
0x1038   :  { %v4621_v32 = vmul.f32 %v4619_v11, %v4613_v58 }
0x103a   :  { %4623 = vrot.lane.b32.xlu1 %v4621_v32, %s15558_s16 }
0x1042   :  { %v4396_v50 = vpop.permute.xlu0 %4395 }
0x1043   :  { %v4398_v2 = vmul.f32 %v4396_v50, %v4390_v48 }
0x1045   :  { %4400 = vrot.lane.b32.xlu2 %v4398_v2, %s15558_s16 }
0x109f   :  { %v4401_v21 = vpop.permute.xlu2 %4400 }
0x10a0   :  { %v16720_v24 = vadd.f32 %v4401_v21, %v4393_v33 }
0x10a2   :  { %15131 = vtanh.f32 %v16720_v24 }
0x10a8   :  { %v15132_v35 = vpop.eup %15131 }
0x10a9   :  { %4406 = vrot.lane.b32.xlu1 %v15132_v35, %s15557_s20 }
0x10ac   :  { %v4624_v51 = vpop.permute.xlu1 %4623 }
0x10ad   :  { %v16725_v0 = vadd.f32 %v4624_v51, %v4616_v5 }
0x10af   :  { %15133 = vtanh.f32 %v16725_v0 }
0x10b5   :  { %v15134_v1 = vpop.eup %15133 }
0x10b6   :  { %4629 = vrot.lane.b32.xlu0 %v15134_v1, %s15557_s20 }
0x111b   :  { %v4407_v9 = vpop.permute.xlu1 %4406 }
0x111c   :  { %v4409_v13 = vmul.f32 %v4407_v9, %v4390_v48  ;;  %v18348_v9 = vld [vmem:[#allocation40_spill] sm:$0xff] }
0x111e   :  { %4824 = vrot.lane.b32.xlu0 %v4409_v13, %s15558_s16  ;;  %v267_v13 = vadd.f32 %v16706_v44, %v18348_v9 }
0x1128   :  { %v4630_v42 = vpop.permute.xlu0 %4629 }
0x1129   :  { %v4632_v26 = vmul.f32 %v4630_v42, %v4613_v58 }
0x112b   :  { %4634 = vrot.lane.b32.xlu2 %v4632_v26, %s15558_s16 }
0x1185   :  { %v4635_v29 = vpop.permute.xlu2 %4634 }
0x1186   :  { %v4636_v46 = vsel %vm562_vm5, %v4635_v29, 0 }
0x1187   :  { %v16732_v34 = vand.u32 4294901760, %v4636_v46 }
0x1189   :  { %v16735_v55 = vsub.f32 %v4636_v46, %v16732_v34  ;;  %4704 = vmatmul.f32.vlgmr.msrb.gmra.mxu3 %v16732_v34 }
0x118a   :  { %4941 = vmatpush.msrb.mxu3 %v15889_v15 }
0x118b   :  { %v4660_v27 = vand.u32 4294901760, %v16735_v55  ;;  %4734 = vmatmul.f32.vlgmr.msrb.gmra.mxu0 %v16735_v55 }
0x118c   :  { %4943 = vmatpush.msrb.mxu3 %v15891_v39  ;;  %4970 = vmatpush.msrb.mxu0 %v15925_v3 }
0x118d   :  { %v4661_v11 = vsub.f32 %v16735_v55, %v4660_v27  ;;  %4761 = vmatmul.f32.vlgmr.msrb.gmra.mxu1 %v4660_v27 }
0x118e   :  { %4945 = vmatpush.msrb.mxu3 %v15893_v14  ;;  %5001 = vmatpush.msrb.mxu1 %v15889_v15 }
0x118f   :  { %v4662_v58 = vand.u32 4294901760, %v4661_v11  ;;  %4974 = vmatpush.msrb.mxu0 %v15928_v30 }
0x1190   :  { %4947 = vmatpush.msrb.mxu3 %v15903_v23  ;;  %5003 = vmatpush.msrb.mxu1 %v15891_v39  ;;  %v4825_v32 = vpop.permute.xlu0 %4824 }
0x1191   :  { %4663 = vmatmul.f32.vlgmr.msrb.gmra.mxu2 %v4662_v58  ;;  %4819 = vmatmul.f32.vlgmr.msra.gmra.mxu3 %v16732_v34  ;;  %v4826_v22 = vsel %vm562_vm5, %v4825_v32, 0 }
0x1192   :  { %4912 = vmatpush.msrb.mxu2 %v15908_v38  ;;  %5005 = vmatpush.msrb.mxu1 %v15893_v14  ;;  %v4848_v53 = vand.u32 4294901760, %v4826_v22 }
0x1193   :  { %5097 = vmatpush.msra.mxu3 %v15706_v36  ;;  %4978 = vmatpush.msrb.mxu0 %v15943_v37 }
0x1194   :  { %4915 = vmatpush.msrb.mxu2 %v15911_v8  ;;  %5007 = vmatpush.msrb.mxu1 %v15903_v23  ;;  %v4849_v59 = vsub.f32 %v4826_v22, %v4848_v53 }
0x1195   :  { %4894 = vmatmul.f32.vlgmr.msra.gmra.mxu1 %v4848_v53  ;;  %5103 = vmatpush.msra.mxu3 %v15718_v43 }
0x1196   :  { %4918 = vmatpush.msrb.mxu2 %v15915_v4  ;;  %5164 = vmatpush.msra.mxu1 %v15670_v10  ;;  %v4850_v63 = vand.u32 4294901760, %v4849_v59 }
0x1197   :  { %5109 = vmatpush.msra.mxu3 %v15738_v52  ;;  %4982 = vmatpush.msrb.mxu0 %v15952_v28  ;;  %v18340_v52 = vld [vmem:[#allocation53_spill] sm:$0xff] }
0x1198   :  { %4921 = vmatpush.msrb.mxu2 %v15932_v31  ;;  %5166 = vmatpush.msra.mxu1 %v15684_v19  ;;  %v4851_v36 = vsub.f32 %v4849_v59, %v4850_v63 }
0x1199   :  { %4794 = vmatmul.f32.vlgmr.msra.gmra.mxu2 %v16732_v34  ;;  %4951 = vmatmul.f32.vlgmr.msrb.gmra.mxu3 %v4850_v63 }
0x119a   :  { %5115 = vmatpush.msra.mxu3 %v15770_v7  ;;  %5064 = vmatpush.msra.mxu2 %v15670_v10  ;;  %v4852_v43 = vand.u32 4294901760, %v4851_v36  ;;  %v18343_v7 = vld [vmem:[#allocation59_spill] sm:$0xff] }
0x119b   :  { %5168 = vmatpush.msra.mxu1 %v15714_v40 }
0x119c   :  { %5224 = vmatpush.msrb.mxu3 %v15670_v10  ;;  %5066 = vmatpush.msra.mxu2 %v15684_v19  ;;  %v18334_v10 = vld [vmem:[#allocation43_spill] sm:$0xff] }
0x119d   :  { %4853 = vmatmul.f32.vlgmr.msra.gmra.mxu0 %v4852_v43  ;;  %5009 = vmatmul.f32.vlgmr.msrb.gmra.mxu1 %v4848_v53 }
0x119e   :  { %5170 = vmatpush.msra.mxu1 %v15749_v60  ;;  %5226 = vmatpush.msrb.mxu3 %v15684_v19  ;;  %v18336_v19 = vld [vmem:[#allocation49_spill] sm:$0xff] }
0x119f   :  { %5068 = vmatpush.msra.mxu2 %v15714_v40  ;;  %5135 = vmatpush.msra.mxu0 %v15681_v17  ;;  %v18335_v17 = vld [vmem:[#allocation45_spill] sm:$0xff] }
0x11a0   :  { %5228 = vmatpush.msrb.mxu3 %v15714_v40  ;;  %5325 = vmatpush.msrb.mxu1 %v15955_v18  ;;  %v18338_v40 = vld [vmem:[#allocation51_spill] sm:$0xff] }
0x11a1   :  { %4924 = vmatmul.f32.vlgmr.msrb.gmra.mxu2 %v4849_v59  ;;  %5117 = vmatmul.f32.vlgmr.msra.gmra.mxu3 %v16732_v34  ;;  %v18344_v18 = vld [vmem:[#allocation47_spill] sm:$0xff] }
0x11a2   :  { %5070 = vmatpush.msra.mxu2 %v15749_v60  ;;  %5138 = vmatpush.msra.mxu0 %v15693_v25  ;;  %v18337_v25 = vld [vmem:[#allocation50_spill] sm:$0xff] }
0x11a3   :  { %5230 = vmatpush.msrb.mxu3 %v15749_v60  ;;  %5331 = vmatpush.msrb.mxu1 %v18224_v54  ;;  %v18341_v60 = vld [vmem:[#allocation58_spill] sm:$0xff]  ;;  %v18346_v54 = vld [vmem:[#allocation52_spill] sm:$0xff] }
0x11a4   :  { %5193 = vmatpush.msrb.mxu2 %v18223_v49  ;;  %5141 = vmatpush.msra.mxu0 %v15723_v45  ;;  %v18339_v45 = vld [vmem:[#allocation57_spill] sm:$0xff]  ;;  %v18345_v49 = vld [vmem:[#allocation60_spill] sm:$0xff] }
0x11a5   :  { %4984 = vmatmul.f32.vlgmr.msrb.gmra.mxu0 %v4848_v53  ;;  %5174 = vmatmul.f32.vlgmr.msra.gmra.mxu1 %v4660_v27  ;;  %v18350_v53 = vld [vmem:[#allocation36_spill] sm:$0xff] }
0x11a6   :  { %5144 = vmatpush.msra.mxu0 %v15756_v62  ;;  %5197 = vmatpush.msrb.mxu2 %v18225_v56  ;;  %v18342_v62 = vld [vmem:[#allocation46_spill] sm:$0xff] }
0x11a7   :  { %5337 = vmatpush.msrb.mxu1 %v18226_v61  ;;  %5392 = vmatpush.msra.mxu3 %v18227_v12  ;;  %v18347_v56 = vld [vmem:[#allocation54_spill] sm:$0xff] }
0x11a8   :  { %5201 = vmatpush.msrb.mxu2 %v18228_v57  ;;  %5292 = vmatpush.msrb.mxu0 %v18227_v12 }
0x11a9   :  { %5076 = vmatmul.f32.vlgmr.msra.gmra.mxu2 %v4662_v58  ;;  %5232 = vmatmul.f32.vlgmr.msrb.gmra.mxu3 %v16732_v34 }
0x11aa   :  { %5205 = vmatpush.msrb.mxu2 %v18230_v47  ;;  %5343 = vmatpush.msrb.mxu1 %v18229_v41  ;;  %v16823_v47 = vld [vmem:[%s18089_s6] ss:$0 sm:$0xff] }
0x11ab   :  { %5394 = vmatpush.msra.mxu3 %v18334_v10  ;;  %5294 = vmatpush.msrb.mxu0 %v18334_v10 }
0x11ac   :  { %5363 = vmatpush.msra.mxu2 %v18314_v20  ;;  %5452 = vmatpush.msra.mxu1 %v18227_v12 }
0x11ad   :  { %5147 = vmatmul.f32.vlgmr.msra.gmra.mxu0 %v16735_v55  ;;  %5396 = vmatpush.msra.mxu3 %v18336_v19 }
0x11ae   :  { %5366 = vmatpush.msra.mxu2 %v18335_v17  ;;  %5454 = vmatpush.msra.mxu1 %v18334_v10  ;;  %v18351_v17 = vld [vmem:[#allocation37_spill] sm:$0xff] }
0x11af   :  { %5296 = vmatpush.msrb.mxu0 %v18336_v19  ;;  %5398 = vmatpush.msra.mxu3 %v18338_v40 }
0x11b0   :  { %5369 = vmatpush.msra.mxu2 %v18337_v25  ;;  %5456 = vmatpush.msra.mxu1 %v18336_v19  ;;  %v18352_v25 = vld [vmem:[#allocation71_spill] sm:$0xff] }
0x11b1   :  { %5207 = vmatmul.f32.vlgmr.msrb.gmra.mxu2 %v16732_v34  ;;  %5515 = vmatpush.msrb.mxu3 %v18339_v45  ;;  %v18349_v34 = vld [vmem:[#allocation41_spill] sm:$0xff] }
0x11b2   :  { %5372 = vmatpush.msra.mxu2 %v18340_v52  ;;  %5298 = vmatpush.msrb.mxu0 %v18338_v40  ;;  %v326_v55 = vadd.f32 %v18349_v34, %v267_v13 }
0x11b3   :  { %5458 = vmatpush.msra.mxu1 %v18338_v40  ;;  %5521 = vmatpush.msrb.mxu3 %v18341_v60 }
0x11b4   :  { %5482 = vmatpush.msrb.mxu2 %v15889_v15  ;;  %5421 = vmatpush.msra.mxu0 %v18342_v62  ;;  %v387_v59 = vadd.f32 %v18350_v53, %v326_v55 }
0x11b5   :  { %5527 = vmatpush.msrb.mxu3 %v18343_v7 }
0x11b6   :  { %5484 = vmatpush.msrb.mxu2 %v15891_v39  ;;  %5425 = vmatpush.msra.mxu0 %v18344_v18  ;;  %v454_v44 = vadd.f32 %v18351_v17, %v387_v59  ;;  %v18353_v18 = vld [vmem:[#allocation72_spill] sm:$0xff] }
0x11b7   :  { %5533 = vmatpush.msrb.mxu3 %v18345_v49 }
0x11b8   :  { %5486 = vmatpush.msrb.mxu2 %v15893_v14  ;;  %5429 = vmatpush.msra.mxu0 %v18346_v54  ;;  %v509_v40 = vadd.f32 %v18352_v25, %v454_v44 }
0x11ba   :  { %5488 = vmatpush.msrb.mxu2 %v15903_v23  ;;  %5433 = vmatpush.msra.mxu0 %v18347_v56  ;;  %v560_v49 = vadd.f32 %v18353_v18, %v509_v40 }
0x1208   :  { %v4735_v12 = vpop.f32.mrf.mxu0 }
0x120a   :  { %v4762_v57 = vpop.f32.mrf.mxu1 }
0x120c   :  { %v4705_v61 = vpop.f32.mrf.mxu3 }
0x1212   :  { %v4895_v2 = vpop.f32.mrf.mxu1 }
0x1214   :  { %v4664_v41 = vpop.f32.mrf.mxu2  ;;  %v4820_v6 = vpop.f32.mrf.mxu3 }
0x1215   :  { %v4665_v20 = vadd.f32 %v16823_v47, %v4664_v41 }
0x1217   :  { %v4706_v50 = vadd.f32 %v4705_v61, %v4665_v20 }
0x1219   :  { %v4736_v33 = vadd.f32 %v4735_v12, %v4706_v50 }
0x121a   :  { %v4854_v16 = vpop.f32.mrf.mxu0  ;;  %v5010_v46 = vpop.f32.mrf.mxu1 }
0x121b   :  { %v4896_v35 = vadd.f32 %v4895_v2, %v4854_v16  ;;  %v4763_v5 = vadd.f32 %v4762_v57, %v4736_v33 }
0x121c   :  { %v4795_v48 = vpop.f32.mrf.mxu2  ;;  %v4952_v21 = vpop.f32.mrf.mxu3 }
0x121d   :  { %v4796_v26 = vadd.f32 %v4795_v48, %v4763_v5 }
0x121f   :  { %v4821_v11 = vadd.f32 %v4820_v6, %v4796_v26 }
0x1222   :  { %v4985_v51 = vpop.f32.mrf.mxu0  ;;  %v5175_v19 = vpop.f32.mrf.mxu1 }
0x1224   :  { %v4925_v1 = vpop.f32.mrf.mxu2  ;;  %v5118_v32 = vpop.f32.mrf.mxu3 }
0x1225   :  { %v4926_v42 = vadd.f32 %v4925_v1, %v4896_v35 }
0x1227   :  { %v4953_v29 = vadd.f32 %v4952_v21, %v4926_v42 }
0x1229   :  { %v4986_v27 = vadd.f32 %v4985_v51, %v4953_v29 }
0x122a   :  { %v5148_v43 = vpop.f32.mrf.mxu0 }
0x122b   :  { %v5011_v58 = vadd.f32 %v5010_v46, %v4986_v27 }
0x122c   :  { %v5077_v22 = vpop.f32.mrf.mxu2  ;;  %v5233_v7 = vpop.f32.mrf.mxu3 }
0x122d   :  { %v5013_v63 = vadd.f32 %v5011_v58, %v4821_v11  ;;  %v5119_v36 = vadd.f32 %v5118_v32, %v5077_v22 }
0x122f   :  { %15135 = vtanh.f32 %v5013_v63  ;;  %v5149_v10 = vadd.f32 %v5148_v43, %v5119_v36  ;;  %v14979_v12 = vmul.f32 -1.442695, %v5013_v63 }
0x1231   :  { %v5176_v45 = vadd.f32 %v5175_v19, %v5149_v10 }
0x1234   :  { %v5208_v52 = vpop.f32.mrf.mxu2 }
0x1235   :  { %v15136_v60 = vpop.eup %15135  ;;  %v5209_v62 = vadd.f32 %v5208_v52, %v5176_v45 }
0x1236   :  { %5036 = vrot.lane.b32.xlu2 %v15136_v60, %s15557_s20 }
0x1237   :  { %v5234_v54 = vadd.f32 %v5233_v7, %v5209_v62  ;;  %v141_v62 = vld [vmem:[#allocation4 + $0x18] sm:$0xff] }
0x1238   :  { %v16847_v18 = vand.u32 4294901760, %v141_v62 }
0x1239   :  { %v5236_v56 = vadd.f32 %v5234_v54, %v560_v49  ;;  %v139_v54 = vld [vmem:[#allocation4 + $0x8] sm:$0xff] }
0x123b   :  { %15137 = vtanh.f32 %v5236_v56  ;;  %v14980_v48 = vmul.f32 -1.442695, %v5236_v56 }
0x123c   :  { %15139 = vpow2.f32 %v14979_v12  ;;  %v16856_v12 = vand.u32 4294901760, %v139_v54 }
0x1241   :  { %v15138_v61 = vpop.eup %15137 }
0x1242   :  { %5259 = vrot.lane.b32.xlu1 %v15138_v61, %s15557_s20  ;;  %v15140_v57 = vpop.eup %15139  ;;  %v16854_v61 = vsub.f32 %v141_v62, %v16847_v18 }
0x1243   :  { %v5017_v41 = vadd.f32 1.0, %v15140_v57  ;;  %v138_v57 = vld [vmem:[#allocation4] sm:$0xff] }
0x1245   :  { %15141 = vrcp.f32 %v5017_v41  ;;  %v5029_v33 = vand.u32 2147483648, %v5017_v41  ;;  %vm5023_vm13 = vweird.f32 %v5017_v41  ;;  %v5027_v21 = vand.u32 2147483647, %v5017_v41 }
0x1246   :  { %15143 = vpow2.f32 %v14980_v48  ;;  %v5751_v48 = vand.u32 4294901760, %v16854_v61 }
0x1247   :  { %v5030_v5 = vor.u32 1.1754944e-38, %v5029_v33  ;;  %vm5028_vm15 = vcmp.eq.f32.partialorder %v5027_v21, 8.507059e+37  ;;  %v16871_v33 = vsub.f32 %v139_v54, %v16856_v12 }
0x124b   :  { %v15142_v20 = vpop.eup %15141 }
0x124c   :  { %v5019_v6 = vmul.f32 %v15142_v20, %v5017_v41  ;;  %vm5024_vm12 = vweird.f32 %v15142_v20  ;;  %v15144_v9 = vpop.eup %15143 }
0x124d   :  { %vm5025_vm14 = vmor %vm5023_vm13, %vm5024_vm12  ;;  %v5240_v42 = vadd.f32 1.0, %v15144_v9 }
0x124e   :  { %v5020_v16 = vsub.f32 1.0, %v5019_v6 }
0x124f   :  { %15145 = vrcp.f32 %v5240_v42  ;;  %v5252_v27 = vand.u32 2147483648, %v5240_v42  ;;  %vm5246_vm2 = vweird.f32 %v5240_v42  ;;  %v5250_v11 = vand.u32 2147483647, %v5240_v42 }
0x1250   :  { %v5021_v50 = vmul.f32 %v15142_v20, %v5020_v16 }
0x1251   :  { %v5253_v32 = vor.u32 1.1754944e-38, %v5252_v27  ;;  %vm5251_vm4 = vcmp.eq.f32.partialorder %v5250_v11, 8.507059e+37 }
0x1252   :  { %v5022_v2 = vadd.f32 %v15142_v20, %v5021_v50 }
0x1254   :  { %v5026_v35 = vsel %vm5025_vm14, %v15142_v20, %v5022_v2  ;;  %v16868_v2 = vand.u32 4294901760, %v138_v57 }
0x1255   :  { %v5031_v1 = vsel %vm5028_vm15, %v5030_v5, %v5026_v35  ;;  %v15146_v26 = vpop.eup %15145 }
0x1256   :  { %v5242_v29 = vmul.f32 %v15146_v26, %v5240_v42  ;;  %vm5247_vm1 = vweird.f32 %v15146_v26  ;;  %v5034_v63 = vmul.f32 %v5031_v1, %v16720_v24  ;;  %v16886_v9 = vsub.f32 %v138_v57, %v16868_v2 }
0x1257   :  { %vm5248_vm3 = vmor %vm5246_vm2, %vm5247_vm1 }
0x1258   :  { %v5243_v46 = vsub.f32 1.0, %v5242_v29 }
0x125a   :  { %v5244_v34 = vmul.f32 %v15146_v26, %v5243_v46 }
0x125c   :  { %v5245_v55 = vadd.f32 %v15146_v26, %v5244_v34 }
0x125e   :  { %v5249_v58 = vsel %vm5248_vm3, %v15146_v26, %v5245_v55 }
0x125f   :  { %v5254_v53 = vsel %vm5251_vm4, %v5253_v32, %v5249_v58 }
0x1260   :  { %v5257_v17 = vmul.f32 %v5254_v53, %v16725_v0  ;;  %v140_v0 = vld [vmem:[#allocation4 + $0x10] sm:$0xff] }
0x1261   :  { %v16851_v56 = vand.u32 4294901760, %v140_v0 }
0x1263   :  { %v16863_v16 = vsub.f32 %v140_v0, %v16851_v56 }
0x1265   :  { %v5757_v5 = vand.u32 4294901760, %v16863_v16 }
0x1267   :  { %v5758_v29 = vsub.f32 %v16863_v16, %v5757_v5 }
0x1290   :  { %v5037_v51 = vpop.permute.xlu2 %5036 }
0x1291   :  { %v5039_v13 = vmul.f32 %v5037_v51, %v5031_v1 }
0x1293   :  { %5041 = vrot.lane.b32.xlu1 %v5039_v13, %s15558_s16  ;;  %v5763_v13 = vand.u32 4294901760, %v16871_v33 }
0x1295   :  { %v5764_v55 = vsub.f32 %v16871_v33, %v5763_v13 }
0x12b4   :  { %v5260_v22 = vpop.permute.xlu1 %5259 }
0x12b5   :  { %v5262_v59 = vmul.f32 %v5260_v22, %v5254_v53 }
0x12b7   :  { %5264 = vrot.lane.b32.xlu0 %v5262_v59, %s15558_s16 }
0x1305   :  { %v5042_v36 = vpop.permute.xlu1 %5041 }
0x1306   :  { %v16838_v43 = vadd.f32 %v5042_v36, %v5034_v63 }
0x1308   :  { %15147 = vtanh.f32 %v16838_v43 }
0x130e   :  { %v15148_v10 = vpop.eup %15147 }
0x130f   :  { %5047 = vrot.lane.b32.xlu0 %v15148_v10, %s15557_s20 }
0x1329   :  { %v5265_v44 = vpop.permute.xlu0 %5264 }
0x132a   :  { %v5267_v19 = vadd.f32 %v5265_v44, %v5257_v17 }
0x132c   :  { %15149 = vtanh.f32 %v5267_v19 }
0x1332   :  { %v15150_v25 = vpop.eup %15149 }
0x1333   :  { %5270 = vrot.lane.b32.xlu2 %v15150_v25, %s15557_s20 }
0x1381   :  { %v5048_v40 = vpop.permute.xlu0 %5047 }
0x1382   :  { %v5050_v45 = vmul.f32 %v5048_v40, %v5031_v1  ;;  %v5752_v1 = vsub.f32 %v16854_v61, %v5751_v48 }
0x1384   :  { %5465 = vrot.lane.b32.xlu2 %v5050_v45, %s15558_s16  ;;  %v5753_v34 = vand.u32 4294901760, %v5752_v1 }
0x138d   :  { %v5271_v24 = vpop.permute.xlu2 %5270 }
0x138e   :  { %v5273_v52 = vmul.f32 %v5271_v24, %v5254_v53 }
0x1390   :  { %5275 = vrot.lane.b32.xlu1 %v5273_v52, %s15558_s16 }
0x13de   :  { %v5466_v60 = vpop.permute.xlu2 %5465 }
0x13df   :  { %v5467_v7 = vsel %vm562_vm5, %v5466_v60, 0 }
0x13e0   :  { %v16849_v49 = vand.u32 4294901760, %v5467_v7 }
0x13e2   :  { %v16859_v41 = vsub.f32 %v5467_v7, %v16849_v49 }
0x13e4   :  { %v5491_v21 = vand.u32 4294901760, %v16859_v41 }
0x13e6   :  { %v5492_v42 = vsub.f32 %v16859_v41, %v5491_v21 }
0x13e8   :  { %v5493_v27 = vand.u32 4294901760, %v5492_v42 }
0x1402   :  { %v5276_v20 = vpop.permute.xlu1 %5275 }
0x1403   :  { %v5277_v6 = vsel %vm562_vm5, %v5276_v20, 0 }
0x1404   :  { %v16865_v50 = vand.u32 4294901760, %v5277_v6 }
0x1406   :  { %v16875_v35 = vsub.f32 %v5277_v6, %v16865_v50  ;;  %5345 = vmatmul.f32.vlgmr.msrb.gmra.mxu1 %v16865_v50 }
0x1407   :  { %5582 = vmatpush.msrb.mxu1 %v15889_v15 }
0x1408   :  { %v5301_v51 = vand.u32 4294901760, %v16875_v35  ;;  %5375 = vmatmul.f32.vlgmr.msra.gmra.mxu2 %v16875_v35 }
0x1409   :  { %5584 = vmatpush.msrb.mxu1 %v15891_v39  ;;  %5611 = vmatpush.msra.mxu2 %v15925_v3  ;;  %v5769_v3 = vand.u32 4294901760, %v16886_v9 }
0x140a   :  { %v5302_v26 = vsub.f32 %v16875_v35, %v5301_v51  ;;  %5402 = vmatmul.f32.vlgmr.msra.gmra.mxu3 %v5301_v51 }
0x140b   :  { %5586 = vmatpush.msrb.mxu1 %v15893_v14  ;;  %5615 = vmatpush.msra.mxu2 %v15928_v30  ;;  %v5759_v30 = vand.u32 4294901760, %v5758_v29 }
0x140c   :  { %v5303_v46 = vand.u32 4294901760, %v5302_v26  ;;  %5642 = vmatpush.msra.mxu3 %v15889_v15  ;;  %v5770_v15 = vsub.f32 %v16886_v9, %v5769_v3 }
0x140d   :  { %5588 = vmatpush.msrb.mxu1 %v15903_v23  ;;  %5619 = vmatpush.msra.mxu2 %v15943_v37  ;;  %v5765_v37 = vand.u32 4294901760, %v5764_v55 }
0x140e   :  { %5304 = vmatmul.f32.vlgmr.msrb.gmra.mxu0 %v5303_v46  ;;  %5460 = vmatmul.f32.vlgmr.msra.gmra.mxu1 %v16865_v50 }
0x140f   :  { %5644 = vmatpush.msra.mxu3 %v15891_v39  ;;  %5553 = vmatpush.msrb.mxu0 %v15908_v38  ;;  %v5771_v39 = vand.u32 4294901760, %v5770_v15 }
0x1410   :  { %5494 = vmatmul.f32.vlgmr.msrb.gmra.mxu2 %v5493_v27  ;;  %5754 = vmatpush.msra.mxu1 %v5753_v34 }
0x1411   :  { %5623 = vmatpush.msra.mxu2 %v15952_v28  ;;  %5646 = vmatpush.msra.mxu3 %v15893_v14 }
0x1412   :  { %5535 = vmatmul.f32.vlgmr.msrb.gmra.mxu3 %v16849_v49  ;;  %5556 = vmatpush.msrb.mxu0 %v15911_v8 }
0x1413   :  { %5648 = vmatpush.msra.mxu3 %v15903_v23  ;;  %5760 = vmatpush.msra.mxu1 %v5759_v30 }
0x1414   :  { %5796 = vmatpush.msrb.mxu2 %v16854_v61  ;;  %5559 = vmatpush.msrb.mxu0 %v15915_v4 }
0x1415   :  { %5766 = vmatpush.msra.mxu1 %v5765_v37  ;;  %5830 = vmatpush.msrb.mxu3 %v16847_v18 }
0x1416   :  { %5435 = vmatmul.f32.vlgmr.msra.gmra.mxu0 %v16865_v50  ;;  %5592 = vmatmul.f32.vlgmr.msrb.gmra.mxu1 %v5491_v21 }
0x1417   :  { %5799 = vmatpush.msrb.mxu2 %v16863_v16  ;;  %5562 = vmatpush.msrb.mxu0 %v15932_v31 }
0x1418   :  { %5625 = vmatmul.f32.vlgmr.msra.gmra.mxu2 %v16849_v49  ;;  %5772 = vmatpush.msra.mxu1 %v5771_v39 }
0x1419   :  { %5802 = vmatpush.msrb.mxu2 %v16871_v33  ;;  %5832 = vmatpush.msrb.mxu3 %v16851_v56 }
0x141a   :  { %5650 = vmatmul.f32.vlgmr.msra.gmra.mxu3 %v16849_v49  ;;  %5713 = vmatpush.msra.mxu0 %v16847_v18 }
0x141b   :  { %5805 = vmatpush.msrb.mxu2 %v16886_v9  ;;  %5834 = vmatpush.msrb.mxu3 %v16856_v12  ;;  %v142_v9 = vld [vmem:[#allocation6] sm:$0xff] }
0x141c   :  { %5715 = vmatpush.msra.mxu0 %v16851_v56  ;;  %5900 = vmatpush.msrb.mxu1 %v16847_v18 }
0x141d   :  { %5836 = vmatpush.msrb.mxu3 %v16868_v2 }
0x141e   :  { %5565 = vmatmul.f32.vlgmr.msrb.gmra.mxu0 %v16859_v41  ;;  %5774 = vmatmul.f32.vlgmr.msra.gmra.mxu1 %v16865_v50 }
0x141f   :  { %5717 = vmatpush.msra.mxu0 %v16856_v12  ;;  %5902 = vmatpush.msrb.mxu1 %v16851_v56 }
0x1420   :  { %5808 = vmatmul.f32.vlgmr.msrb.gmra.mxu2 %v16875_v35 }
0x1421   :  { %5719 = vmatpush.msra.mxu0 %v16868_v2  ;;  %5904 = vmatpush.msrb.mxu1 %v16856_v12 }
0x1422   :  { %5840 = vmatmul.f32.vlgmr.msrb.gmra.mxu3 %v5301_v51  ;;  %v143_v51 = vld [vmem:[#allocation6 + $0x8] sm:$0xff] }
0x1423   :  { %5865 = vmatpush.msrb.mxu0 %v5751_v48  ;;  %5906 = vmatpush.msrb.mxu1 %v16868_v2  ;;  %v16946_v1 = vand.u32 4294901760, %v143_v51 }
0x1425   :  { %5869 = vmatpush.msrb.mxu0 %v5757_v5  ;;  %5933 = vmatpush.msra.mxu2 %v16946_v1 }
0x1426   :  { %5725 = vmatmul.f32.vlgmr.msra.gmra.mxu0 %v5303_v46  ;;  %6069 = vmatpush.msra.mxu1 %v16946_v1 }
0x1427   :  { %5873 = vmatpush.msrb.mxu0 %v5763_v13  ;;  %v16950_v13 = vsub.f32 %v143_v51, %v16946_v1 }
0x1429   :  { %5877 = vmatpush.msrb.mxu0 %v5769_v3  ;;  %v16956_v42 = vand.u32 4294901760, %v16950_v13 }
0x142b   :  { %v5962_v29 = vsub.f32 %v16950_v13, %v16956_v42  ;;  %6044 = vmatpush.msra.mxu0 %v16956_v42 }
0x142d   :  { %v16971_v34 = vand.u32 4294901760, %v5962_v29 }
0x142f   :  { %5964 = vmatpush.msra.mxu3 %v16971_v34 }
0x1483   :  { %v5346_v14 = vpop.f32.mrf.mxu1 }
0x148b   :  { %v5305_v23 = vpop.f32.mrf.mxu0  ;;  %v5376_v38 = vpop.f32.mrf.mxu2 }
0x148c   :  { %v5306_v4 = vadd.f32 %v16823_v47, %v5305_v23  ;;  %v5461_v28 = vpop.f32.mrf.mxu1 }
0x148d   :  { %v5403_v8 = vpop.f32.mrf.mxu3 }
0x148e   :  { %v5347_v31 = vadd.f32 %v5346_v14, %v5306_v4 }
0x1490   :  { %v5377_v32 = vadd.f32 %v5376_v38, %v5347_v31  ;;  %v18354_v38 = vmov 0.0  }
0x1492   :  { %v5404_v53 = vadd.f32 %v5403_v8, %v5377_v32 }
0x1493   :  { %v5436_v11 = vpop.f32.mrf.mxu0  ;;  %v5495_v58 = vpop.f32.mrf.mxu2 }
0x1494   :  { %v5593_v10 = vpop.f32.mrf.mxu1  ;;  %v5437_v17 = vadd.f32 %v5436_v11, %v5404_v53 }
0x1495   :  { %v5536_v22 = vpop.f32.mrf.mxu3 }
0x1496   :  { %v5537_v59 = vadd.f32 %v5536_v22, %v5495_v58  ;;  %v5462_v45 = vadd.f32 %v5461_v28, %v5437_v17  ;;  %v17002_v22 = vld [vmem:[%s18092_s9] ss:$0 sm:$0xff]  ;;  %s15559_s9 = smov 96  }
0x149b   :  { %v5566_v63 = vpop.f32.mrf.mxu0  ;;  %v5626_v19 = vpop.f32.mrf.mxu2 }
0x149c   :  { %v5567_v36 = vadd.f32 %v5566_v63, %v5537_v59  ;;  %v5775_v8 = vpop.f32.mrf.mxu1 }
0x149d   :  { %v5651_v40 = vpop.f32.mrf.mxu3 }
0x149e   :  { %v5594_v44 = vadd.f32 %v5593_v10, %v5567_v36 }
0x14a0   :  { %v5627_v25 = vadd.f32 %v5626_v19, %v5594_v44 }
0x14a2   :  { %v5652_v24 = vadd.f32 %v5651_v40, %v5627_v25 }
0x14a3   :  { %v5726_v4 = vpop.f32.mrf.mxu0  ;;  %v5809_v31 = vpop.f32.mrf.mxu2 }
0x14a4   :  { %v5654_v52 = vadd.f32 %v5652_v24, %v5462_v45  ;;  %v5727_v36 = vadd.f32 %v17002_v22, %v5726_v4 }
0x14a5   :  { %v5841_v28 = vpop.f32.mrf.mxu3 }
0x14a6   :  { %15151 = vtanh.f32 %v5654_v52  ;;  %v14981_v60 = vmul.f32 -1.442695, %v5654_v52  ;;  %v5776_v17 = vadd.f32 %v5775_v8, %v5727_v36  ;;  %v145_v8 = vld [vmem:[#allocation7] sm:$0xff] }
0x14a8   :  { %15153 = vpow2.f32 %v14981_v60  ;;  %v5810_v40 = vadd.f32 %v5809_v31, %v5776_v17  ;;  %v17024_v31 = vand.u32 4294901760, %v145_v8 }
0x14ac   :  { %v15152_v47 = vpop.eup %15151 }
0x14ad   :  { %5677 = vrot.lane.b32.xlu0 %v15152_v47, %s15557_s20  ;;  %v5842_v47 = vadd.f32 %v5841_v28, %v5810_v40 }
0x14ae   :  { %v15154_v62 = vpop.eup %15153 }
0x14af   :  { %v5658_v7 = vadd.f32 1.0, %v15154_v62 }
0x14b1   :  { %15155 = vrcp.f32 %v5658_v7  ;;  %v5670_v61 = vand.u32 2147483648, %v5658_v7  ;;  %vm5664_vm7 = vweird.f32 %v5658_v7  ;;  %v5668_v12 = vand.u32 2147483647, %v5658_v7 }
0x14b3   :  { %v5671_v41 = vor.u32 1.1754944e-38, %v5670_v61  ;;  %vm5669_vm9 = vcmp.eq.f32.partialorder %v5668_v12, 8.507059e+37 }
0x14b7   :  { %v15156_v18 = vpop.eup %15155 }
0x14b8   :  { %v5660_v0 = vmul.f32 %v15156_v18, %v5658_v7  ;;  %vm5665_vm6 = vweird.f32 %v15156_v18 }
0x14b9   :  { %vm5666_vm8 = vmor %vm5664_vm7, %vm5665_vm6 }
0x14ba   :  { %v5661_v49 = vsub.f32 1.0, %v5660_v0 }
0x14bc   :  { %v5662_v54 = vmul.f32 %v15156_v18, %v5661_v49 }
0x14be   :  { %v5663_v56 = vadd.f32 %v15156_v18, %v5662_v54 }
0x14c0   :  { %v5667_v57 = vsel %vm5666_vm8, %v15156_v18, %v5663_v56 }
0x14c1   :  { %v5672_v6 = vsel %vm5669_vm9, %v5671_v41, %v5667_v57 }
0x14c2   :  { %v5675_v48 = vmul.f32 %v5672_v6, %v16838_v43  ;;  %v16952_v43 = vand.u32 4294901760, %v142_v9 }
0x14c4   :  { %5935 = vmatpush.msra.mxu2 %v16952_v43  ;;  %v16960_v26 = vsub.f32 %v142_v9, %v16952_v43  ;;  %6071 = vmatpush.msra.mxu1 %v16952_v43 }
0x14c6   :  { %5992 = vmatpush.msrb.mxu2 %v16950_v13  ;;  %v16967_v46 = vand.u32 4294901760, %v16960_v26 }
0x14c8   :  { %5995 = vmatpush.msrb.mxu2 %v16960_v26  ;;  %v5968_v3 = vsub.f32 %v16960_v26, %v16967_v46  ;;  %6048 = vmatpush.msra.mxu0 %v16967_v46 }
0x14ca   :  { %v16977_v55 = vand.u32 4294901760, %v5968_v3 }
0x14cc   :  { %5970 = vmatpush.msra.mxu3 %v16977_v55 }
0x14ce   :  { %6017 = vmatpush.msrb.mxu3 %v16946_v1 }
0x14d0   :  { %6019 = vmatpush.msrb.mxu3 %v16952_v43 }
0x151f   :  { %v5678_v20 = vpop.permute.xlu0 %5677 }
0x1520   :  { %v5680_v16 = vmul.f32 %v5678_v20, %v5672_v6 }
0x1522   :  { %5682 = vrot.lane.b32.xlu1 %v5680_v16, %s15558_s16 }
0x1594   :  { %v5683_v2 = vpop.permute.xlu1 %5682 }
0x1595   :  { %v5685_v33 = vadd.f32 %v5683_v2, %v5675_v48 }
0x1597   :  { %15157 = vtanh.f32 %v5685_v33 }
0x159d   :  { %v15158_v21 = vpop.eup %15157 }
0x159e   :  { %5688 = vrot.lane.b32.xlu2 %v15158_v21, %s15557_s20 }
0x15f8   :  { %v5689_v35 = vpop.permute.xlu2 %5688 }
0x15f9   :  { %v5691_v5 = vmul.f32 %v5689_v35, %v5672_v6 }
0x15fb   :  { %5696 = vrot.lane.b32.xlu0 %v5691_v5, %s15558_s16 }
0x166d   :  { %v5697_v27 = vpop.permute.xlu0 %5696 }
0x166e   :  { %v5698_v30 = vsel %vm562_vm5, %v5697_v27, 0 }
0x166f   :  { %v5728_v15 = vand.u32 4294901760, %v5698_v30 }
0x1671   :  { %v5729_v37 = vsub.f32 %v5698_v30, %v5728_v15  ;;  %5778 = vmatmul.f32.gmra.mxu1 %v5728_v15 }
0x1673   :  { %5813 = vmatmul.f32.gmra.mxu2 %v5729_v37  ;;  %v5730_v39 = vand.u32 4294901760, %v5729_v37 }
0x1675   :  { %5846 = vmatmul.f32.gmra.mxu3 %v5730_v39  ;;  %v5731_v14 = vsub.f32 %v5729_v37, %v5730_v39 }
0x1677   :  { %v5732_v23 = vand.u32 4294901760, %v5731_v14  ;;  %v146_v14 = vld [vmem:[#allocation7 + $0x8] sm:$0xff] }
0x1679   :  { %5733 = vmatmul.f32.gmra.mxu0 %v5732_v23  ;;  %5908 = vmatmul.f32.vlgmr.msrb.gmra.mxu1 %v16865_v50  ;;  %v17019_v23 = vand.u32 4294901760, %v146_v14 }
0x167b   :  { %5941 = vmatmul.f32.vlgmr.msra.gmra.mxu2 %v18354_v38  ;;  %v17022_v4 = vsub.f32 %v146_v14, %v17019_v23  ;;  %6222 = vmatpush.msrb.mxu1 %v17019_v23 }
0x167c   :  { %6138 = vmatpush.msra.mxu2 %v17019_v23 }
0x167d   :  { %5972 = vmatmul.f32.vlgmr.msra.gmra.mxu3 %v18354_v38  ;;  %v17029_v28 = vand.u32 4294901760, %v17022_v4  ;;  %6224 = vmatpush.msrb.mxu1 %v17024_v31 }
0x167e   :  { %6140 = vmatpush.msra.mxu2 %v17024_v31 }
0x1681   :  { %5879 = vmatmul.f32.vlgmr.msrb.gmra.mxu0 %v16865_v50  ;;  %5912 = vmatmul.f32.gmra.mxu1 %v5728_v15 }
0x1682   :  { %6197 = vmatpush.msrb.mxu0 %v17022_v4 }
0x1683   :  { %5998 = vmatmul.f32.vlgmr.msrb.gmra.mxu2 %v18354_v38 }
0x1684   :  { %6249 = vmatpush.msrb.mxu2 %v17029_v28 }
0x1685   :  { %6023 = vmatmul.f32.vlgmr.msrb.gmra.mxu3 %v18354_v38 }
0x1689   :  { %5883 = vmatmul.f32.gmra.mxu0 %v5728_v15  ;;  %6073 = vmatmul.f32.vlgmr.msra.gmra.mxu1 %v18354_v38 }
0x1691   :  { %6050 = vmatmul.f32.vlgmr.msra.gmra.mxu0 %v18354_v38 }
0x16ee   :  { %v16991_v11 = vpop.f32.mrf.mxu1 }
0x16f6   :  { %v16993_v58 = vpop.f32.mrf.mxu0  ;;  %v16995_v32 = vpop.f32.mrf.mxu2 }
0x16f7   :  { %v5909_v53 = vpop.f32.mrf.mxu1 }
0x16f8   :  { %v16997_v50 = vpop.f32.mrf.mxu3 }
0x16fe   :  { %v5880_v59 = vpop.f32.mrf.mxu0  ;;  %v5942_v63 = vpop.f32.mrf.mxu2 }
0x16ff   :  { %v17005_v44 = vpop.f32.mrf.mxu1  ;;  %v5881_v60 = vadd.f32 %v5880_v59, %v5842_v47  ;;  %v6167_v59 = vsub.f32 %v17022_v4, %v17029_v28 }
0x1700   :  { %v5973_v10 = vpop.f32.mrf.mxu3 }
0x1701   :  { %v5974_v45 = vadd.f32 %v5973_v10, %v5942_v63  ;;  %v17009_v49 = vadd.f32 %v5909_v53, %v5881_v60  ;;  %v17032_v53 = vsub.f32 %v145_v8, %v17024_v31  ;;  %v17044_v36 = vand.u32 4294901760, %v6167_v59 }
0x1702   :  { %v5735_v8 = vadd.f32 %v17002_v22, %v16993_v58 }
0x1703   :  { %v17040_v63 = vand.u32 4294901760, %v17032_v53  ;;  %6200 = vmatpush.msrb.mxu0 %v17032_v53  ;;  %6169 = vmatpush.msra.mxu3 %v17044_v36 }
0x1705   :  { %v6173_v10 = vsub.f32 %v17032_v53, %v17040_v63  ;;  %6253 = vmatpush.msrb.mxu2 %v17040_v63 }
0x1706   :  { %v17007_v19 = vpop.f32.mrf.mxu0  ;;  %v5999_v25 = vpop.f32.mrf.mxu2 }
0x1707   :  { %v6000_v24 = vadd.f32 %v5999_v25, %v5974_v45  ;;  %v6074_v18 = vpop.f32.mrf.mxu1  ;;  %v17050_v17 = vand.u32 4294901760, %v6173_v10  ;;  %v148_v25 = vld [vmem:[#allocation9 + $0x8] sm:$0xff]  ;;  %v147_v45 = vld [vmem:[#allocation9] sm:$0xff] }
0x1708   :  { %v6024_v52 = vpop.f32.mrf.mxu3  ;;  %v17053_v40 = vand.u32 4294901760, %v148_v25 }
0x1709   :  { %v6025_v62 = vadd.f32 %v6024_v52, %v6000_v24  ;;  %6175 = vmatpush.msra.mxu3 %v17050_v17  ;;  %v17057_v24 = vand.u32 4294901760, %v147_v45 }
0x170a   :  { %6297 = vmatpush.msra.mxu0 %v17053_v40  ;;  %v17060_v52 = vsub.f32 %v148_v25, %v17053_v40 }
0x170b   :  { %6274 = vmatpush.msrb.mxu3 %v17019_v23  ;;  %v17068_v60 = vsub.f32 %v147_v45, %v17057_v24 }
0x170c   :  { %6299 = vmatpush.msra.mxu0 %v17057_v24  ;;  %v17065_v47 = vand.u32 4294901760, %v17060_v52 }
0x170d   :  { %6276 = vmatpush.msrb.mxu3 %v17024_v31 }
0x170e   :  { %v6051_v7 = vpop.f32.mrf.mxu0 }
0x170f   :  { %v6052_v0 = vadd.f32 %v6051_v7, %v6025_v62  ;;  %v6326_v62 = vsub.f32 %v17060_v52, %v17065_v47  ;;  %v17073_v7 = vand.u32 4294901760, %v17068_v60 }
0x1711   :  { %v6075_v54 = vadd.f32 %v6074_v18, %v6052_v0  ;;  %v17075_v18 = vand.u32 4294901760, %v6326_v62  ;;  %v6332_v0 = vsub.f32 %v17068_v60, %v17073_v7  ;;  %v5780_v62 = vadd.f32 %v16991_v11, %v5735_v8 }
0x1713   :  { %v6077_v56 = vadd.f32 %v6075_v54, %v17009_v49  ;;  %6328 = vmatpush.msra.mxu1 %v17075_v18  ;;  %v17080_v54 = vand.u32 4294901760, %v6332_v0 }
0x1715   :  { %15159 = vtanh.f32 %v6077_v56  ;;  %v14982_v12 = vmul.f32 -1.442695, %v6077_v56  ;;  %6334 = vmatpush.msra.mxu1 %v17080_v54 }
0x1717   :  { %15161 = vpow2.f32 %v14982_v12 }
0x171b   :  { %v15160_v61 = vpop.eup %15159 }
0x171c   :  { %6100 = vrot.lane.b32.xlu1 %v15160_v61, %s15559_s9 }
0x171d   :  { %v15162_v57 = vpop.eup %15161 }
0x171e   :  { %v6081_v41 = vadd.f32 1.0, %v15162_v57 }
0x1720   :  { %15163 = vrcp.f32 %v6081_v41  ;;  %v6093_v33 = vand.u32 2147483648, %v6081_v41  ;;  %vm6087_vm10 = vweird.f32 %v6081_v41  ;;  %v6091_v21 = vand.u32 2147483647, %v6081_v41 }
0x1722   :  { %v6094_v5 = vor.u32 1.1754944e-38, %v6093_v33  ;;  %vm6092_vm12 = vcmp.eq.f32.partialorder %v6091_v21, 8.507059e+37 }
0x1726   :  { %v15164_v20 = vpop.eup %15163 }
0x1727   :  { %v6083_v6 = vmul.f32 %v15164_v20, %v6081_v41  ;;  %vm6088_vm5 = vweird.f32 %v15164_v20 }
0x1728   :  { %vm6089_vm11 = vmor %vm6087_vm10, %vm6088_vm5 }
0x1729   :  { %v6084_v16 = vsub.f32 1.0, %v6083_v6 }
0x172b   :  { %v6085_v48 = vmul.f32 %v15164_v20, %v6084_v16 }
0x172d   :  { %v6086_v2 = vadd.f32 %v15164_v20, %v6085_v48  ;;  %v17129_v48 = vld [vmem:[%s18095_s12] ss:$0 sm:$0xff] }
0x172f   :  { %v6090_v35 = vsel %vm6089_vm11, %v15164_v20, %v6086_v2 }
0x1730   :  { %v6095_v9 = vsel %vm6092_vm12, %v6094_v5, %v6090_v35 }
0x1731   :  { %v6098_v3 = vmul.f32 0.0, %v6095_v9 }
0x178e   :  { %v6101_v51 = vpop.permute.xlu1 %6100 }
0x178f   :  { %v6103_v29 = vmul.f32 %v6101_v51, %v6095_v9 }
0x1791   :  { %6105 = vrot.lane.b32.xlu2 %v6103_v29, %s15560_s2 }
0x17eb   :  { %v6106_v27 = vpop.permute.xlu2 %6105 }
0x17ec   :  { %v17014_v30 = vadd.f32 %v6106_v27, %v6098_v3 }
0x17ee   :  { %15165 = vtanh.f32 %v17014_v30 }
0x17f4   :  { %v15166_v15 = vpop.eup %15165 }
0x17f5   :  { %6111 = vrot.lane.b32.xlu0 %v15166_v15, %s15558_s16 }
0x1867   :  { %v6112_v37 = vpop.permute.xlu0 %6111 }
0x1868   :  { %v6114_v39 = vmul.f32 %v6112_v37, %v6095_v9 }
0x186a   :  { %6119 = vrot.lane.b32.xlu1 %v6114_v39, %s15561_s15 }
0x18dc   :  { %v6120_v56 = vpop.permute.xlu1 %6119 }
0x18dd   :  { %v6121_v61 = vsel %vm161_vm0, %v6120_v56, 0 }
0x18de   :  { %v6141_v12 = vand.u32 4294901760, %v6121_v61 }
0x18e0   :  { %v6142_v57 = vsub.f32 %v6121_v61, %v6141_v12  ;;  %6177 = vmatmul.f32.vlgmr.msra.gmra.mxu3 %v6141_v12 }
0x18e1   :  { %6381 = vmatpush.msra.mxu3 %v17053_v40 }
0x18e2   :  { %v6143_v41 = vand.u32 4294901760, %v6142_v57  ;;  %6203 = vmatmul.f32.vlgmr.msrb.gmra.mxu0 %v6142_v57 }
0x18e3   :  { %6383 = vmatpush.msra.mxu3 %v17057_v24  ;;  %6408 = vmatpush.msrb.mxu0 %v17065_v47 }
0x18e4   :  { %v6144_v20 = vsub.f32 %v6142_v57, %v6143_v41  ;;  %6228 = vmatmul.f32.vlgmr.msrb.gmra.mxu1 %v6143_v41 }
0x18e5   :  { %6412 = vmatpush.msrb.mxu0 %v17073_v7  ;;  %6433 = vmatpush.msrb.mxu1 %v17053_v40 }
0x18e6   :  { %v6145_v6 = vand.u32 4294901760, %v6144_v20 }
0x18e7   :  { %6435 = vmatpush.msrb.mxu1 %v17057_v24 }
0x18e8   :  { %6146 = vmatmul.f32.vlgmr.msra.gmra.mxu2 %v6145_v6  ;;  %6278 = vmatmul.f32.vlgmr.msrb.gmra.mxu3 %v6141_v12 }
0x18e9   :  { %6356 = vmatpush.msra.mxu2 %v17060_v52  ;;  %6530 = vmatpush.msrb.mxu3 %v16971_v34 }
0x18ea   :  { %6305 = vmatmul.f32.vlgmr.msra.gmra.mxu0 %v18354_v38 }
0x18eb   :  { %6359 = vmatpush.msra.mxu2 %v17068_v60  ;;  %6536 = vmatpush.msrb.mxu3 %v16977_v55 }
0x18ec   :  { %6336 = vmatmul.f32.vlgmr.msra.gmra.mxu1 %v18354_v38  ;;  %6558 = vmatpush.msra.mxu0 %v16950_v13 }
0x18ed   :  { %6583 = vmatpush.msra.mxu1 %v16946_v1 }
0x18ee   :  { %6561 = vmatpush.msra.mxu0 %v16960_v26 }
0x18ef   :  { %6585 = vmatpush.msra.mxu1 %v16952_v43 }
0x18f0   :  { %6255 = vmatmul.f32.vlgmr.msrb.gmra.mxu2 %v6141_v12  ;;  %6387 = vmatmul.f32.vlgmr.msra.gmra.mxu3 %v18354_v38 }
0x18f1   :  { %6499 = vmatpush.msrb.mxu2 %v16946_v1  ;;  %6635 = vmatpush.msra.mxu3 %v16946_v1 }
0x18f2   :  { %6414 = vmatmul.f32.vlgmr.msrb.gmra.mxu0 %v18354_v38 }
0x18f3   :  { %6501 = vmatpush.msrb.mxu2 %v16952_v43  ;;  %6637 = vmatpush.msra.mxu3 %v16952_v43 }
0x18f4   :  { %6437 = vmatmul.f32.vlgmr.msrb.gmra.mxu1 %v18354_v38  ;;  %6701 = vmatpush.msrb.mxu0 %v17019_v23 }
0x18f5   :  { %6732 = vmatpush.msrb.mxu1 %v17044_v36 }
0x18f6   :  { %6703 = vmatpush.msrb.mxu0 %v17024_v31 }
0x18f7   :  { %6738 = vmatpush.msrb.mxu1 %v17050_v17 }
0x18f8   :  { %6362 = vmatmul.f32.vlgmr.msra.gmra.mxu2 %v18354_v38  ;;  %6538 = vmatmul.f32.vlgmr.msrb.gmra.mxu3 %v6141_v12 }
0x18f9   :  { %6610 = vmatpush.msra.mxu2 %v16956_v42  ;;  %6785 = vmatpush.msrb.mxu3 %v17019_v23 }
0x18fa   :  { %6564 = vmatmul.f32.vlgmr.msra.gmra.mxu0 %v6142_v57 }
0x18fb   :  { %6614 = vmatpush.msra.mxu2 %v16967_v46  ;;  %6787 = vmatpush.msrb.mxu3 %v17024_v31 }
0x18fc   :  { %6589 = vmatmul.f32.vlgmr.msra.gmra.mxu1 %v6143_v41  ;;  %6812 = vmatpush.msra.mxu0 %v17029_v28  ;;  %v5815_v41 = vadd.f32 %v16995_v32, %v5780_v62 }
0x18fd   :  { %6837 = vmatpush.msra.mxu1 %v17019_v23 }
0x18fe   :  { %6816 = vmatpush.msra.mxu0 %v17040_v63  ;;  %v5848_v58 = vadd.f32 %v16997_v50, %v5815_v41 }
0x18ff   :  { %6839 = vmatpush.msra.mxu1 %v17024_v31 }
0x1900   :  { %6507 = vmatmul.f32.vlgmr.msrb.gmra.mxu2 %v6145_v6  ;;  %6639 = vmatmul.f32.vlgmr.msra.gmra.mxu3 %v6141_v12 }
0x1901   :  { %6760 = vmatpush.msrb.mxu2 %v17022_v4  ;;  %6893 = vmatpush.msra.mxu3 %v17075_v18 }
0x1903   :  { %6763 = vmatpush.msrb.mxu2 %v17032_v53  ;;  %6899 = vmatpush.msra.mxu3 %v17080_v54 }
0x1908   :  { %6616 = vmatmul.f32.vlgmr.msra.gmra.mxu2 %v6141_v12 }
0x1909   :  { %6862 = vmatpush.msra.mxu2 %v17053_v40 }
0x190b   :  { %6864 = vmatpush.msra.mxu2 %v17057_v24 }
0x195f   :  { %v6204_v16 = vpop.f32.mrf.mxu0 }
0x1961   :  { %v6229_v2 = vpop.f32.mrf.mxu1 }
0x1963   :  { %v6178_v38 = vpop.f32.mrf.mxu3 }
0x1967   :  { %v6306_v5 = vpop.f32.mrf.mxu0 }
0x1969   :  { %v6337_v29 = vpop.f32.mrf.mxu1 }
0x196a   :  { %v6338_v15 = vadd.f32 %v6337_v29, %v6306_v5 }
0x196b   :  { %v6147_v33 = vpop.f32.mrf.mxu2  ;;  %v6279_v35 = vpop.f32.mrf.mxu3 }
0x196c   :  { %v6148_v21 = vadd.f32 %v17129_v48, %v6147_v33 }
0x196e   :  { %v6179_v51 = vadd.f32 %v6178_v38, %v6148_v21 }
0x196f   :  { %v6415_v39 = vpop.f32.mrf.mxu0 }
0x1970   :  { %v6205_v3 = vadd.f32 %v6204_v16, %v6179_v51 }
0x1971   :  { %v6438_v45 = vpop.f32.mrf.mxu1 }
0x1972   :  { %v6230_v37 = vadd.f32 %v6229_v2, %v6205_v3  ;;  %v5885_v2 = vadd.f32 %v17007_v19, %v5848_v58 }
0x1973   :  { %v6256_v9 = vpop.f32.mrf.mxu2  ;;  %v6388_v27 = vpop.f32.mrf.mxu3 }
0x1974   :  { %v6257_v10 = vadd.f32 %v6256_v9, %v6230_v37  ;;  %v17140_v51 = vadd.f32 %v17005_v44, %v5885_v2 }
0x1976   :  { %v6280_v56 = vadd.f32 %v6279_v35, %v6257_v10 }
0x1977   :  { %v6565_v38 = vpop.f32.mrf.mxu0 }
0x1979   :  { %v6590_v22 = vpop.f32.mrf.mxu1 }
0x197b   :  { %v6363_v14 = vpop.f32.mrf.mxu2  ;;  %v6539_v12 = vpop.f32.mrf.mxu3 }
0x197c   :  { %v6364_v59 = vadd.f32 %v6363_v14, %v6338_v15 }
0x197e   :  { %v6389_v25 = vadd.f32 %v6388_v27, %v6364_v59 }
0x1980   :  { %v6416_v0 = vadd.f32 %v6415_v39, %v6389_v25 }
0x1982   :  { %v6439_v61 = vadd.f32 %v6438_v45, %v6416_v0 }
0x1983   :  { %v6508_v57 = vpop.f32.mrf.mxu2  ;;  %v6640_v35 = vpop.f32.mrf.mxu3 }
0x1984   :  { %v6441_v20 = vadd.f32 %v6439_v61, %v6280_v56  ;;  %v6540_v6 = vadd.f32 %v6539_v12, %v6508_v57 }
0x1986   :  { %15167 = vtanh.f32 %v6441_v20  ;;  %v6566_v16 = vadd.f32 %v6565_v38, %v6540_v6  ;;  %v14983_v3 = vmul.f32 -1.442695, %v6441_v20 }
0x1988   :  { %v6591_v33 = vadd.f32 %v6590_v22, %v6566_v16 }
0x198b   :  { %v6617_v21 = vpop.f32.mrf.mxu2 }
0x198c   :  { %v15168_v11 = vpop.eup %15167  ;;  %v6618_v5 = vadd.f32 %v6617_v21, %v6591_v33 }
0x198d   :  { %6464 = vrot.lane.b32.xlu0 %v15168_v11, %s15559_s9 }
0x198e   :  { %v6641_v32 = vadd.f32 %v6640_v35, %v6618_v5 }
0x1990   :  { %v6643_v9 = vadd.f32 %v6641_v32, %v17140_v51 }
0x1992   :  { %15169 = vtanh.f32 %v6643_v9  ;;  %v14984_v50 = vmul.f32 -1.442695, %v6643_v9 }
0x1994   :  { %15171 = vpow2.f32 %v14984_v50 }
0x1995   :  { %15173 = vpow2.f32 %v14983_v3 }
0x1998   :  { %v15170_v29 = vpop.eup %15169 }
0x1999   :  { %6666 = vrot.lane.b32.xlu2 %v15170_v29, %s15559_s9 }
0x199a   :  { %v15172_v19 = vpop.eup %15171 }
0x199b   :  { %v6647_v27 = vadd.f32 1.0, %v15172_v19  ;;  %v15174_v15 = vpop.eup %15173 }
0x199c   :  { %v6445_v39 = vadd.f32 1.0, %v15174_v15 }
0x199d   :  { %15175 = vrcp.f32 %v6647_v27  ;;  %v6659_v45 = vand.u32 2147483648, %v6647_v27  ;;  %vm6653_vm14 = vweird.f32 %v6647_v27  ;;  %v6657_v62 = vand.u32 2147483647, %v6647_v27 }
0x199e   :  { %15177 = vrcp.f32 %v6445_v39  ;;  %v6457_v38 = vand.u32 2147483648, %v6445_v39  ;;  %vm6451_vm3 = vweird.f32 %v6445_v39  ;;  %v6455_v16 = vand.u32 2147483647, %v6445_v39 }
0x199f   :  { %v6660_v61 = vor.u32 1.1754944e-38, %v6659_v45  ;;  %vm6658_vm1 = vcmp.eq.f32.partialorder %v6657_v62, 8.507059e+37 }
0x19a0   :  { %v6458_v22 = vor.u32 1.1754944e-38, %v6457_v38  ;;  %vm6456_vm6 = vcmp.eq.f32.partialorder %v6455_v16, 8.507059e+37 }
0x19a3   :  { %v15176_v37 = vpop.eup %15175 }
0x19a4   :  { %v6649_v14 = vmul.f32 %v15176_v37, %v6647_v27  ;;  %v15178_v59 = vpop.eup %15177  ;;  %vm6654_vm13 = vweird.f32 %v15176_v37 }
0x19a5   :  { %v6447_v25 = vmul.f32 %v15178_v59, %v6445_v39  ;;  %vm6655_vm15 = vmor %vm6653_vm14, %vm6654_vm13  ;;  %vm6452_vm2 = vweird.f32 %v15178_v59 }
0x19a6   :  { %v6650_v44 = vsub.f32 1.0, %v6649_v14  ;;  %vm6453_vm4 = vmor %vm6451_vm3, %vm6452_vm2 }
0x19a7   :  { %v6448_v56 = vsub.f32 1.0, %v6447_v25 }
0x19a8   :  { %v6651_v8 = vmul.f32 %v15176_v37, %v6650_v44 }
0x19a9   :  { %v6449_v20 = vmul.f32 %v15178_v59, %v6448_v56 }
0x19aa   :  { %v6652_v10 = vadd.f32 %v15176_v37, %v6651_v8 }
0x19ab   :  { %v6450_v6 = vadd.f32 %v15178_v59, %v6449_v20 }
0x19ac   :  { %v6656_v0 = vsel %vm6655_vm15, %v15176_v37, %v6652_v10 }
0x19ad   :  { %v6661_v57 = vsel %vm6658_vm1, %v6660_v61, %v6656_v0  ;;  %v6454_v58 = vsel %vm6453_vm4, %v15178_v59, %v6450_v6 }
0x19ae   :  { %v6459_v33 = vsel %vm6456_vm6, %v6458_v22, %v6454_v58  ;;  %v6664_v9 = vmul.f32 %v6661_v57, %v17014_v30 }
0x19af   :  { %v6462_v11 = vmul.f32 0.0, %v6459_v33 }
0x19f3   :  { %v6667_v12 = vpop.permute.xlu2 %6666 }
0x19f4   :  { %v6669_v41 = vmul.f32 %v6667_v12, %v6661_v57 }
0x19f6   :  { %6671 = vrot.lane.b32.xlu1 %v6669_v41, %s15560_s2 }
0x19ff   :  { %v6465_v2 = vpop.permute.xlu0 %6464 }
0x1a00   :  { %v6467_v21 = vmul.f32 %v6465_v2, %v6459_v33 }
0x1a02   :  { %6469 = vrot.lane.b32.xlu2 %v6467_v21, %s15560_s2 }
0x1a5c   :  { %v6470_v5 = vpop.permute.xlu2 %6469 }
0x1a5d   :  { %v17146_v35 = vadd.f32 %v6470_v5, %v6462_v11 }
0x1a5f   :  { %15179 = vtanh.f32 %v17146_v35 }
0x1a65   :  { %v15180_v32 = vpop.eup %15179 }
0x1a66   :  { %6475 = vrot.lane.b32.xlu1 %v15180_v32, %s15558_s16 }
0x1a68   :  { %v6672_v29 = vpop.permute.xlu1 %6671 }
0x1a69   :  { %v17151_v50 = vadd.f32 %v6672_v29, %v6664_v9 }
0x1a6b   :  { %15181 = vtanh.f32 %v17151_v50 }
0x1a71   :  { %v15182_v19 = vpop.eup %15181 }
0x1a72   :  { %6677 = vrot.lane.b32.xlu0 %v15182_v19, %s15558_s16 }
0x1ad8   :  { %v6476_v3 = vpop.permute.xlu1 %6475 }
0x1ad9   :  { %v6478_v27 = vmul.f32 %v6476_v3, %v6459_v33 }
0x1adb   :  { %6480 = vrot.lane.b32.xlu0 %v6478_v27, %s15561_s15 }
0x1ae4   :  { %v6678_v15 = vpop.permute.xlu0 %6677 }
0x1ae5   :  { %v6680_v37 = vmul.f32 %v6678_v15, %v6661_v57 }
0x1ae7   :  { %6682 = vrot.lane.b32.xlu2 %v6680_v37, %s15561_s15 }
0x1b41   :  { %v6683_v39 = vpop.permute.xlu2 %6682 }
0x1b42   :  { %v6684_v14 = vsel %vm161_vm0, %v6683_v39, 0 }
0x1b43   :  { %v17158_v30 = vand.u32 4294901760, %v6684_v14 }
0x1b45   :  { %v6705_v44 = vsub.f32 %v6684_v14, %v17158_v30  ;;  %6740 = vmatmul.f32.vlgmr.msrb.gmra.mxu1 %v17158_v30 }
0x1b46   :  { %6946 = vmatpush.msrb.mxu1 %v17053_v40 }
0x1b47   :  { %v6706_v8 = vand.u32 4294901760, %v6705_v44  ;;  %6766 = vmatmul.f32.vlgmr.msrb.gmra.mxu2 %v6705_v44 }
0x1b48   :  { %6948 = vmatpush.msrb.mxu1 %v17057_v24  ;;  %6973 = vmatpush.msrb.mxu2 %v17065_v47 }
0x1b49   :  { %v6707_v59 = vsub.f32 %v6705_v44, %v6706_v8  ;;  %6791 = vmatmul.f32.vlgmr.msrb.gmra.mxu3 %v6706_v8 }
0x1b4a   :  { %6998 = vmatpush.msrb.mxu3 %v17053_v40  ;;  %6977 = vmatpush.msrb.mxu2 %v17073_v7 }
0x1b4b   :  { %v6708_v10 = vand.u32 4294901760, %v6707_v59 }
0x1b4c   :  { %7000 = vmatpush.msrb.mxu3 %v17057_v24 }
0x1b4d   :  { %6709 = vmatmul.f32.vlgmr.msrb.gmra.mxu0 %v6708_v10  ;;  %6841 = vmatmul.f32.vlgmr.msra.gmra.mxu1 %v17158_v30  ;;  %v6481_v25 = vpop.permute.xlu0 %6480 }
0x1b4e   :  { %6483 = vst.msk [vmem:[%s18096_s13] sm:$0xff] %vm161_vm0, %v6481_v25  ;;  %v6845_v45 = vsel %vm161_vm0, %v6481_v25, 0  ;;  %6921 = vmatpush.msrb.mxu0 %v17060_v52  ;;  %7095 = vmatpush.msra.mxu1 %v16971_v34 }
0x1b4f   :  { %v6865_v62 = vand.u32 4294901760, %v6845_v45 }
0x1b50   :  { %6924 = vmatpush.msrb.mxu0 %v17068_v60  ;;  %7101 = vmatpush.msra.mxu1 %v16977_v55 }
0x1b51   :  { %v6866_v0 = vsub.f32 %v6845_v45, %v6865_v62  ;;  %6901 = vmatmul.f32.vlgmr.msra.gmra.mxu3 %v6865_v62 }
0x1b52   :  { %7148 = vmatpush.msra.mxu3 %v16946_v1 }
0x1b53   :  { %v6867_v56 = vand.u32 4294901760, %v6866_v0 }
0x1b54   :  { %7150 = vmatpush.msra.mxu3 %v16952_v43 }
0x1b55   :  { %v6868_v61 = vsub.f32 %v6866_v0, %v6867_v56  ;;  %6818 = vmatmul.f32.vlgmr.msra.gmra.mxu0 %v17158_v30  ;;  %6952 = vmatmul.f32.vlgmr.msrb.gmra.mxu1 %v6867_v56 }
0x1b56   :  { %7064 = vmatpush.msra.mxu0 %v16946_v1  ;;  %7200 = vmatpush.msrb.mxu1 %v16946_v1 }
0x1b57   :  { %v6869_v12 = vand.u32 4294901760, %v6868_v61 }
0x1b58   :  { %7066 = vmatpush.msra.mxu0 %v16952_v43  ;;  %7202 = vmatpush.msrb.mxu1 %v16952_v43 }
0x1b59   :  { %6870 = vmatmul.f32.vlgmr.msra.gmra.mxu2 %v6869_v12  ;;  %7002 = vmatmul.f32.vlgmr.msrb.gmra.mxu3 %v6865_v62 }
0x1b5a   :  { %7123 = vmatpush.msra.mxu2 %v16950_v13  ;;  %7297 = vmatpush.msrb.mxu3 %v17044_v36 }
0x1b5c   :  { %7126 = vmatpush.msra.mxu2 %v16960_v26  ;;  %7303 = vmatpush.msrb.mxu3 %v17050_v17 }
0x1b5d   :  { %6927 = vmatmul.f32.vlgmr.msrb.gmra.mxu0 %v6866_v0  ;;  %7103 = vmatmul.f32.vlgmr.msra.gmra.mxu1 %v17158_v30 }
0x1b5e   :  { %7175 = vmatpush.msrb.mxu0 %v16956_v42  ;;  %7350 = vmatpush.msra.mxu1 %v17019_v23 }
0x1b60   :  { %7179 = vmatpush.msrb.mxu0 %v16967_v46  ;;  %7352 = vmatpush.msra.mxu1 %v17024_v31 }
0x1b61   :  { %6979 = vmatmul.f32.vlgmr.msrb.gmra.mxu2 %v6865_v62  ;;  %7154 = vmatmul.f32.vlgmr.msra.gmra.mxu3 %v6706_v8 }
0x1b62   :  { %7266 = vmatpush.msrb.mxu2 %v17019_v23  ;;  %7402 = vmatpush.msra.mxu3 %v17019_v23 }
0x1b64   :  { %7268 = vmatpush.msrb.mxu2 %v17024_v31  ;;  %7404 = vmatpush.msra.mxu3 %v17024_v31 }
0x1b65   :  { %7072 = vmatmul.f32.vlgmr.msra.gmra.mxu0 %v6708_v10  ;;  %7204 = vmatmul.f32.vlgmr.msrb.gmra.mxu1 %v17158_v30 }
0x1b66   :  { %7325 = vmatpush.msra.mxu0 %v17022_v4  ;;  %7458 = vmatpush.msrb.mxu1 %v17075_v18 }
0x1b68   :  { %7328 = vmatpush.msra.mxu0 %v17032_v53  ;;  %7464 = vmatpush.msrb.mxu1 %v17080_v54 }
0x1b69   :  { %7129 = vmatmul.f32.vlgmr.msra.gmra.mxu2 %v6705_v44 }
0x1b6a   :  { %7377 = vmatpush.msra.mxu2 %v17029_v28 }
0x1b6c   :  { %7381 = vmatpush.msra.mxu2 %v17040_v63 }
0x1b6d   :  { %7181 = vmatmul.f32.vlgmr.msrb.gmra.mxu0 %v17158_v30 }
0x1b6e   :  { %7427 = vmatpush.msrb.mxu0 %v17053_v40 }
0x1b70   :  { %7429 = vmatpush.msrb.mxu0 %v17057_v24 }
0x1bc2   :  { %v6741_v57 = vpop.f32.mrf.mxu1 }
0x1bca   :  { %v6710_v41 = vpop.f32.mrf.mxu0  ;;  %v6767_v16 = vpop.f32.mrf.mxu2 }
0x1bcb   :  { %v6711_v38 = vadd.f32 %v17129_v48, %v6710_v41  ;;  %v6842_v58 = vpop.f32.mrf.mxu1 }
0x1bcc   :  { %v6792_v20 = vpop.f32.mrf.mxu3 }
0x1bcd   :  { %v6742_v22 = vadd.f32 %v6741_v57, %v6711_v38 }
0x1bcf   :  { %v6768_v33 = vadd.f32 %v6767_v16, %v6742_v22 }
0x1bd1   :  { %v6793_v9 = vadd.f32 %v6792_v20, %v6768_v33 }
0x1bd2   :  { %v6819_v6 = vpop.f32.mrf.mxu0 }
0x1bd3   :  { %v6953_v32 = vpop.f32.mrf.mxu1  ;;  %v6820_v19 = vadd.f32 %v6819_v6, %v6793_v9 }
0x1bd4   :  { %v6902_v2 = vpop.f32.mrf.mxu3 }
0x1bd5   :  { %v6843_v14 = vadd.f32 %v6842_v58, %v6820_v19 }
0x1bda   :  { %v6928_v21 = vpop.f32.mrf.mxu0 }
0x1bdb   :  { %v7104_v44 = vpop.f32.mrf.mxu1 }
0x1bdc   :  { %v6871_v11 = vpop.f32.mrf.mxu2  ;;  %v7003_v27 = vpop.f32.mrf.mxu3 }
0x1bdd   :  { %v6903_v5 = vadd.f32 %v6902_v2, %v6871_v11 }
0x1bdf   :  { %v6929_v29 = vadd.f32 %v6928_v21, %v6903_v5 }
0x1be1   :  { %v6954_v3 = vadd.f32 %v6953_v32, %v6929_v29 }
0x1be2   :  { %v7073_v39 = vpop.f32.mrf.mxu0 }
0x1be3   :  { %v7105_v59 = vadd.f32 %v7104_v44, %v7073_v39  ;;  %v7205_v12 = vpop.f32.mrf.mxu1 }
0x1be4   :  { %v6980_v15 = vpop.f32.mrf.mxu2  ;;  %v7155_v45 = vpop.f32.mrf.mxu3 }
0x1be5   :  { %v6981_v37 = vadd.f32 %v6980_v15, %v6954_v3 }
0x1be7   :  { %v7004_v30 = vadd.f32 %v7003_v27, %v6981_v37 }
0x1be9   :  { %v7006_v8 = vadd.f32 %v7004_v30, %v6843_v14 }
0x1bea   :  { %v7182_v0 = vpop.f32.mrf.mxu0 }
0x1beb   :  { %15183 = vtanh.f32 %v7006_v8  ;;  %v14985_v6 = vmul.f32 -1.442695, %v7006_v8 }
0x1bec   :  { %v7130_v10 = vpop.f32.mrf.mxu2 }
0x1bed   :  { %v7131_v25 = vadd.f32 %v7130_v10, %v7105_v59 }
0x1bef   :  { %v7156_v62 = vadd.f32 %v7155_v45, %v7131_v25 }
0x1bf1   :  { %v15184_v56 = vpop.eup %15183  ;;  %v7183_v61 = vadd.f32 %v7182_v0, %v7156_v62 }
0x1bf2   :  { %7029 = vrot.lane.b32.xlu2 %v15184_v56, %s15559_s9 }
0x1bf3   :  { %v7206_v57 = vadd.f32 %v7205_v12, %v7183_v61 }
0x1bf5   :  { %v7208_v41 = vadd.f32 %v7206_v57, %v17009_v49 }
0x1bf7   :  { %15185 = vtanh.f32 %v7208_v41  ;;  %v14986_v21 = vmul.f32 -1.442695, %v7208_v41 }
0x1bf8   :  { %15187 = vpow2.f32 %v14985_v6 }
0x1bfd   :  { %v15186_v20 = vpop.eup %15185 }
0x1bfe   :  { %7231 = vrot.lane.b32.xlu1 %v15186_v20, %s15559_s9  ;;  %v15188_v38 = vpop.eup %15187 }
0x1bff   :  { %v7010_v16 = vadd.f32 1.0, %v15188_v38 }
0x1c01   :  { %15189 = vrcp.f32 %v7010_v16  ;;  %v7022_v5 = vand.u32 2147483648, %v7010_v16  ;;  %vm7016_vm8 = vweird.f32 %v7010_v16  ;;  %v7020_v32 = vand.u32 2147483647, %v7010_v16 }
0x1c02   :  { %15191 = vpow2.f32 %v14986_v21 }
0x1c03   :  { %v7023_v29 = vor.u32 1.1754944e-38, %v7022_v5  ;;  %vm7021_vm5 = vcmp.eq.f32.partialorder %v7020_v32, 8.507059e+37 }
0x1c07   :  { %v15190_v58 = vpop.eup %15189 }
0x1c08   :  { %v7012_v22 = vmul.f32 %v15190_v58, %v7010_v16  ;;  %vm7017_vm7 = vweird.f32 %v15190_v58  ;;  %v15192_v27 = vpop.eup %15191 }
0x1c09   :  { %vm7018_vm9 = vmor %vm7016_vm8, %vm7017_vm7  ;;  %v7212_v37 = vadd.f32 1.0, %v15192_v27 }
0x1c0a   :  { %v7013_v2 = vsub.f32 1.0, %v7012_v22 }
0x1c0b   :  { %15193 = vrcp.f32 %v7212_v37  ;;  %v7224_v59 = vand.u32 2147483648, %v7212_v37  ;;  %vm7218_vm11 = vweird.f32 %v7212_v37  ;;  %v7222_v10 = vand.u32 2147483647, %v7212_v37 }
0x1c0c   :  { %v7014_v33 = vmul.f32 %v15190_v58, %v7013_v2 }
0x1c0d   :  { %v7225_v45 = vor.u32 1.1754944e-38, %v7224_v59  ;;  %vm7223_vm13 = vcmp.eq.f32.partialorder %v7222_v10, 8.507059e+37 }
0x1c0e   :  { %v7015_v11 = vadd.f32 %v15190_v58, %v7014_v33 }
0x1c10   :  { %v7019_v9 = vsel %vm7018_vm9, %v15190_v58, %v7015_v11 }
0x1c11   :  { %v7024_v3 = vsel %vm7021_vm5, %v7023_v29, %v7019_v9  ;;  %v15194_v39 = vpop.eup %15193 }
0x1c12   :  { %v7214_v14 = vmul.f32 %v15194_v39, %v7212_v37  ;;  %vm7219_vm10 = vweird.f32 %v15194_v39  ;;  %v7027_v61 = vmul.f32 %v7024_v3, %v17146_v35 }
0x1c13   :  { %vm7220_vm12 = vmor %vm7218_vm11, %vm7219_vm10 }
0x1c14   :  { %v7215_v30 = vsub.f32 1.0, %v7214_v14 }
0x1c16   :  { %v7216_v44 = vmul.f32 %v15194_v39, %v7215_v30 }
0x1c18   :  { %v7217_v8 = vadd.f32 %v15194_v39, %v7216_v44 }
0x1c1a   :  { %v7221_v25 = vsel %vm7220_vm12, %v15194_v39, %v7217_v8 }
0x1c1b   :  { %v7226_v0 = vsel %vm7223_vm13, %v7225_v45, %v7221_v25 }
0x1c1c   :  { %v7229_v20 = vmul.f32 %v7226_v0, %v17151_v50 }
0x1c4c   :  { %v7030_v19 = vpop.permute.xlu2 %7029 }
0x1c4d   :  { %v7032_v15 = vmul.f32 %v7030_v19, %v7024_v3 }
0x1c4f   :  { %7034 = vrot.lane.b32.xlu1 %v7032_v15, %s15560_s2 }
0x1c70   :  { %v7232_v62 = vpop.permute.xlu1 %7231 }
0x1c71   :  { %v7234_v56 = vmul.f32 %v7232_v62, %v7226_v0 }
0x1c73   :  { %7236 = vrot.lane.b32.xlu0 %v7234_v56, %s15560_s2 }
0x1cc1   :  { %v7035_v12 = vpop.permute.xlu1 %7034 }
0x1cc2   :  { %v17215_v57 = vadd.f32 %v7035_v12, %v7027_v61 }
0x1cc4   :  { %15195 = vtanh.f32 %v17215_v57 }
0x1cca   :  { %v15196_v41 = vpop.eup %15195 }
0x1ccb   :  { %7040 = vrot.lane.b32.xlu0 %v15196_v41, %s15558_s16 }
0x1ce5   :  { %v7237_v6 = vpop.permute.xlu0 %7236 }
0x1ce6   :  { %v17220_v38 = vadd.f32 %v7237_v6, %v7229_v20 }
0x1ce8   :  { %15197 = vtanh.f32 %v17220_v38 }
0x1cee   :  { %v15198_v16 = vpop.eup %15197 }
0x1cef   :  { %7242 = vrot.lane.b32.xlu2 %v15198_v16, %s15558_s16 }
0x1d3d   :  { %v7041_v58 = vpop.permute.xlu0 %7040 }
0x1d3e   :  { %v7043_v35 = vmul.f32 %v7041_v58, %v7024_v3 }
0x1d40   :  { %7045 = vrot.lane.b32.xlu2 %v7043_v35, %s15561_s15 }
0x1d49   :  { %v7243_v22 = vpop.permute.xlu2 %7242 }
0x1d4a   :  { %v7245_v2 = vmul.f32 %v7243_v22, %v7226_v0 }
0x1d4c   :  { %7247 = vrot.lane.b32.xlu1 %v7245_v2, %s15561_s15 }
0x1d9a   :  { %v7046_v33 = vpop.permute.xlu2 %7045 }
0x1d9b   :  { %7048 = vst.msk [vmem:[%s18096_s13 + $0x8] sm:$0xff] %vm161_vm0, %v7046_v33  ;;  %v7410_v50 = vsel %vm161_vm0, %v7046_v33, 0 }
0x1d9c   :  { %v7430_v21 = vand.u32 4294901760, %v7410_v50 }
0x1d9e   :  { %v7431_v11 = vsub.f32 %v7410_v50, %v7430_v21 }
0x1da0   :  { %v7432_v29 = vand.u32 4294901760, %v7431_v11 }
0x1da2   :  { %v7433_v27 = vsub.f32 %v7431_v11, %v7432_v29 }
0x1da4   :  { %v7434_v39 = vand.u32 4294901760, %v7433_v27 }
0x1dbe   :  { %v7248_v5 = vpop.permute.xlu1 %7247 }
0x1dbf   :  { %v7249_v32 = vsel %vm161_vm0, %v7248_v5, 0 }
0x1dc0   :  { %v7269_v9 = vand.u32 4294901760, %v7249_v32 }
0x1dc2   :  { %v7270_v19 = vsub.f32 %v7249_v32, %v7269_v9  ;;  %7305 = vmatmul.f32.vlgmr.msrb.gmra.mxu3 %v7269_v9 }
0x1dc3   :  { %7511 = vmatpush.msrb.mxu3 %v17053_v40 }
0x1dc4   :  { %v7271_v3 = vand.u32 4294901760, %v7270_v19  ;;  %7331 = vmatmul.f32.vlgmr.msra.gmra.mxu0 %v7270_v19 }
0x1dc5   :  { %7513 = vmatpush.msrb.mxu3 %v17057_v24  ;;  %7538 = vmatpush.msra.mxu0 %v17065_v47 }
0x1dc6   :  { %v7272_v15 = vsub.f32 %v7270_v19, %v7271_v3  ;;  %7356 = vmatmul.f32.vlgmr.msra.gmra.mxu1 %v7271_v3 }
0x1dc7   :  { %7542 = vmatpush.msra.mxu0 %v17073_v7  ;;  %7563 = vmatpush.msra.mxu1 %v17053_v40 }
0x1dc8   :  { %v7273_v37 = vand.u32 4294901760, %v7272_v15 }
0x1dc9   :  { %7565 = vmatpush.msra.mxu1 %v17057_v24 }
0x1dca   :  { %7274 = vmatmul.f32.vlgmr.msrb.gmra.mxu2 %v7273_v37  ;;  %7406 = vmatmul.f32.vlgmr.msra.gmra.mxu3 %v7269_v9 }
0x1dcb   :  { %7486 = vmatpush.msrb.mxu2 %v17060_v52  ;;  %7660 = vmatpush.msra.mxu3 %v16971_v34 }
0x1dcc   :  { %7435 = vmatmul.f32.vlgmr.msrb.gmra.mxu0 %v7434_v39 }
0x1dcd   :  { %7489 = vmatpush.msrb.mxu2 %v17068_v60  ;;  %7666 = vmatpush.msra.mxu3 %v16977_v55 }
0x1dce   :  { %7466 = vmatmul.f32.vlgmr.msrb.gmra.mxu1 %v7430_v21  ;;  %7688 = vmatpush.msrb.mxu0 %v16950_v13 }
0x1dcf   :  { %7713 = vmatpush.msrb.mxu1 %v16946_v1 }
0x1dd0   :  { %7691 = vmatpush.msrb.mxu0 %v16960_v26 }
0x1dd1   :  { %7715 = vmatpush.msrb.mxu1 %v16952_v43 }
0x1dd2   :  { %7383 = vmatmul.f32.vlgmr.msra.gmra.mxu2 %v7269_v9  ;;  %7517 = vmatmul.f32.vlgmr.msrb.gmra.mxu3 %v7432_v29 }
0x1dd3   :  { %7629 = vmatpush.msra.mxu2 %v16946_v1  ;;  %7765 = vmatpush.msrb.mxu3 %v16946_v1 }
0x1dd4   :  { %7544 = vmatmul.f32.vlgmr.msra.gmra.mxu0 %v7430_v21 }
0x1dd5   :  { %7631 = vmatpush.msra.mxu2 %v16952_v43  ;;  %7767 = vmatpush.msrb.mxu3 %v16952_v43 }
0x1dd6   :  { %7567 = vmatmul.f32.vlgmr.msra.gmra.mxu1 %v7430_v21  ;;  %7831 = vmatpush.msra.mxu0 %v17019_v23 }
0x1dd7   :  { %7862 = vmatpush.msra.mxu1 %v17044_v36 }
0x1dd8   :  { %7833 = vmatpush.msra.mxu0 %v17024_v31 }
0x1dd9   :  { %7868 = vmatpush.msra.mxu1 %v17050_v17 }
0x1dda   :  { %7492 = vmatmul.f32.vlgmr.msrb.gmra.mxu2 %v7431_v11  ;;  %7668 = vmatmul.f32.vlgmr.msra.gmra.mxu3 %v7269_v9 }
0x1ddb   :  { %7740 = vmatpush.msrb.mxu2 %v16956_v42  ;;  %7915 = vmatpush.msra.mxu3 %v17019_v23 }
0x1ddc   :  { %7694 = vmatmul.f32.vlgmr.msrb.gmra.mxu0 %v7270_v19 }
0x1ddd   :  { %7744 = vmatpush.msrb.mxu2 %v16967_v46  ;;  %7917 = vmatpush.msra.mxu3 %v17024_v31 }
0x1dde   :  { %7719 = vmatmul.f32.vlgmr.msrb.gmra.mxu1 %v7271_v3  ;;  %7942 = vmatpush.msrb.mxu0 %v17029_v28 }
0x1ddf   :  { %7967 = vmatpush.msrb.mxu1 %v17019_v23 }
0x1de0   :  { %7946 = vmatpush.msrb.mxu0 %v17040_v63 }
0x1de1   :  { %7969 = vmatpush.msrb.mxu1 %v17024_v31 }
0x1de2   :  { %7637 = vmatmul.f32.vlgmr.msra.gmra.mxu2 %v7273_v37  ;;  %7769 = vmatmul.f32.vlgmr.msrb.gmra.mxu3 %v7269_v9 }
0x1de3   :  { %7890 = vmatpush.msra.mxu2 %v17022_v4  ;;  %8023 = vmatpush.msrb.mxu3 %v17075_v18 }
0x1de5   :  { %7893 = vmatpush.msra.mxu2 %v17032_v53  ;;  %8029 = vmatpush.msrb.mxu3 %v17080_v54 }
0x1dea   :  { %7746 = vmatmul.f32.vlgmr.msrb.gmra.mxu2 %v7269_v9 }
0x1deb   :  { %7992 = vmatpush.msrb.mxu2 %v17053_v40 }
0x1ded   :  { %7994 = vmatpush.msrb.mxu2 %v17057_v24 }
0x1e41   :  { %v7332_v30 = vpop.f32.mrf.mxu0 }
0x1e43   :  { %v7357_v44 = vpop.f32.mrf.mxu1 }
0x1e45   :  { %v7306_v14 = vpop.f32.mrf.mxu3 }
0x1e49   :  { %v7436_v25 = vpop.f32.mrf.mxu0 }
0x1e4b   :  { %v7467_v0 = vpop.f32.mrf.mxu1 }
0x1e4c   :  { %v7468_v12 = vadd.f32 %v7467_v0, %v7436_v25 }
0x1e4d   :  { %v7275_v8 = vpop.f32.mrf.mxu2  ;;  %v7407_v10 = vpop.f32.mrf.mxu3 }
0x1e4e   :  { %v7276_v59 = vadd.f32 %v17129_v48, %v7275_v8 }
0x1e50   :  { %v7307_v45 = vadd.f32 %v7306_v14, %v7276_v59 }
0x1e51   :  { %v7545_v20 = vpop.f32.mrf.mxu0 }
0x1e52   :  { %v7333_v56 = vadd.f32 %v7332_v30, %v7307_v45 }
0x1e53   :  { %v7568_v22 = vpop.f32.mrf.mxu1 }
0x1e54   :  { %v7358_v41 = vadd.f32 %v7357_v44, %v7333_v56 }
0x1e55   :  { %v7384_v62 = vpop.f32.mrf.mxu2  ;;  %v7518_v61 = vpop.f32.mrf.mxu3 }
0x1e56   :  { %v7385_v58 = vadd.f32 %v7384_v62, %v7358_v41 }
0x1e58   :  { %v7408_v33 = vadd.f32 %v7407_v10, %v7385_v58 }
0x1e59   :  { %v7695_v32 = vpop.f32.mrf.mxu0 }
0x1e5b   :  { %v7720_v29 = vpop.f32.mrf.mxu1 }
0x1e5d   :  { %v7493_v6 = vpop.f32.mrf.mxu2  ;;  %v7669_v21 = vpop.f32.mrf.mxu3 }
0x1e5e   :  { %v7494_v16 = vadd.f32 %v7493_v6, %v7468_v12 }
0x1e60   :  { %v7519_v35 = vadd.f32 %v7518_v61, %v7494_v16 }
0x1e62   :  { %v7546_v2 = vadd.f32 %v7545_v20, %v7519_v35 }
0x1e64   :  { %v7569_v50 = vadd.f32 %v7568_v22, %v7546_v2 }
0x1e65   :  { %v7638_v48 = vpop.f32.mrf.mxu2  ;;  %v7770_v37 = vpop.f32.mrf.mxu3 }
0x1e66   :  { %v7571_v11 = vadd.f32 %v7569_v50, %v7408_v33  ;;  %v7670_v5 = vadd.f32 %v7669_v21, %v7638_v48 }
0x1e68   :  { %15199 = vtanh.f32 %v7571_v11  ;;  %v7696_v9 = vadd.f32 %v7695_v32, %v7670_v5  ;;  %v14987_v44 = vmul.f32 -1.442695, %v7571_v11 }
0x1e6a   :  { %v7721_v19 = vadd.f32 %v7720_v29, %v7696_v9 }
0x1e6d   :  { %v7747_v3 = vpop.f32.mrf.mxu2 }
0x1e6e   :  { %v15200_v27 = vpop.eup %15199  ;;  %v7748_v15 = vadd.f32 %v7747_v3, %v7721_v19 }
0x1e6f   :  { %7594 = vrot.lane.b32.xlu1 %v15200_v27, %s15559_s9 }
0x1e70   :  { %v7771_v39 = vadd.f32 %v7770_v37, %v7748_v15 }
0x1e72   :  { %v7773_v14 = vadd.f32 %v7771_v39, %v17140_v51 }
0x1e74   :  { %15201 = vtanh.f32 %v7773_v14  ;;  %v14988_v59 = vmul.f32 -1.442695, %v7773_v14 }
0x1e75   :  { %15203 = vpow2.f32 %v14987_v44 }
0x1e76   :  { %15205 = vpow2.f32 %v14988_v59 }
0x1e7a   :  { %v15202_v30 = vpop.eup %15201 }
0x1e7b   :  { %7796 = vrot.lane.b32.xlu0 %v15202_v30, %s15559_s9  ;;  %v15204_v8 = vpop.eup %15203 }
0x1e7c   :  { %v7575_v10 = vadd.f32 1.0, %v15204_v8  ;;  %v15206_v25 = vpop.eup %15205 }
0x1e7d   :  { %v7777_v62 = vadd.f32 1.0, %v15206_v25 }
0x1e7e   :  { %15207 = vrcp.f32 %v7575_v10  ;;  %v7587_v6 = vand.u32 2147483648, %v7575_v10  ;;  %vm7581_vm15 = vweird.f32 %v7575_v10  ;;  %v7585_v16 = vand.u32 2147483647, %v7575_v10 }
0x1e7f   :  { %15209 = vrcp.f32 %v7777_v62  ;;  %v7789_v11 = vand.u32 2147483648, %v7777_v62  ;;  %vm7783_vm4 = vweird.f32 %v7777_v62  ;;  %v7787_v5 = vand.u32 2147483647, %v7777_v62 }
0x1e80   :  { %v7588_v22 = vor.u32 1.1754944e-38, %v7587_v6  ;;  %vm7586_vm2 = vcmp.eq.f32.partialorder %v7585_v16, 8.507059e+37 }
0x1e81   :  { %v7790_v9 = vor.u32 1.1754944e-38, %v7789_v11  ;;  %vm7788_vm7 = vcmp.eq.f32.partialorder %v7787_v5, 8.507059e+37 }
0x1e84   :  { %v15208_v45 = vpop.eup %15207 }
0x1e85   :  { %v7577_v0 = vmul.f32 %v15208_v45, %v7575_v10  ;;  %v15210_v12 = vpop.eup %15209  ;;  %vm7582_vm14 = vweird.f32 %v15208_v45 }
0x1e86   :  { %v7779_v20 = vmul.f32 %v15210_v12, %v7777_v62  ;;  %vm7583_vm1 = vmor %vm7581_vm15, %vm7582_vm14  ;;  %vm7784_vm3 = vweird.f32 %v15210_v12 }
0x1e87   :  { %v7578_v56 = vsub.f32 1.0, %v7577_v0  ;;  %vm7785_vm6 = vmor %vm7783_vm4, %vm7784_vm3 }
0x1e88   :  { %v7780_v35 = vsub.f32 1.0, %v7779_v20 }
0x1e89   :  { %v7579_v61 = vmul.f32 %v15208_v45, %v7578_v56 }
0x1e8a   :  { %v7781_v21 = vmul.f32 %v15210_v12, %v7780_v35 }
0x1e8b   :  { %v7580_v41 = vadd.f32 %v15208_v45, %v7579_v61 }
0x1e8c   :  { %v7782_v48 = vadd.f32 %v15210_v12, %v7781_v21 }
0x1e8d   :  { %v7584_v58 = vsel %vm7583_vm1, %v15208_v45, %v7580_v41 }
0x1e8e   :  { %v7589_v33 = vsel %vm7586_vm2, %v7588_v22, %v7584_v58  ;;  %v7786_v32 = vsel %vm7785_vm6, %v15210_v12, %v7782_v48  ;;  %v17331_v48 = vld [vmem:[%s18095_s12] ss:$0 sm:$0xff] }
0x1e8f   :  { %v7791_v19 = vsel %vm7788_vm7, %v7790_v9, %v7786_v32  ;;  %v7592_v14 = vmul.f32 %v7589_v33, %v17215_v57 }
0x1e90   :  { %v7794_v27 = vmul.f32 %v7791_v19, %v17220_v38 }
0x1ee1   :  { %v7595_v2 = vpop.permute.xlu1 %7594 }
0x1ee2   :  { %v7597_v50 = vmul.f32 %v7595_v2, %v7589_v33 }
0x1ee4   :  { %7599 = vrot.lane.b32.xlu0 %v7597_v50, %s15560_s2 }
0x1eed   :  { %v7797_v29 = vpop.permute.xlu0 %7796 }
0x1eee   :  { %v7799_v3 = vmul.f32 %v7797_v29, %v7791_v19 }
0x1ef0   :  { %7801 = vrot.lane.b32.xlu2 %v7799_v3, %s15560_s2 }
0x1f4a   :  { %v7802_v15 = vpop.permute.xlu2 %7801 }
0x1f4b   :  { %v17275_v37 = vadd.f32 %v7802_v15, %v7794_v27 }
0x1f4d   :  { %15211 = vtanh.f32 %v17275_v37 }
0x1f53   :  { %v15212_v39 = vpop.eup %15211 }
0x1f54   :  { %7807 = vrot.lane.b32.xlu1 %v15212_v39, %s15558_s16 }
0x1f56   :  { %v7600_v30 = vpop.permute.xlu0 %7599 }
0x1f57   :  { %v17280_v44 = vadd.f32 %v7600_v30, %v7592_v14 }
0x1f59   :  { %15213 = vtanh.f32 %v17280_v44 }
0x1f5f   :  { %v15214_v8 = vpop.eup %15213 }
0x1f60   :  { %7605 = vrot.lane.b32.xlu2 %v15214_v8, %s15558_s16 }
0x1fba   :  { %v7606_v59 = vpop.permute.xlu2 %7605 }
0x1fbb   :  { %v7608_v38 = vmul.f32 %v7606_v59, %v7589_v33 }
0x1fbd   :  { %7610 = vrot.lane.b32.xlu1 %v7608_v38, %s15561_s15 }
0x1fc6   :  { %v7808_v10 = vpop.permute.xlu1 %7807 }
0x1fc7   :  { %v7810_v25 = vmul.f32 %v7808_v10, %v7791_v19 }
0x1fc9   :  { %7812 = vrot.lane.b32.xlu0 %v7810_v25, %s15561_s15 }
0x202f   :  { %v7611_v45 = vpop.permute.xlu1 %7610 }
0x2030   :  { %7613 = vst.msk [vmem:[%s18096_s13 + $0x10] sm:$0xff] %vm161_vm0, %v7611_v45  ;;  %v7975_v57 = vsel %vm161_vm0, %v7611_v45, 0 }
0x2031   :  { %v7995_v62 = vand.u32 4294901760, %v7975_v57 }
0x2033   :  { %v7996_v0 = vsub.f32 %v7975_v57, %v7995_v62 }
0x2035   :  { %v7997_v41 = vand.u32 4294901760, %v7996_v0 }
0x2037   :  { %v7998_v16 = vsub.f32 %v7996_v0, %v7997_v41 }
0x2039   :  { %v7999_v22 = vand.u32 4294901760, %v7998_v16 }
0x203b   :  { %v7813_v56 = vpop.permute.xlu0 %7812 }
0x203c   :  { %v7814_v61 = vsel %vm161_vm0, %v7813_v56, 0 }
0x203d   :  { %v7834_v12 = vand.u32 4294901760, %v7814_v61 }
0x203f   :  { %v7835_v20 = vsub.f32 %v7814_v61, %v7834_v12  ;;  %7870 = vmatmul.f32.vlgmr.msra.gmra.mxu1 %v7834_v12 }
0x2040   :  { %8076 = vmatpush.msra.mxu1 %v17053_v40 }
0x2041   :  { %v7836_v6 = vand.u32 4294901760, %v7835_v20  ;;  %7896 = vmatmul.f32.vlgmr.msra.gmra.mxu2 %v7835_v20 }
0x2042   :  { %8078 = vmatpush.msra.mxu1 %v17057_v24  ;;  %8103 = vmatpush.msra.mxu2 %v17065_v47 }
0x2043   :  { %v7837_v58 = vsub.f32 %v7835_v20, %v7836_v6  ;;  %7921 = vmatmul.f32.vlgmr.msra.gmra.mxu3 %v7836_v6 }
0x2044   :  { %8107 = vmatpush.msra.mxu2 %v17073_v7  ;;  %8128 = vmatpush.msra.mxu3 %v17053_v40 }
0x2045   :  { %v7838_v35 = vand.u32 4294901760, %v7837_v58 }
0x2046   :  { %8130 = vmatpush.msra.mxu3 %v17057_v24 }
0x2047   :  { %7839 = vmatmul.f32.vlgmr.msra.gmra.mxu0 %v7838_v35  ;;  %7971 = vmatmul.f32.vlgmr.msrb.gmra.mxu1 %v7834_v12 }
0x2048   :  { %8051 = vmatpush.msra.mxu0 %v17060_v52  ;;  %8225 = vmatpush.msrb.mxu1 %v16971_v34 }
0x2049   :  { %8000 = vmatmul.f32.vlgmr.msrb.gmra.mxu2 %v7999_v22 }
0x204a   :  { %8054 = vmatpush.msra.mxu0 %v17068_v60  ;;  %8231 = vmatpush.msrb.mxu1 %v16977_v55 }
0x204b   :  { %8031 = vmatmul.f32.vlgmr.msrb.gmra.mxu3 %v7995_v62  ;;  %8253 = vmatpush.msrb.mxu2 %v16950_v13 }
0x204c   :  { %8278 = vmatpush.msrb.mxu3 %v16946_v1 }
0x204d   :  { %8256 = vmatpush.msrb.mxu2 %v16960_v26 }
0x204e   :  { %8280 = vmatpush.msrb.mxu3 %v16952_v43 }
0x204f   :  { %7948 = vmatmul.f32.vlgmr.msrb.gmra.mxu0 %v7834_v12  ;;  %8082 = vmatmul.f32.vlgmr.msra.gmra.mxu1 %v7997_v41 }
0x2050   :  { %8194 = vmatpush.msrb.mxu0 %v16946_v1  ;;  %8330 = vmatpush.msra.mxu1 %v16946_v1 }
0x2051   :  { %8109 = vmatmul.f32.vlgmr.msra.gmra.mxu2 %v7995_v62 }
0x2052   :  { %8196 = vmatpush.msrb.mxu0 %v16952_v43  ;;  %8332 = vmatpush.msra.mxu1 %v16952_v43 }
0x2053   :  { %8132 = vmatmul.f32.vlgmr.msra.gmra.mxu3 %v7995_v62  ;;  %8396 = vmatpush.msra.mxu2 %v17019_v23 }
0x2054   :  { %8427 = vmatpush.msra.mxu3 %v17044_v36 }
0x2055   :  { %8398 = vmatpush.msra.mxu2 %v17024_v31 }
0x2056   :  { %8433 = vmatpush.msra.mxu3 %v17050_v17 }
0x2057   :  { %8057 = vmatmul.f32.vlgmr.msra.gmra.mxu0 %v7996_v0  ;;  %8233 = vmatmul.f32.vlgmr.msrb.gmra.mxu1 %v7834_v12 }
0x2058   :  { %8305 = vmatpush.msra.mxu0 %v16956_v42  ;;  %8480 = vmatpush.msrb.mxu1 %v17019_v23 }
0x2059   :  { %8259 = vmatmul.f32.vlgmr.msrb.gmra.mxu2 %v7835_v20 }
0x205a   :  { %8309 = vmatpush.msra.mxu0 %v16967_v46  ;;  %8482 = vmatpush.msrb.mxu1 %v17024_v31 }
0x205b   :  { %8284 = vmatmul.f32.vlgmr.msrb.gmra.mxu3 %v7836_v6  ;;  %8507 = vmatpush.msrb.mxu2 %v17029_v28 }
0x205c   :  { %8532 = vmatpush.msrb.mxu3 %v17019_v23 }
0x205d   :  { %8511 = vmatpush.msrb.mxu2 %v17040_v63 }
0x205e   :  { %8534 = vmatpush.msrb.mxu3 %v17024_v31 }
0x205f   :  { %8202 = vmatmul.f32.vlgmr.msrb.gmra.mxu0 %v7838_v35  ;;  %8334 = vmatmul.f32.vlgmr.msra.gmra.mxu1 %v7834_v12 }
0x2060   :  { %8455 = vmatpush.msrb.mxu0 %v17022_v4  ;;  %8588 = vmatpush.msra.mxu1 %v17075_v18 }
0x2062   :  { %8458 = vmatpush.msrb.mxu0 %v17032_v53  ;;  %8594 = vmatpush.msra.mxu1 %v17080_v54 }
0x2067   :  { %8311 = vmatmul.f32.vlgmr.msra.gmra.mxu0 %v7834_v12 }
0x2068   :  { %8557 = vmatpush.msra.mxu0 %v17053_v40 }
0x206a   :  { %8559 = vmatpush.msra.mxu0 %v17057_v24 }
0x20bc   :  { %v7871_v2 = vpop.f32.mrf.mxu1 }
0x20c4   :  { %v7840_v33 = vpop.f32.mrf.mxu0  ;;  %v7897_v50 = vpop.f32.mrf.mxu2 }
0x20c5   :  { %v7841_v11 = vadd.f32 %v17331_v48, %v7840_v33  ;;  %v7972_v5 = vpop.f32.mrf.mxu1 }
0x20c6   :  { %v7922_v21 = vpop.f32.mrf.mxu3 }
0x20c7   :  { %v7872_v32 = vadd.f32 %v7871_v2, %v7841_v11 }
0x20c9   :  { %v7898_v3 = vadd.f32 %v7897_v50, %v7872_v32 }
0x20cb   :  { %v7923_v15 = vadd.f32 %v7922_v21, %v7898_v3 }
0x20cc   :  { %v7949_v9 = vpop.f32.mrf.mxu0  ;;  %v8001_v29 = vpop.f32.mrf.mxu2 }
0x20cd   :  { %v8083_v27 = vpop.f32.mrf.mxu1  ;;  %v7950_v59 = vadd.f32 %v7949_v9, %v7923_v15 }
0x20ce   :  { %v8032_v19 = vpop.f32.mrf.mxu3 }
0x20cf   :  { %v8033_v39 = vadd.f32 %v8032_v19, %v8001_v29  ;;  %v7973_v45 = vadd.f32 %v7972_v5, %v7950_v59 }
0x20d4   :  { %v8058_v14 = vpop.f32.mrf.mxu0  ;;  %v8110_v30 = vpop.f32.mrf.mxu2 }
0x20d5   :  { %v8059_v8 = vadd.f32 %v8058_v14, %v8033_v39  ;;  %v8234_v62 = vpop.f32.mrf.mxu1 }
0x20d6   :  { %v8133_v10 = vpop.f32.mrf.mxu3 }
0x20d7   :  { %v8084_v38 = vadd.f32 %v8083_v27, %v8059_v8 }
0x20d9   :  { %v8111_v25 = vadd.f32 %v8110_v30, %v8084_v38 }
0x20db   :  { %v8134_v57 = vadd.f32 %v8133_v10, %v8111_v25 }
0x20dc   :  { %v8203_v0 = vpop.f32.mrf.mxu0  ;;  %v8260_v12 = vpop.f32.mrf.mxu2 }
0x20dd   :  { %v8136_v56 = vadd.f32 %v8134_v57, %v7973_v45  ;;  %v8235_v61 = vadd.f32 %v8234_v62, %v8203_v0  ;;  %v8335_v22 = vpop.f32.mrf.mxu1 }
0x20de   :  { %v8285_v20 = vpop.f32.mrf.mxu3 }
0x20df   :  { %15215 = vtanh.f32 %v8136_v56  ;;  %v8261_v41 = vadd.f32 %v8260_v12, %v8235_v61  ;;  %v14989_v5 = vmul.f32 -1.442695, %v8136_v56 }
0x20e1   :  { %v8286_v6 = vadd.f32 %v8285_v20, %v8261_v41 }
0x20e4   :  { %v8312_v16 = vpop.f32.mrf.mxu0 }
0x20e5   :  { %v15216_v58 = vpop.eup %15215  ;;  %v8313_v35 = vadd.f32 %v8312_v16, %v8286_v6 }
0x20e6   :  { %8159 = vrot.lane.b32.xlu0 %v15216_v58, %s15559_s9 }
0x20e7   :  { %v8336_v2 = vadd.f32 %v8335_v22, %v8313_v35 }
0x20e9   :  { %v8338_v33 = vadd.f32 %v8336_v2, %v17009_v49 }
0x20eb   :  { %15217 = vtanh.f32 %v8338_v33  ;;  %v14990_v21 = vmul.f32 -1.442695, %v8338_v33 }
0x20ed   :  { %15219 = vpow2.f32 %v14990_v21 }
0x20ee   :  { %15221 = vpow2.f32 %v14989_v5 }
0x20f1   :  { %v15218_v50 = vpop.eup %15217 }
0x20f2   :  { %8361 = vrot.lane.b32.xlu2 %v15218_v50, %s15559_s9 }
0x20f3   :  { %v15220_v11 = vpop.eup %15219 }
0x20f4   :  { %v8342_v32 = vadd.f32 1.0, %v15220_v11  ;;  %v15222_v9 = vpop.eup %15221 }
0x20f5   :  { %v8140_v19 = vadd.f32 1.0, %v15222_v9 }
0x20f6   :  { %15223 = vrcp.f32 %v8342_v32  ;;  %v8354_v8 = vand.u32 2147483648, %v8342_v32  ;;  %vm8348_vm9 = vweird.f32 %v8342_v32  ;;  %v8352_v59 = vand.u32 2147483647, %v8342_v32 }
0x20f7   :  { %15225 = vrcp.f32 %v8140_v19  ;;  %v8152_v61 = vand.u32 2147483648, %v8140_v19  ;;  %vm8146_vm12 = vweird.f32 %v8140_v19  ;;  %v8150_v12 = vand.u32 2147483647, %v8140_v19 }
0x20f8   :  { %v8355_v25 = vor.u32 1.1754944e-38, %v8354_v8  ;;  %vm8353_vm10 = vcmp.eq.f32.partialorder %v8352_v59, 8.507059e+37 }
0x20f9   :  { %v8153_v20 = vor.u32 1.1754944e-38, %v8152_v61  ;;  %vm8151_vm14 = vcmp.eq.f32.partialorder %v8150_v12, 8.507059e+37 }
0x20fc   :  { %v15224_v29 = vpop.eup %15223 }
0x20fd   :  { %v8344_v3 = vmul.f32 %v15224_v29, %v8342_v32  ;;  %v15226_v39 = vpop.eup %15225  ;;  %vm8349_vm8 = vweird.f32 %v15224_v29 }
0x20fe   :  { %v8142_v30 = vmul.f32 %v15226_v39, %v8140_v19  ;;  %vm8350_vm5 = vmor %vm8348_vm9, %vm8349_vm8  ;;  %vm8147_vm11 = vweird.f32 %v15226_v39 }
0x20ff   :  { %v8345_v27 = vsub.f32 1.0, %v8344_v3  ;;  %vm8148_vm13 = vmor %vm8146_vm12, %vm8147_vm11 }
0x2100   :  { %v8143_v10 = vsub.f32 1.0, %v8142_v30 }
0x2101   :  { %v8346_v15 = vmul.f32 %v15224_v29, %v8345_v27 }
0x2102   :  { %v8144_v0 = vmul.f32 %v15226_v39, %v8143_v10 }
0x2103   :  { %v8347_v14 = vadd.f32 %v15224_v29, %v8346_v15 }
0x2104   :  { %v8145_v56 = vadd.f32 %v15226_v39, %v8144_v0 }
0x2105   :  { %v8351_v38 = vsel %vm8350_vm5, %v15224_v29, %v8347_v14 }
0x2106   :  { %v8356_v57 = vsel %vm8353_vm10, %v8355_v25, %v8351_v38  ;;  %v8149_v41 = vsel %vm8148_vm13, %v15226_v39, %v8145_v56 }
0x2107   :  { %v8154_v16 = vsel %vm8151_vm14, %v8153_v20, %v8149_v41  ;;  %v8359_v50 = vmul.f32 %v8356_v57, %v17275_v37 }
0x2108   :  { %v8157_v35 = vmul.f32 %v8154_v16, %v17280_v44 }
0x214c   :  { %v8362_v45 = vpop.permute.xlu2 %8361 }
0x214d   :  { %v8364_v62 = vmul.f32 %v8362_v45, %v8356_v57 }
0x214f   :  { %8366 = vrot.lane.b32.xlu1 %v8364_v62, %s15560_s2 }
0x2158   :  { %v8160_v6 = vpop.permute.xlu0 %8159 }
0x2159   :  { %v8162_v58 = vmul.f32 %v8160_v6, %v8154_v16 }
0x215b   :  { %8164 = vrot.lane.b32.xlu2 %v8162_v58, %s15560_s2 }
0x21b5   :  { %v8165_v22 = vpop.permute.xlu2 %8164 }
0x21b6   :  { %v17340_v2 = vadd.f32 %v8165_v22, %v8157_v35 }
0x21b8   :  { %15227 = vtanh.f32 %v17340_v2 }
0x21be   :  { %v15228_v33 = vpop.eup %15227 }
0x21bf   :  { %8170 = vrot.lane.b32.xlu1 %v15228_v33, %s15558_s16 }
0x21c1   :  { %v8367_v21 = vpop.permute.xlu1 %8366 }
0x21c2   :  { %v17345_v11 = vadd.f32 %v8367_v21, %v8359_v50 }
0x21c4   :  { %15229 = vtanh.f32 %v17345_v11 }
0x21ca   :  { %v15230_v5 = vpop.eup %15229 }
0x21cb   :  { %8372 = vrot.lane.b32.xlu0 %v15230_v5, %s15558_s16 }
0x2231   :  { %v8171_v32 = vpop.permute.xlu1 %8170 }
0x2232   :  { %v8173_v44 = vmul.f32 %v8171_v32, %v8154_v16 }
0x2234   :  { %8175 = vrot.lane.b32.xlu0 %v8173_v44, %s15561_s15 }
0x223d   :  { %v8373_v9 = vpop.permute.xlu0 %8372 }
0x223e   :  { %v8375_v29 = vmul.f32 %v8373_v9, %v8356_v57 }
0x2240   :  { %8377 = vrot.lane.b32.xlu2 %v8375_v29, %s15561_s15 }
0x229a   :  { %v8378_v19 = vpop.permute.xlu2 %8377 }
0x229b   :  { %v8379_v3 = vsel %vm161_vm0, %v8378_v19, 0 }
0x229c   :  { %v17352_v37 = vand.u32 4294901760, %v8379_v3 }
0x229e   :  { %v8400_v27 = vsub.f32 %v8379_v3, %v17352_v37  ;;  %8435 = vmatmul.f32.vlgmr.msra.gmra.mxu3 %v17352_v37 }
0x229f   :  { %8641 = vmatpush.msra.mxu3 %v17053_v40 }
0x22a0   :  { %v8401_v15 = vand.u32 4294901760, %v8400_v27  ;;  %8461 = vmatmul.f32.vlgmr.msrb.gmra.mxu0 %v8400_v27 }
0x22a1   :  { %8643 = vmatpush.msra.mxu3 %v17057_v24  ;;  %8668 = vmatpush.msrb.mxu0 %v17065_v47 }
0x22a2   :  { %v8402_v39 = vsub.f32 %v8400_v27, %v8401_v15  ;;  %8486 = vmatmul.f32.vlgmr.msrb.gmra.mxu1 %v8401_v15 }
0x22a3   :  { %8693 = vmatpush.msrb.mxu1 %v17053_v40  ;;  %8672 = vmatpush.msrb.mxu0 %v17073_v7 }
0x22a4   :  { %v8403_v14 = vand.u32 4294901760, %v8402_v39 }
0x22a5   :  { %8695 = vmatpush.msrb.mxu1 %v17057_v24 }
0x22a6   :  { %8404 = vmatmul.f32.vlgmr.msra.gmra.mxu2 %v8403_v14  ;;  %8536 = vmatmul.f32.vlgmr.msrb.gmra.mxu3 %v17352_v37  ;;  %v8176_v30 = vpop.permute.xlu0 %8175 }
0x22a7   :  { %8178 = vst.msk [vmem:[%s18096_s13 + $0x18] sm:$0xff] %vm161_vm0, %v8176_v30  ;;  %v8540_v8 = vsel %vm161_vm0, %v8176_v30, 0  ;;  %8616 = vmatpush.msra.mxu2 %v17060_v52  ;;  %8790 = vmatpush.msrb.mxu3 %v16971_v34 }
0x22a8   :  { %v8560_v59 = vand.u32 4294901760, %v8540_v8 }
0x22a9   :  { %8619 = vmatpush.msra.mxu2 %v17068_v60  ;;  %8796 = vmatpush.msrb.mxu3 %v16977_v55 }
0x22aa   :  { %v8561_v38 = vsub.f32 %v8540_v8, %v8560_v59  ;;  %8596 = vmatmul.f32.vlgmr.msra.gmra.mxu1 %v8560_v59 }
0x22ab   :  { %8843 = vmatpush.msra.mxu1 %v16946_v1 }
0x22ac   :  { %v8562_v10 = vand.u32 4294901760, %v8561_v38 }
0x22ad   :  { %8845 = vmatpush.msra.mxu1 %v16952_v43 }
0x22ae   :  { %v8563_v25 = vsub.f32 %v8561_v38, %v8562_v10  ;;  %8513 = vmatmul.f32.vlgmr.msrb.gmra.mxu2 %v17352_v37  ;;  %8647 = vmatmul.f32.vlgmr.msra.gmra.mxu3 %v8562_v10 }
0x22af   :  { %8759 = vmatpush.msrb.mxu2 %v16946_v1  ;;  %8895 = vmatpush.msra.mxu3 %v16946_v1 }
0x22b0   :  { %v8564_v45 = vand.u32 4294901760, %v8563_v25 }
0x22b1   :  { %8761 = vmatpush.msrb.mxu2 %v16952_v43  ;;  %8897 = vmatpush.msra.mxu3 %v16952_v43 }
0x22b2   :  { %8565 = vmatmul.f32.vlgmr.msra.gmra.mxu0 %v8564_v45  ;;  %8697 = vmatmul.f32.vlgmr.msrb.gmra.mxu1 %v8560_v59 }
0x22b3   :  { %8818 = vmatpush.msra.mxu0 %v16950_v13  ;;  %8992 = vmatpush.msrb.mxu1 %v17044_v36 }
0x22b5   :  { %8821 = vmatpush.msra.mxu0 %v16960_v26  ;;  %8998 = vmatpush.msrb.mxu1 %v17050_v17 }
0x22b6   :  { %8622 = vmatmul.f32.vlgmr.msra.gmra.mxu2 %v8561_v38  ;;  %8798 = vmatmul.f32.vlgmr.msrb.gmra.mxu3 %v17352_v37 }
0x22b7   :  { %8870 = vmatpush.msra.mxu2 %v16956_v42  ;;  %9045 = vmatpush.msrb.mxu3 %v17019_v23 }
0x22b9   :  { %8874 = vmatpush.msra.mxu2 %v16967_v46  ;;  %9047 = vmatpush.msrb.mxu3 %v17024_v31 }
0x22ba   :  { %8674 = vmatmul.f32.vlgmr.msrb.gmra.mxu0 %v8560_v59  ;;  %8849 = vmatmul.f32.vlgmr.msra.gmra.mxu1 %v8401_v15 }
0x22bb   :  { %8961 = vmatpush.msrb.mxu0 %v17019_v23  ;;  %9097 = vmatpush.msra.mxu1 %v17019_v23 }
0x22bd   :  { %8963 = vmatpush.msrb.mxu0 %v17024_v31  ;;  %9099 = vmatpush.msra.mxu1 %v17024_v31 }
0x22be   :  { %8767 = vmatmul.f32.vlgmr.msrb.gmra.mxu2 %v8403_v14  ;;  %8899 = vmatmul.f32.vlgmr.msra.gmra.mxu3 %v17352_v37 }
0x22bf   :  { %9020 = vmatpush.msrb.mxu2 %v17022_v4  ;;  %9153 = vmatpush.msra.mxu3 %v17075_v18 }
0x22c1   :  { %9023 = vmatpush.msrb.mxu2 %v17032_v53  ;;  %9159 = vmatpush.msra.mxu3 %v17080_v54 }
0x22c2   :  { %8824 = vmatmul.f32.vlgmr.msra.gmra.mxu0 %v8400_v27 }
0x22c3   :  { %9072 = vmatpush.msra.mxu0 %v17029_v28 }
0x22c5   :  { %9076 = vmatpush.msra.mxu0 %v17040_v63 }
0x22c6   :  { %8876 = vmatmul.f32.vlgmr.msra.gmra.mxu2 %v17352_v37 }
0x22c7   :  { %9122 = vmatpush.msra.mxu2 %v17053_v40 }
0x22c9   :  { %9124 = vmatpush.msra.mxu2 %v17057_v24 }
0x231d   :  { %v8462_v62 = vpop.f32.mrf.mxu0 }
0x231f   :  { %v8487_v0 = vpop.f32.mrf.mxu1 }
0x2321   :  { %v8436_v57 = vpop.f32.mrf.mxu3 }
0x2327   :  { %v8597_v16 = vpop.f32.mrf.mxu1 }
0x2329   :  { %v8405_v56 = vpop.f32.mrf.mxu2  ;;  %v8537_v12 = vpop.f32.mrf.mxu3 }
0x232a   :  { %v8406_v61 = vadd.f32 %v17331_v48, %v8405_v56 }
0x232c   :  { %v8437_v20 = vadd.f32 %v8436_v57, %v8406_v61 }
0x232e   :  { %v8463_v58 = vadd.f32 %v8462_v62, %v8437_v20 }
0x232f   :  { %v8566_v41 = vpop.f32.mrf.mxu0  ;;  %v8698_v9 = vpop.f32.mrf.mxu1 }
0x2330   :  { %v8598_v22 = vadd.f32 %v8597_v16, %v8566_v41  ;;  %v8488_v33 = vadd.f32 %v8487_v0, %v8463_v58 }
0x2331   :  { %v8514_v6 = vpop.f32.mrf.mxu2  ;;  %v8648_v35 = vpop.f32.mrf.mxu3 }
0x2332   :  { %v8515_v32 = vadd.f32 %v8514_v6, %v8488_v33 }
0x2334   :  { %v8538_v19 = vadd.f32 %v8537_v12, %v8515_v32 }
0x2337   :  { %v8675_v50 = vpop.f32.mrf.mxu0  ;;  %v8850_v8 = vpop.f32.mrf.mxu1 }
0x2339   :  { %v8623_v21 = vpop.f32.mrf.mxu2  ;;  %v8799_v37 = vpop.f32.mrf.mxu3 }
0x233a   :  { %v8624_v5 = vadd.f32 %v8623_v21, %v8598_v22 }
0x233c   :  { %v8649_v44 = vadd.f32 %v8648_v35, %v8624_v5 }
0x233e   :  { %v8676_v29 = vadd.f32 %v8675_v50, %v8649_v44 }
0x233f   :  { %v8825_v14 = vpop.f32.mrf.mxu0 }
0x2340   :  { %v8699_v3 = vadd.f32 %v8698_v9, %v8676_v29 }
0x2341   :  { %v8768_v27 = vpop.f32.mrf.mxu2  ;;  %v8900_v45 = vpop.f32.mrf.mxu3 }
0x2342   :  { %v8701_v15 = vadd.f32 %v8699_v3, %v8538_v19  ;;  %v8800_v39 = vadd.f32 %v8799_v37, %v8768_v27 }
0x2344   :  { %15231 = vtanh.f32 %v8701_v15  ;;  %v8826_v30 = vadd.f32 %v8825_v14, %v8800_v39  ;;  %v14991_v56 = vmul.f32 -1.442695, %v8701_v15 }
0x2346   :  { %v8851_v59 = vadd.f32 %v8850_v8, %v8826_v30 }
0x2349   :  { %v8877_v38 = vpop.f32.mrf.mxu2 }
0x234a   :  { %v15232_v10 = vpop.eup %15231  ;;  %v8878_v25 = vadd.f32 %v8877_v38, %v8851_v59 }
0x234b   :  { %8724 = vrot.lane.b32.xlu2 %v15232_v10, %s15559_s9 }
0x234c   :  { %v8901_v57 = vadd.f32 %v8900_v45, %v8878_v25 }
0x234e   :  { %v8903_v62 = vadd.f32 %v8901_v57, %v17140_v51 }
0x2350   :  { %15233 = vtanh.f32 %v8903_v62  ;;  %v14992_v58 = vmul.f32 -1.442695, %v8903_v62 }
0x2351   :  { %15235 = vpow2.f32 %v14991_v56 }
0x2356   :  { %v15234_v0 = vpop.eup %15233 }
0x2357   :  { %8926 = vrot.lane.b32.xlu1 %v15234_v0, %s15559_s9  ;;  %v15236_v61 = vpop.eup %15235 }
0x2358   :  { %v8705_v12 = vadd.f32 1.0, %v15236_v61 }
0x235a   :  { %15237 = vrcp.f32 %v8705_v12  ;;  %v8717_v22 = vand.u32 2147483648, %v8705_v12  ;;  %vm8711_vm1 = vweird.f32 %v8705_v12  ;;  %v8715_v33 = vand.u32 2147483647, %v8705_v12 }
0x235b   :  { %15239 = vpow2.f32 %v14992_v58 }
0x235c   :  { %v8718_v21 = vor.u32 1.1754944e-38, %v8717_v22  ;;  %vm8716_vm3 = vcmp.eq.f32.partialorder %v8715_v33, 8.507059e+37 }
0x2360   :  { %v15238_v41 = vpop.eup %15237 }
0x2361   :  { %v8707_v20 = vmul.f32 %v15238_v41, %v8705_v12  ;;  %vm8712_vm15 = vweird.f32 %v15238_v41  ;;  %v15240_v44 = vpop.eup %15239 }
0x2362   :  { %vm8713_vm2 = vmor %vm8711_vm1, %vm8712_vm15  ;;  %v8907_v29 = vadd.f32 1.0, %v15240_v44 }
0x2363   :  { %v8708_v6 = vsub.f32 1.0, %v8707_v20 }
0x2364   :  { %15241 = vrcp.f32 %v8907_v29  ;;  %v8919_v39 = vand.u32 2147483648, %v8907_v29  ;;  %vm8913_vm6 = vweird.f32 %v8907_v29  ;;  %v8917_v14 = vand.u32 2147483647, %v8907_v29 }
0x2365   :  { %v8709_v16 = vmul.f32 %v15238_v41, %v8708_v6 }
0x2366   :  { %v8920_v8 = vor.u32 1.1754944e-38, %v8919_v39  ;;  %vm8918_vm8 = vcmp.eq.f32.partialorder %v8917_v14, 8.507059e+37 }
0x2367   :  { %v8710_v35 = vadd.f32 %v15238_v41, %v8709_v16 }
0x2369   :  { %v8714_v50 = vsel %vm8713_vm2, %v15238_v41, %v8710_v35 }
0x236a   :  { %v8719_v32 = vsel %vm8716_vm3, %v8718_v21, %v8714_v50  ;;  %v15242_v19 = vpop.eup %15241 }
0x236b   :  { %v8909_v3 = vmul.f32 %v15242_v19, %v8907_v29  ;;  %vm8914_vm4 = vweird.f32 %v15242_v19  ;;  %v8722_v25 = vmul.f32 %v8719_v32, %v17340_v2 }
0x236c   :  { %vm8915_vm7 = vmor %vm8913_vm6, %vm8914_vm4 }
0x236d   :  { %v8910_v37 = vsub.f32 1.0, %v8909_v3 }
0x236f   :  { %v8911_v27 = vmul.f32 %v15242_v19, %v8910_v37 }
0x2371   :  { %v8912_v15 = vadd.f32 %v15242_v19, %v8911_v27 }
0x2373   :  { %v8916_v30 = vsel %vm8915_vm7, %v15242_v19, %v8912_v15 }
0x2374   :  { %v8921_v38 = vsel %vm8918_vm8, %v8920_v8, %v8916_v30 }
0x2375   :  { %v8924_v0 = vmul.f32 %v8921_v38, %v17345_v11 }
0x23a5   :  { %v8725_v5 = vpop.permute.xlu2 %8724 }
0x23a6   :  { %v8727_v9 = vmul.f32 %v8725_v5, %v8719_v32 }
0x23a8   :  { %8729 = vrot.lane.b32.xlu1 %v8727_v9, %s15560_s2 }
0x23c9   :  { %v8927_v59 = vpop.permute.xlu1 %8926 }
0x23ca   :  { %v8929_v10 = vmul.f32 %v8927_v59, %v8921_v38 }
0x23cc   :  { %8931 = vrot.lane.b32.xlu0 %v8929_v10, %s15560_s2 }
0x241a   :  { %v8730_v45 = vpop.permute.xlu1 %8729 }
0x241b   :  { %v17409_v57 = vadd.f32 %v8730_v45, %v8722_v25 }
0x241d   :  { %15243 = vtanh.f32 %v17409_v57 }
0x2423   :  { %v15244_v62 = vpop.eup %15243 }
0x2424   :  { %8735 = vrot.lane.b32.xlu0 %v15244_v62, %s15558_s16 }
0x243e   :  { %v8932_v56 = vpop.permute.xlu0 %8931 }
0x243f   :  { %v17414_v61 = vadd.f32 %v8932_v56, %v8924_v0 }
0x2441   :  { %15245 = vtanh.f32 %v17414_v61 }
0x2447   :  { %v15246_v12 = vpop.eup %15245 }
0x2448   :  { %8937 = vrot.lane.b32.xlu2 %v15246_v12, %s15558_s16 }
0x2496   :  { %v8736_v41 = vpop.permute.xlu0 %8735 }
0x2497   :  { %v8738_v2 = vmul.f32 %v8736_v41, %v8719_v32 }
0x2499   :  { %8740 = vrot.lane.b32.xlu2 %v8738_v2, %s15561_s15 }
0x24a2   :  { %v8938_v20 = vpop.permute.xlu2 %8937 }
0x24a3   :  { %v8940_v6 = vmul.f32 %v8938_v20, %v8921_v38 }
0x24a5   :  { %8942 = vrot.lane.b32.xlu1 %v8940_v6, %s15561_s15 }
0x24f3   :  { %v8741_v16 = vpop.permute.xlu2 %8740 }
0x24f4   :  { %8743 = vst.msk [vmem:[%s18096_s13 + $0x20] sm:$0xff] %vm161_vm0, %v8741_v16  ;;  %v9105_v11 = vsel %vm161_vm0, %v8741_v16, 0 }
0x24f5   :  { %v9125_v58 = vand.u32 4294901760, %v9105_v11 }
0x24f7   :  { %v9126_v35 = vsub.f32 %v9105_v11, %v9125_v58 }
0x24f9   :  { %v9127_v21 = vand.u32 4294901760, %v9126_v35 }
0x24fb   :  { %v9128_v44 = vsub.f32 %v9126_v35, %v9127_v21 }
0x24fd   :  { %v9129_v19 = vand.u32 4294901760, %v9128_v44 }
0x2517   :  { %v8943_v22 = vpop.permute.xlu1 %8942 }
0x2518   :  { %v8944_v33 = vsel %vm161_vm0, %v8943_v22, 0 }
0x2519   :  { %v8964_v50 = vand.u32 4294901760, %v8944_v33 }
0x251b   :  { %v8965_v5 = vsub.f32 %v8944_v33, %v8964_v50  ;;  %9000 = vmatmul.f32.vlgmr.msrb.gmra.mxu1 %v8964_v50 }
0x251c   :  { %9206 = vmatpush.msrb.mxu1 %v17053_v40 }
0x251d   :  { %v8966_v32 = vand.u32 4294901760, %v8965_v5  ;;  %9026 = vmatmul.f32.vlgmr.msrb.gmra.mxu2 %v8965_v5 }
0x251e   :  { %9208 = vmatpush.msrb.mxu1 %v17057_v24  ;;  %9233 = vmatpush.msrb.mxu2 %v17065_v47 }
0x251f   :  { %v8967_v9 = vsub.f32 %v8965_v5, %v8966_v32  ;;  %9051 = vmatmul.f32.vlgmr.msrb.gmra.mxu3 %v8966_v32 }
0x2520   :  { %9237 = vmatpush.msrb.mxu2 %v17073_v7  ;;  %9258 = vmatpush.msrb.mxu3 %v17053_v40 }
0x2521   :  { %v8968_v29 = vand.u32 4294901760, %v8967_v9 }
0x2522   :  { %9260 = vmatpush.msrb.mxu3 %v17057_v24 }
0x2523   :  { %8969 = vmatmul.f32.vlgmr.msrb.gmra.mxu0 %v8968_v29  ;;  %9101 = vmatmul.f32.vlgmr.msra.gmra.mxu1 %v8964_v50 }
0x2524   :  { %9181 = vmatpush.msrb.mxu0 %v17060_v52  ;;  %9355 = vmatpush.msra.mxu1 %v16971_v34 }
0x2525   :  { %9130 = vmatmul.f32.vlgmr.msra.gmra.mxu2 %v9129_v19 }
0x2526   :  { %9184 = vmatpush.msrb.mxu0 %v17068_v60  ;;  %9361 = vmatpush.msra.mxu1 %v16977_v55 }
0x2527   :  { %9161 = vmatmul.f32.vlgmr.msra.gmra.mxu3 %v9125_v58  ;;  %9383 = vmatpush.msra.mxu2 %v16950_v13 }
0x2528   :  { %9408 = vmatpush.msra.mxu3 %v16946_v1 }
0x2529   :  { %9386 = vmatpush.msra.mxu2 %v16960_v26 }
0x252a   :  { %9410 = vmatpush.msra.mxu3 %v16952_v43 }
0x252b   :  { %9078 = vmatmul.f32.vlgmr.msra.gmra.mxu0 %v8964_v50  ;;  %9212 = vmatmul.f32.vlgmr.msrb.gmra.mxu1 %v9127_v21 }
0x252c   :  { %9324 = vmatpush.msra.mxu0 %v16946_v1  ;;  %9460 = vmatpush.msrb.mxu1 %v16946_v1 }
0x252d   :  { %9239 = vmatmul.f32.vlgmr.msrb.gmra.mxu2 %v9125_v58 }
0x252e   :  { %9326 = vmatpush.msra.mxu0 %v16952_v43  ;;  %9462 = vmatpush.msrb.mxu1 %v16952_v43 }
0x252f   :  { %9262 = vmatmul.f32.vlgmr.msrb.gmra.mxu3 %v9125_v58  ;;  %9526 = vmatpush.msrb.mxu2 %v17019_v23 }
0x2530   :  { %9557 = vmatpush.msrb.mxu3 %v17044_v36 }
0x2531   :  { %9528 = vmatpush.msrb.mxu2 %v17024_v31 }
0x2532   :  { %9563 = vmatpush.msrb.mxu3 %v17050_v17 }
0x2533   :  { %9187 = vmatmul.f32.vlgmr.msrb.gmra.mxu0 %v9126_v35  ;;  %9363 = vmatmul.f32.vlgmr.msra.gmra.mxu1 %v8964_v50 }
0x2534   :  { %9435 = vmatpush.msrb.mxu0 %v16956_v42  ;;  %9610 = vmatpush.msra.mxu1 %v17019_v23 }
0x2535   :  { %9389 = vmatmul.f32.vlgmr.msra.gmra.mxu2 %v8965_v5 }
0x2536   :  { %9439 = vmatpush.msrb.mxu0 %v16967_v46  ;;  %9612 = vmatpush.msra.mxu1 %v17024_v31 }
0x2537   :  { %9414 = vmatmul.f32.vlgmr.msra.gmra.mxu3 %v8966_v32  ;;  %9637 = vmatpush.msra.mxu2 %v17029_v28 }
0x2538   :  { %9662 = vmatpush.msra.mxu3 %v17019_v23 }
0x2539   :  { %9641 = vmatpush.msra.mxu2 %v17040_v63 }
0x253a   :  { %9664 = vmatpush.msra.mxu3 %v17024_v31 }
0x253b   :  { %9332 = vmatmul.f32.vlgmr.msra.gmra.mxu0 %v8968_v29  ;;  %9464 = vmatmul.f32.vlgmr.msrb.gmra.mxu1 %v8964_v50 }
0x253c   :  { %9585 = vmatpush.msra.mxu0 %v17022_v4  ;;  %9718 = vmatpush.msrb.mxu1 %v17075_v18 }
0x253e   :  { %9588 = vmatpush.msra.mxu0 %v17032_v53  ;;  %9724 = vmatpush.msrb.mxu1 %v17080_v54 }
0x2543   :  { %9441 = vmatmul.f32.vlgmr.msrb.gmra.mxu0 %v8964_v50 }
0x2544   :  { %9687 = vmatpush.msrb.mxu0 %v17053_v40 }
0x2546   :  { %9689 = vmatpush.msrb.mxu0 %v17057_v24 }
0x2598   :  { %v9001_v3 = vpop.f32.mrf.mxu1 }
0x25a0   :  { %v8970_v37 = vpop.f32.mrf.mxu0  ;;  %v9027_v27 = vpop.f32.mrf.mxu2 }
0x25a1   :  { %v8971_v39 = vadd.f32 %v17331_v48, %v8970_v37  ;;  %v9102_v14 = vpop.f32.mrf.mxu1 }
0x25a2   :  { %v9052_v15 = vpop.f32.mrf.mxu3 }
0x25a3   :  { %v9002_v30 = vadd.f32 %v9001_v3, %v8971_v39 }
0x25a5   :  { %v9028_v10 = vadd.f32 %v9027_v27, %v9002_v30 }
0x25a7   :  { %v9053_v45 = vadd.f32 %v9052_v15, %v9028_v10 }
0x25a8   :  { %v9079_v8 = vpop.f32.mrf.mxu0  ;;  %v9131_v59 = vpop.f32.mrf.mxu2 }
0x25a9   :  { %v9213_v25 = vpop.f32.mrf.mxu1  ;;  %v9080_v41 = vadd.f32 %v9079_v8, %v9053_v45 }
0x25aa   :  { %v9162_v38 = vpop.f32.mrf.mxu3 }
0x25ab   :  { %v9163_v62 = vadd.f32 %v9162_v38, %v9131_v59  ;;  %v9103_v16 = vadd.f32 %v9102_v14, %v9080_v41 }
0x25b0   :  { %v9188_v0 = vpop.f32.mrf.mxu0  ;;  %v9240_v56 = vpop.f32.mrf.mxu2 }
0x25b1   :  { %v9189_v12 = vadd.f32 %v9188_v0, %v9163_v62  ;;  %v9364_v58 = vpop.f32.mrf.mxu1 }
0x25b2   :  { %v9263_v20 = vpop.f32.mrf.mxu3 }
0x25b3   :  { %v9214_v2 = vadd.f32 %v9213_v25, %v9189_v12 }
0x25b5   :  { %v9241_v6 = vadd.f32 %v9240_v56, %v9214_v2 }
0x25b7   :  { %v9264_v11 = vadd.f32 %v9263_v20, %v9241_v6 }
0x25b8   :  { %v9333_v48 = vpop.f32.mrf.mxu0  ;;  %v9390_v33 = vpop.f32.mrf.mxu2 }
0x25b9   :  { %v9266_v35 = vadd.f32 %v9264_v11, %v9103_v16  ;;  %v9365_v22 = vadd.f32 %v9364_v58, %v9333_v48  ;;  %v9465_v29 = vpop.f32.mrf.mxu1 }
0x25ba   :  { %v9415_v21 = vpop.f32.mrf.mxu3 }
0x25bb   :  { %15247 = vtanh.f32 %v9266_v35  ;;  %v9391_v50 = vadd.f32 %v9390_v33, %v9365_v22  ;;  %v14993_v27 = vmul.f32 -1.442695, %v9266_v35 }
0x25bd   :  { %v9416_v5 = vadd.f32 %v9415_v21, %v9391_v50 }
0x25c0   :  { %v9442_v32 = vpop.f32.mrf.mxu0 }
0x25c1   :  { %v15248_v44 = vpop.eup %15247  ;;  %v9443_v9 = vadd.f32 %v9442_v32, %v9416_v5 }
0x25c2   :  { %9289 = vrot.lane.b32.xlu1 %v15248_v44, %s15559_s9 }
0x25c3   :  { %v9466_v19 = vadd.f32 %v9465_v29, %v9443_v9 }
0x25c5   :  { %v9468_v3 = vadd.f32 %v9466_v19, %v17009_v49 }
0x25c7   :  { %15249 = vtanh.f32 %v9468_v3  ;;  %v14994_v39 = vmul.f32 -1.442695, %v9468_v3 }
0x25c8   :  { %15251 = vpow2.f32 %v14993_v27 }
0x25c9   :  { %15253 = vpow2.f32 %v14994_v39 }
0x25cd   :  { %v15250_v37 = vpop.eup %15249 }
0x25ce   :  { %9491 = vrot.lane.b32.xlu0 %v15250_v37, %s15559_s9  ;;  %v15252_v15 = vpop.eup %15251 }
0x25cf   :  { %v9270_v14 = vadd.f32 1.0, %v15252_v15  ;;  %v15254_v30 = vpop.eup %15253 }
0x25d0   :  { %v9472_v59 = vadd.f32 1.0, %v15254_v30 }
0x25d1   :  { %15255 = vrcp.f32 %v9270_v14  ;;  %v9282_v56 = vand.u32 2147483648, %v9270_v14  ;;  %vm9276_vm5 = vweird.f32 %v9270_v14  ;;  %v9280_v12 = vand.u32 2147483647, %v9270_v14 }
0x25d2   :  { %15257 = vrcp.f32 %v9472_v59  ;;  %v9484_v35 = vand.u32 2147483648, %v9472_v59  ;;  %vm9478_vm13 = vweird.f32 %v9472_v59  ;;  %v9482_v22 = vand.u32 2147483647, %v9472_v59 }
0x25d3   :  { %v9283_v20 = vor.u32 1.1754944e-38, %v9282_v56  ;;  %vm9281_vm11 = vcmp.eq.f32.partialorder %v9280_v12, 8.507059e+37 }
0x25d4   :  { %v9485_v50 = vor.u32 1.1754944e-38, %v9484_v35  ;;  %vm9483_vm15 = vcmp.eq.f32.partialorder %v9482_v22, 8.507059e+37 }
0x25d7   :  { %v15256_v8 = vpop.eup %15255 }
0x25d8   :  { %v9272_v38 = vmul.f32 %v15256_v8, %v9270_v14  ;;  %v15258_v45 = vpop.eup %15257  ;;  %vm9277_vm9 = vweird.f32 %v15256_v8 }
0x25d9   :  { %v9474_v0 = vmul.f32 %v15258_v45, %v9472_v59  ;;  %vm9278_vm10 = vmor %vm9276_vm5, %vm9277_vm9  ;;  %vm9479_vm12 = vweird.f32 %v15258_v45 }
0x25da   :  { %v9273_v10 = vsub.f32 1.0, %v9272_v38  ;;  %vm9480_vm14 = vmor %vm9478_vm13, %vm9479_vm12 }
0x25db   :  { %v9475_v2 = vsub.f32 1.0, %v9474_v0 }
0x25dc   :  { %v9274_v25 = vmul.f32 %v15256_v8, %v9273_v10 }
0x25dd   :  { %v9476_v58 = vmul.f32 %v15258_v45, %v9475_v2 }
0x25de   :  { %v9275_v62 = vadd.f32 %v15256_v8, %v9274_v25 }
0x25df   :  { %v9477_v48 = vadd.f32 %v15258_v45, %v9476_v58 }
0x25e0   :  { %v9279_v41 = vsel %vm9278_vm10, %v15256_v8, %v9275_v62 }
0x25e1   :  { %v9284_v16 = vsel %vm9281_vm11, %v9283_v20, %v9279_v41  ;;  %v9481_v33 = vsel %vm9480_vm14, %v15258_v45, %v9477_v48  ;;  %v17525_v48 = vld [vmem:[%s18095_s12] ss:$0 sm:$0xff] }
0x25e2   :  { %v9486_v5 = vsel %vm9483_vm15, %v9485_v50, %v9481_v33  ;;  %v9287_v3 = vmul.f32 %v9284_v16, %v17409_v57 }
0x25e3   :  { %v9489_v44 = vmul.f32 %v9486_v5, %v17414_v61 }
0x2634   :  { %v9290_v6 = vpop.permute.xlu1 %9289 }
0x2635   :  { %v9292_v11 = vmul.f32 %v9290_v6, %v9284_v16 }
0x2637   :  { %9294 = vrot.lane.b32.xlu0 %v9292_v11, %s15560_s2 }
0x2640   :  { %v9492_v21 = vpop.permute.xlu0 %9491 }
0x2641   :  { %v9494_v32 = vmul.f32 %v9492_v21, %v9486_v5 }
0x2643   :  { %9496 = vrot.lane.b32.xlu2 %v9494_v32, %s15560_s2 }
0x269d   :  { %v9497_v9 = vpop.permute.xlu2 %9496 }
0x269e   :  { %v17469_v29 = vadd.f32 %v9497_v9, %v9489_v44 }
0x26a0   :  { %15259 = vtanh.f32 %v17469_v29 }
0x26a6   :  { %v15260_v19 = vpop.eup %15259 }
0x26a7   :  { %9502 = vrot.lane.b32.xlu1 %v15260_v19, %s15558_s16 }
0x26a9   :  { %v9295_v37 = vpop.permute.xlu0 %9294 }
0x26aa   :  { %v17474_v27 = vadd.f32 %v9295_v37, %v9287_v3 }
0x26ac   :  { %15261 = vtanh.f32 %v17474_v27 }
0x26b2   :  { %v15262_v15 = vpop.eup %15261 }
0x26b3   :  { %9300 = vrot.lane.b32.xlu2 %v15262_v15, %s15558_s16 }
0x270d   :  { %v9301_v39 = vpop.permute.xlu2 %9300 }
0x270e   :  { %v9303_v61 = vmul.f32 %v9301_v39, %v9284_v16 }
0x2710   :  { %9305 = vrot.lane.b32.xlu1 %v9303_v61, %s15561_s15 }
0x2719   :  { %v9503_v14 = vpop.permute.xlu1 %9502 }
0x271a   :  { %v9505_v30 = vmul.f32 %v9503_v14, %v9486_v5 }
0x271c   :  { %9507 = vrot.lane.b32.xlu0 %v9505_v30, %s15561_s15 }
0x2782   :  { %v9306_v8 = vpop.permute.xlu1 %9305 }
0x2783   :  { %9308 = vst.msk [vmem:[%s18096_s13 + $0x28] sm:$0xff] %vm161_vm0, %v9306_v8  ;;  %v9670_v57 = vsel %vm161_vm0, %v9306_v8, 0 }
0x2784   :  { %v9690_v59 = vand.u32 4294901760, %v9670_v57 }
0x2786   :  { %v9691_v38 = vsub.f32 %v9670_v57, %v9690_v59 }
0x2788   :  { %v9692_v62 = vand.u32 4294901760, %v9691_v38 }
0x278a   :  { %v9693_v12 = vsub.f32 %v9691_v38, %v9692_v62 }
0x278c   :  { %v9694_v20 = vand.u32 4294901760, %v9693_v12 }
0x278e   :  { %v9508_v10 = vpop.permute.xlu0 %9507 }
0x278f   :  { %v9509_v25 = vsel %vm161_vm0, %v9508_v10, 0 }
0x2790   :  { %v9529_v45 = vand.u32 4294901760, %v9509_v25 }
0x2792   :  { %v9530_v0 = vsub.f32 %v9509_v25, %v9529_v45  ;;  %9565 = vmatmul.f32.vlgmr.msrb.gmra.mxu3 %v9529_v45 }
0x2793   :  { %9771 = vmatpush.msrb.mxu3 %v17053_v40 }
0x2794   :  { %v9531_v56 = vand.u32 4294901760, %v9530_v0  ;;  %9591 = vmatmul.f32.vlgmr.msra.gmra.mxu0 %v9530_v0 }
0x2795   :  { %9773 = vmatpush.msrb.mxu3 %v17057_v24  ;;  %9798 = vmatpush.msra.mxu0 %v17065_v47 }
0x2796   :  { %v9532_v41 = vsub.f32 %v9530_v0, %v9531_v56  ;;  %9616 = vmatmul.f32.vlgmr.msra.gmra.mxu1 %v9531_v56 }
0x2797   :  { %9802 = vmatpush.msra.mxu0 %v17073_v7  ;;  %9823 = vmatpush.msra.mxu1 %v17053_v40 }
0x2798   :  { %v9533_v2 = vand.u32 4294901760, %v9532_v41 }
0x2799   :  { %9825 = vmatpush.msra.mxu1 %v17057_v24 }
0x279a   :  { %9534 = vmatmul.f32.vlgmr.msrb.gmra.mxu2 %v9533_v2  ;;  %9666 = vmatmul.f32.vlgmr.msra.gmra.mxu3 %v9529_v45 }
0x279b   :  { %9746 = vmatpush.msrb.mxu2 %v17060_v52  ;;  %9920 = vmatpush.msra.mxu3 %v16971_v34 }
0x279c   :  { %9695 = vmatmul.f32.vlgmr.msrb.gmra.mxu0 %v9694_v20 }
0x279d   :  { %9749 = vmatpush.msrb.mxu2 %v17068_v60  ;;  %9926 = vmatpush.msra.mxu3 %v16977_v55 }
0x279e   :  { %9726 = vmatmul.f32.vlgmr.msrb.gmra.mxu1 %v9690_v59  ;;  %9948 = vmatpush.msrb.mxu0 %v16950_v13 }
0x279f   :  { %9973 = vmatpush.msrb.mxu1 %v16946_v1 }
0x27a0   :  { %9951 = vmatpush.msrb.mxu0 %v16960_v26 }
0x27a1   :  { %9975 = vmatpush.msrb.mxu1 %v16952_v43 }
0x27a2   :  { %9643 = vmatmul.f32.vlgmr.msra.gmra.mxu2 %v9529_v45  ;;  %9777 = vmatmul.f32.vlgmr.msrb.gmra.mxu3 %v9692_v62 }
0x27a3   :  { %9889 = vmatpush.msra.mxu2 %v16946_v1  ;;  %10025 = vmatpush.msrb.mxu3 %v16946_v1 }
0x27a4   :  { %9804 = vmatmul.f32.vlgmr.msra.gmra.mxu0 %v9690_v59 }
0x27a5   :  { %9891 = vmatpush.msra.mxu2 %v16952_v43  ;;  %10027 = vmatpush.msrb.mxu3 %v16952_v43 }
0x27a6   :  { %9827 = vmatmul.f32.vlgmr.msra.gmra.mxu1 %v9690_v59  ;;  %10091 = vmatpush.msra.mxu0 %v17019_v23 }
0x27a7   :  { %10122 = vmatpush.msra.mxu1 %v17044_v36 }
0x27a8   :  { %10093 = vmatpush.msra.mxu0 %v17024_v31 }
0x27a9   :  { %10128 = vmatpush.msra.mxu1 %v17050_v17 }
0x27aa   :  { %9752 = vmatmul.f32.vlgmr.msrb.gmra.mxu2 %v9691_v38  ;;  %9928 = vmatmul.f32.vlgmr.msra.gmra.mxu3 %v9529_v45 }
0x27ab   :  { %10000 = vmatpush.msrb.mxu2 %v16956_v42  ;;  %10175 = vmatpush.msra.mxu3 %v17019_v23 }
0x27ac   :  { %9954 = vmatmul.f32.vlgmr.msrb.gmra.mxu0 %v9530_v0 }
0x27ad   :  { %10004 = vmatpush.msrb.mxu2 %v16967_v46  ;;  %10177 = vmatpush.msra.mxu3 %v17024_v31 }
0x27ae   :  { %9979 = vmatmul.f32.vlgmr.msrb.gmra.mxu1 %v9531_v56  ;;  %10202 = vmatpush.msrb.mxu0 %v17029_v28 }
0x27af   :  { %10227 = vmatpush.msrb.mxu1 %v17019_v23 }
0x27b0   :  { %10206 = vmatpush.msrb.mxu0 %v17040_v63 }
0x27b1   :  { %10229 = vmatpush.msrb.mxu1 %v17024_v31 }
0x27b2   :  { %9897 = vmatmul.f32.vlgmr.msra.gmra.mxu2 %v9533_v2  ;;  %10029 = vmatmul.f32.vlgmr.msrb.gmra.mxu3 %v9529_v45 }
0x27b3   :  { %10150 = vmatpush.msra.mxu2 %v17022_v4  ;;  %10283 = vmatpush.msrb.mxu3 %v17075_v18 }
0x27b5   :  { %10153 = vmatpush.msra.mxu2 %v17032_v53  ;;  %10289 = vmatpush.msrb.mxu3 %v17080_v54 }
0x27ba   :  { %10006 = vmatmul.f32.vlgmr.msrb.gmra.mxu2 %v9529_v45 }
0x27bb   :  { %10252 = vmatpush.msrb.mxu2 %v17053_v40 }
0x27bd   :  { %10254 = vmatpush.msrb.mxu2 %v17057_v24 }
0x2811   :  { %v9592_v16 = vpop.f32.mrf.mxu0 }
0x2813   :  { %v9617_v11 = vpop.f32.mrf.mxu1 }
0x2815   :  { %v9566_v6 = vpop.f32.mrf.mxu3 }
0x2819   :  { %v9696_v33 = vpop.f32.mrf.mxu0 }
0x281b   :  { %v9727_v5 = vpop.f32.mrf.mxu1 }
0x281c   :  { %v9728_v9 = vadd.f32 %v9727_v5, %v9696_v33 }
0x281d   :  { %v9535_v58 = vpop.f32.mrf.mxu2  ;;  %v9667_v22 = vpop.f32.mrf.mxu3 }
0x281e   :  { %v9536_v35 = vadd.f32 %v17525_v48, %v9535_v58 }
0x2820   :  { %v9567_v50 = vadd.f32 %v9566_v6, %v9536_v35 }
0x2821   :  { %v9805_v3 = vpop.f32.mrf.mxu0 }
0x2822   :  { %v9593_v32 = vadd.f32 %v9592_v16, %v9567_v50 }
0x2823   :  { %v9828_v14 = vpop.f32.mrf.mxu1 }
0x2824   :  { %v9618_v19 = vadd.f32 %v9617_v11, %v9593_v32 }
0x2825   :  { %v9644_v21 = vpop.f32.mrf.mxu2  ;;  %v9778_v44 = vpop.f32.mrf.mxu3 }
0x2826   :  { %v9645_v39 = vadd.f32 %v9644_v21, %v9618_v19 }
0x2828   :  { %v9668_v8 = vadd.f32 %v9667_v22, %v9645_v39 }
0x2829   :  { %v9955_v45 = vpop.f32.mrf.mxu0 }
0x282b   :  { %v9980_v0 = vpop.f32.mrf.mxu1 }
0x282d   :  { %v9753_v37 = vpop.f32.mrf.mxu2  ;;  %v9929_v59 = vpop.f32.mrf.mxu3 }
0x282e   :  { %v9754_v15 = vadd.f32 %v9753_v37, %v9728_v9 }
0x2830   :  { %v9779_v61 = vadd.f32 %v9778_v44, %v9754_v15 }
0x2832   :  { %v9806_v30 = vadd.f32 %v9805_v3, %v9779_v61 }
0x2834   :  { %v9829_v57 = vadd.f32 %v9828_v14, %v9806_v30 }
0x2835   :  { %v9898_v38 = vpop.f32.mrf.mxu2  ;;  %v10030_v20 = vpop.f32.mrf.mxu3 }
0x2836   :  { %v9831_v10 = vadd.f32 %v9829_v57, %v9668_v8  ;;  %v9930_v25 = vadd.f32 %v9929_v59, %v9898_v38 }
0x2838   :  { %15263 = vtanh.f32 %v9831_v10  ;;  %v9956_v62 = vadd.f32 %v9955_v45, %v9930_v25  ;;  %v14995_v22 = vmul.f32 -1.442695, %v9831_v10 }
0x283a   :  { %v9981_v56 = vadd.f32 %v9980_v0, %v9956_v62 }
0x283d   :  { %v10007_v12 = vpop.f32.mrf.mxu2 }
0x283e   :  { %v15264_v41 = vpop.eup %15263  ;;  %v10008_v2 = vadd.f32 %v10007_v12, %v9981_v56 }
0x283f   :  { %9854 = vrot.lane.b32.xlu0 %v15264_v41, %s15559_s9 }
0x2840   :  { %v10031_v6 = vadd.f32 %v10030_v20, %v10008_v2 }
0x2842   :  { %v10033_v16 = vadd.f32 %v10031_v6, %v17140_v51 }
0x2844   :  { %15265 = vtanh.f32 %v10033_v16  ;;  %v14996_v58 = vmul.f32 -1.442695, %v10033_v16 }
0x2846   :  { %15267 = vpow2.f32 %v14996_v58 }
0x2847   :  { %15269 = vpow2.f32 %v14995_v22 }
0x284a   :  { %v15266_v11 = vpop.eup %15265 }
0x284b   :  { %10056 = vrot.lane.b32.xlu2 %v15266_v11, %s15559_s9 }
0x284c   :  { %v15268_v35 = vpop.eup %15267 }
0x284d   :  { %v10037_v33 = vadd.f32 1.0, %v15268_v35  ;;  %v15270_v50 = vpop.eup %15269 }
0x284e   :  { %v9835_v5 = vadd.f32 1.0, %v15270_v50 }
0x284f   :  { %15271 = vrcp.f32 %v10037_v33  ;;  %v10049_v15 = vand.u32 2147483648, %v10037_v33  ;;  %vm10043_vm2 = vweird.f32 %v10037_v33  ;;  %v10047_v39 = vand.u32 2147483647, %v10037_v33 }
0x2850   :  { %15273 = vrcp.f32 %v9835_v5  ;;  %v9847_v25 = vand.u32 2147483648, %v9835_v5  ;;  %vm9841_vm7 = vweird.f32 %v9835_v5  ;;  %v9845_v45 = vand.u32 2147483647, %v9835_v5 }
0x2851   :  { %v10050_v30 = vor.u32 1.1754944e-38, %v10049_v15  ;;  %vm10048_vm4 = vcmp.eq.f32.partialorder %v10047_v39, 8.507059e+37 }
0x2852   :  { %v9848_v0 = vor.u32 1.1754944e-38, %v9847_v25  ;;  %vm9846_vm9 = vcmp.eq.f32.partialorder %v9845_v45, 8.507059e+37 }
0x2855   :  { %v15272_v21 = vpop.eup %15271 }
0x2856   :  { %v10039_v32 = vmul.f32 %v15272_v21, %v10037_v33  ;;  %v15274_v19 = vpop.eup %15273  ;;  %vm10044_vm1 = vweird.f32 %v15272_v21 }
0x2857   :  { %v9837_v37 = vmul.f32 %v15274_v19, %v9835_v5  ;;  %vm10045_vm3 = vmor %vm10043_vm2, %vm10044_vm1  ;;  %vm9842_vm6 = vweird.f32 %v15274_v19 }
0x2858   :  { %v10040_v44 = vsub.f32 1.0, %v10039_v32  ;;  %vm9843_vm8 = vmor %vm9841_vm7, %vm9842_vm6 }
0x2859   :  { %v9838_v14 = vsub.f32 1.0, %v9837_v37 }
0x285a   :  { %v10041_v9 = vmul.f32 %v15272_v21, %v10040_v44 }
0x285b   :  { %v9839_v38 = vmul.f32 %v15274_v19, %v9838_v14 }
0x285c   :  { %v10042_v3 = vadd.f32 %v15272_v21, %v10041_v9 }
0x285d   :  { %v9840_v10 = vadd.f32 %v15274_v19, %v9839_v38 }
0x285e   :  { %v10046_v61 = vsel %vm10045_vm3, %v15272_v21, %v10042_v3 }
0x285f   :  { %v10051_v57 = vsel %vm10048_vm4, %v10050_v30, %v10046_v61  ;;  %v9844_v62 = vsel %vm9843_vm8, %v15274_v19, %v9840_v10 }
0x2860   :  { %v9849_v12 = vsel %vm9846_vm9, %v9848_v0, %v9844_v62  ;;  %v10054_v11 = vmul.f32 %v10051_v57, %v17469_v29 }
0x2861   :  { %v9852_v2 = vmul.f32 %v9849_v12, %v17474_v27 }
0x28a5   :  { %v10057_v8 = vpop.permute.xlu2 %10056 }
0x28a6   :  { %v10059_v59 = vmul.f32 %v10057_v8, %v10051_v57 }
0x28a8   :  { %10061 = vrot.lane.b32.xlu1 %v10059_v59, %s15560_s2 }
0x28b1   :  { %v9855_v56 = vpop.permute.xlu0 %9854 }
0x28b2   :  { %v9857_v41 = vmul.f32 %v9855_v56, %v9849_v12 }
0x28b4   :  { %9859 = vrot.lane.b32.xlu2 %v9857_v41, %s15560_s2 }
0x290e   :  { %v9860_v20 = vpop.permute.xlu2 %9859 }
0x290f   :  { %v17534_v6 = vadd.f32 %v9860_v20, %v9852_v2 }
0x2911   :  { %15275 = vtanh.f32 %v17534_v6 }
0x2917   :  { %v15276_v16 = vpop.eup %15275 }
0x2918   :  { %9865 = vrot.lane.b32.xlu1 %v15276_v16, %s15558_s16 }
0x291a   :  { %v10062_v58 = vpop.permute.xlu1 %10061 }
0x291b   :  { %v17539_v35 = vadd.f32 %v10062_v58, %v10054_v11 }
0x291d   :  { %15277 = vtanh.f32 %v17539_v35 }
0x2923   :  { %v15278_v22 = vpop.eup %15277 }
0x2924   :  { %10067 = vrot.lane.b32.xlu0 %v15278_v22, %s15558_s16 }
0x298a   :  { %v9866_v33 = vpop.permute.xlu1 %9865 }
0x298b   :  { %v9868_v27 = vmul.f32 %v9866_v33, %v9849_v12 }
0x298d   :  { %9870 = vrot.lane.b32.xlu0 %v9868_v27, %s15561_s15 }
0x2996   :  { %v10068_v50 = vpop.permute.xlu0 %10067 }
0x2997   :  { %v10070_v21 = vmul.f32 %v10068_v50, %v10051_v57 }
0x2999   :  { %10072 = vrot.lane.b32.xlu2 %v10070_v21, %s15561_s15 }
0x29f3   :  { %v10073_v5 = vpop.permute.xlu2 %10072 }
0x29f4   :  { %v10074_v32 = vsel %vm161_vm0, %v10073_v5, 0 }
0x29f5   :  { %v17546_v29 = vand.u32 4294901760, %v10074_v32 }
0x29f7   :  { %v10095_v44 = vsub.f32 %v10074_v32, %v17546_v29  ;;  %10130 = vmatmul.f32.vlgmr.msra.gmra.mxu1 %v17546_v29 }
0x29f8   :  { %10336 = vmatpush.msra.mxu1 %v17053_v40 }
0x29f9   :  { %v10096_v9 = vand.u32 4294901760, %v10095_v44  ;;  %10156 = vmatmul.f32.vlgmr.msra.gmra.mxu2 %v10095_v44 }
0x29fa   :  { %10338 = vmatpush.msra.mxu1 %v17057_v24  ;;  %10363 = vmatpush.msra.mxu2 %v17065_v47 }
0x29fb   :  { %v10097_v19 = vsub.f32 %v10095_v44, %v10096_v9  ;;  %10181 = vmatmul.f32.vlgmr.msra.gmra.mxu3 %v10096_v9 }
0x29fc   :  { %10388 = vmatpush.msra.mxu3 %v17053_v40  ;;  %10367 = vmatpush.msra.mxu2 %v17073_v7 }
0x29fd   :  { %v10098_v3 = vand.u32 4294901760, %v10097_v19 }
0x29fe   :  { %10390 = vmatpush.msra.mxu3 %v17057_v24 }
0x29ff   :  { %10099 = vmatmul.f32.vlgmr.msra.gmra.mxu0 %v10098_v3  ;;  %10231 = vmatmul.f32.vlgmr.msrb.gmra.mxu1 %v17546_v29  ;;  %v9871_v37 = vpop.permute.xlu0 %9870 }
0x2a00   :  { %9873 = vst.msk [vmem:[%s18096_s13 + $0x30] sm:$0xff] %vm161_vm0, %v9871_v37  ;;  %v10235_v15 = vsel %vm161_vm0, %v9871_v37, 0  ;;  %10311 = vmatpush.msra.mxu0 %v17060_v52  ;;  %10485 = vmatpush.msrb.mxu1 %v16971_v34 }
0x2a01   :  { %v10255_v39 = vand.u32 4294901760, %v10235_v15 }
0x2a02   :  { %10314 = vmatpush.msra.mxu0 %v17068_v60  ;;  %10491 = vmatpush.msrb.mxu1 %v16977_v55 }
0x2a03   :  { %v10256_v61 = vsub.f32 %v10235_v15, %v10255_v39  ;;  %10291 = vmatmul.f32.vlgmr.msrb.gmra.mxu3 %v10255_v39 }
0x2a04   :  { %10538 = vmatpush.msrb.mxu3 %v16946_v1 }
0x2a05   :  { %v10257_v14 = vand.u32 4294901760, %v10256_v61 }
0x2a06   :  { %10540 = vmatpush.msrb.mxu3 %v16952_v43 }
0x2a07   :  { %v10258_v30 = vsub.f32 %v10256_v61, %v10257_v14  ;;  %10208 = vmatmul.f32.vlgmr.msrb.gmra.mxu0 %v17546_v29  ;;  %10342 = vmatmul.f32.vlgmr.msra.gmra.mxu1 %v10257_v14 }
0x2a08   :  { %10454 = vmatpush.msrb.mxu0 %v16946_v1  ;;  %10590 = vmatpush.msra.mxu1 %v16946_v1 }
0x2a09   :  { %v10259_v8 = vand.u32 4294901760, %v10258_v30 }
0x2a0a   :  { %10456 = vmatpush.msrb.mxu0 %v16952_v43  ;;  %10592 = vmatpush.msra.mxu1 %v16952_v43 }
0x2a0b   :  { %10260 = vmatmul.f32.vlgmr.msrb.gmra.mxu2 %v10259_v8  ;;  %10392 = vmatmul.f32.vlgmr.msra.gmra.mxu3 %v10255_v39 }
0x2a0c   :  { %10513 = vmatpush.msrb.mxu2 %v16950_v13  ;;  %10687 = vmatpush.msra.mxu3 %v17044_v36 }
0x2a0e   :  { %10516 = vmatpush.msrb.mxu2 %v16960_v26  ;;  %10693 = vmatpush.msra.mxu3 %v17050_v17 }
0x2a0f   :  { %10317 = vmatmul.f32.vlgmr.msra.gmra.mxu0 %v10256_v61  ;;  %10493 = vmatmul.f32.vlgmr.msrb.gmra.mxu1 %v17546_v29 }
0x2a10   :  { %10565 = vmatpush.msra.mxu0 %v16956_v42  ;;  %10740 = vmatpush.msrb.mxu1 %v17019_v23 }
0x2a12   :  { %10569 = vmatpush.msra.mxu0 %v16967_v46  ;;  %10742 = vmatpush.msrb.mxu1 %v17024_v31 }
0x2a13   :  { %10369 = vmatmul.f32.vlgmr.msra.gmra.mxu2 %v10255_v39  ;;  %10544 = vmatmul.f32.vlgmr.msrb.gmra.mxu3 %v10096_v9 }
0x2a14   :  { %10656 = vmatpush.msra.mxu2 %v17019_v23  ;;  %10792 = vmatpush.msrb.mxu3 %v17019_v23 }
0x2a16   :  { %10658 = vmatpush.msra.mxu2 %v17024_v31  ;;  %10794 = vmatpush.msrb.mxu3 %v17024_v31 }
0x2a17   :  { %10462 = vmatmul.f32.vlgmr.msrb.gmra.mxu0 %v10098_v3  ;;  %10594 = vmatmul.f32.vlgmr.msra.gmra.mxu1 %v17546_v29 }
0x2a18   :  { %10715 = vmatpush.msrb.mxu0 %v17022_v4  ;;  %10848 = vmatpush.msra.mxu1 %v17075_v18 }
0x2a1a   :  { %10718 = vmatpush.msrb.mxu0 %v17032_v53  ;;  %10854 = vmatpush.msra.mxu1 %v17080_v54 }
0x2a1b   :  { %10519 = vmatmul.f32.vlgmr.msrb.gmra.mxu2 %v10095_v44 }
0x2a1c   :  { %10767 = vmatpush.msrb.mxu2 %v17029_v28 }
0x2a1e   :  { %10771 = vmatpush.msrb.mxu2 %v17040_v63 }
0x2a1f   :  { %10571 = vmatmul.f32.vlgmr.msra.gmra.mxu0 %v17546_v29 }
0x2a20   :  { %10817 = vmatpush.msra.mxu0 %v17053_v40 }
0x2a22   :  { %10819 = vmatpush.msra.mxu0 %v17057_v24 }
0x2a74   :  { %v10131_v57 = vpop.f32.mrf.mxu1 }
0x2a7c   :  { %v10100_v59 = vpop.f32.mrf.mxu0  ;;  %v10157_v45 = vpop.f32.mrf.mxu2 }
0x2a7d   :  { %v10101_v25 = vadd.f32 %v17525_v48, %v10100_v59  ;;  %v10232_v62 = vpop.f32.mrf.mxu1 }
0x2a7e   :  { %v10182_v38 = vpop.f32.mrf.mxu3 }
0x2a7f   :  { %v10132_v0 = vadd.f32 %v10131_v57, %v10101_v25 }
0x2a81   :  { %v10158_v12 = vadd.f32 %v10157_v45, %v10132_v0 }
0x2a83   :  { %v10183_v11 = vadd.f32 %v10182_v38, %v10158_v12 }
0x2a84   :  { %v10209_v10 = vpop.f32.mrf.mxu0 }
0x2a85   :  { %v10343_v16 = vpop.f32.mrf.mxu1  ;;  %v10210_v22 = vadd.f32 %v10209_v10, %v10183_v11 }
0x2a86   :  { %v10292_v56 = vpop.f32.mrf.mxu3 }
0x2a87   :  { %v10233_v32 = vadd.f32 %v10232_v62, %v10210_v22 }
0x2a8c   :  { %v10318_v41 = vpop.f32.mrf.mxu0 }
0x2a8d   :  { %v10494_v44 = vpop.f32.mrf.mxu1 }
0x2a8e   :  { %v10261_v2 = vpop.f32.mrf.mxu2  ;;  %v10393_v27 = vpop.f32.mrf.mxu3 }
0x2a8f   :  { %v10293_v20 = vadd.f32 %v10292_v56, %v10261_v2 }
0x2a91   :  { %v10319_v58 = vadd.f32 %v10318_v41, %v10293_v20 }
0x2a93   :  { %v10344_v33 = vadd.f32 %v10343_v16, %v10319_v58 }
0x2a94   :  { %v10463_v5 = vpop.f32.mrf.mxu0 }
0x2a95   :  { %v10495_v19 = vadd.f32 %v10494_v44, %v10463_v5  ;;  %v10595_v8 = vpop.f32.mrf.mxu1 }
0x2a96   :  { %v10370_v50 = vpop.f32.mrf.mxu2  ;;  %v10545_v15 = vpop.f32.mrf.mxu3 }
0x2a97   :  { %v10371_v21 = vadd.f32 %v10370_v50, %v10344_v33 }
0x2a99   :  { %v10394_v29 = vadd.f32 %v10393_v27, %v10371_v21 }
0x2a9b   :  { %v10396_v9 = vadd.f32 %v10394_v29, %v10233_v32 }
0x2a9c   :  { %v10572_v61 = vpop.f32.mrf.mxu0 }
0x2a9d   :  { %15279 = vtanh.f32 %v10396_v9  ;;  %v14997_v10 = vmul.f32 -1.442695, %v10396_v9 }
0x2a9e   :  { %v10520_v3 = vpop.f32.mrf.mxu2 }
0x2a9f   :  { %v10521_v37 = vadd.f32 %v10520_v3, %v10495_v19 }
0x2aa1   :  { %v10546_v39 = vadd.f32 %v10545_v15, %v10521_v37 }
0x2aa3   :  { %v15280_v14 = vpop.eup %15279  ;;  %v10573_v30 = vadd.f32 %v10572_v61, %v10546_v39 }
0x2aa4   :  { %10419 = vrot.lane.b32.xlu2 %v15280_v14, %s15559_s9 }
0x2aa5   :  { %v10596_v57 = vadd.f32 %v10595_v8, %v10573_v30 }
0x2aa7   :  { %v10598_v59 = vadd.f32 %v10596_v57, %v17009_v49 }
0x2aa9   :  { %15281 = vtanh.f32 %v10598_v59  ;;  %v14998_v41 = vmul.f32 -1.442695, %v10598_v59 }
0x2aaa   :  { %15283 = vpow2.f32 %v14997_v10 }
0x2aaf   :  { %v15282_v38 = vpop.eup %15281 }
0x2ab0   :  { %10621 = vrot.lane.b32.xlu1 %v15282_v38, %s15559_s9  ;;  %v15284_v25 = vpop.eup %15283 }
0x2ab1   :  { %v10400_v45 = vadd.f32 1.0, %v15284_v25 }
0x2ab3   :  { %15285 = vrcp.f32 %v10400_v45  ;;  %v10412_v20 = vand.u32 2147483648, %v10400_v45  ;;  %vm10406_vm10 = vweird.f32 %v10400_v45  ;;  %v10410_v16 = vand.u32 2147483647, %v10400_v45 }
0x2ab4   :  { %15287 = vpow2.f32 %v14998_v41 }
0x2ab5   :  { %v10413_v58 = vor.u32 1.1754944e-38, %v10412_v20  ;;  %vm10411_vm12 = vcmp.eq.f32.partialorder %v10410_v16, 8.507059e+37 }
0x2ab9   :  { %v15286_v62 = vpop.eup %15285 }
0x2aba   :  { %v10402_v0 = vmul.f32 %v15286_v62, %v10400_v45  ;;  %vm10407_vm5 = vweird.f32 %v15286_v62  ;;  %v15288_v27 = vpop.eup %15287 }
0x2abb   :  { %vm10408_vm11 = vmor %vm10406_vm10, %vm10407_vm5  ;;  %v10602_v21 = vadd.f32 1.0, %v15288_v27 }
0x2abc   :  { %v10403_v56 = vsub.f32 1.0, %v10402_v0 }
0x2abd   :  { %15289 = vrcp.f32 %v10602_v21  ;;  %v10614_v19 = vand.u32 2147483648, %v10602_v21  ;;  %vm10608_vm14 = vweird.f32 %v10602_v21  ;;  %v10612_v3 = vand.u32 2147483647, %v10602_v21 }
0x2abe   :  { %v10404_v12 = vmul.f32 %v15286_v62, %v10403_v56 }
0x2abf   :  { %v10615_v15 = vor.u32 1.1754944e-38, %v10614_v19  ;;  %vm10613_vm1 = vcmp.eq.f32.partialorder %v10612_v3, 8.507059e+37 }
0x2ac0   :  { %v10405_v2 = vadd.f32 %v15286_v62, %v10404_v12 }
0x2ac2   :  { %v10409_v11 = vsel %vm10408_vm11, %v15286_v62, %v10405_v2 }
0x2ac3   :  { %v10414_v33 = vsel %vm10411_vm12, %v10413_v58, %v10409_v11  ;;  %v15290_v5 = vpop.eup %15289 }
0x2ac4   :  { %v10604_v32 = vmul.f32 %v15290_v5, %v10602_v21  ;;  %vm10609_vm13 = vweird.f32 %v15290_v5  ;;  %v10417_v30 = vmul.f32 %v10414_v33, %v17534_v6 }
0x2ac5   :  { %vm10610_vm15 = vmor %vm10608_vm14, %vm10609_vm13 }
0x2ac6   :  { %v10605_v29 = vsub.f32 1.0, %v10604_v32 }
0x2ac8   :  { %v10606_v44 = vmul.f32 %v15290_v5, %v10605_v29 }
0x2aca   :  { %v10607_v9 = vadd.f32 %v15290_v5, %v10606_v44 }
0x2acc   :  { %v10611_v37 = vsel %vm10610_vm15, %v15290_v5, %v10607_v9 }
0x2acd   :  { %v10616_v61 = vsel %vm10613_vm1, %v10615_v15, %v10611_v37 }
0x2ace   :  { %v10619_v38 = vmul.f32 %v10616_v61, %v17539_v35 }
0x2afe   :  { %v10420_v22 = vpop.permute.xlu2 %10419 }
0x2aff   :  { %v10422_v50 = vmul.f32 %v10420_v22, %v10414_v33 }
0x2b01   :  { %10424 = vrot.lane.b32.xlu1 %v10422_v50, %s15560_s2 }
0x2b22   :  { %v10622_v39 = vpop.permute.xlu1 %10621 }
0x2b23   :  { %v10624_v14 = vmul.f32 %v10622_v39, %v10616_v61 }
0x2b25   :  { %10626 = vrot.lane.b32.xlu0 %v10624_v14, %s15560_s2 }
0x2b73   :  { %v10425_v8 = vpop.permute.xlu1 %10424 }
0x2b74   :  { %v17603_v57 = vadd.f32 %v10425_v8, %v10417_v30 }
0x2b76   :  { %15291 = vtanh.f32 %v17603_v57 }
0x2b7c   :  { %v15292_v59 = vpop.eup %15291 }
0x2b7d   :  { %10430 = vrot.lane.b32.xlu0 %v15292_v59, %s15558_s16 }
0x2b97   :  { %v10627_v10 = vpop.permute.xlu0 %10626 }
0x2b98   :  { %v17608_v25 = vadd.f32 %v10627_v10, %v10619_v38 }
0x2b9a   :  { %15293 = vtanh.f32 %v17608_v25 }
0x2ba0   :  { %v15294_v45 = vpop.eup %15293 }
0x2ba1   :  { %10632 = vrot.lane.b32.xlu2 %v15294_v45, %s15558_s16 }
0x2bef   :  { %v10431_v62 = vpop.permute.xlu0 %10430 }
0x2bf0   :  { %v10433_v6 = vmul.f32 %v10431_v62, %v10414_v33 }
0x2bf2   :  { %10435 = vrot.lane.b32.xlu2 %v10433_v6, %s15561_s15 }
0x2bfb   :  { %v10633_v0 = vpop.permute.xlu2 %10632 }
0x2bfc   :  { %v10635_v56 = vmul.f32 %v10633_v0, %v10616_v61 }
0x2bfe   :  { %10637 = vrot.lane.b32.xlu1 %v10635_v56, %s15561_s15 }
0x2c4c   :  { %v10436_v12 = vpop.permute.xlu2 %10435 }
0x2c4d   :  { %10438 = vst.msk [vmem:[%s18096_s13 + $0x38] sm:$0xff] %vm161_vm0, %v10436_v12  ;;  %v10800_v35 = vsel %vm161_vm0, %v10436_v12, 0 }
0x2c4e   :  { %v10820_v41 = vand.u32 4294901760, %v10800_v35 }
0x2c50   :  { %v10821_v2 = vsub.f32 %v10800_v35, %v10820_v41 }
0x2c52   :  { %v10822_v58 = vand.u32 4294901760, %v10821_v2 }
0x2c54   :  { %v10823_v27 = vsub.f32 %v10821_v2, %v10822_v58 }
0x2c56   :  { %v10824_v5 = vand.u32 4294901760, %v10823_v27 }
0x2c70   :  { %v10638_v20 = vpop.permute.xlu1 %10637 }
0x2c71   :  { %v10639_v16 = vsel %vm161_vm0, %v10638_v20, 0 }
0x2c72   :  { %v10659_v11 = vand.u32 4294901760, %v10639_v16 }
0x2c74   :  { %v10660_v22 = vsub.f32 %v10639_v16, %v10659_v11  ;;  %10695 = vmatmul.f32.vlgmr.msra.gmra.mxu3 %v10659_v11 }
0x2c75   :  { %10901 = vmatpush.msra.mxu3 %v17053_v40 }
0x2c76   :  { %v10661_v33 = vand.u32 4294901760, %v10660_v22  ;;  %10721 = vmatmul.f32.vlgmr.msrb.gmra.mxu0 %v10660_v22 }
0x2c77   :  { %10903 = vmatpush.msra.mxu3 %v17057_v24  ;;  %10928 = vmatpush.msrb.mxu0 %v17065_v47 }
0x2c78   :  { %v10662_v50 = vsub.f32 %v10660_v22, %v10661_v33  ;;  %10746 = vmatmul.f32.vlgmr.msrb.gmra.mxu1 %v10661_v33 }
0x2c79   :  { %10932 = vmatpush.msrb.mxu0 %v17073_v7  ;;  %10953 = vmatpush.msrb.mxu1 %v17053_v40 }
0x2c7a   :  { %v10663_v21 = vand.u32 4294901760, %v10662_v50 }
0x2c7b   :  { %10955 = vmatpush.msrb.mxu1 %v17057_v24 }
0x2c7c   :  { %10664 = vmatmul.f32.vlgmr.msra.gmra.mxu2 %v10663_v21  ;;  %10796 = vmatmul.f32.vlgmr.msrb.gmra.mxu3 %v10659_v11 }
0x2c7d   :  { %10876 = vmatpush.msra.mxu2 %v17060_v52  ;;  %11050 = vmatpush.msrb.mxu3 %v16971_v34 }
0x2c7e   :  { %10825 = vmatmul.f32.vlgmr.msra.gmra.mxu0 %v10824_v5 }
0x2c7f   :  { %10879 = vmatpush.msra.mxu2 %v17068_v60  ;;  %11056 = vmatpush.msrb.mxu3 %v16977_v55 }
0x2c80   :  { %10856 = vmatmul.f32.vlgmr.msra.gmra.mxu1 %v10820_v41  ;;  %11078 = vmatpush.msra.mxu0 %v16950_v13 }
0x2c81   :  { %11103 = vmatpush.msra.mxu1 %v16946_v1 }
0x2c82   :  { %11081 = vmatpush.msra.mxu0 %v16960_v26 }
0x2c83   :  { %11105 = vmatpush.msra.mxu1 %v16952_v43 }
0x2c84   :  { %10773 = vmatmul.f32.vlgmr.msrb.gmra.mxu2 %v10659_v11  ;;  %10907 = vmatmul.f32.vlgmr.msra.gmra.mxu3 %v10822_v58 }
0x2c85   :  { %11019 = vmatpush.msrb.mxu2 %v16946_v1  ;;  %11155 = vmatpush.msra.mxu3 %v16946_v1 }
0x2c86   :  { %10934 = vmatmul.f32.vlgmr.msrb.gmra.mxu0 %v10820_v41 }
0x2c87   :  { %11021 = vmatpush.msrb.mxu2 %v16952_v43  ;;  %11157 = vmatpush.msra.mxu3 %v16952_v43 }
0x2c88   :  { %10957 = vmatmul.f32.vlgmr.msrb.gmra.mxu1 %v10820_v41  ;;  %11221 = vmatpush.msrb.mxu0 %v17019_v23 }
0x2c89   :  { %11252 = vmatpush.msrb.mxu1 %v17044_v36 }
0x2c8a   :  { %11223 = vmatpush.msrb.mxu0 %v17024_v31 }
0x2c8b   :  { %11258 = vmatpush.msrb.mxu1 %v17050_v17 }
0x2c8c   :  { %10882 = vmatmul.f32.vlgmr.msra.gmra.mxu2 %v10821_v2  ;;  %11058 = vmatmul.f32.vlgmr.msrb.gmra.mxu3 %v10659_v11 }
0x2c8d   :  { %11130 = vmatpush.msra.mxu2 %v16956_v42  ;;  %11305 = vmatpush.msrb.mxu3 %v17019_v23 }
0x2c8e   :  { %11084 = vmatmul.f32.vlgmr.msra.gmra.mxu0 %v10660_v22 }
0x2c8f   :  { %11134 = vmatpush.msra.mxu2 %v16967_v46  ;;  %11307 = vmatpush.msrb.mxu3 %v17024_v31 }
0x2c90   :  { %11109 = vmatmul.f32.vlgmr.msra.gmra.mxu1 %v10661_v33  ;;  %11332 = vmatpush.msra.mxu0 %v17029_v28 }
0x2c91   :  { %11357 = vmatpush.msra.mxu1 %v17019_v23 }
0x2c92   :  { %11336 = vmatpush.msra.mxu0 %v17040_v63 }
0x2c93   :  { %11359 = vmatpush.msra.mxu1 %v17024_v31 }
0x2c94   :  { %11027 = vmatmul.f32.vlgmr.msrb.gmra.mxu2 %v10663_v21  ;;  %11159 = vmatmul.f32.vlgmr.msra.gmra.mxu3 %v10659_v11 }
0x2c95   :  { %11280 = vmatpush.msrb.mxu2 %v17022_v4  ;;  %11413 = vmatpush.msra.mxu3 %v17075_v18 }
0x2c97   :  { %11283 = vmatpush.msrb.mxu2 %v17032_v53  ;;  %11419 = vmatpush.msra.mxu3 %v17080_v54 }
0x2c9c   :  { %11136 = vmatmul.f32.vlgmr.msra.gmra.mxu2 %v10659_v11 }
0x2c9d   :  { %11382 = vmatpush.msra.mxu2 %v17053_v40 }
0x2c9f   :  { %11384 = vmatpush.msra.mxu2 %v17057_v24 }
0x2cf3   :  { %v10722_v29 = vpop.f32.mrf.mxu0 }
0x2cf5   :  { %v10747_v44 = vpop.f32.mrf.mxu1 }
0x2cf7   :  { %v10696_v32 = vpop.f32.mrf.mxu3 }
0x2cfb   :  { %v10826_v37 = vpop.f32.mrf.mxu0 }
0x2cfd   :  { %v10857_v61 = vpop.f32.mrf.mxu1 }
0x2cfe   :  { %v10858_v8 = vadd.f32 %v10857_v61, %v10826_v37 }
0x2cff   :  { %v10665_v9 = vpop.f32.mrf.mxu2  ;;  %v10797_v3 = vpop.f32.mrf.mxu3 }
0x2d00   :  { %v10666_v19 = vadd.f32 %v17525_v48, %v10665_v9 }
0x2d02   :  { %v10697_v15 = vadd.f32 %v10696_v32, %v10666_v19 }
0x2d03   :  { %v10935_v38 = vpop.f32.mrf.mxu0 }
0x2d04   :  { %v10723_v14 = vadd.f32 %v10722_v29, %v10697_v15 }
0x2d05   :  { %v10958_v0 = vpop.f32.mrf.mxu1 }
0x2d06   :  { %v10748_v59 = vadd.f32 %v10747_v44, %v10723_v14 }
0x2d07   :  { %v10774_v39 = vpop.f32.mrf.mxu2  ;;  %v10908_v30 = vpop.f32.mrf.mxu3 }
0x2d08   :  { %v10775_v62 = vadd.f32 %v10774_v39, %v10748_v59 }
0x2d0a   :  { %v10798_v12 = vadd.f32 %v10797_v3, %v10775_v62 }
0x2d0b   :  { %v11085_v16 = vpop.f32.mrf.mxu0 }
0x2d0d   :  { %v11110_v58 = vpop.f32.mrf.mxu1 }
0x2d0f   :  { %v10883_v10 = vpop.f32.mrf.mxu2  ;;  %v11059_v41 = vpop.f32.mrf.mxu3 }
0x2d10   :  { %v10884_v45 = vadd.f32 %v10883_v10, %v10858_v8 }
0x2d12   :  { %v10909_v6 = vadd.f32 %v10908_v30, %v10884_v45 }
0x2d14   :  { %v10936_v56 = vadd.f32 %v10935_v38, %v10909_v6 }
0x2d16   :  { %v10959_v35 = vadd.f32 %v10958_v0, %v10936_v56 }
0x2d17   :  { %v11028_v48 = vpop.f32.mrf.mxu2  ;;  %v11160_v21 = vpop.f32.mrf.mxu3 }
0x2d18   :  { %v10961_v2 = vadd.f32 %v10959_v35, %v10798_v12  ;;  %v11060_v20 = vadd.f32 %v11059_v41, %v11028_v48 }
0x2d1a   :  { %15295 = vtanh.f32 %v10961_v2  ;;  %v11086_v11 = vadd.f32 %v11085_v16, %v11060_v20  ;;  %v14999_v44 = vmul.f32 -1.442695, %v10961_v2 }
0x2d1c   :  { %v11111_v22 = vadd.f32 %v11110_v58, %v11086_v11 }
0x2d1f   :  { %v11137_v33 = vpop.f32.mrf.mxu2 }
0x2d20   :  { %v15296_v27 = vpop.eup %15295  ;;  %v11138_v50 = vadd.f32 %v11137_v33, %v11111_v22 }
0x2d21   :  { %10984 = vrot.lane.b32.xlu1 %v15296_v27, %s15559_s9 }
0x2d22   :  { %v11161_v5 = vadd.f32 %v11160_v21, %v11138_v50 }
0x2d24   :  { %v11163_v32 = vadd.f32 %v11161_v5, %v17140_v51 }
0x2d26   :  { %15297 = vtanh.f32 %v11163_v32  ;;  %v15000_v19 = vmul.f32 -1.442695, %v11163_v32 }
0x2d27   :  { %15299 = vpow2.f32 %v14999_v44 }
0x2d28   :  { %15301 = vpow2.f32 %v15000_v19 }
0x2d2c   :  { %v15298_v29 = vpop.eup %15297 }
0x2d2d   :  { %11186 = vrot.lane.b32.xlu0 %v15298_v29, %s15559_s9  ;;  %v15300_v9 = vpop.eup %15299 }
0x2d2e   :  { %v10965_v3 = vadd.f32 1.0, %v15300_v9  ;;  %v15302_v37 = vpop.eup %15301 }
0x2d2f   :  { %v11167_v39 = vadd.f32 1.0, %v15302_v37 }
0x2d30   :  { %15303 = vrcp.f32 %v10965_v3  ;;  %v10977_v10 = vand.u32 2147483648, %v10965_v3  ;;  %vm10971_vm3 = vweird.f32 %v10965_v3  ;;  %v10975_v45 = vand.u32 2147483647, %v10965_v3 }
0x2d31   :  { %15305 = vrcp.f32 %v11167_v39  ;;  %v11179_v2 = vand.u32 2147483648, %v11167_v39  ;;  %vm11173_vm8 = vweird.f32 %v11167_v39  ;;  %v11177_v20 = vand.u32 2147483647, %v11167_v39 }
0x2d32   :  { %v10978_v0 = vor.u32 1.1754944e-38, %v10977_v10  ;;  %vm10976_vm6 = vcmp.eq.f32.partialorder %v10975_v45, 8.507059e+37 }
0x2d33   :  { %v11180_v11 = vor.u32 1.1754944e-38, %v11179_v2  ;;  %vm11178_vm5 = vcmp.eq.f32.partialorder %v11177_v20, 8.507059e+37 }
0x2d36   :  { %v15304_v15 = vpop.eup %15303 }
0x2d37   :  { %v10967_v61 = vmul.f32 %v15304_v15, %v10965_v3  ;;  %v15306_v8 = vpop.eup %15305  ;;  %vm10972_vm2 = vweird.f32 %v15304_v15 }
0x2d38   :  { %v11169_v38 = vmul.f32 %v15306_v8, %v11167_v39  ;;  %vm10973_vm4 = vmor %vm10971_vm3, %vm10972_vm2  ;;  %vm11174_vm7 = vweird.f32 %v15306_v8 }
0x2d39   :  { %v10968_v14 = vsub.f32 1.0, %v10967_v61  ;;  %vm11175_vm9 = vmor %vm11173_vm8, %vm11174_vm7 }
0x2d3a   :  { %v11170_v6 = vsub.f32 1.0, %v11169_v38 }
0x2d3b   :  { %v10969_v30 = vmul.f32 %v15304_v15, %v10968_v14 }
0x2d3c   :  { %v11171_v41 = vmul.f32 %v15306_v8, %v11170_v6 }
0x2d3d   :  { %v10970_v59 = vadd.f32 %v15304_v15, %v10969_v30 }
0x2d3e   :  { %v11172_v48 = vadd.f32 %v15306_v8, %v11171_v41 }
0x2d3f   :  { %v10974_v62 = vsel %vm10973_vm4, %v15304_v15, %v10970_v59 }
0x2d40   :  { %v10979_v12 = vsel %vm10976_vm6, %v10978_v0, %v10974_v62  ;;  %v11176_v16 = vsel %vm11175_vm9, %v15306_v8, %v11172_v48  ;;  %v17719_v48 = vld [vmem:[%s18095_s12] ss:$0 sm:$0xff] }
0x2d41   :  { %v11181_v22 = vsel %vm11178_vm5, %v11180_v11, %v11176_v16  ;;  %v10982_v32 = vmul.f32 %v10979_v12, %v17603_v57 }
0x2d42   :  { %v11184_v27 = vmul.f32 %v11181_v22, %v17608_v25 }
0x2d93   :  { %v10985_v56 = vpop.permute.xlu1 %10984 }
0x2d94   :  { %v10987_v35 = vmul.f32 %v10985_v56, %v10979_v12 }
0x2d96   :  { %10989 = vrot.lane.b32.xlu0 %v10987_v35, %s15560_s2 }
0x2d9f   :  { %v11187_v58 = vpop.permute.xlu0 %11186 }
0x2da0   :  { %v11189_v33 = vmul.f32 %v11187_v58, %v11181_v22 }
0x2da2   :  { %11191 = vrot.lane.b32.xlu2 %v11189_v33, %s15560_s2 }
0x2dfc   :  { %v11192_v50 = vpop.permute.xlu2 %11191 }
0x2dfd   :  { %v17663_v21 = vadd.f32 %v11192_v50, %v11184_v27 }
0x2dff   :  { %15307 = vtanh.f32 %v17663_v21 }
0x2e05   :  { %v15308_v5 = vpop.eup %15307 }
0x2e06   :  { %11197 = vrot.lane.b32.xlu1 %v15308_v5, %s15558_s16 }
0x2e08   :  { %v10990_v29 = vpop.permute.xlu0 %10989 }
0x2e09   :  { %v17668_v44 = vadd.f32 %v10990_v29, %v10982_v32 }
0x2e0b   :  { %15309 = vtanh.f32 %v17668_v44 }
0x2e11   :  { %v15310_v9 = vpop.eup %15309 }
0x2e12   :  { %10995 = vrot.lane.b32.xlu2 %v15310_v9, %s15558_s16 }
0x2e6c   :  { %v10996_v19 = vpop.permute.xlu2 %10995 }
0x2e6d   :  { %v10998_v25 = vmul.f32 %v10996_v19, %v10979_v12 }
0x2e6f   :  { %11000 = vrot.lane.b32.xlu1 %v10998_v25, %s15561_s15 }
0x2e78   :  { %v11198_v3 = vpop.permute.xlu1 %11197 }
0x2e79   :  { %v11200_v37 = vmul.f32 %v11198_v3, %v11181_v22 }
0x2e7b   :  { %11202 = vrot.lane.b32.xlu0 %v11200_v37, %s15561_s15 }
0x2ee1   :  { %v11001_v15 = vpop.permute.xlu1 %11000 }
0x2ee2   :  { %11003 = vst.msk [vmem:[%s18096_s13 + $0x40] sm:$0xff] %vm161_vm0, %v11001_v15  ;;  %v11365_v57 = vsel %vm161_vm0, %v11001_v15, 0 }
0x2ee3   :  { %v11385_v39 = vand.u32 4294901760, %v11365_v57 }
0x2ee5   :  { %v11386_v61 = vsub.f32 %v11365_v57, %v11385_v39 }
0x2ee7   :  { %v11387_v59 = vand.u32 4294901760, %v11386_v61 }
0x2ee9   :  { %v11388_v45 = vsub.f32 %v11386_v61, %v11387_v59 }
0x2eeb   :  { %v11389_v0 = vand.u32 4294901760, %v11388_v45 }
0x2eed   :  { %v11203_v14 = vpop.permute.xlu0 %11202 }
0x2eee   :  { %v11204_v30 = vsel %vm161_vm0, %v11203_v14, 0 }
0x2eef   :  { %v11224_v8 = vand.u32 4294901760, %v11204_v30 }
0x2ef1   :  { %v11225_v38 = vsub.f32 %v11204_v30, %v11224_v8  ;;  %11260 = vmatmul.f32.vlgmr.msrb.gmra.mxu1 %v11224_v8 }
0x2ef2   :  { %11466 = vmatpush.msrb.mxu1 %v17053_v40 }
0x2ef3   :  { %v11226_v10 = vand.u32 4294901760, %v11225_v38  ;;  %11286 = vmatmul.f32.vlgmr.msrb.gmra.mxu2 %v11225_v38 }
0x2ef4   :  { %11468 = vmatpush.msrb.mxu1 %v17057_v24  ;;  %11493 = vmatpush.msrb.mxu2 %v17065_v47 }
0x2ef5   :  { %v11227_v62 = vsub.f32 %v11225_v38, %v11226_v10  ;;  %11311 = vmatmul.f32.vlgmr.msrb.gmra.mxu3 %v11226_v10 }
0x2ef6   :  { %11497 = vmatpush.msrb.mxu2 %v17073_v7  ;;  %11518 = vmatpush.msrb.mxu3 %v17053_v40 }
0x2ef7   :  { %v11228_v6 = vand.u32 4294901760, %v11227_v62 }
0x2ef8   :  { %11520 = vmatpush.msrb.mxu3 %v17057_v24 }
0x2ef9   :  { %11229 = vmatmul.f32.vlgmr.msrb.gmra.mxu0 %v11228_v6  ;;  %11361 = vmatmul.f32.vlgmr.msra.gmra.mxu1 %v11224_v8 }
0x2efa   :  { %11441 = vmatpush.msrb.mxu0 %v17060_v52  ;;  %11615 = vmatpush.msra.mxu1 %v16971_v34 }
0x2efb   :  { %11390 = vmatmul.f32.vlgmr.msra.gmra.mxu2 %v11389_v0 }
0x2efc   :  { %11444 = vmatpush.msrb.mxu0 %v17068_v60  ;;  %11621 = vmatpush.msra.mxu1 %v16977_v55 }
0x2efd   :  { %11421 = vmatmul.f32.vlgmr.msra.gmra.mxu3 %v11385_v39  ;;  %11643 = vmatpush.msra.mxu2 %v16950_v13 }
0x2efe   :  { %11668 = vmatpush.msra.mxu3 %v16946_v1 }
0x2eff   :  { %11646 = vmatpush.msra.mxu2 %v16960_v26 }
0x2f00   :  { %11670 = vmatpush.msra.mxu3 %v16952_v43 }
0x2f01   :  { %11338 = vmatmul.f32.vlgmr.msra.gmra.mxu0 %v11224_v8  ;;  %11472 = vmatmul.f32.vlgmr.msrb.gmra.mxu1 %v11387_v59 }
0x2f02   :  { %11584 = vmatpush.msra.mxu0 %v16946_v1  ;;  %11720 = vmatpush.msrb.mxu1 %v16946_v1 }
0x2f03   :  { %11499 = vmatmul.f32.vlgmr.msrb.gmra.mxu2 %v11385_v39 }
0x2f04   :  { %11586 = vmatpush.msra.mxu0 %v16952_v43  ;;  %11722 = vmatpush.msrb.mxu1 %v16952_v43 }
0x2f05   :  { %11522 = vmatmul.f32.vlgmr.msrb.gmra.mxu3 %v11385_v39  ;;  %11786 = vmatpush.msrb.mxu2 %v17019_v23 }
0x2f06   :  { %11817 = vmatpush.msrb.mxu3 %v17044_v36 }
0x2f07   :  { %11788 = vmatpush.msrb.mxu2 %v17024_v31 }
0x2f08   :  { %11823 = vmatpush.msrb.mxu3 %v17050_v17 }
0x2f09   :  { %11447 = vmatmul.f32.vlgmr.msrb.gmra.mxu0 %v11386_v61  ;;  %11623 = vmatmul.f32.vlgmr.msra.gmra.mxu1 %v11224_v8 }
0x2f0a   :  { %11695 = vmatpush.msrb.mxu0 %v16956_v42  ;;  %11870 = vmatpush.msra.mxu1 %v17019_v23 }
0x2f0b   :  { %11649 = vmatmul.f32.vlgmr.msra.gmra.mxu2 %v11225_v38 }
0x2f0c   :  { %11699 = vmatpush.msrb.mxu0 %v16967_v46  ;;  %11872 = vmatpush.msra.mxu1 %v17024_v31 }
0x2f0d   :  { %11674 = vmatmul.f32.vlgmr.msra.gmra.mxu3 %v11226_v10  ;;  %11897 = vmatpush.msra.mxu2 %v17029_v28 }
0x2f0e   :  { %11922 = vmatpush.msra.mxu3 %v17019_v23 }
0x2f0f   :  { %11901 = vmatpush.msra.mxu2 %v17040_v63 }
0x2f10   :  { %11924 = vmatpush.msra.mxu3 %v17024_v31 }
0x2f11   :  { %11592 = vmatmul.f32.vlgmr.msra.gmra.mxu0 %v11228_v6  ;;  %11724 = vmatmul.f32.vlgmr.msrb.gmra.mxu1 %v11224_v8 }
0x2f12   :  { %11845 = vmatpush.msra.mxu0 %v17022_v4  ;;  %11978 = vmatpush.msrb.mxu1 %v17075_v18 }
0x2f14   :  { %11848 = vmatpush.msra.mxu0 %v17032_v53  ;;  %11984 = vmatpush.msrb.mxu1 %v17080_v54 }
0x2f19   :  { %11701 = vmatmul.f32.vlgmr.msrb.gmra.mxu0 %v11224_v8 }
0x2f1a   :  { %11947 = vmatpush.msrb.mxu0 %v17053_v40 }
0x2f1c   :  { %11949 = vmatpush.msrb.mxu0 %v17057_v24 }
0x2f6e   :  { %v11261_v56 = vpop.f32.mrf.mxu1 }
0x2f76   :  { %v11230_v12 = vpop.f32.mrf.mxu0  ;;  %v11287_v35 = vpop.f32.mrf.mxu2 }
0x2f77   :  { %v11231_v2 = vadd.f32 %v17719_v48, %v11230_v12  ;;  %v11362_v20 = vpop.f32.mrf.mxu1 }
0x2f78   :  { %v11312_v41 = vpop.f32.mrf.mxu3 }
0x2f79   :  { %v11262_v16 = vadd.f32 %v11261_v56, %v11231_v2 }
0x2f7b   :  { %v11288_v33 = vadd.f32 %v11287_v35, %v11262_v16 }
0x2f7d   :  { %v11313_v50 = vadd.f32 %v11312_v41, %v11288_v33 }
0x2f7e   :  { %v11339_v11 = vpop.f32.mrf.mxu0  ;;  %v11391_v58 = vpop.f32.mrf.mxu2 }
0x2f7f   :  { %v11473_v27 = vpop.f32.mrf.mxu1  ;;  %v11340_v19 = vadd.f32 %v11339_v11, %v11313_v50 }
0x2f80   :  { %v11422_v22 = vpop.f32.mrf.mxu3 }
0x2f81   :  { %v11423_v5 = vadd.f32 %v11422_v22, %v11391_v58  ;;  %v11363_v15 = vadd.f32 %v11362_v20, %v11340_v19 }
0x2f86   :  { %v11448_v32 = vpop.f32.mrf.mxu0  ;;  %v11500_v29 = vpop.f32.mrf.mxu2 }
0x2f87   :  { %v11449_v9 = vadd.f32 %v11448_v32, %v11423_v5  ;;  %v11624_v39 = vpop.f32.mrf.mxu1 }
0x2f88   :  { %v11523_v3 = vpop.f32.mrf.mxu3 }
0x2f89   :  { %v11474_v25 = vadd.f32 %v11473_v27, %v11449_v9 }
0x2f8b   :  { %v11501_v37 = vadd.f32 %v11500_v29, %v11474_v25 }
0x2f8d   :  { %v11524_v57 = vadd.f32 %v11523_v3, %v11501_v37 }
0x2f8e   :  { %v11593_v61 = vpop.f32.mrf.mxu0  ;;  %v11650_v8 = vpop.f32.mrf.mxu2 }
0x2f8f   :  { %v11526_v14 = vadd.f32 %v11524_v57, %v11363_v15  ;;  %v11625_v30 = vadd.f32 %v11624_v39, %v11593_v61  ;;  %v11725_v0 = vpop.f32.mrf.mxu1 }
0x2f90   :  { %v11675_v38 = vpop.f32.mrf.mxu3 }
0x2f91   :  { %15311 = vtanh.f32 %v11526_v14  ;;  %v11651_v59 = vadd.f32 %v11650_v8, %v11625_v30  ;;  %v15001_v20 = vmul.f32 -1.442695, %v11526_v14 }
0x2f93   :  { %v11676_v10 = vadd.f32 %v11675_v38, %v11651_v59 }
0x2f96   :  { %v11702_v45 = vpop.f32.mrf.mxu0 }
0x2f97   :  { %v15312_v62 = vpop.eup %15311  ;;  %v11703_v6 = vadd.f32 %v11702_v45, %v11676_v10 }
0x2f98   :  { %11549 = vrot.lane.b32.xlu0 %v15312_v62, %s15559_s9 }
0x2f99   :  { %v11726_v56 = vadd.f32 %v11725_v0, %v11703_v6 }
0x2f9b   :  { %v11728_v12 = vadd.f32 %v11726_v56, %v17009_v49 }
0x2f9d   :  { %15313 = vtanh.f32 %v11728_v12  ;;  %v15002_v41 = vmul.f32 -1.442695, %v11728_v12 }
0x2f9f   :  { %15315 = vpow2.f32 %v15002_v41 }
0x2fa0   :  { %15317 = vpow2.f32 %v15001_v20 }
0x2fa3   :  { %v15314_v35 = vpop.eup %15313 }
0x2fa4   :  { %11751 = vrot.lane.b32.xlu2 %v15314_v35, %s15559_s9 }
0x2fa5   :  { %v15316_v2 = vpop.eup %15315 }
0x2fa6   :  { %v11732_v16 = vadd.f32 1.0, %v15316_v2  ;;  %v15318_v11 = vpop.eup %15317 }
0x2fa7   :  { %v11530_v22 = vadd.f32 1.0, %v15318_v11 }
0x2fa8   :  { %15319 = vrcp.f32 %v11732_v16  ;;  %v11744_v9 = vand.u32 2147483648, %v11732_v16  ;;  %vm11738_vm11 = vweird.f32 %v11732_v16  ;;  %v11742_v19 = vand.u32 2147483647, %v11732_v16 }
0x2fa9   :  { %15321 = vrcp.f32 %v11530_v22  ;;  %v11542_v30 = vand.u32 2147483648, %v11530_v22  ;;  %vm11536_vm15 = vweird.f32 %v11530_v22  ;;  %v11540_v8 = vand.u32 2147483647, %v11530_v22 }
0x2faa   :  { %v11745_v37 = vor.u32 1.1754944e-38, %v11744_v9  ;;  %vm11743_vm13 = vcmp.eq.f32.partialorder %v11742_v19, 8.507059e+37 }
0x2fab   :  { %v11543_v38 = vor.u32 1.1754944e-38, %v11542_v30  ;;  %vm11541_vm2 = vcmp.eq.f32.partialorder %v11540_v8, 8.507059e+37 }
0x2fae   :  { %v15320_v58 = vpop.eup %15319 }
0x2faf   :  { %v11734_v33 = vmul.f32 %v15320_v58, %v11732_v16  ;;  %v15322_v5 = vpop.eup %15321  ;;  %vm11739_vm10 = vweird.f32 %v15320_v58 }
0x2fb0   :  { %v11532_v29 = vmul.f32 %v15322_v5, %v11530_v22  ;;  %vm11740_vm12 = vmor %vm11738_vm11, %vm11739_vm10  ;;  %vm11537_vm14 = vweird.f32 %v15322_v5 }
0x2fb1   :  { %v11735_v27 = vsub.f32 1.0, %v11734_v33  ;;  %vm11538_vm1 = vmor %vm11536_vm15, %vm11537_vm14 }
0x2fb2   :  { %v11533_v3 = vsub.f32 1.0, %v11532_v29 }
0x2fb3   :  { %v11736_v50 = vmul.f32 %v15320_v58, %v11735_v27 }
0x2fb4   :  { %v11534_v61 = vmul.f32 %v15322_v5, %v11533_v3 }
0x2fb5   :  { %v11737_v32 = vadd.f32 %v15320_v58, %v11736_v50 }
0x2fb6   :  { %v11535_v14 = vadd.f32 %v15322_v5, %v11534_v61 }
0x2fb7   :  { %v11741_v25 = vsel %vm11740_vm12, %v15320_v58, %v11737_v32 }
0x2fb8   :  { %v11746_v57 = vsel %vm11743_vm13, %v11745_v37, %v11741_v25  ;;  %v11539_v59 = vsel %vm11538_vm1, %v15322_v5, %v11535_v14 }
0x2fb9   :  { %v11544_v45 = vsel %vm11541_vm2, %v11543_v38, %v11539_v59  ;;  %v11749_v35 = vmul.f32 %v11746_v57, %v17663_v21 }
0x2fba   :  { %v11547_v6 = vmul.f32 %v11544_v45, %v17668_v44 }
0x2ffe   :  { %v11752_v15 = vpop.permute.xlu2 %11751 }
0x2fff   :  { %v11754_v39 = vmul.f32 %v11752_v15, %v11746_v57 }
0x3001   :  { %11756 = vrot.lane.b32.xlu1 %v11754_v39, %s15560_s2 }
0x300a   :  { %v11550_v10 = vpop.permute.xlu0 %11549 }
0x300b   :  { %v11552_v62 = vmul.f32 %v11550_v10, %v11544_v45 }
0x300d   :  { %11554 = vrot.lane.b32.xlu2 %v11552_v62, %s15560_s2 }
0x3067   :  { %v11555_v0 = vpop.permute.xlu2 %11554 }
0x3068   :  { %v17728_v56 = vadd.f32 %v11555_v0, %v11547_v6 }
0x306a   :  { %15323 = vtanh.f32 %v17728_v56 }
0x3070   :  { %v15324_v12 = vpop.eup %15323 }
0x3071   :  { %11560 = vrot.lane.b32.xlu1 %v15324_v12, %s15558_s16 }
0x3073   :  { %v11757_v41 = vpop.permute.xlu1 %11756 }
0x3074   :  { %v17733_v2 = vadd.f32 %v11757_v41, %v11749_v35 }
0x3076   :  { %15325 = vtanh.f32 %v17733_v2 }
0x307c   :  { %v15326_v20 = vpop.eup %15325 }
0x307d   :  { %11762 = vrot.lane.b32.xlu0 %v15326_v20, %s15558_s16 }
0x30e3   :  { %v11561_v16 = vpop.permute.xlu1 %11560 }
0x30e4   :  { %v11563_v44 = vmul.f32 %v11561_v16, %v11544_v45 }
0x30e6   :  { %11565 = vrot.lane.b32.xlu0 %v11563_v44, %s15561_s15 }
0x30ef   :  { %v11763_v11 = vpop.permute.xlu0 %11762 }
0x30f0   :  { %v11765_v58 = vmul.f32 %v11763_v11, %v11746_v57 }
0x30f2   :  { %11767 = vrot.lane.b32.xlu2 %v11765_v58, %s15561_s15 }
0x314c   :  { %v11768_v22 = vpop.permute.xlu2 %11767 }
0x314d   :  { %v11769_v33 = vsel %vm161_vm0, %v11768_v22, 0 }
0x314e   :  { %v17740_v21 = vand.u32 4294901760, %v11769_v33 }
0x3150   :  { %v11790_v27 = vsub.f32 %v11769_v33, %v17740_v21  ;;  %11825 = vmatmul.f32.vlgmr.msrb.gmra.mxu3 %v17740_v21 }
0x3151   :  { %12031 = vmatpush.msrb.mxu3 %v17053_v40 }
0x3152   :  { %v11791_v50 = vand.u32 4294901760, %v11790_v27  ;;  %11851 = vmatmul.f32.vlgmr.msra.gmra.mxu0 %v11790_v27 }
0x3153   :  { %12033 = vmatpush.msrb.mxu3 %v17057_v24  ;;  %12058 = vmatpush.msra.mxu0 %v17065_v47 }
0x3154   :  { %v11792_v5 = vsub.f32 %v11790_v27, %v11791_v50  ;;  %11876 = vmatmul.f32.vlgmr.msra.gmra.mxu1 %v11791_v50 }
0x3155   :  { %12083 = vmatpush.msra.mxu1 %v17053_v40  ;;  %12062 = vmatpush.msra.mxu0 %v17073_v7 }
0x3156   :  { %v11793_v32 = vand.u32 4294901760, %v11792_v5 }
0x3157   :  { %12085 = vmatpush.msra.mxu1 %v17057_v24 }
0x3158   :  { %11794 = vmatmul.f32.vlgmr.msrb.gmra.mxu2 %v11793_v32  ;;  %11926 = vmatmul.f32.vlgmr.msra.gmra.mxu3 %v17740_v21  ;;  %v11566_v29 = vpop.permute.xlu0 %11565 }
0x3159   :  { %11568 = vst.msk [vmem:[%s18096_s13 + $0x48] sm:$0xff] %vm161_vm0, %v11566_v29  ;;  %v11930_v9 = vsel %vm161_vm0, %v11566_v29, 0  ;;  %12006 = vmatpush.msrb.mxu2 %v17060_v52  ;;  %12180 = vmatpush.msra.mxu3 %v16971_v34 }
0x315a   :  { %v11950_v19 = vand.u32 4294901760, %v11930_v9 }
0x315b   :  { %12009 = vmatpush.msrb.mxu2 %v17068_v60  ;;  %12186 = vmatpush.msra.mxu3 %v16977_v55 }
0x315c   :  { %v11951_v25 = vsub.f32 %v11930_v9, %v11950_v19  ;;  %11986 = vmatmul.f32.vlgmr.msrb.gmra.mxu1 %v11950_v19 }
0x315d   :  { %12233 = vmatpush.msrb.mxu1 %v16946_v1 }
0x315e   :  { %v11952_v3 = vand.u32 4294901760, %v11951_v25 }
0x315f   :  { %12235 = vmatpush.msrb.mxu1 %v16952_v43 }
0x3160   :  { %v11953_v37 = vsub.f32 %v11951_v25, %v11952_v3  ;;  %11903 = vmatmul.f32.vlgmr.msra.gmra.mxu2 %v17740_v21  ;;  %12037 = vmatmul.f32.vlgmr.msrb.gmra.mxu3 %v11952_v3 }
0x3161   :  { %12149 = vmatpush.msra.mxu2 %v16946_v1  ;;  %12285 = vmatpush.msrb.mxu3 %v16946_v1 }
0x3162   :  { %v11954_v15 = vand.u32 4294901760, %v11953_v37 }
0x3163   :  { %12151 = vmatpush.msra.mxu2 %v16952_v43  ;;  %12287 = vmatpush.msrb.mxu3 %v16952_v43 }
0x3164   :  { %11955 = vmatmul.f32.vlgmr.msrb.gmra.mxu0 %v11954_v15  ;;  %12087 = vmatmul.f32.vlgmr.msra.gmra.mxu1 %v11950_v19 }
0x3165   :  { %12208 = vmatpush.msrb.mxu0 %v16950_v13  ;;  %12382 = vmatpush.msra.mxu1 %v17044_v36 }
0x3167   :  { %12211 = vmatpush.msrb.mxu0 %v16960_v26  ;;  %12388 = vmatpush.msra.mxu1 %v17050_v17 }
0x3168   :  { %12012 = vmatmul.f32.vlgmr.msrb.gmra.mxu2 %v11951_v25  ;;  %12188 = vmatmul.f32.vlgmr.msra.gmra.mxu3 %v17740_v21 }
0x3169   :  { %12260 = vmatpush.msrb.mxu2 %v16956_v42  ;;  %12435 = vmatpush.msra.mxu3 %v17019_v23 }
0x316b   :  { %12264 = vmatpush.msrb.mxu2 %v16967_v46  ;;  %12437 = vmatpush.msra.mxu3 %v17024_v31 }
0x316c   :  { %12064 = vmatmul.f32.vlgmr.msra.gmra.mxu0 %v11950_v19  ;;  %12239 = vmatmul.f32.vlgmr.msrb.gmra.mxu1 %v11791_v50 }
0x316d   :  { %12351 = vmatpush.msra.mxu0 %v17019_v23  ;;  %12487 = vmatpush.msrb.mxu1 %v17019_v23 }
0x316f   :  { %12353 = vmatpush.msra.mxu0 %v17024_v31  ;;  %12489 = vmatpush.msrb.mxu1 %v17024_v31 }
0x3170   :  { %12157 = vmatmul.f32.vlgmr.msra.gmra.mxu2 %v11793_v32  ;;  %12289 = vmatmul.f32.vlgmr.msrb.gmra.mxu3 %v17740_v21 }
0x3171   :  { %12410 = vmatpush.msra.mxu2 %v17022_v4  ;;  %12543 = vmatpush.msrb.mxu3 %v17075_v18 }
0x3173   :  { %12413 = vmatpush.msra.mxu2 %v17032_v53  ;;  %12549 = vmatpush.msrb.mxu3 %v17080_v54 }
0x3174   :  { %12214 = vmatmul.f32.vlgmr.msrb.gmra.mxu0 %v11790_v27 }
0x3175   :  { %12462 = vmatpush.msrb.mxu0 %v17029_v28 }
0x3177   :  { %12466 = vmatpush.msrb.mxu0 %v17040_v63 }
0x3178   :  { %12266 = vmatmul.f32.vlgmr.msrb.gmra.mxu2 %v17740_v21 }
0x3179   :  { %12512 = vmatpush.msrb.mxu2 %v17053_v40 }
0x317b   :  { %12514 = vmatpush.msrb.mxu2 %v17057_v24 }
0x31cf   :  { %v11852_v39 = vpop.f32.mrf.mxu0 }
0x31d1   :  { %v11877_v61 = vpop.f32.mrf.mxu1 }
0x31d3   :  { %v11826_v57 = vpop.f32.mrf.mxu3 }
0x31d9   :  { %v11987_v45 = vpop.f32.mrf.mxu1 }
0x31db   :  { %v11795_v14 = vpop.f32.mrf.mxu2  ;;  %v11927_v8 = vpop.f32.mrf.mxu3 }
0x31dc   :  { %v11796_v30 = vadd.f32 %v17719_v48, %v11795_v14 }
0x31de   :  { %v11827_v38 = vadd.f32 %v11826_v57, %v11796_v30 }
0x31e0   :  { %v11853_v62 = vadd.f32 %v11852_v39, %v11827_v38 }
0x31e1   :  { %v11956_v59 = vpop.f32.mrf.mxu0  ;;  %v12088_v11 = vpop.f32.mrf.mxu1 }
0x31e2   :  { %v11988_v0 = vadd.f32 %v11987_v45, %v11956_v59  ;;  %v11878_v12 = vadd.f32 %v11877_v61, %v11853_v62 }
0x31e3   :  { %v11904_v10 = vpop.f32.mrf.mxu2  ;;  %v12038_v6 = vpop.f32.mrf.mxu3 }
0x31e4   :  { %v11905_v16 = vadd.f32 %v11904_v10, %v11878_v12 }
0x31e6   :  { %v11928_v22 = vadd.f32 %v11927_v8, %v11905_v16 }
0x31e9   :  { %v12065_v35 = vpop.f32.mrf.mxu0  ;;  %v12240_v9 = vpop.f32.mrf.mxu1 }
0x31eb   :  { %v12013_v41 = vpop.f32.mrf.mxu2  ;;  %v12189_v21 = vpop.f32.mrf.mxu3 }
0x31ec   :  { %v12014_v20 = vadd.f32 %v12013_v41, %v11988_v0 }
0x31ee   :  { %v12039_v44 = vadd.f32 %v12038_v6, %v12014_v20 }
0x31f0   :  { %v12066_v58 = vadd.f32 %v12065_v35, %v12039_v44 }
0x31f1   :  { %v12215_v32 = vpop.f32.mrf.mxu0 }
0x31f2   :  { %v12089_v33 = vadd.f32 %v12088_v11, %v12066_v58 }
0x31f3   :  { %v12158_v27 = vpop.f32.mrf.mxu2  ;;  %v12290_v15 = vpop.f32.mrf.mxu3 }
0x31f4   :  { %v12091_v50 = vadd.f32 %v12089_v33, %v11928_v22  ;;  %v12190_v5 = vadd.f32 %v12189_v21, %v12158_v27 }
0x31f6   :  { %15327 = vtanh.f32 %v12091_v50  ;;  %v12216_v29 = vadd.f32 %v12215_v32, %v12190_v5  ;;  %v15003_v14 = vmul.f32 -1.442695, %v12091_v50 }
0x31f8   :  { %v12241_v19 = vadd.f32 %v12240_v9, %v12216_v29 }
0x31fb   :  { %v12267_v25 = vpop.f32.mrf.mxu2 }
0x31fc   :  { %v15328_v3 = vpop.eup %15327  ;;  %v12268_v37 = vadd.f32 %v12267_v25, %v12241_v19 }
0x31fd   :  { %12114 = vrot.lane.b32.xlu2 %v15328_v3, %s15559_s9 }
0x31fe   :  { %v12291_v57 = vadd.f32 %v12290_v15, %v12268_v37 }
0x3200   :  { %v12293_v39 = vadd.f32 %v12291_v57, %v17140_v51 }
0x3202   :  { %15329 = vtanh.f32 %v12293_v39  ;;  %v15004_v62 = vmul.f32 -1.442695, %v12293_v39 }
0x3203   :  { %15331 = vpow2.f32 %v15003_v14 }
0x3208   :  { %v15330_v61 = vpop.eup %15329 }
0x3209   :  { %12316 = vrot.lane.b32.xlu1 %v15330_v61, %s15559_s9  ;;  %v15332_v30 = vpop.eup %15331 }
0x320a   :  { %v12095_v8 = vadd.f32 1.0, %v15332_v30 }
0x320c   :  { %15333 = vrcp.f32 %v12095_v8  ;;  %v12107_v0 = vand.u32 2147483648, %v12095_v8  ;;  %vm12101_vm4 = vweird.f32 %v12095_v8  ;;  %v12105_v12 = vand.u32 2147483647, %v12095_v8 }
0x320d   :  { %15335 = vpow2.f32 %v15004_v62 }
0x320e   :  { %v12108_v41 = vor.u32 1.1754944e-38, %v12107_v0  ;;  %vm12106_vm7 = vcmp.eq.f32.partialorder %v12105_v12, 8.507059e+37 }
0x3212   :  { %v15334_v59 = vpop.eup %15333 }
0x3213   :  { %v12097_v38 = vmul.f32 %v15334_v59, %v12095_v8  ;;  %vm12102_vm3 = vweird.f32 %v15334_v59  ;;  %v15336_v44 = vpop.eup %15335 }
0x3214   :  { %vm12103_vm6 = vmor %vm12101_vm4, %vm12102_vm3  ;;  %v12297_v58 = vadd.f32 1.0, %v15336_v44 }
0x3215   :  { %v12098_v10 = vsub.f32 1.0, %v12097_v38 }
0x3216   :  { %15337 = vrcp.f32 %v12297_v58  ;;  %v12309_v5 = vand.u32 2147483648, %v12297_v58  ;;  %vm12303_vm9 = vweird.f32 %v12297_v58  ;;  %v12307_v32 = vand.u32 2147483647, %v12297_v58 }
0x3217   :  { %v12099_v45 = vmul.f32 %v15334_v59, %v12098_v10 }
0x3218   :  { %v12310_v9 = vor.u32 1.1754944e-38, %v12309_v5  ;;  %vm12308_vm10 = vcmp.eq.f32.partialorder %v12307_v32, 8.507059e+37 }
0x3219   :  { %v12100_v6 = vadd.f32 %v15334_v59, %v12099_v45 }
0x321b   :  { %v12104_v35 = vsel %vm12103_vm6, %v15334_v59, %v12100_v6 }
0x321c   :  { %v12109_v16 = vsel %vm12106_vm7, %v12108_v41, %v12104_v35  ;;  %v15338_v22 = vpop.eup %15337 }
0x321d   :  { %v12299_v33 = vmul.f32 %v15338_v22, %v12297_v58  ;;  %vm12304_vm8 = vweird.f32 %v15338_v22  ;;  %v12112_v37 = vmul.f32 %v12109_v16, %v17728_v56 }
0x321e   :  { %vm12305_vm5 = vmor %vm12303_vm9, %vm12304_vm8 }
0x321f   :  { %v12300_v21 = vsub.f32 1.0, %v12299_v33 }
0x3221   :  { %v12301_v27 = vmul.f32 %v15338_v22, %v12300_v21 }
0x3223   :  { %v12302_v50 = vadd.f32 %v15338_v22, %v12301_v27 }
0x3225   :  { %v12306_v29 = vsel %vm12305_vm5, %v15338_v22, %v12302_v50 }
0x3226   :  { %v12311_v25 = vsel %vm12308_vm10, %v12310_v9, %v12306_v29 }
0x3227   :  { %v12314_v61 = vmul.f32 %v12311_v25, %v17733_v2 }
0x3257   :  { %v12115_v20 = vpop.permute.xlu2 %12114 }
0x3258   :  { %v12117_v11 = vmul.f32 %v12115_v20, %v12109_v16 }
0x325a   :  { %12119 = vrot.lane.b32.xlu1 %v12117_v11, %s15560_s2 }
0x327b   :  { %v12317_v19 = vpop.permute.xlu1 %12316 }
0x327c   :  { %v12319_v3 = vmul.f32 %v12317_v19, %v12311_v25 }
0x327e   :  { %12321 = vrot.lane.b32.xlu0 %v12319_v3, %s15560_s2 }
0x32cc   :  { %v12120_v15 = vpop.permute.xlu1 %12119 }
0x32cd   :  { %v17797_v57 = vadd.f32 %v12120_v15, %v12112_v37 }
0x32cf   :  { %15339 = vtanh.f32 %v17797_v57 }
0x32d5   :  { %v15340_v39 = vpop.eup %15339 }
0x32d6   :  { %12125 = vrot.lane.b32.xlu0 %v15340_v39, %s15558_s16 }
0x32f0   :  { %v12322_v14 = vpop.permute.xlu0 %12321 }
0x32f1   :  { %v17802_v30 = vadd.f32 %v12322_v14, %v12314_v61 }
0x32f3   :  { %15341 = vtanh.f32 %v17802_v30 }
0x32f9   :  { %v15342_v8 = vpop.eup %15341 }
0x32fa   :  { %12327 = vrot.lane.b32.xlu2 %v15342_v8, %s15558_s16 }
0x3348   :  { %v12126_v59 = vpop.permute.xlu0 %12125 }
0x3349   :  { %v12128_v56 = vmul.f32 %v12126_v59, %v12109_v16 }
0x334b   :  { %12130 = vrot.lane.b32.xlu2 %v12128_v56, %s15561_s15 }
0x3354   :  { %v12328_v38 = vpop.permute.xlu2 %12327 }
0x3355   :  { %v12330_v10 = vmul.f32 %v12328_v38, %v12311_v25 }
0x3357   :  { %12332 = vrot.lane.b32.xlu1 %v12330_v10, %s15561_s15 }
0x33a5   :  { %v12131_v45 = vpop.permute.xlu2 %12130 }
0x33a6   :  { %12133 = vst.msk [vmem:[%s18096_s13 + $0x50] sm:$0xff] %vm161_vm0, %v12131_v45  ;;  %v12495_v2 = vsel %vm161_vm0, %v12131_v45, 0 }
0x33a7   :  { %v12515_v62 = vand.u32 4294901760, %v12495_v2 }
0x33a9   :  { %v12516_v6 = vsub.f32 %v12495_v2, %v12515_v62 }
0x33ab   :  { %v12517_v41 = vand.u32 4294901760, %v12516_v6 }
0x33ad   :  { %v12518_v44 = vsub.f32 %v12516_v6, %v12517_v41 }
0x33af   :  { %v12519_v22 = vand.u32 4294901760, %v12518_v44 }
0x33c9   :  { %v12333_v0 = vpop.permute.xlu1 %12332 }
0x33ca   :  { %v12334_v12 = vsel %vm161_vm0, %v12333_v0, 0 }
0x33cb   :  { %v12354_v35 = vand.u32 4294901760, %v12334_v12 }
0x33cd   :  { %v12355_v20 = vsub.f32 %v12334_v12, %v12354_v35  ;;  %12390 = vmatmul.f32.vlgmr.msra.gmra.mxu1 %v12354_v35 }
0x33ce   :  { %12596 = vmatpush.msra.mxu1 %v17053_v40 }
0x33cf   :  { %v12356_v16 = vand.u32 4294901760, %v12355_v20  ;;  %12416 = vmatmul.f32.vlgmr.msra.gmra.mxu2 %v12355_v20 }
0x33d0   :  { %12598 = vmatpush.msra.mxu1 %v17057_v24  ;;  %12623 = vmatpush.msra.mxu2 %v17065_v47 }
0x33d1   :  { %v12357_v11 = vsub.f32 %v12355_v20, %v12356_v16  ;;  %12441 = vmatmul.f32.vlgmr.msra.gmra.mxu3 %v12356_v16 }
0x33d2   :  { %12627 = vmatpush.msra.mxu2 %v17073_v7  ;;  %12648 = vmatpush.msra.mxu3 %v17053_v40 }
0x33d3   :  { %v12358_v58 = vand.u32 4294901760, %v12357_v11 }
0x33d4   :  { %12650 = vmatpush.msra.mxu3 %v17057_v24 }
0x33d5   :  { %12359 = vmatmul.f32.vlgmr.msra.gmra.mxu0 %v12358_v58  ;;  %12491 = vmatmul.f32.vlgmr.msrb.gmra.mxu1 %v12354_v35 }
0x33d6   :  { %12571 = vmatpush.msra.mxu0 %v17060_v52  ;;  %12745 = vmatpush.msrb.mxu1 %v16971_v34 }
0x33d7   :  { %12520 = vmatmul.f32.vlgmr.msrb.gmra.mxu2 %v12519_v22 }
0x33d8   :  { %12574 = vmatpush.msra.mxu0 %v17068_v60  ;;  %12751 = vmatpush.msrb.mxu1 %v16977_v55 }
0x33d9   :  { %12551 = vmatmul.f32.vlgmr.msrb.gmra.mxu3 %v12515_v62  ;;  %12773 = vmatpush.msrb.mxu2 %v16950_v13 }
0x33da   :  { %12798 = vmatpush.msrb.mxu3 %v16946_v1 }
0x33db   :  { %12776 = vmatpush.msrb.mxu2 %v16960_v26 }
0x33dc   :  { %12800 = vmatpush.msrb.mxu3 %v16952_v43 }
0x33dd   :  { %12468 = vmatmul.f32.vlgmr.msrb.gmra.mxu0 %v12354_v35  ;;  %12602 = vmatmul.f32.vlgmr.msra.gmra.mxu1 %v12517_v41 }
0x33de   :  { %12714 = vmatpush.msrb.mxu0 %v16946_v1  ;;  %12850 = vmatpush.msra.mxu1 %v16946_v1 }
0x33df   :  { %12629 = vmatmul.f32.vlgmr.msra.gmra.mxu2 %v12515_v62 }
0x33e0   :  { %12716 = vmatpush.msrb.mxu0 %v16952_v43  ;;  %12852 = vmatpush.msra.mxu1 %v16952_v43 }
0x33e1   :  { %12652 = vmatmul.f32.vlgmr.msra.gmra.mxu3 %v12515_v62  ;;  %12916 = vmatpush.msra.mxu2 %v17019_v23 }
0x33e2   :  { %12947 = vmatpush.msra.mxu3 %v17044_v36 }
0x33e3   :  { %12918 = vmatpush.msra.mxu2 %v17024_v31 }
0x33e4   :  { %12953 = vmatpush.msra.mxu3 %v17050_v17 }
0x33e5   :  { %12577 = vmatmul.f32.vlgmr.msra.gmra.mxu0 %v12516_v6  ;;  %12753 = vmatmul.f32.vlgmr.msrb.gmra.mxu1 %v12354_v35 }
0x33e6   :  { %12825 = vmatpush.msra.mxu0 %v16956_v42  ;;  %13000 = vmatpush.msrb.mxu1 %v17019_v23 }
0x33e7   :  { %12779 = vmatmul.f32.vlgmr.msrb.gmra.mxu2 %v12355_v20 }
0x33e8   :  { %12829 = vmatpush.msra.mxu0 %v16967_v46  ;;  %13002 = vmatpush.msrb.mxu1 %v17024_v31 }
0x33e9   :  { %12804 = vmatmul.f32.vlgmr.msrb.gmra.mxu3 %v12356_v16  ;;  %13027 = vmatpush.msrb.mxu2 %v17029_v28 }
0x33ea   :  { %13052 = vmatpush.msrb.mxu3 %v17019_v23 }
0x33eb   :  { %13031 = vmatpush.msrb.mxu2 %v17040_v63 }
0x33ec   :  { %13054 = vmatpush.msrb.mxu3 %v17024_v31 }
0x33ed   :  { %12722 = vmatmul.f32.vlgmr.msrb.gmra.mxu0 %v12358_v58  ;;  %12854 = vmatmul.f32.vlgmr.msra.gmra.mxu1 %v12354_v35 }
0x33ee   :  { %12975 = vmatpush.msrb.mxu0 %v17022_v4  ;;  %13108 = vmatpush.msra.mxu1 %v17075_v18 }
0x33f0   :  { %12978 = vmatpush.msrb.mxu0 %v17032_v53  ;;  %13114 = vmatpush.msra.mxu1 %v17080_v54 }
0x33f5   :  { %12831 = vmatmul.f32.vlgmr.msra.gmra.mxu0 %v12354_v35 }
0x33f6   :  { %13077 = vmatpush.msra.mxu0 %v17053_v40 }
0x33f8   :  { %13079 = vmatpush.msra.mxu0 %v17057_v24 }
0x344a   :  { %v12391_v33 = vpop.f32.mrf.mxu1 }
0x3452   :  { %v12360_v21 = vpop.f32.mrf.mxu0  ;;  %v12417_v27 = vpop.f32.mrf.mxu2 }
0x3453   :  { %v12361_v5 = vadd.f32 %v17719_v48, %v12360_v21  ;;  %v12492_v32 = vpop.f32.mrf.mxu1 }
0x3454   :  { %v12442_v50 = vpop.f32.mrf.mxu3 }
0x3455   :  { %v12392_v29 = vadd.f32 %v12391_v33, %v12361_v5 }
0x3457   :  { %v12418_v3 = vadd.f32 %v12417_v27, %v12392_v29 }
0x3459   :  { %v12443_v15 = vadd.f32 %v12442_v50, %v12418_v3 }
0x345a   :  { %v12469_v9 = vpop.f32.mrf.mxu0  ;;  %v12521_v19 = vpop.f32.mrf.mxu2 }
0x345b   :  { %v12603_v37 = vpop.f32.mrf.mxu1  ;;  %v12470_v59 = vadd.f32 %v12469_v9, %v12443_v15 }
0x345c   :  { %v12552_v25 = vpop.f32.mrf.mxu3 }
0x345d   :  { %v12553_v39 = vadd.f32 %v12552_v25, %v12521_v19  ;;  %v12493_v45 = vadd.f32 %v12492_v32, %v12470_v59 }
0x3462   :  { %v12578_v61 = vpop.f32.mrf.mxu0  ;;  %v12630_v14 = vpop.f32.mrf.mxu2 }
0x3463   :  { %v12579_v8 = vadd.f32 %v12578_v61, %v12553_v39  ;;  %v12754_v62 = vpop.f32.mrf.mxu1 }
0x3464   :  { %v12653_v38 = vpop.f32.mrf.mxu3 }
0x3465   :  { %v12604_v56 = vadd.f32 %v12603_v37, %v12579_v8 }
0x3467   :  { %v12631_v10 = vadd.f32 %v12630_v14, %v12604_v56 }
0x3469   :  { %v12654_v2 = vadd.f32 %v12653_v38, %v12631_v10 }
0x346a   :  { %v12723_v48 = vpop.f32.mrf.mxu0  ;;  %v12780_v12 = vpop.f32.mrf.mxu2 }
0x346b   :  { %v12656_v6 = vadd.f32 %v12654_v2, %v12493_v45  ;;  %v12755_v0 = vadd.f32 %v12754_v62, %v12723_v48  ;;  %v12855_v58 = vpop.f32.mrf.mxu1 }
0x346c   :  { %v12805_v41 = vpop.f32.mrf.mxu3 }
0x346d   :  { %15343 = vtanh.f32 %v12656_v6  ;;  %v12781_v35 = vadd.f32 %v12780_v12, %v12755_v0  ;;  %v15005_v27 = vmul.f32 -1.442695, %v12656_v6 }
0x346f   :  { %v12806_v20 = vadd.f32 %v12805_v41, %v12781_v35 }
0x3472   :  { %v12832_v16 = vpop.f32.mrf.mxu0 }
0x3473   :  { %v15344_v44 = vpop.eup %15343  ;;  %v12833_v11 = vadd.f32 %v12832_v16, %v12806_v20 }
0x3474   :  { %12679 = vrot.lane.b32.xlu1 %v15344_v44, %s15559_s9 }
0x3475   :  { %v12856_v22 = vadd.f32 %v12855_v58, %v12833_v11 }
0x3477   :  { %v12858_v33 = vadd.f32 %v12856_v22, %v17009_v49 }
0x3479   :  { %15345 = vtanh.f32 %v12858_v33  ;;  %v15006_v5 = vmul.f32 -1.442695, %v12858_v33 }
0x347a   :  { %15347 = vpow2.f32 %v15005_v27 }
0x347b   :  { %15349 = vpow2.f32 %v15006_v5 }
0x347f   :  { %v15346_v21 = vpop.eup %15345 }
0x3480   :  { %12881 = vrot.lane.b32.xlu0 %v15346_v21, %s15559_s9  ;;  %v15348_v50 = vpop.eup %15347 }
0x3481   :  { %v12660_v32 = vadd.f32 1.0, %v15348_v50  ;;  %v15350_v29 = vpop.eup %15349 }
0x3482   :  { %v12862_v19 = vadd.f32 1.0, %v15350_v29 }
0x3483   :  { %15351 = vrcp.f32 %v12660_v32  ;;  %v12672_v14 = vand.u32 2147483648, %v12660_v32  ;;  %vm12666_vm12 = vweird.f32 %v12660_v32  ;;  %v12670_v8 = vand.u32 2147483647, %v12660_v32 }
0x3484   :  { %15353 = vrcp.f32 %v12862_v19  ;;  %v12874_v6 = vand.u32 2147483648, %v12862_v19  ;;  %vm12868_vm1 = vweird.f32 %v12862_v19  ;;  %v12872_v0 = vand.u32 2147483647, %v12862_v19 }
0x3485   :  { %v12673_v38 = vor.u32 1.1754944e-38, %v12672_v14  ;;  %vm12671_vm14 = vcmp.eq.f32.partialorder %v12670_v8, 8.507059e+37 }
0x3486   :  { %v12875_v35 = vor.u32 1.1754944e-38, %v12874_v6  ;;  %vm12873_vm3 = vcmp.eq.f32.partialorder %v12872_v0, 8.507059e+37 }
0x3489   :  { %v15352_v9 = vpop.eup %15351 }
0x348a   :  { %v12662_v25 = vmul.f32 %v15352_v9, %v12660_v32  ;;  %v15354_v15 = vpop.eup %15353  ;;  %vm12667_vm11 = vweird.f32 %v15352_v9 }
0x348b   :  { %v12864_v61 = vmul.f32 %v15354_v15, %v12862_v19  ;;  %vm12668_vm13 = vmor %vm12666_vm12, %vm12667_vm11  ;;  %vm12869_vm15 = vweird.f32 %v15354_v15 }
0x348c   :  { %v12663_v3 = vsub.f32 1.0, %v12662_v25  ;;  %vm12870_vm2 = vmor %vm12868_vm1, %vm12869_vm15 }
0x348d   :  { %v12865_v56 = vsub.f32 1.0, %v12864_v61 }
0x348e   :  { %v12664_v37 = vmul.f32 %v15352_v9, %v12663_v3 }
0x348f   :  { %v12866_v62 = vmul.f32 %v15354_v15, %v12865_v56 }
0x3490   :  { %v12665_v39 = vadd.f32 %v15352_v9, %v12664_v37 }
0x3491   :  { %v12867_v48 = vadd.f32 %v15354_v15, %v12866_v62 }
0x3492   :  { %v12669_v59 = vsel %vm12668_vm13, %v15352_v9, %v12665_v39 }
0x3493   :  { %v12674_v45 = vsel %vm12671_vm14, %v12673_v38, %v12669_v59  ;;  %v12871_v12 = vsel %vm12870_vm2, %v15354_v15, %v12867_v48  ;;  %v17913_v48 = vld [vmem:[%s18095_s12] ss:$0 sm:$0xff] }
0x3494   :  { %v12876_v20 = vsel %vm12873_vm3, %v12875_v35, %v12871_v12  ;;  %v12677_v33 = vmul.f32 %v12674_v45, %v17797_v57 }
0x3495   :  { %v12879_v44 = vmul.f32 %v12876_v20, %v17802_v30 }
0x34e6   :  { %v12680_v10 = vpop.permute.xlu1 %12679 }
0x34e7   :  { %v12682_v2 = vmul.f32 %v12680_v10, %v12674_v45 }
0x34e9   :  { %12684 = vrot.lane.b32.xlu0 %v12682_v2, %s15560_s2 }
0x34f2   :  { %v12882_v41 = vpop.permute.xlu0 %12881 }
0x34f3   :  { %v12884_v16 = vmul.f32 %v12882_v41, %v12876_v20 }
0x34f5   :  { %12886 = vrot.lane.b32.xlu2 %v12884_v16, %s15560_s2 }
0x354f   :  { %v12887_v11 = vpop.permute.xlu2 %12886 }
0x3550   :  { %v17857_v58 = vadd.f32 %v12887_v11, %v12879_v44 }
0x3552   :  { %15355 = vtanh.f32 %v17857_v58 }
0x3558   :  { %v15356_v22 = vpop.eup %15355 }
0x3559   :  { %12892 = vrot.lane.b32.xlu1 %v15356_v22, %s15558_s16 }
0x355b   :  { %v12685_v21 = vpop.permute.xlu0 %12684 }
0x355c   :  { %v17862_v27 = vadd.f32 %v12685_v21, %v12677_v33 }
0x355e   :  { %15357 = vtanh.f32 %v17862_v27 }
0x3564   :  { %v15358_v50 = vpop.eup %15357 }
0x3565   :  { %12690 = vrot.lane.b32.xlu2 %v15358_v50, %s15558_s16 }
0x35bf   :  { %v12691_v5 = vpop.permute.xlu2 %12690 }
0x35c0   :  { %v12693_v30 = vmul.f32 %v12691_v5, %v12674_v45 }
0x35c2   :  { %12695 = vrot.lane.b32.xlu1 %v12693_v30, %s15561_s15 }
0x35cb   :  { %v12893_v32 = vpop.permute.xlu1 %12892 }
0x35cc   :  { %v12895_v29 = vmul.f32 %v12893_v32, %v12876_v20 }
0x35ce   :  { %12897 = vrot.lane.b32.xlu0 %v12895_v29, %s15561_s15 }
0x3634   :  { %v12696_v9 = vpop.permute.xlu1 %12695 }
0x3635   :  { %12698 = vst.msk [vmem:[%s18096_s13 + $0x58] sm:$0xff] %vm161_vm0, %v12696_v9  ;;  %v13060_v57 = vsel %vm161_vm0, %v12696_v9, 0 }
0x3636   :  { %v13080_v19 = vand.u32 4294901760, %v13060_v57 }
0x3638   :  { %v13081_v25 = vsub.f32 %v13060_v57, %v13080_v19 }
0x363a   :  { %v13082_v39 = vand.u32 4294901760, %v13081_v25 }
0x363c   :  { %v13083_v8 = vsub.f32 %v13081_v25, %v13082_v39 }
0x363e   :  { %v13084_v38 = vand.u32 4294901760, %v13083_v8 }
0x3640   :  { %v12898_v3 = vpop.permute.xlu0 %12897 }
0x3641   :  { %v12899_v37 = vsel %vm161_vm0, %v12898_v3, 0 }
0x3642   :  { %v12919_v15 = vand.u32 4294901760, %v12899_v37 }
0x3644   :  { %v12920_v61 = vsub.f32 %v12899_v37, %v12919_v15  ;;  %12955 = vmatmul.f32.vlgmr.msra.gmra.mxu3 %v12919_v15 }
0x3645   :  { %13161 = vmatpush.msra.mxu3 %v17053_v40 }
0x3646   :  { %v12921_v14 = vand.u32 4294901760, %v12920_v61  ;;  %12981 = vmatmul.f32.vlgmr.msrb.gmra.mxu0 %v12920_v61 }
0x3647   :  { %13163 = vmatpush.msra.mxu3 %v17057_v24  ;;  %13188 = vmatpush.msrb.mxu0 %v17065_v47 }
0x3648   :  { %v12922_v59 = vsub.f32 %v12920_v61, %v12921_v14  ;;  %13006 = vmatmul.f32.vlgmr.msrb.gmra.mxu1 %v12921_v14 }
0x3649   :  { %13192 = vmatpush.msrb.mxu0 %v17073_v7  ;;  %13213 = vmatpush.msrb.mxu1 %v17053_v40 }
0x364a   :  { %v12923_v56 = vand.u32 4294901760, %v12922_v59 }
0x364b   :  { %13215 = vmatpush.msrb.mxu1 %v17057_v24 }
0x364c   :  { %12924 = vmatmul.f32.vlgmr.msra.gmra.mxu2 %v12923_v56  ;;  %13056 = vmatmul.f32.vlgmr.msrb.gmra.mxu3 %v12919_v15 }
0x364d   :  { %13136 = vmatpush.msra.mxu2 %v17060_v52  ;;  %13310 = vmatpush.msrb.mxu3 %v16971_v34 }
0x364e   :  { %13085 = vmatmul.f32.vlgmr.msra.gmra.mxu0 %v13084_v38 }
0x364f   :  { %13139 = vmatpush.msra.mxu2 %v17068_v60  ;;  %13316 = vmatpush.msrb.mxu3 %v16977_v55 }
0x3650   :  { %13116 = vmatmul.f32.vlgmr.msra.gmra.mxu1 %v13080_v19  ;;  %13338 = vmatpush.msra.mxu0 %v16950_v13 }
0x3651   :  { %13363 = vmatpush.msra.mxu1 %v16946_v1 }
0x3652   :  { %13341 = vmatpush.msra.mxu0 %v16960_v26 }
0x3653   :  { %13365 = vmatpush.msra.mxu1 %v16952_v43 }
0x3654   :  { %13033 = vmatmul.f32.vlgmr.msrb.gmra.mxu2 %v12919_v15  ;;  %13167 = vmatmul.f32.vlgmr.msra.gmra.mxu3 %v13082_v39 }
0x3655   :  { %13279 = vmatpush.msrb.mxu2 %v16946_v1  ;;  %13415 = vmatpush.msra.mxu3 %v16946_v1 }
0x3656   :  { %13194 = vmatmul.f32.vlgmr.msrb.gmra.mxu0 %v13080_v19 }
0x3657   :  { %13281 = vmatpush.msrb.mxu2 %v16952_v43  ;;  %13417 = vmatpush.msra.mxu3 %v16952_v43 }
0x3658   :  { %13217 = vmatmul.f32.vlgmr.msrb.gmra.mxu1 %v13080_v19  ;;  %13481 = vmatpush.msrb.mxu0 %v17019_v23 }
0x3659   :  { %13512 = vmatpush.msrb.mxu1 %v17044_v36 }
0x365a   :  { %13483 = vmatpush.msrb.mxu0 %v17024_v31 }
0x365b   :  { %13518 = vmatpush.msrb.mxu1 %v17050_v17 }
0x365c   :  { %13142 = vmatmul.f32.vlgmr.msra.gmra.mxu2 %v13081_v25  ;;  %13318 = vmatmul.f32.vlgmr.msrb.gmra.mxu3 %v12919_v15 }
0x365d   :  { %13390 = vmatpush.msra.mxu2 %v16956_v42  ;;  %13565 = vmatpush.msrb.mxu3 %v17019_v23 }
0x365e   :  { %13344 = vmatmul.f32.vlgmr.msra.gmra.mxu0 %v12920_v61 }
0x365f   :  { %13394 = vmatpush.msra.mxu2 %v16967_v46  ;;  %13567 = vmatpush.msrb.mxu3 %v17024_v31 }
0x3660   :  { %13369 = vmatmul.f32.vlgmr.msra.gmra.mxu1 %v12921_v14  ;;  %13592 = vmatpush.msra.mxu0 %v17029_v28 }
0x3661   :  { %13617 = vmatpush.msra.mxu1 %v17019_v23 }
0x3662   :  { %13596 = vmatpush.msra.mxu0 %v17040_v63 }
0x3663   :  { %13619 = vmatpush.msra.mxu1 %v17024_v31 }
0x3664   :  { %13287 = vmatmul.f32.vlgmr.msrb.gmra.mxu2 %v12923_v56  ;;  %13419 = vmatmul.f32.vlgmr.msra.gmra.mxu3 %v12919_v15 }
0x3665   :  { %13540 = vmatpush.msrb.mxu2 %v17022_v4  ;;  %13673 = vmatpush.msra.mxu3 %v17075_v18 }
0x3667   :  { %13543 = vmatpush.msrb.mxu2 %v17032_v53  ;;  %13679 = vmatpush.msra.mxu3 %v17080_v54 }
0x366c   :  { %13396 = vmatmul.f32.vlgmr.msra.gmra.mxu2 %v12919_v15 }
0x366d   :  { %13642 = vmatpush.msra.mxu2 %v17053_v40 }
0x366f   :  { %13644 = vmatpush.msra.mxu2 %v17057_v24 }
0x36c3   :  { %v12982_v45 = vpop.f32.mrf.mxu0 }
0x36c5   :  { %v13007_v2 = vpop.f32.mrf.mxu1 }
0x36c7   :  { %v12956_v10 = vpop.f32.mrf.mxu3 }
0x36cb   :  { %v13086_v12 = vpop.f32.mrf.mxu0 }
0x36cd   :  { %v13117_v20 = vpop.f32.mrf.mxu1 }
0x36ce   :  { %v13118_v11 = vadd.f32 %v13117_v20, %v13086_v12 }
0x36cf   :  { %v12925_v62 = vpop.f32.mrf.mxu2  ;;  %v13057_v0 = vpop.f32.mrf.mxu3 }
0x36d0   :  { %v12926_v6 = vadd.f32 %v17913_v48, %v12925_v62 }
0x36d2   :  { %v12957_v35 = vadd.f32 %v12956_v10, %v12926_v6 }
0x36d3   :  { %v13195_v33 = vpop.f32.mrf.mxu0 }
0x36d4   :  { %v12983_v16 = vadd.f32 %v12982_v45, %v12957_v35 }
0x36d5   :  { %v13218_v32 = vpop.f32.mrf.mxu1 }
0x36d6   :  { %v13008_v22 = vadd.f32 %v13007_v2, %v12983_v16 }
0x36d7   :  { %v13034_v41 = vpop.f32.mrf.mxu2  ;;  %v13168_v44 = vpop.f32.mrf.mxu3 }
0x36d8   :  { %v13035_v5 = vadd.f32 %v13034_v41, %v13008_v22 }
0x36da   :  { %v13058_v9 = vadd.f32 %v13057_v0, %v13035_v5 }
0x36db   :  { %v13345_v15 = vpop.f32.mrf.mxu0 }
0x36dd   :  { %v13370_v61 = vpop.f32.mrf.mxu1 }
0x36df   :  { %v13143_v21 = vpop.f32.mrf.mxu2  ;;  %v13319_v19 = vpop.f32.mrf.mxu3 }
0x36e0   :  { %v13144_v50 = vadd.f32 %v13143_v21, %v13118_v11 }
0x36e2   :  { %v13169_v30 = vadd.f32 %v13168_v44, %v13144_v50 }
0x36e4   :  { %v13196_v29 = vadd.f32 %v13195_v33, %v13169_v30 }
0x36e6   :  { %v13219_v57 = vadd.f32 %v13218_v32, %v13196_v29 }
0x36e7   :  { %v13288_v25 = vpop.f32.mrf.mxu2  ;;  %v13420_v38 = vpop.f32.mrf.mxu3 }
0x36e8   :  { %v13221_v3 = vadd.f32 %v13219_v57, %v13058_v9  ;;  %v13320_v37 = vadd.f32 %v13319_v19, %v13288_v25 }
0x36ea   :  { %15359 = vtanh.f32 %v13221_v3  ;;  %v13346_v39 = vadd.f32 %v13345_v15, %v13320_v37  ;;  %v15007_v0 = vmul.f32 -1.442695, %v13221_v3 }
0x36ec   :  { %v13371_v14 = vadd.f32 %v13370_v61, %v13346_v39 }
0x36ef   :  { %v13397_v8 = vpop.f32.mrf.mxu2 }
0x36f0   :  { %v15360_v59 = vpop.eup %15359  ;;  %v13398_v56 = vadd.f32 %v13397_v8, %v13371_v14 }
0x36f1   :  { %13244 = vrot.lane.b32.xlu0 %v15360_v59, %s15559_s9 }
0x36f2   :  { %v13421_v10 = vadd.f32 %v13420_v38, %v13398_v56 }
0x36f4   :  { %v13423_v45 = vadd.f32 %v13421_v10, %v17140_v51 }
0x36f6   :  { %15361 = vtanh.f32 %v13423_v45  ;;  %v15008_v62 = vmul.f32 -1.442695, %v13423_v45 }
0x36f8   :  { %15363 = vpow2.f32 %v15008_v62 }
0x36f9   :  { %15365 = vpow2.f32 %v15007_v0 }
0x36fc   :  { %v15362_v2 = vpop.eup %15361 }
0x36fd   :  { %13446 = vrot.lane.b32.xlu2 %v15362_v2, %s15559_s9 }
0x36fe   :  { %v15364_v6 = vpop.eup %15363 }
0x36ff   :  { %v13427_v12 = vadd.f32 1.0, %v15364_v6  ;;  %v15366_v35 = vpop.eup %15365 }
0x3700   :  { %v13225_v20 = vadd.f32 1.0, %v15366_v35 }
0x3701   :  { %15367 = vrcp.f32 %v13427_v12  ;;  %v13439_v50 = vand.u32 2147483648, %v13427_v12  ;;  %vm13433_vm6 = vweird.f32 %v13427_v12  ;;  %v13437_v5 = vand.u32 2147483647, %v13427_v12 }
0x3702   :  { %15369 = vrcp.f32 %v13225_v20  ;;  %v13237_v37 = vand.u32 2147483648, %v13225_v20  ;;  %vm13231_vm5 = vweird.f32 %v13225_v20  ;;  %v13235_v15 = vand.u32 2147483647, %v13225_v20 }
0x3703   :  { %v13440_v29 = vor.u32 1.1754944e-38, %v13439_v50  ;;  %vm13438_vm8 = vcmp.eq.f32.partialorder %v13437_v5, 8.507059e+37 }
0x3704   :  { %v13238_v61 = vor.u32 1.1754944e-38, %v13237_v37  ;;  %vm13236_vm11 = vcmp.eq.f32.partialorder %v13235_v15, 8.507059e+37 }
0x3707   :  { %v15368_v41 = vpop.eup %15367 }
0x3708   :  { %v13429_v16 = vmul.f32 %v15368_v41, %v13427_v12  ;;  %v15370_v22 = vpop.eup %15369  ;;  %vm13434_vm4 = vweird.f32 %v15368_v41 }
0x3709   :  { %v13227_v21 = vmul.f32 %v15370_v22, %v13225_v20  ;;  %vm13435_vm7 = vmor %vm13433_vm6, %vm13434_vm4  ;;  %vm13232_vm9 = vweird.f32 %v15370_v22 }
0x370a   :  { %v13430_v44 = vsub.f32 1.0, %v13429_v16  ;;  %vm13233_vm10 = vmor %vm13231_vm5, %vm13232_vm9 }
0x370b   :  { %v13228_v32 = vsub.f32 1.0, %v13227_v21 }
0x370c   :  { %v13431_v11 = vmul.f32 %v15368_v41, %v13430_v44 }
0x370d   :  { %v13229_v25 = vmul.f32 %v15370_v22, %v13228_v32 }
0x370e   :  { %v13432_v33 = vadd.f32 %v15368_v41, %v13431_v11 }
0x370f   :  { %v13230_v3 = vadd.f32 %v15370_v22, %v13229_v25 }
0x3710   :  { %v13436_v30 = vsel %vm13435_vm7, %v15368_v41, %v13432_v33 }
0x3711   :  { %v13441_v57 = vsel %vm13438_vm8, %v13440_v29, %v13436_v30  ;;  %v13234_v39 = vsel %vm13233_vm10, %v15370_v22, %v13230_v3 }
0x3712   :  { %v13239_v8 = vsel %vm13236_vm11, %v13238_v61, %v13234_v39  ;;  %v13444_v2 = vmul.f32 %v13441_v57, %v17857_v58 }
0x3713   :  { %v13242_v56 = vmul.f32 %v13239_v8, %v17862_v27 }
0x3757   :  { %v13447_v9 = vpop.permute.xlu2 %13446 }
0x3758   :  { %v13449_v19 = vmul.f32 %v13447_v9, %v13441_v57 }
0x375a   :  { %13451 = vrot.lane.b32.xlu1 %v13449_v19, %s15560_s2 }
0x3763   :  { %v13245_v14 = vpop.permute.xlu0 %13244 }
0x3764   :  { %v13247_v59 = vmul.f32 %v13245_v14, %v13239_v8 }
0x3766   :  { %13249 = vrot.lane.b32.xlu2 %v13247_v59, %s15560_s2 }
0x37c0   :  { %v13250_v38 = vpop.permute.xlu2 %13249 }
0x37c1   :  { %v17922_v10 = vadd.f32 %v13250_v38, %v13242_v56 }
0x37c3   :  { %15371 = vtanh.f32 %v17922_v10 }
0x37c9   :  { %v15372_v45 = vpop.eup %15371 }
0x37ca   :  { %13255 = vrot.lane.b32.xlu1 %v15372_v45, %s15558_s16 }
0x37cc   :  { %v13452_v62 = vpop.permute.xlu1 %13451 }
0x37cd   :  { %v17927_v6 = vadd.f32 %v13452_v62, %v13444_v2 }
0x37cf   :  { %15373 = vtanh.f32 %v17927_v6 }
0x37d5   :  { %v15374_v0 = vpop.eup %15373 }
0x37d6   :  { %13457 = vrot.lane.b32.xlu0 %v15374_v0, %s15558_s16 }
0x383c   :  { %v13256_v12 = vpop.permute.xlu1 %13255 }
0x383d   :  { %v13258_v27 = vmul.f32 %v13256_v12, %v13239_v8 }
0x383f   :  { %13260 = vrot.lane.b32.xlu0 %v13258_v27, %s15561_s15 }
0x3848   :  { %v13458_v35 = vpop.permute.xlu0 %13457 }
0x3849   :  { %v13460_v41 = vmul.f32 %v13458_v35, %v13441_v57 }
0x384b   :  { %13462 = vrot.lane.b32.xlu2 %v13460_v41, %s15561_s15 }
0x38a5   :  { %v13463_v20 = vpop.permute.xlu2 %13462 }
0x38a6   :  { %v13464_v16 = vsel %vm161_vm0, %v13463_v20, 0 }
0x38a7   :  { %v17934_v58 = vand.u32 4294901760, %v13464_v16 }
0x38a9   :  { %v13485_v44 = vsub.f32 %v13464_v16, %v17934_v58  ;;  %13520 = vmatmul.f32.vlgmr.msrb.gmra.mxu1 %v17934_v58 }
0x38aa   :  { %13726 = vmatpush.msrb.mxu1 %v17053_v40 }
0x38ab   :  { %v13486_v11 = vand.u32 4294901760, %v13485_v44  ;;  %13546 = vmatmul.f32.vlgmr.msrb.gmra.mxu2 %v13485_v44 }
0x38ac   :  { %13728 = vmatpush.msrb.mxu1 %v17057_v24  ;;  %13753 = vmatpush.msrb.mxu2 %v17065_v47 }
0x38ad   :  { %v13487_v22 = vsub.f32 %v13485_v44, %v13486_v11  ;;  %13571 = vmatmul.f32.vlgmr.msrb.gmra.mxu3 %v13486_v11 }
0x38ae   :  { %13778 = vmatpush.msrb.mxu3 %v17053_v40  ;;  %13757 = vmatpush.msrb.mxu2 %v17073_v7 }
0x38af   :  { %v13488_v33 = vand.u32 4294901760, %v13487_v22 }
0x38b0   :  { %13780 = vmatpush.msrb.mxu3 %v17057_v24 }
0x38b1   :  { %13489 = vmatmul.f32.vlgmr.msrb.gmra.mxu0 %v13488_v33  ;;  %13621 = vmatmul.f32.vlgmr.msra.gmra.mxu1 %v17934_v58  ;;  %v13261_v21 = vpop.permute.xlu0 %13260 }
0x38b2   :  { %13263 = vst.msk [vmem:[%s18096_s13 + $0x60] sm:$0xff] %vm161_vm0, %v13261_v21  ;;  %v13625_v50 = vsel %vm161_vm0, %v13261_v21, 0  ;;  %13701 = vmatpush.msrb.mxu0 %v17060_v52  ;;  %13875 = vmatpush.msra.mxu1 %v16971_v34 }
0x38b3   :  { %v13645_v5 = vand.u32 4294901760, %v13625_v50 }
0x38b4   :  { %13704 = vmatpush.msrb.mxu0 %v17068_v60  ;;  %13881 = vmatpush.msra.mxu1 %v16977_v55 }
0x38b5   :  { %v13646_v30 = vsub.f32 %v13625_v50, %v13645_v5  ;;  %13681 = vmatmul.f32.vlgmr.msra.gmra.mxu3 %v13645_v5 }
0x38b6   :  { %13928 = vmatpush.msra.mxu3 %v16946_v1 }
0x38b7   :  { %v13647_v32 = vand.u32 4294901760, %v13646_v30 }
0x38b8   :  { %13930 = vmatpush.msra.mxu3 %v16952_v43 }
0x38b9   :  { %v13648_v29 = vsub.f32 %v13646_v30, %v13647_v32  ;;  %13598 = vmatmul.f32.vlgmr.msra.gmra.mxu0 %v17934_v58  ;;  %13732 = vmatmul.f32.vlgmr.msrb.gmra.mxu1 %v13647_v32 }
0x38ba   :  { %13844 = vmatpush.msra.mxu0 %v16946_v1  ;;  %13980 = vmatpush.msrb.mxu1 %v16946_v1 }
0x38bb   :  { %v13649_v9 = vand.u32 4294901760, %v13648_v29 }
0x38bc   :  { %13846 = vmatpush.msra.mxu0 %v16952_v43  ;;  %13982 = vmatpush.msrb.mxu1 %v16952_v43 }
0x38bd   :  { %13650 = vmatmul.f32.vlgmr.msra.gmra.mxu2 %v13649_v9  ;;  %13782 = vmatmul.f32.vlgmr.msrb.gmra.mxu3 %v13645_v5 }
0x38be   :  { %13903 = vmatpush.msra.mxu2 %v16950_v13  ;;  %14077 = vmatpush.msrb.mxu3 %v17044_v36 }
0x38c0   :  { %13906 = vmatpush.msra.mxu2 %v16960_v26  ;;  %14083 = vmatpush.msrb.mxu3 %v17050_v17 }
0x38c1   :  { %13707 = vmatmul.f32.vlgmr.msrb.gmra.mxu0 %v13646_v30  ;;  %13883 = vmatmul.f32.vlgmr.msra.gmra.mxu1 %v17934_v58 }
0x38c2   :  { %13955 = vmatpush.msrb.mxu0 %v16956_v42  ;;  %14130 = vmatpush.msra.mxu1 %v17019_v23 }
0x38c4   :  { %13959 = vmatpush.msrb.mxu0 %v16967_v46  ;;  %14132 = vmatpush.msra.mxu1 %v17024_v31 }
0x38c5   :  { %13759 = vmatmul.f32.vlgmr.msrb.gmra.mxu2 %v13645_v5  ;;  %13934 = vmatmul.f32.vlgmr.msra.gmra.mxu3 %v13486_v11 }
0x38c6   :  { %14046 = vmatpush.msrb.mxu2 %v17019_v23  ;;  %14182 = vmatpush.msra.mxu3 %v17019_v23 }
0x38c8   :  { %14048 = vmatpush.msrb.mxu2 %v17024_v31  ;;  %14184 = vmatpush.msra.mxu3 %v17024_v31 }
0x38c9   :  { %13852 = vmatmul.f32.vlgmr.msra.gmra.mxu0 %v13488_v33  ;;  %13984 = vmatmul.f32.vlgmr.msrb.gmra.mxu1 %v17934_v58 }
0x38ca   :  { %14105 = vmatpush.msra.mxu0 %v17022_v4  ;;  %14238 = vmatpush.msrb.mxu1 %v17075_v18 }
0x38cc   :  { %14108 = vmatpush.msra.mxu0 %v17032_v53  ;;  %14244 = vmatpush.msrb.mxu1 %v17080_v54 }
0x38cd   :  { %13909 = vmatmul.f32.vlgmr.msra.gmra.mxu2 %v13485_v44 }
0x38ce   :  { %14157 = vmatpush.msra.mxu2 %v17029_v28 }
0x38d0   :  { %14161 = vmatpush.msra.mxu2 %v17040_v63 }
0x38d1   :  { %13961 = vmatmul.f32.vlgmr.msrb.gmra.mxu0 %v17934_v58 }
0x38d2   :  { %14207 = vmatpush.msrb.mxu0 %v17053_v40 }
0x38d4   :  { %14209 = vmatpush.msrb.mxu0 %v17057_v24 }
0x3926   :  { %v13521_v57 = vpop.f32.mrf.mxu1 }
0x392e   :  { %v13490_v19 = vpop.f32.mrf.mxu0  ;;  %v13547_v15 = vpop.f32.mrf.mxu2 }
0x392f   :  { %v13491_v37 = vadd.f32 %v17913_v48, %v13490_v19  ;;  %v13622_v39 = vpop.f32.mrf.mxu1 }
0x3930   :  { %v13572_v25 = vpop.f32.mrf.mxu3 }
0x3931   :  { %v13522_v61 = vadd.f32 %v13521_v57, %v13491_v37 }
0x3933   :  { %v13548_v8 = vadd.f32 %v13547_v15, %v13522_v61 }
0x3935   :  { %v13573_v2 = vadd.f32 %v13572_v25, %v13548_v8 }
0x3936   :  { %v13599_v3 = vpop.f32.mrf.mxu0 }
0x3937   :  { %v13733_v45 = vpop.f32.mrf.mxu1  ;;  %v13600_v0 = vadd.f32 %v13599_v3, %v13573_v2 }
0x3938   :  { %v13682_v14 = vpop.f32.mrf.mxu3 }
0x3939   :  { %v13623_v16 = vadd.f32 %v13622_v39, %v13600_v0 }
0x393e   :  { %v13708_v59 = vpop.f32.mrf.mxu0 }
0x393f   :  { %v13884_v44 = vpop.f32.mrf.mxu1 }
0x3940   :  { %v13651_v56 = vpop.f32.mrf.mxu2  ;;  %v13783_v27 = vpop.f32.mrf.mxu3 }
0x3941   :  { %v13683_v38 = vadd.f32 %v13682_v14, %v13651_v56 }
0x3943   :  { %v13709_v62 = vadd.f32 %v13708_v59, %v13683_v38 }
0x3945   :  { %v13734_v12 = vadd.f32 %v13733_v45, %v13709_v62 }
0x3946   :  { %v13853_v20 = vpop.f32.mrf.mxu0 }
0x3947   :  { %v13885_v22 = vadd.f32 %v13884_v44, %v13853_v20  ;;  %v13985_v9 = vpop.f32.mrf.mxu1 }
0x3948   :  { %v13760_v35 = vpop.f32.mrf.mxu2  ;;  %v13935_v50 = vpop.f32.mrf.mxu3 }
0x3949   :  { %v13761_v41 = vadd.f32 %v13760_v35, %v13734_v12 }
0x394b   :  { %v13784_v58 = vadd.f32 %v13783_v27, %v13761_v41 }
0x394d   :  { %v13786_v11 = vadd.f32 %v13784_v58, %v13623_v16 }
0x394e   :  { %v13962_v30 = vpop.f32.mrf.mxu0 }
0x394f   :  { %15375 = vtanh.f32 %v13786_v11  ;;  %v15009_v3 = vmul.f32 -1.442695, %v13786_v11 }
0x3950   :  { %v13910_v33 = vpop.f32.mrf.mxu2 }
0x3951   :  { %v13911_v21 = vadd.f32 %v13910_v33, %v13885_v22 }
0x3953   :  { %v13936_v5 = vadd.f32 %v13935_v50, %v13911_v21 }
0x3955   :  { %v15376_v32 = vpop.eup %15375  ;;  %v13963_v29 = vadd.f32 %v13962_v30, %v13936_v5 }
0x3956   :  { %13809 = vrot.lane.b32.xlu2 %v15376_v32, %s15559_s9 }
0x3957   :  { %v13986_v57 = vadd.f32 %v13985_v9, %v13963_v29 }
0x3959   :  { %v13988_v19 = vadd.f32 %v13986_v57, %v17009_v49 }
0x395b   :  { %15377 = vtanh.f32 %v13988_v19  ;;  %v15010_v59 = vmul.f32 -1.442695, %v13988_v19 }
0x395c   :  { %15379 = vpow2.f32 %v15009_v3 }
0x3961   :  { %v15378_v25 = vpop.eup %15377 }
0x3962   :  { %14011 = vrot.lane.b32.xlu1 %v15378_v25, %s15559_s9  ;;  %v15380_v37 = vpop.eup %15379 }
0x3963   :  { %v13790_v15 = vadd.f32 1.0, %v15380_v37 }
0x3965   :  { %15381 = vrcp.f32 %v13790_v15  ;;  %v13802_v38 = vand.u32 2147483648, %v13790_v15  ;;  %vm13796_vm13 = vweird.f32 %v13790_v15  ;;  %v13800_v49 = vand.u32 2147483647, %v13790_v15 }
0x3966   :  { %15383 = vpow2.f32 %v15010_v59 }
0x3967   :  { %v13803_v2 = vor.u32 1.1754944e-38, %v13802_v38  ;;  %vm13801_vm15 = vcmp.eq.f32.partialorder %v13800_v49, 8.507059e+37 }
0x396b   :  { %v15382_v39 = vpop.eup %15381 }
0x396c   :  { %v13792_v61 = vmul.f32 %v15382_v39, %v13790_v15  ;;  %vm13797_vm12 = vweird.f32 %v15382_v39  ;;  %v15384_v12 = vpop.eup %15383 }
0x396d   :  { %vm13798_vm14 = vmor %vm13796_vm13, %vm13797_vm12  ;;  %v13992_v35 = vadd.f32 1.0, %v15384_v12 }
0x396e   :  { %v13793_v14 = vsub.f32 1.0, %v13792_v61 }
0x396f   :  { %15385 = vrcp.f32 %v13992_v35  ;;  %v14004_v11 = vand.u32 2147483648, %v13992_v35  ;;  %vm13998_vm2 = vweird.f32 %v13992_v35  ;;  %v14002_v22 = vand.u32 2147483647, %v13992_v35 }
0x3970   :  { %v13794_v8 = vmul.f32 %v15382_v39, %v13793_v14 }
0x3971   :  { %v14005_v21 = vor.u32 1.1754944e-38, %v14004_v11  ;;  %vm14003_vm4 = vcmp.eq.f32.partialorder %v14002_v22, 8.507059e+37 }
0x3972   :  { %v13795_v56 = vadd.f32 %v15382_v39, %v13794_v8 }
0x3974   :  { %v13799_v45 = vsel %vm13798_vm14, %v15382_v39, %v13795_v56 }
0x3975   :  { %v13804_v0 = vsel %vm13801_vm15, %v13803_v2, %v13799_v45  ;;  %v15386_v41 = vpop.eup %15385 }
0x3976   :  { %v13994_v20 = vmul.f32 %v15386_v41, %v13992_v35  ;;  %vm13999_vm1 = vweird.f32 %v15386_v41  ;;  %v13807_v32 = vmul.f32 %v13804_v0, %v17922_v10 }
0x3977   :  { %vm14000_vm3 = vmor %vm13998_vm2, %vm13999_vm1 }
0x3978   :  { %v13995_v16 = vsub.f32 1.0, %v13994_v20 }
0x397a   :  { %v13996_v58 = vmul.f32 %v15386_v41, %v13995_v16 }
0x397c   :  { %v13997_v44 = vadd.f32 %v15386_v41, %v13996_v58 }
0x397e   :  { %v14001_v33 = vsel %vm14000_vm3, %v15386_v41, %v13997_v44 }
0x397f   :  { %v14006_v5 = vsel %vm14003_vm4, %v14005_v21, %v14001_v33 }
0x3980   :  { %v14009_v19 = vmul.f32 %v14006_v5, %v17927_v6 }
0x39b0   :  { %v13810_v62 = vpop.permute.xlu2 %13809 }
0x39b1   :  { %v13812_v27 = vmul.f32 %v13810_v62, %v13804_v0 }
0x39b3   :  { %13814 = vrot.lane.b32.xlu1 %v13812_v27, %s15560_s2 }
0x39d4   :  { %v14012_v50 = vpop.permute.xlu1 %14011 }
0x39d5   :  { %v14014_v30 = vmul.f32 %v14012_v50, %v14006_v5 }
0x39d7   :  { %14016 = vrot.lane.b32.xlu0 %v14014_v30, %s15560_s2 }
0x3a25   :  { %v13815_v29 = vpop.permute.xlu1 %13814 }
0x3a26   :  { %v17991_v9 = vadd.f32 %v13815_v29, %v13807_v32 }
0x3a28   :  { %15387 = vtanh.f32 %v17991_v9 }
0x3a2e   :  { %v15388_v57 = vpop.eup %15387 }
0x3a2f   :  { %13820 = vrot.lane.b32.xlu0 %v15388_v57, %s15558_s16 }
0x3a49   :  { %v14017_v25 = vpop.permute.xlu0 %14016 }
0x3a4a   :  { %v17996_v3 = vadd.f32 %v14017_v25, %v14009_v19 }
0x3a4c   :  { %15389 = vtanh.f32 %v17996_v3 }
0x3a52   :  { %v15390_v37 = vpop.eup %15389 }
0x3a53   :  { %14022 = vrot.lane.b32.xlu2 %v15390_v37, %s15558_s16 }
0x3aa1   :  { %v13821_v15 = vpop.permute.xlu0 %13820 }
0x3aa2   :  { %v13823_v10 = vmul.f32 %v13821_v15, %v13804_v0 }
0x3aa4   :  { %13825 = vrot.lane.b32.xlu2 %v13823_v10, %s15561_s15 }
0x3aad   :  { %v14023_v39 = vpop.permute.xlu2 %14022 }
0x3aae   :  { %v14025_v61 = vmul.f32 %v14023_v39, %v14006_v5 }
0x3ab0   :  { %14027 = vrot.lane.b32.xlu1 %v14025_v61, %s15561_s15 }
0x3afe   :  { %v13826_v14 = vpop.permute.xlu2 %13825 }
0x3aff   :  { %13828 = vst.msk [vmem:[%s18096_s13 + $0x68] sm:$0xff] %vm161_vm0, %v13826_v14  ;;  %v14190_v6 = vsel %vm161_vm0, %v13826_v14, 0 }
0x3b00   :  { %v14210_v8 = vand.u32 4294901760, %v14190_v6 }
0x3b02   :  { %v14211_v59 = vsub.f32 %v14190_v6, %v14210_v8 }
0x3b04   :  { %v14212_v45 = vand.u32 4294901760, %v14211_v59 }
0x3b06   :  { %v14213_v0 = vsub.f32 %v14211_v59, %v14212_v45 }
0x3b08   :  { %v14214_v35 = vand.u32 4294901760, %v14213_v0 }
0x3b22   :  { %v14028_v56 = vpop.permute.xlu1 %14027 }
0x3b23   :  { %v14029_v38 = vsel %vm161_vm0, %v14028_v56, 0 }
0x3b24   :  { %v14049_v49 = vand.u32 4294901760, %v14029_v38 }
0x3b26   :  { %v14050_v2 = vsub.f32 %v14029_v38, %v14049_v49  ;;  %14085 = vmatmul.f32.vlgmr.msrb.gmra.mxu3 %v14049_v49 }
0x3b27   :  { %14291 = vmatpush.msrb.mxu3 %v17053_v40 }
0x3b28   :  { %v14051_v62 = vand.u32 4294901760, %v14050_v2  ;;  %14111 = vmatmul.f32.vlgmr.msra.gmra.mxu0 %v14050_v2 }
0x3b29   :  { %14293 = vmatpush.msrb.mxu3 %v17057_v24  ;;  %14318 = vmatpush.msra.mxu0 %v17065_v47 }
0x3b2a   :  { %v14052_v12 = vsub.f32 %v14050_v2, %v14051_v62  ;;  %14136 = vmatmul.f32.vlgmr.msra.gmra.mxu1 %v14051_v62 }
0x3b2b   :  { %14322 = vmatpush.msra.mxu0 %v17073_v7  ;;  %14343 = vmatpush.msra.mxu1 %v17053_v40 }
0x3b2c   :  { %v14053_v27 = vand.u32 4294901760, %v14052_v12 }
0x3b2d   :  { %14345 = vmatpush.msra.mxu1 %v17057_v24 }
0x3b2e   :  { %14054 = vmatmul.f32.vlgmr.msrb.gmra.mxu2 %v14053_v27  ;;  %14186 = vmatmul.f32.vlgmr.msra.gmra.mxu3 %v14049_v49 }
0x3b2f   :  { %14266 = vmatpush.msrb.mxu2 %v17060_v52  ;;  %14440 = vmatpush.msra.mxu3 %v16971_v34 }
0x3b30   :  { %14215 = vmatmul.f32.vlgmr.msrb.gmra.mxu0 %v14214_v35 }
0x3b31   :  { %14269 = vmatpush.msrb.mxu2 %v17068_v60  ;;  %14446 = vmatpush.msra.mxu3 %v16977_v55 }
0x3b32   :  { %14246 = vmatmul.f32.vlgmr.msrb.gmra.mxu1 %v14210_v8  ;;  %14468 = vmatpush.msrb.mxu0 %v16950_v13 }
0x3b33   :  { %14493 = vmatpush.msrb.mxu1 %v16946_v1 }
0x3b34   :  { %14471 = vmatpush.msrb.mxu0 %v16960_v26 }
0x3b35   :  { %14495 = vmatpush.msrb.mxu1 %v16952_v43 }
0x3b36   :  { %14163 = vmatmul.f32.vlgmr.msra.gmra.mxu2 %v14049_v49  ;;  %14297 = vmatmul.f32.vlgmr.msrb.gmra.mxu3 %v14212_v45 }
0x3b37   :  { %14409 = vmatpush.msra.mxu2 %v16946_v1  ;;  %14545 = vmatpush.msrb.mxu3 %v16946_v1 }
0x3b38   :  { %14324 = vmatmul.f32.vlgmr.msra.gmra.mxu0 %v14210_v8 }
0x3b39   :  { %14411 = vmatpush.msra.mxu2 %v16952_v43  ;;  %14547 = vmatpush.msrb.mxu3 %v16952_v43 }
0x3b3a   :  { %14347 = vmatmul.f32.vlgmr.msra.gmra.mxu1 %v14210_v8  ;;  %14611 = vmatpush.msra.mxu0 %v17019_v23 }
0x3b3b   :  { %14642 = vmatpush.msra.mxu1 %v17044_v36 }
0x3b3c   :  { %14613 = vmatpush.msra.mxu0 %v17024_v31 }
0x3b3d   :  { %14648 = vmatpush.msra.mxu1 %v17050_v17 }
0x3b3e   :  { %14272 = vmatmul.f32.vlgmr.msrb.gmra.mxu2 %v14211_v59  ;;  %14448 = vmatmul.f32.vlgmr.msra.gmra.mxu3 %v14049_v49 }
0x3b3f   :  { %14520 = vmatpush.msrb.mxu2 %v16956_v42  ;;  %14695 = vmatpush.msra.mxu3 %v17019_v23 }
0x3b40   :  { %14474 = vmatmul.f32.vlgmr.msrb.gmra.mxu0 %v14050_v2 }
0x3b41   :  { %14524 = vmatpush.msrb.mxu2 %v16967_v46  ;;  %14697 = vmatpush.msra.mxu3 %v17024_v31 }
0x3b42   :  { %14499 = vmatmul.f32.vlgmr.msrb.gmra.mxu1 %v14051_v62  ;;  %14722 = vmatpush.msrb.mxu0 %v17029_v28 }
0x3b43   :  { %14747 = vmatpush.msrb.mxu1 %v17019_v23 }
0x3b44   :  { %14726 = vmatpush.msrb.mxu0 %v17040_v63 }
0x3b45   :  { %14749 = vmatpush.msrb.mxu1 %v17024_v31 }
0x3b46   :  { %14417 = vmatmul.f32.vlgmr.msra.gmra.mxu2 %v14053_v27  ;;  %14549 = vmatmul.f32.vlgmr.msrb.gmra.mxu3 %v14049_v49 }
0x3b47   :  { %14670 = vmatpush.msra.mxu2 %v17022_v4  ;;  %14803 = vmatpush.msrb.mxu3 %v17075_v18 }
0x3b49   :  { %14673 = vmatpush.msra.mxu2 %v17032_v53  ;;  %14809 = vmatpush.msrb.mxu3 %v17080_v54 }
0x3b4e   :  { %14526 = vmatmul.f32.vlgmr.msrb.gmra.mxu2 %v14049_v49 }
0x3b4f   :  { %14772 = vmatpush.msrb.mxu2 %v17053_v40 }
0x3b51   :  { %14774 = vmatpush.msrb.mxu2 %v17057_v24 }
0x3ba5   :  { %v14112_v13 = vpop.f32.mrf.mxu0 }
0x3ba7   :  { %v14137_v43 = vpop.f32.mrf.mxu1 }
0x3ba9   :  { %v14086_v1 = vpop.f32.mrf.mxu3 }
0x3bad   :  { %v14216_v34 = vpop.f32.mrf.mxu0 }
0x3baf   :  { %v14247_v4 = vpop.f32.mrf.mxu1 }
0x3bb0   :  { %v14248_v53 = vadd.f32 %v14247_v4, %v14216_v34 }
0x3bb1   :  { %v14055_v42 = vpop.f32.mrf.mxu2  ;;  %v14187_v46 = vpop.f32.mrf.mxu3 }
0x3bb2   :  { %v14056_v26 = vadd.f32 %v17913_v48, %v14055_v42 }
0x3bb4   :  { %v14087_v55 = vadd.f32 %v14086_v1, %v14056_v26 }
0x3bb5   :  { %v14325_v36 = vpop.f32.mrf.mxu0 }
0x3bb6   :  { %v14113_v31 = vadd.f32 %v14112_v13, %v14087_v55 }
0x3bb7   :  { %v14348_v20 = vpop.f32.mrf.mxu1 }
0x3bb8   :  { %v14138_v63 = vadd.f32 %v14137_v43, %v14113_v31 }
0x3bb9   :  { %v14164_v23 = vpop.f32.mrf.mxu2  ;;  %v14298_v28 = vpop.f32.mrf.mxu3 }
0x3bba   :  { %v14165_v54 = vadd.f32 %v14164_v23, %v14138_v63 }
0x3bbc   :  { %v14188_v58 = vadd.f32 %v14187_v46, %v14165_v54 }
0x3bbd   :  { %v14475_v50 = vpop.f32.mrf.mxu0 }
0x3bbf   :  { %v14500_v30 = vpop.f32.mrf.mxu1 }
0x3bc1   :  { %v14273_v17 = vpop.f32.mrf.mxu2  ;;  %v14449_v11 = vpop.f32.mrf.mxu3 }
0x3bc2   :  { %v14274_v18 = vadd.f32 %v14273_v17, %v14248_v53 }
0x3bc4   :  { %v14299_v41 = vadd.f32 %v14298_v28, %v14274_v18 }
0x3bc6   :  { %v14326_v16 = vadd.f32 %v14325_v36, %v14299_v41 }
0x3bc8   :  { %v14349_v44 = vadd.f32 %v14348_v20, %v14326_v16 }
0x3bc9   :  { %v14418_v22 = vpop.f32.mrf.mxu2  ;;  %v14550_v25 = vpop.f32.mrf.mxu3 }
0x3bca   :  { %v14351_v33 = vadd.f32 %v14349_v44, %v14188_v58  ;;  %v14450_v21 = vadd.f32 %v14449_v11, %v14418_v22 }
0x3bcc   :  { %15391 = vtanh.f32 %v14351_v33  ;;  %v14476_v5 = vadd.f32 %v14475_v50, %v14450_v21  ;;  %v15011_v39 = vmul.f32 -1.442695, %v14351_v33 }
0x3bce   :  { %v14501_v32 = vadd.f32 %v14500_v30, %v14476_v5 }
0x3bd1   :  { %v14527_v29 = vpop.f32.mrf.mxu2 }
0x3bd2   :  { %v15392_v57 = vpop.eup %15391  ;;  %v14528_v19 = vadd.f32 %v14527_v29, %v14501_v32 }
0x3bd3   :  { %14374 = vrot.lane.b32.xlu1 %v15392_v57, %s15559_s9 }
0x3bd4   :  { %v14551_v37 = vadd.f32 %v14550_v25, %v14528_v19 }
0x3bd6   :  { %v14553_v15 = vadd.f32 %v14551_v37, %v17140_v51 }
0x3bd8   :  { %15393 = vtanh.f32 %v14553_v15  ;;  %v15012_v14 = vmul.f32 -1.442695, %v14553_v15 }
0x3bd9   :  { %15395 = vpow2.f32 %v15011_v39 }
0x3bda   :  { %15397 = vpow2.f32 %v15012_v14 }
0x3bde   :  { %v15394_v10 = vpop.eup %15393 }
0x3bdf   :  { %14576 = vrot.lane.b32.xlu0 %v15394_v10, %s15559_s9  ;;  %v15396_v61 = vpop.eup %15395 }
0x3be0   :  { %v14355_v6 = vadd.f32 1.0, %v15396_v61  ;;  %v15398_v8 = vpop.eup %15397 }
0x3be1   :  { %v14557_v56 = vadd.f32 1.0, %v15398_v8 }
0x3be2   :  { %15399 = vrcp.f32 %v14355_v6  ;;  %v14367_v0 = vand.u32 2147483648, %v14355_v6  ;;  %vm14361_vm7 = vweird.f32 %v14355_v6  ;;  %v14365_v12 = vand.u32 2147483647, %v14355_v6 }
0x3be3   :  { %15401 = vrcp.f32 %v14557_v56  ;;  %v14569_v34 = vand.u32 2147483648, %v14557_v56  ;;  %vm14563_vm10 = vweird.f32 %v14557_v56  ;;  %v14567_v55 = vand.u32 2147483647, %v14557_v56 }
0x3be4   :  { %v14368_v1 = vor.u32 1.1754944e-38, %v14367_v0  ;;  %vm14366_vm9 = vcmp.eq.f32.partialorder %v14365_v12, 8.507059e+37 }
0x3be5   :  { %v14570_v4 = vor.u32 1.1754944e-38, %v14569_v34  ;;  %vm14568_vm12 = vcmp.eq.f32.partialorder %v14567_v55, 8.507059e+37 }
0x3be8   :  { %v15400_v59 = vpop.eup %15399 }
0x3be9   :  { %v14357_v38 = vmul.f32 %v15400_v59, %v14355_v6  ;;  %v15402_v2 = vpop.eup %15401  ;;  %vm14362_vm6 = vweird.f32 %v15400_v59 }
0x3bea   :  { %v14559_v62 = vmul.f32 %v15402_v2, %v14557_v56  ;;  %vm14363_vm8 = vmor %vm14361_vm7, %vm14362_vm6  ;;  %vm14564_vm5 = vweird.f32 %v15402_v2 }
0x3beb   :  { %v14358_v49 = vsub.f32 1.0, %v14357_v38  ;;  %vm14565_vm11 = vmor %vm14563_vm10, %vm14564_vm5 }
0x3bec   :  { %v14560_v35 = vsub.f32 1.0, %v14559_v62 }
0x3bed   :  { %v14359_v45 = vmul.f32 %v15400_v59, %v14358_v49 }
0x3bee   :  { %v14561_v26 = vmul.f32 %v15402_v2, %v14560_v35 }
0x3bef   :  { %v14360_v51 = vadd.f32 %v15400_v59, %v14359_v45 }
0x3bf0   :  { %v14562_v46 = vadd.f32 %v15402_v2, %v14561_v26 }
0x3bf1   :  { %v14364_v27 = vsel %vm14363_vm8, %v15400_v59, %v14360_v51 }
0x3bf2   :  { %v14369_v43 = vsel %vm14366_vm9, %v14368_v1, %v14364_v27  ;;  %v14566_v23 = vsel %vm14565_vm11, %v15402_v2, %v14562_v46 }
0x3bf3   :  { %v14571_v28 = vsel %vm14568_vm12, %v14570_v4, %v14566_v23  ;;  %v14372_v54 = vmul.f32 %v14369_v43, %v17991_v9 }
0x3bf4   :  { %v14574_v63 = vmul.f32 %v14571_v28, %v17996_v3 }
0x3c45   :  { %v14375_v13 = vpop.permute.xlu1 %14374 }
0x3c46   :  { %v14377_v42 = vmul.f32 %v14375_v13, %v14369_v43 }
0x3c48   :  { %14379 = vrot.lane.b32.xlu0 %v14377_v42, %s15560_s2 }
0x3c51   :  { %v14577_v31 = vpop.permute.xlu0 %14576 }
0x3c52   :  { %v14579_v53 = vmul.f32 %v14577_v31, %v14571_v28 }
0x3c54   :  { %14581 = vrot.lane.b32.xlu2 %v14579_v53, %s15560_s2 }
0x3cae   :  { %v14582_v36 = vpop.permute.xlu2 %14581 }
0x3caf   :  { %v14584_v17 = vadd.f32 %v14582_v36, %v14574_v63 }
0x3cb1   :  { %15403 = vtanh.f32 %v14584_v17 }
0x3cb7   :  { %v15404_v18 = vpop.eup %15403 }
0x3cb8   :  { %14587 = vrot.lane.b32.xlu1 %v15404_v18, %s15558_s16 }
0x3cba   :  { %v14380_v41 = vpop.permute.xlu0 %14379 }
0x3cbb   :  { %v18053_v20 = vadd.f32 %v14380_v41, %v14372_v54 }
0x3cbd   :  { %15405 = vtanh.f32 %v18053_v20 }
0x3cc3   :  { %v15406_v16 = vpop.eup %15405 }
0x3cc4   :  { %14385 = vrot.lane.b32.xlu2 %v15406_v16, %s15558_s16 }
0x3d1e   :  { %v14386_v58 = vpop.permute.xlu2 %14385 }
0x3d1f   :  { %v14388_v44 = vmul.f32 %v14386_v58, %v14369_v43 }
0x3d21   :  { %14390 = vrot.lane.b32.xlu1 %v14388_v44, %s15561_s15 }
0x3d2a   :  { %v14588_v3 = vpop.permute.xlu1 %14587 }
0x3d2b   :  { %v14590_v11 = vmul.f32 %v14588_v3, %v14571_v28 }
0x3d2d   :  { %14592 = vrot.lane.b32.xlu0 %v14590_v11, %s15561_s15 }
0x3d93   :  { %v14391_v22 = vpop.permute.xlu1 %14390 }
0x3d94   :  { %14393 = vst.msk [vmem:[%s18096_s13 + $0x70] sm:$0xff] %vm161_vm0, %v14391_v22  ;;  %v14755_v9 = vsel %vm161_vm0, %v14391_v22, 0 }
0x3d95   :  { %v14775_v33 = vand.u32 4294901760, %v14755_v9 }
0x3d97   :  { %v14776_v21 = vsub.f32 %v14755_v9, %v14775_v33 }
0x3d99   :  { %v14777_v32 = vand.u32 4294901760, %v14776_v21 }
0x3d9b   :  { %v14778_v19 = vsub.f32 %v14776_v21, %v14777_v32 }
0x3d9d   :  { %v14779_v15 = vand.u32 4294901760, %v14778_v19 }
0x3d9f   :  { %v14593_v50 = vpop.permute.xlu0 %14592 }
0x3da0   :  { %v14594_v5 = vsel %vm161_vm0, %v14593_v50, 0 }
0x3da1   :  { %v14614_v30 = vand.u32 4294901760, %v14594_v5 }
0x3da3   :  { %v14615_v29 = vsub.f32 %v14594_v5, %v14614_v30  ;;  %14650 = vmatmul.f32.vlgmr.msra.gmra.mxu1 %v14614_v30 }
0x3da4   :  { %14856 = vmatpush.msra.mxu1 %v17053_v40 }
0x3da5   :  { %v14616_v57 = vand.u32 4294901760, %v14615_v29  ;;  %14676 = vmatmul.f32.vlgmr.msra.gmra.mxu2 %v14615_v29 }
0x3da6   :  { %14858 = vmatpush.msra.mxu1 %v17057_v24  ;;  %14883 = vmatpush.msra.mxu2 %v17065_v47 }
0x3da7   :  { %v14617_v25 = vsub.f32 %v14615_v29, %v14616_v57  ;;  %14701 = vmatmul.f32.vlgmr.msra.gmra.mxu3 %v14616_v57 }
0x3da8   :  { %14887 = vmatpush.msra.mxu2 %v17073_v7  ;;  %14908 = vmatpush.msra.mxu3 %v17053_v40 }
0x3da9   :  { %v14618_v37 = vand.u32 4294901760, %v14617_v25 }
0x3daa   :  { %14910 = vmatpush.msra.mxu3 %v17057_v24 }
0x3dab   :  { %14619 = vmatmul.f32.vlgmr.msra.gmra.mxu0 %v14618_v37  ;;  %14751 = vmatmul.f32.vlgmr.msrb.gmra.mxu1 %v14614_v30 }
0x3dac   :  { %14831 = vmatpush.msra.mxu0 %v17060_v52 }
0x3dad   :  { %14780 = vmatmul.f32.vlgmr.msrb.gmra.mxu2 %v14779_v15 }
0x3dae   :  { %14834 = vmatpush.msra.mxu0 %v17068_v60 }
0x3daf   :  { %14811 = vmatmul.f32.vlgmr.msrb.gmra.mxu3 %v14775_v33 }
0x3db3   :  { %14728 = vmatmul.f32.vlgmr.msrb.gmra.mxu0 %v14614_v30  ;;  %14862 = vmatmul.f32.vlgmr.msra.gmra.mxu1 %v14777_v32 }
0x3db5   :  { %14889 = vmatmul.f32.vlgmr.msra.gmra.mxu2 %v14775_v33 }
0x3db7   :  { %14912 = vmatmul.f32.vlgmr.msra.gmra.mxu3 %v14775_v33 }
0x3dbb   :  { %14837 = vmatmul.f32.vlgmr.msra.gmra.mxu0 %v14776_v21 }
0x3e20   :  { %v14651_v47 = vpop.f32.mrf.mxu1 }
0x3e28   :  { %v14620_v7 = vpop.f32.mrf.mxu0  ;;  %v14677_v40 = vpop.f32.mrf.mxu2 }
0x3e29   :  { %v14621_v24 = vadd.f32 %v17913_v48, %v14620_v7  ;;  %v14752_v61 = vpop.f32.mrf.mxu1 }
0x3e2a   :  { %v14702_v10 = vpop.f32.mrf.mxu3 }
0x3e2b   :  { %v14652_v39 = vadd.f32 %v14651_v47, %v14621_v24 }
0x3e2d   :  { %v14678_v52 = vadd.f32 %v14677_v40, %v14652_v39 }
0x3e2f   :  { %v14703_v59 = vadd.f32 %v14702_v10, %v14678_v52 }
0x3e30   :  { %v14729_v14 = vpop.f32.mrf.mxu0  ;;  %v14781_v6 = vpop.f32.mrf.mxu2 }
0x3e31   :  { %v14863_v49 = vpop.f32.mrf.mxu1  ;;  %v14730_v45 = vadd.f32 %v14729_v14, %v14703_v59 }
0x3e32   :  { %v14812_v8 = vpop.f32.mrf.mxu3 }
0x3e33   :  { %v14813_v60 = vadd.f32 %v14812_v8, %v14781_v6  ;;  %v14753_v12 = vadd.f32 %v14752_v61, %v14730_v45 }
0x3e38   :  { %v14838_v56 = vpop.f32.mrf.mxu0  ;;  %v14890_v51 = vpop.f32.mrf.mxu2 }
0x3e39   :  { %v14839_v38 = vadd.f32 %v14838_v56, %v14813_v60 }
0x3e3a   :  { %v14913_v0 = vpop.f32.mrf.mxu3 }
0x3e3b   :  { %v14864_v2 = vadd.f32 %v14863_v49, %v14839_v38 }
0x3e3d   :  { %v14891_v62 = vadd.f32 %v14890_v51, %v14864_v2 }
0x3e3f   :  { %v14914_v27 = vadd.f32 %v14913_v0, %v14891_v62 }
0x3e41   :  { %v14916_v35 = vadd.f32 %v14914_v27, %v14753_v12 }
0x3e43   :  { %15407 = vtanh.f32 %v14916_v35  ;;  %v15013_v1 = vmul.f32 -1.442695, %v14916_v35 }
0x3e45   :  { %15409 = vpow2.f32 %v15013_v1 }
0x3e49   :  { %v15408_v48 = vpop.eup %15407 }
0x3e4a   :  { %14939 = vrot.lane.b32.xlu2 %v15408_v48, %s15559_s9 }
0x3e4b   :  { %v15410_v13 = vpop.eup %15409 }
0x3e4c   :  { %v14920_v43 = vadd.f32 1.0, %v15410_v13 }
0x3e4e   :  { %15411 = vrcp.f32 %v14920_v43  ;;  %v14932_v23 = vand.u32 2147483648, %v14920_v43  ;;  %vm14926_vm14 = vweird.f32 %v14920_v43  ;;  %v14930_v4 = vand.u32 2147483647, %v14920_v43 }
0x3e50   :  { %v14933_v28 = vor.u32 1.1754944e-38, %v14932_v23  ;;  %vm14931_vm1 = vcmp.eq.f32.partialorder %v14930_v4, 8.507059e+37 }
0x3e54   :  { %v15412_v42 = vpop.eup %15411 }
0x3e55   :  { %v14922_v26 = vmul.f32 %v15412_v42, %v14920_v43  ;;  %vm14927_vm13 = vweird.f32 %v15412_v42 }
0x3e56   :  { %vm14928_vm15 = vmor %vm14926_vm14, %vm14927_vm13 }
0x3e57   :  { %v14923_v46 = vsub.f32 1.0, %v14922_v26 }
0x3e59   :  { %v14924_v34 = vmul.f32 %v15412_v42, %v14923_v46 }
0x3e5b   :  { %v14925_v55 = vadd.f32 %v15412_v42, %v14924_v34 }
0x3e5d   :  { %v14929_v31 = vsel %vm14928_vm15, %v15412_v42, %v14925_v55 }
0x3e5e   :  { %v14934_v63 = vsel %vm14931_vm1, %v14933_v28, %v14929_v31 }
0x3e5f   :  { %v14937_v17 = vmul.f32 %v14934_v63, %v18053_v20 }
0x3ea4   :  { %v14940_v53 = vpop.permute.xlu2 %14939 }
0x3ea5   :  { %v14942_v36 = vmul.f32 %v14940_v53, %v14934_v63 }
0x3ea7   :  { %14944 = vrot.lane.b32.xlu0 %v14942_v36, %s15560_s2 }
0x3f19   :  { %v14945_v18 = vpop.permute.xlu0 %14944 }
0x3f1a   :  { %v14947_v54 = vadd.f32 %v14945_v18, %v14937_v17 }
0x3f1c   :  { %15413 = vtanh.f32 %v14947_v54 }
0x3f22   :  { %v15414_v41 = vpop.eup %15413 }
0x3f23   :  { %14950 = vrot.lane.b32.xlu1 %v15414_v41, %s15558_s16 }
0x3f95   :  { %v14951_v16 = vpop.permute.xlu1 %14950 }
0x3f96   :  { %v14953_v58 = vmul.f32 %v14951_v16, %v14934_v63 }
0x3f98   :  { %14955 = vrot.lane.b32.xlu2 %v14953_v58, %s15561_s15 }
0x3ff2   :  { %v14956_v44 = vpop.permute.xlu2 %14955 }
0x3ff3   :  { %14958 = vst.msk [vmem:[%s18096_s13 + $0x78] sm:$0xff] %vm161_vm0, %v14956_v44 }
0x3ff4   :  { %14963 = vsyncpa [#allocation3], 1 }
0x3ff5   :  { %14964 = vsyncpa [#allocation5], 1 }
0x3ff6   :  { %14965 = vsyncpa [#allocation8], 1 }

</bundles_post_ra>
